<compile_context>
chip_gen: v5e
topology: v5e:2x2
jax: 0.10.0
libtpu: 0.0.40
codegen_flags: <defaults>
</compile_context>

<pallas_src>
import functools

import jax
import jax.numpy as jnp
from jax.experimental import pallas as pl
from jax.experimental.pallas import tpu as pltpu


# --------------------------------------------------------------------------- #
# Fused kernel: attention + dynamic conv for one batch element.
# --------------------------------------------------------------------------- #
def _ede_fused_kernel(x_ref, w1d_ref, wout_ref, wk_ref, w_ref, out_ref, *,
                      ks, pad, h, w, ho, wo, stride, dilation, kernel_num):
    """
    x_ref   : (1, H, W, C)          unpadded NHWC activation block (VMEM, f32)
    w1d_ref : (3,)                  Conv1d(1,1,3) taps (SMEM scalars)
    wout_ref: (C, Cout)             out-channel 1x1 conv weight (VMEM, f32)
    wk_ref  : (C, KN)               kernel-attention 1x1 conv weight (VMEM, f32)
    w_ref   : (KN, ks*ks*C, Cout)   dynamic weight, rows (kh, kw, cin)-ordered (bf16)
    out_ref : (1, Cout, Ho*Wo)      transposed, lane-dense output block (f32)
    """
    c = x_ref.shape[3]
    xb = x_ref[0]                                                    # (H, W, C) f32

    # ---------------- attention branch (tiny, fully fused) ------------------ #
    # AdaptiveAvgPool2d(1): mean over the (unpadded) spatial region.
    pooled = jnp.sum(xb.reshape(h * w, c), axis=0, keepdims=True) * (1.0 / float(h * w))  # (1, C)

    # Conv1d(1, 1, kernel=3, padding=1, bias=False) along channels, expressed as
    # three shifted copies (no (C,C) band matrix, no extra HBM DMA).
    t0 = w1d_ref[0]
    t1 = w1d_ref[1]
    t2 = w1d_ref[2]
    zero = jnp.zeros((1, 1), jnp.float32)
    if c > 1:
        p_left = jnp.concatenate([zero, pooled[:, :c - 1]], axis=1)   # p[i-1], 0 at i=0
        p_right = jnp.concatenate([pooled[:, 1:], zero], axis=1)      # p[i+1], 0 at i=C-1
    else:
        p_left = jnp.zeros_like(pooled)
        p_right = jnp.zeros_like(pooled)
    y = t0 * p_left + t1 * pooled + t2 * p_right                      # (1, C)

    in_att = jax.nn.sigmoid(y)                                                      # (1, C)
    out_att = jax.nn.sigmoid(
        jnp.dot(y, wout_ref[...], preferred_element_type=jnp.float32))              # (1, Cout)
    kern_att = jax.nn.softmax(
        jnp.dot(y, wk_ref[...], preferred_element_type=jnp.float32), axis=-1)       # (1, KN)

    # ------- aggregate dynamic weight (f32 accumulation over bf16 storage) -- #
    agg = kern_att[:, 0:1] * w_ref[0].astype(jnp.float32)             # (ks*ks*C, Cout)
    for n in range(1, kernel_num):
        agg = agg + kern_att[:, n:n + 1] * w_ref[n].astype(jnp.float32)

    # Fold BOTH attentions into the weight (the conv is linear in W):
    #   rows (kh,kw,cin)-ordered  <- in-channel attention  (no (H,W,C) VPU pass)
    #   cols (cout)               <- out-channel attention (no post-conv scale)
    in_att_col = in_att.T                                              # (C, 1)
    in_att_rows = jnp.concatenate([in_att_col] * (ks * ks), axis=0)    # (ks*ks*C, 1)
    agg = agg * in_att_rows * out_att                                  # (ks*ks*C, Cout) f32
    agg_bf = agg.astype(jnp.bfloat16)

    # --------------------------- dynamic conv ------------------------------- #
    # bf16 activations straight into im2col; attention already lives in the weight.
    xb_bf = xb.astype(jnp.bfloat16)                                    # (H, W, C) bf16
    if pad > 0:
        # In-kernel zero halo (replaces the wrapper-side jnp.pad HBM round trip).
        zh = jnp.zeros((pad, w, c), jnp.bfloat16)
        xb_bf = jnp.concatenate([zh, xb_bf, zh], axis=0)               # (Hp, W, C)
        zw = jnp.zeros((h + 2 * pad, pad, c), jnp.bfloat16)
        xb_bf = jnp.concatenate([zw, xb_bf, zw], axis=1)               # (Hp, Wp, C)

    def window(kh, kw):
        h0 = kh * dilation
        w0 = kw * dilation
        return xb_bf[h0:h0 + (ho - 1) * stride + 1:stride,
                     w0:w0 + (wo - 1) * stride + 1:stride, :]          # (Ho, Wo, C) bf16

    if c % 128 == 0:
        # Lane-aligned case: one big-contraction bf16 MXU matmul, K = ks*ks*C.
        cols = [window(kh, kw) for kh in range(ks) for kw in range(ks)]
        x_col = jnp.concatenate(cols, axis=2).reshape(ho * wo, ks * ks * c)
        out2d = jnp.dot(x_col, agg_bf, preferred_element_type=jnp.float32)  # (Ho*Wo, Cout)
    else:
        # C not a multiple of 128: accumulate per-tap matmuls in f32 instead of a
        # lane-axis concatenate (avoids cross-lane relayouts + an extra big temp).
        out2d = None
        tap = 0
        for kh in range(ks):
            for kw in range(ks):
                win2d = window(kh, kw).reshape(ho * wo, c)
                part = jnp.dot(win2d, agg_bf[tap * c:(tap + 1) * c, :],
                               preferred_element_type=jnp.float32)
                out2d = part if out2d is None else out2d + part
                tap += 1

    # Transposed, lane-dense store: (Cout, Ho*Wo).  The wrapper only reshapes,
    # so there is no output-side NHWC->NCHW HBM transpose.
    out_ref[0] = out2d.T.astype(out_ref.dtype)


# --------------------------------------------------------------------------- #
# Wrapper module
# --------------------------------------------------------------------------- #
class EDEPallas:
    def __init__(self, in_planes, out_planes, kernel_num=1, kernel_size=3,
                 stride=1, padding=0, groups=1, dilation=1, *, key):
        if groups != 1:
            # TODO(synk): grouped convolution (groups > 1) not implemented.
            raise NotImplementedError("groups != 1 not supported")
        self.in_planes = in_planes
        self.out_planes = out_planes
        self.kernel_num = kernel_num
        self.kernel_size = kernel_size
        self.stride = stride
        self.padding = padding
        self.dilation = dilation
        self.groups = groups

        k1, k2, k3, k4 = jax.random.split(key, 4)
        # Conv1d(1, 1, 3, bias=False) weight -> (3,), PyTorch default uniform init.
        bound = 1.0 / (3.0 ** 0.5)
        self.w1d = jax.random.uniform(k1, (3,), jnp.float32, minval=-bound, maxval=bound)
        # out_channel_conv2d: Conv2d(C_in, C_out, 1), kaiming fan_out
        self.w_out = jax.random.normal(k2, (out_planes, in_planes), jnp.float32) * (2.0 / out_planes) ** 0.5
        # kernel_conv2d: Conv2d(C_in, KN, 1), kaiming fan_out
        self.w_k = jax.random.normal(k3, (kernel_num, in_planes), jnp.float32) * (2.0 / kernel_num) ** 0.5
        # dynamic conv weight: (KN, OUT, C_in/groups, k, k), kaiming fan_out per kernel
        std = (2.0 / (out_planes * kernel_size * kernel_size)) ** 0.5
        self.weight = jax.random.normal(
            k4, (kernel_num, out_planes, in_planes // groups, kernel_size, kernel_size),
            jnp.float32) * std

    # ------------------------------------------------------------------ #
    def __call__(self, x_nchw):
        b, c, h, w = x_nchw.shape
        c_out, kn, ks = self.out_planes, self.kernel_num, self.kernel_size
        pad, stride, dil = self.padding, self.stride, self.dilation

        # TODO(synk): accept/produce NHWC directly from the surrounding model to
        # drop this input-side transpose (a full HBM round trip) as well.
        x = jnp.transpose(x_nchw, (0, 2, 3, 1)).astype(jnp.float32)      # NHWC, unpadded

        hp, wp = h + 2 * pad, w + 2 * pad
        ho = (hp - dil * (ks - 1) - 1) // stride + 1
        wo = (wp - dil * (ks - 1) - 1) // stride + 1

        # (KN, OUT, Cin, kh, kw) -> (KN, kh, kw, Cin, OUT) -> (KN, kh*kw*Cin, OUT)
        # so the rows of the flattened weight match the im2col column order.
        # Stored bf16 in HBM (halves weight DMA + VMEM residency); aggregation and
        # attention folds happen in f32 inside the kernel.
        w_flat = (jnp.transpose(self.weight, (0, 3, 4, 2, 1))
                  .reshape(kn, ks * ks * c, c_out).astype(jnp.bfloat16))

        kernel = functools.partial(
            _ede_fused_kernel, ks=ks, pad=pad, h=h, w=w, ho=ho, wo=wo,
            stride=stride, dilation=dil, kernel_num=kn)

        # VMEM cap derived from the actual hardware (v5e/v6e: 128 MiB, v7x: 64 MiB)
        # rather than a fixed clamp; leave 25% headroom for compiler scratch.
        try:
            info = pltpu.get_tpu_info()
            vmem_cap = int(getattr(info, "vmem_capacity_bytes", 128 * 1024 * 1024))
        except Exception:
            vmem_cap = 128 * 1024 * 1024
        vmem_limit = int(0.75 * vmem_cap)

        # Grid-invariant inputs (w1d/w_out/w_k/w_flat) use constant index_maps, so
        # their DMA happens once across the batch grid.
        out2 = pl.pallas_call(
            kernel,
            grid=(b,),
            in_specs=[
                pl.BlockSpec((1, h, w, c), lambda i: (i, 0, 0, 0)),
                pl.BlockSpec(memory_space=pltpu.MemorySpace.SMEM),       # conv1d taps
                pl.BlockSpec((c, c_out), lambda i: (0, 0)),
                pl.BlockSpec((c, kn), lambda i: (0, 0)),
                pl.BlockSpec((kn, ks * ks * c, c_out), lambda i: (0, 0, 0)),
            ],
            out_specs=pl.BlockSpec((1, c_out, ho * wo), lambda i: (i, 0, 0)),
            out_shape=jax.ShapeDtypeStruct((b, c_out, ho * wo), jnp.float32),
            compiler_params=pltpu.CompilerParams(
                dimension_semantics=("parallel",),
                vmem_limit_bytes=vmem_limit),
        )(x, self.w1d, self.w_out.T, self.w_k.T, w_flat)

        # (B, Cout, Ho*Wo) -> (B, Cout, Ho, Wo): pure reshape, already NCHW.
        return out2.reshape(b, c_out, ho, wo)

    # Pure-JAX reference mirroring the PyTorch forward (NCHW), for validation.
    def reference(self, x):
        b, c, h, w = x.shape
        pooled = jnp.mean(x, axis=(2, 3))                                        # (B, C)
        pp = jnp.pad(pooled, ((0, 0), (1, 1)))
        y = (self.w1d[0] * pp[:, :c] + self.w1d[1] * pp[:, 1:c + 1]
             + self.w1d[2] * pp[:, 2:c + 2])                                     # (B, C)
        in_att = jax.nn.sigmoid(y)
        out_att = jax.nn.sigmoid(y @ self.w_out.T)                               # (B, OUT)
        kern_att = jax.nn.softmax(y @ self.w_k.T, axis=1)                        # (B, KN)
        agg = jnp.einsum('bn,noikl->boikl', kern_att, self.weight)               # (B, OUT, C, k, k)
        xs = x * in_att[:, :, None, None]
        outs = []
        for bi in range(b):
            o = jax.lax.conv_general_dilated(
                xs[bi:bi + 1], agg[bi],
                window_strides=(self.stride, self.stride),
                padding=[(self.padding, self.padding)] * 2,
                rhs_dilation=(self.dilation, self.dilation),
                dimension_numbers=('NCHW', 'OIHW', 'NCHW'))
            outs.append(o)
        return jnp.concatenate(outs, axis=0) * out_att[:, :, None, None]


if __name__ == "__main__":
    B, C_IN, C_OUT, H, W = 2, 4, 8, 16, 16
    KN, KS = 2, 3

    key = jax.random.PRNGKey(0)
    kx, kp = jax.random.split(key)
    x = jax.random.normal(kx, (B, C_IN, H, W), jnp.float32)

    # Config 1: padding=0 (matches the original toy check).
    ede = EDEPallas(C_IN, C_OUT, kernel_num=KN, kernel_size=KS,
                    stride=1, padding=0, groups=1, dilation=1, key=kp)
    out = jax.block_until_ready(ede(x))
    ref = ede.reference(x)
    assert out.shape == ref.shape == (B, C_OUT, H - KS + 1, W - KS + 1)
    # Tolerance accounts for the bf16 MXU matmul (f32 accumulation) in the kernel.
    assert jnp.allclose(out, ref, atol=1e-2, rtol=1e-2), float(jnp.max(jnp.abs(out - ref)))

    # Config 2: padding=1 exercises the in-kernel zero-halo path.
    ede_p = EDEPallas(C_IN, C_OUT, kernel_num=KN, kernel_size=KS,
                      stride=1, padding=1, groups=1, dilation=1, key=kp)
    out_p = jax.block_until_ready(ede_p(x))
    ref_p = ede_p.reference(x)
    assert out_p.shape == ref_p.shape == (B, C_OUT, H, W)
    assert jnp.allclose(out_p, ref_p, atol=1e-2, rtol=1e-2), float(jnp.max(jnp.abs(out_p - ref_p)))

    print("KERNEL_OK")
</pallas_src>

<mosaic_0001>
module attributes {stable_mosaic.version = 11 : i64} {
  func.func @_ede_fused_kernel(%arg0: i32, %arg1: memref<1x16x16x4xf32, #tpu.memory_space<vmem>>, %arg2: memref<3xf32, #tpu.memory_space<smem>>, %arg3: memref<4x8xf32, #tpu.memory_space<vmem>>, %arg4: memref<4x2xf32, #tpu.memory_space<vmem>>, %arg5: memref<2x36x8xbf16, #tpu.memory_space<vmem>>, %arg6: memref<1x8x196xf32, #tpu.memory_space<vmem>>) attributes {dimension_semantics = [#tpu.dimension_semantics<parallel>], iteration_bounds = array<i64: 2>, scalar_prefetch = 0 : i64, scratch_operands = 0 : i64, tpu.core_type = #tpu.core_type<tc>, window_params = [{transform_indices = @transform_0, window_bounds = array<i64: 1, 16, 16, 4>}, {transform_indices = @transform_1, window_bounds = array<i64: 3>}, {pipeline_mode = #tpu.pipeline_mode<synchronous>, transform_indices = @transform_2, window_bounds = array<i64: 4, 8>}, {pipeline_mode = #tpu.pipeline_mode<synchronous>, transform_indices = @transform_3, window_bounds = array<i64: 4, 2>}, {pipeline_mode = #tpu.pipeline_mode<synchronous>, transform_indices = @transform_4, window_bounds = array<i64: 2, 36, 8>}, {transform_indices = @transform_5, window_bounds = array<i64: 1, 8, 196>}]} {
    %c0 = arith.constant 0 : index
    %c0_0 = arith.constant 0 : index
    %c0_1 = arith.constant 0 : index
    %c0_2 = arith.constant 0 : index
    %0 = vector.load %arg1[%c0, %c0_0, %c0_1, %c0_2] : memref<1x16x16x4xf32, #tpu.memory_space<vmem>>, vector<1x16x16x4xf32>
    %1 = vector.shape_cast %0 : vector<1x16x16x4xf32> to vector<16x16x4xf32>
    %2 = vector.shape_cast %1 : vector<16x16x4xf32> to vector<256x4xf32>
    %cst = arith.constant dense<0.000000e+00> : vector<4xf32>
    %3 = vector.multi_reduction <add>, %2, %cst [0] : vector<256x4xf32> to vector<4xf32>
    %4 = vector.shape_cast %3 : vector<4xf32> to vector<1x4xf32>
    %cst_3 = arith.constant 3.906250e-03 : f32
    %5 = vector.broadcast %cst_3 : f32 to vector<1x4xf32>
    %6 = arith.mulf %4, %5 : vector<1x4xf32>
    %c0_4 = arith.constant 0 : index
    %7 = memref.load %arg2[%c0_4] : memref<3xf32, #tpu.memory_space<smem>>
    %c1 = arith.constant 1 : index
    %8 = memref.load %arg2[%c1] : memref<3xf32, #tpu.memory_space<smem>>
    %c2 = arith.constant 2 : index
    %9 = memref.load %arg2[%c2] : memref<3xf32, #tpu.memory_space<smem>>
    %cst_5 = arith.constant 0.000000e+00 : f32
    %10 = vector.broadcast %cst_5 : f32 to vector<1x1xf32>
    %11 = vector.extract_strided_slice %6 {offsets = [0, 0], sizes = [1, 3], strides = [1, 1]} : vector<1x4xf32> to vector<1x3xf32>
    %12 = tpu.concatenate %10, %11 in 1 : vector<1x1xf32>, vector<1x3xf32> -> vector<1x4xf32>
    %13 = vector.extract_strided_slice %6 {offsets = [0, 1], sizes = [1, 3], strides = [1, 1]} : vector<1x4xf32> to vector<1x3xf32>
    %14 = tpu.concatenate %13, %10 in 1 : vector<1x3xf32>, vector<1x1xf32> -> vector<1x4xf32>
    %15 = vector.broadcast %7 : f32 to vector<1x4xf32>
    %16 = arith.mulf %15, %12 : vector<1x4xf32>
    %17 = vector.broadcast %8 : f32 to vector<1x4xf32>
    %18 = arith.mulf %17, %6 : vector<1x4xf32>
    %19 = arith.addf %16, %18 : vector<1x4xf32>
    %20 = vector.broadcast %9 : f32 to vector<1x4xf32>
    %21 = arith.mulf %20, %14 : vector<1x4xf32>
    %22 = arith.addf %19, %21 : vector<1x4xf32>
    %23 = arith.negf %22 : vector<1x4xf32>
    %24 = math.exp %23 : vector<1x4xf32>
    %cst_6 = arith.constant 1.000000e+00 : f32
    %25 = vector.broadcast %cst_6 : f32 to vector<1x4xf32>
    %26 = arith.addf %25, %24 : vector<1x4xf32>
    %27 = arith.divf %25, %26 : vector<1x4xf32>
    %c0_7 = arith.constant 0 : index
    %c0_8 = arith.constant 0 : index
    %28 = vector.load %arg3[%c0_7, %c0_8] : memref<4x8xf32, #tpu.memory_space<vmem>>, vector<4x8xf32>
    %cst_9 = arith.constant dense<0.000000e+00> : vector<1x8xf32>
    %29 = tpu.matmul %22, %28, %cst_9 {dimension_numbers = #tpu.dot_dimension_numbers<[1], [0], [0], [1], [0, 0, 1, 1], [], []>} : vector<1x4xf32>, vector<4x8xf32>, vector<1x8xf32> -> vector<1x8xf32>
    %30 = arith.negf %29 : vector<1x8xf32>
    %31 = math.exp %30 : vector<1x8xf32>
    %cst_10 = arith.constant 1.000000e+00 : f32
    %32 = vector.broadcast %cst_10 : f32 to vector<1x8xf32>
    %33 = arith.addf %32, %31 : vector<1x8xf32>
    %34 = arith.divf %32, %33 : vector<1x8xf32>
    %c0_11 = arith.constant 0 : index
    %c0_12 = arith.constant 0 : index
    %35 = vector.load %arg4[%c0_11, %c0_12] : memref<4x2xf32, #tpu.memory_space<vmem>>, vector<4x2xf32>
    %cst_13 = arith.constant dense<0.000000e+00> : vector<1x2xf32>
    %36 = tpu.matmul %22, %35, %cst_13 {dimension_numbers = #tpu.dot_dimension_numbers<[1], [0], [0], [1], [0, 0, 1, 1], [], []>} : vector<1x4xf32>, vector<4x2xf32>, vector<1x2xf32> -> vector<1x2xf32>
    %cst_14 = arith.constant dense<0xFF800000> : vector<1xf32>
    %37 = vector.multi_reduction <maximumf>, %36, %cst_14 [1] : vector<1x2xf32> to vector<1xf32>
    %cst_15 = arith.constant 0xFF800000 : f32
    %38 = vector.broadcast %cst_15 : f32 to vector<1xf32>
    %39 = arith.maximumf %38, %37 : vector<1xf32>
    %40 = vector.shape_cast %39 : vector<1xf32> to vector<1x1xf32>
    %41 = vector.broadcast %40 : vector<1x1xf32> to vector<1x2xf32>
    %42 = arith.subf %36, %41 : vector<1x2xf32>
    %43 = math.exp %42 : vector<1x2xf32>
    %cst_16 = arith.constant dense<0.000000e+00> : vector<1xf32>
    %44 = vector.multi_reduction <add>, %43, %cst_16 [1] : vector<1x2xf32> to vector<1xf32>
    %45 = vector.shape_cast %44 : vector<1xf32> to vector<1x1xf32>
    %46 = vector.broadcast %45 : vector<1x1xf32> to vector<1x2xf32>
    %47 = arith.divf %43, %46 : vector<1x2xf32>
    %48 = vector.extract_strided_slice %47 {offsets = [0, 0], sizes = [1, 1], strides = [1, 1]} : vector<1x2xf32> to vector<1x1xf32>
    %c0_17 = arith.constant 0 : index
    %c0_18 = arith.constant 0 : index
    %c0_19 = arith.constant 0 : index
    %49 = vector.load %arg5[%c0_17, %c0_18, %c0_19] : memref<2x36x8xbf16, #tpu.memory_space<vmem>>, vector<1x36x8xbf16>
    %50 = vector.shape_cast %49 : vector<1x36x8xbf16> to vector<36x8xbf16>
    %51 = arith.extf %50 : vector<36x8xbf16> to vector<36x8xf32>
    %52 = vector.broadcast %48 : vector<1x1xf32> to vector<36x8xf32>
    %53 = arith.mulf %52, %51 : vector<36x8xf32>
    %54 = vector.extract_strided_slice %47 {offsets = [0, 1], sizes = [1, 1], strides = [1, 1]} : vector<1x2xf32> to vector<1x1xf32>
    %c1_20 = arith.constant 1 : index
    %c0_21 = arith.constant 0 : index
    %c0_22 = arith.constant 0 : index
    %55 = vector.load %arg5[%c1_20, %c0_21, %c0_22] : memref<2x36x8xbf16, #tpu.memory_space<vmem>>, vector<1x36x8xbf16>
    %56 = vector.shape_cast %55 : vector<1x36x8xbf16> to vector<36x8xbf16>
    %57 = arith.extf %56 : vector<36x8xbf16> to vector<36x8xf32>
    %58 = vector.broadcast %54 : vector<1x1xf32> to vector<36x8xf32>
    %59 = arith.mulf %58, %57 : vector<36x8xf32>
    %60 = arith.addf %53, %59 : vector<36x8xf32>
    %61 = tpu.transpose %27, [1, 0] : vector<1x4xf32> -> vector<4x1xf32>
    %62 = tpu.concatenate %61, %61, %61, %61, %61, %61, %61, %61, %61 in 0 : vector<4x1xf32>, vector<4x1xf32>, vector<4x1xf32>, vector<4x1xf32>, vector<4x1xf32>, vector<4x1xf32>, vector<4x1xf32>, vector<4x1xf32>, vector<4x1xf32> -> vector<36x1xf32>
    %63 = vector.broadcast %62 : vector<36x1xf32> to vector<36x8xf32>
    %64 = arith.mulf %60, %63 : vector<36x8xf32>
    %65 = vector.broadcast %34 : vector<1x8xf32> to vector<36x8xf32>
    %66 = arith.mulf %64, %65 : vector<36x8xf32>
    %67 = arith.truncf %66 : vector<36x8xf32> to vector<36x8xbf16>
    %68 = arith.truncf %1 : vector<16x16x4xf32> to vector<16x16x4xbf16>
    %69 = vector.extract_strided_slice %68 {offsets = [0, 0, 0], sizes = [14, 14, 4], strides = [1, 1, 1]} : vector<16x16x4xbf16> to vector<14x14x4xbf16>
    %70 = vector.shape_cast %69 : vector<14x14x4xbf16> to vector<196x4xbf16>
    %71 = vector.extract_strided_slice %67 {offsets = [0, 0], sizes = [4, 8], strides = [1, 1]} : vector<36x8xbf16> to vector<4x8xbf16>
    %cst_23 = arith.constant dense<0.000000e+00> : vector<196x8xf32>
    %72 = tpu.matmul %70, %71, %cst_23 {dimension_numbers = #tpu.dot_dimension_numbers<[1], [0], [0], [1], [0, 0, 1, 1], [], []>} : vector<196x4xbf16>, vector<4x8xbf16>, vector<196x8xf32> -> vector<196x8xf32>
    %73 = vector.extract_strided_slice %68 {offsets = [0, 1, 0], sizes = [14, 14, 4], strides = [1, 1, 1]} : vector<16x16x4xbf16> to vector<14x14x4xbf16>
    %74 = vector.shape_cast %73 : vector<14x14x4xbf16> to vector<196x4xbf16>
    %75 = vector.extract_strided_slice %67 {offsets = [4, 0], sizes = [4, 8], strides = [1, 1]} : vector<36x8xbf16> to vector<4x8xbf16>
    %cst_24 = arith.constant dense<0.000000e+00> : vector<196x8xf32>
    %76 = tpu.matmul %74, %75, %cst_24 {dimension_numbers = #tpu.dot_dimension_numbers<[1], [0], [0], [1], [0, 0, 1, 1], [], []>} : vector<196x4xbf16>, vector<4x8xbf16>, vector<196x8xf32> -> vector<196x8xf32>
    %77 = arith.addf %72, %76 : vector<196x8xf32>
    %78 = vector.extract_strided_slice %68 {offsets = [0, 2, 0], sizes = [14, 14, 4], strides = [1, 1, 1]} : vector<16x16x4xbf16> to vector<14x14x4xbf16>
    %79 = vector.shape_cast %78 : vector<14x14x4xbf16> to vector<196x4xbf16>
    %80 = vector.extract_strided_slice %67 {offsets = [8, 0], sizes = [4, 8], strides = [1, 1]} : vector<36x8xbf16> to vector<4x8xbf16>
    %cst_25 = arith.constant dense<0.000000e+00> : vector<196x8xf32>
    %81 = tpu.matmul %79, %80, %cst_25 {dimension_numbers = #tpu.dot_dimension_numbers<[1], [0], [0], [1], [0, 0, 1, 1], [], []>} : vector<196x4xbf16>, vector<4x8xbf16>, vector<196x8xf32> -> vector<196x8xf32>
    %82 = arith.addf %77, %81 : vector<196x8xf32>
    %83 = vector.extract_strided_slice %68 {offsets = [1, 0, 0], sizes = [14, 14, 4], strides = [1, 1, 1]} : vector<16x16x4xbf16> to vector<14x14x4xbf16>
    %84 = vector.shape_cast %83 : vector<14x14x4xbf16> to vector<196x4xbf16>
    %85 = vector.extract_strided_slice %67 {offsets = [12, 0], sizes = [4, 8], strides = [1, 1]} : vector<36x8xbf16> to vector<4x8xbf16>
    %cst_26 = arith.constant dense<0.000000e+00> : vector<196x8xf32>
    %86 = tpu.matmul %84, %85, %cst_26 {dimension_numbers = #tpu.dot_dimension_numbers<[1], [0], [0], [1], [0, 0, 1, 1], [], []>} : vector<196x4xbf16>, vector<4x8xbf16>, vector<196x8xf32> -> vector<196x8xf32>
    %87 = arith.addf %82, %86 : vector<196x8xf32>
    %88 = vector.extract_strided_slice %68 {offsets = [1, 1, 0], sizes = [14, 14, 4], strides = [1, 1, 1]} : vector<16x16x4xbf16> to vector<14x14x4xbf16>
    %89 = vector.shape_cast %88 : vector<14x14x4xbf16> to vector<196x4xbf16>
    %90 = vector.extract_strided_slice %67 {offsets = [16, 0], sizes = [4, 8], strides = [1, 1]} : vector<36x8xbf16> to vector<4x8xbf16>
    %cst_27 = arith.constant dense<0.000000e+00> : vector<196x8xf32>
    %91 = tpu.matmul %89, %90, %cst_27 {dimension_numbers = #tpu.dot_dimension_numbers<[1], [0], [0], [1], [0, 0, 1, 1], [], []>} : vector<196x4xbf16>, vector<4x8xbf16>, vector<196x8xf32> -> vector<196x8xf32>
    %92 = arith.addf %87, %91 : vector<196x8xf32>
    %93 = vector.extract_strided_slice %68 {offsets = [1, 2, 0], sizes = [14, 14, 4], strides = [1, 1, 1]} : vector<16x16x4xbf16> to vector<14x14x4xbf16>
    %94 = vector.shape_cast %93 : vector<14x14x4xbf16> to vector<196x4xbf16>
    %95 = vector.extract_strided_slice %67 {offsets = [20, 0], sizes = [4, 8], strides = [1, 1]} : vector<36x8xbf16> to vector<4x8xbf16>
    %cst_28 = arith.constant dense<0.000000e+00> : vector<196x8xf32>
    %96 = tpu.matmul %94, %95, %cst_28 {dimension_numbers = #tpu.dot_dimension_numbers<[1], [0], [0], [1], [0, 0, 1, 1], [], []>} : vector<196x4xbf16>, vector<4x8xbf16>, vector<196x8xf32> -> vector<196x8xf32>
    %97 = arith.addf %92, %96 : vector<196x8xf32>
    %98 = vector.extract_strided_slice %68 {offsets = [2, 0, 0], sizes = [14, 14, 4], strides = [1, 1, 1]} : vector<16x16x4xbf16> to vector<14x14x4xbf16>
    %99 = vector.shape_cast %98 : vector<14x14x4xbf16> to vector<196x4xbf16>
    %100 = vector.extract_strided_slice %67 {offsets = [24, 0], sizes = [4, 8], strides = [1, 1]} : vector<36x8xbf16> to vector<4x8xbf16>
    %cst_29 = arith.constant dense<0.000000e+00> : vector<196x8xf32>
    %101 = tpu.matmul %99, %100, %cst_29 {dimension_numbers = #tpu.dot_dimension_numbers<[1], [0], [0], [1], [0, 0, 1, 1], [], []>} : vector<196x4xbf16>, vector<4x8xbf16>, vector<196x8xf32> -> vector<196x8xf32>
    %102 = arith.addf %97, %101 : vector<196x8xf32>
    %103 = vector.extract_strided_slice %68 {offsets = [2, 1, 0], sizes = [14, 14, 4], strides = [1, 1, 1]} : vector<16x16x4xbf16> to vector<14x14x4xbf16>
    %104 = vector.shape_cast %103 : vector<14x14x4xbf16> to vector<196x4xbf16>
    %105 = vector.extract_strided_slice %67 {offsets = [28, 0], sizes = [4, 8], strides = [1, 1]} : vector<36x8xbf16> to vector<4x8xbf16>
    %cst_30 = arith.constant dense<0.000000e+00> : vector<196x8xf32>
    %106 = tpu.matmul %104, %105, %cst_30 {dimension_numbers = #tpu.dot_dimension_numbers<[1], [0], [0], [1], [0, 0, 1, 1], [], []>} : vector<196x4xbf16>, vector<4x8xbf16>, vector<196x8xf32> -> vector<196x8xf32>
    %107 = arith.addf %102, %106 : vector<196x8xf32>
    %108 = vector.extract_strided_slice %68 {offsets = [2, 2, 0], sizes = [14, 14, 4], strides = [1, 1, 1]} : vector<16x16x4xbf16> to vector<14x14x4xbf16>
    %109 = vector.shape_cast %108 : vector<14x14x4xbf16> to vector<196x4xbf16>
    %110 = vector.extract_strided_slice %67 {offsets = [32, 0], sizes = [4, 8], strides = [1, 1]} : vector<36x8xbf16> to vector<4x8xbf16>
    %cst_31 = arith.constant dense<0.000000e+00> : vector<196x8xf32>
    %111 = tpu.matmul %109, %110, %cst_31 {dimension_numbers = #tpu.dot_dimension_numbers<[1], [0], [0], [1], [0, 0, 1, 1], [], []>} : vector<196x4xbf16>, vector<4x8xbf16>, vector<196x8xf32> -> vector<196x8xf32>
    %112 = arith.addf %107, %111 : vector<196x8xf32>
    %113 = tpu.transpose %112, [1, 0] : vector<196x8xf32> -> vector<8x196xf32>
    %c0_32 = arith.constant 0 : index
    %c0_33 = arith.constant 0 : index
    %c0_34 = arith.constant 0 : index
    %114 = vector.load %arg6[%c0_32, %c0_33, %c0_34] : memref<1x8x196xf32, #tpu.memory_space<vmem>>, vector<1x8x196xf32>
    %115 = vector.shape_cast %114 : vector<1x8x196xf32> to vector<8x196xf32>
    %116 = vector.shape_cast %113 : vector<8x196xf32> to vector<1x8x196xf32>
    tpu.vector_store %arg6[%c0_32, %c0_33, %c0_34], %116 {strides = array<i32>} : memref<1x8x196xf32, #tpu.memory_space<vmem>>, vector<1x8x196xf32>,
    return
  }
  func.func @transform_0(%arg0: i32) -> (i32, i32, i32, i32) {
    %c0_i32 = arith.constant 0 : i32
    %c0_i32_0 = arith.constant 0 : i32
    %c0_i32_1 = arith.constant 0 : i32
    %c0_i32_2 = arith.constant 0 : i32
    return %arg0, %c0_i32, %c0_i32_0, %c0_i32_1 : i32, i32, i32, i32
  }
  func.func @transform_1(%arg0: i32) -> i32 {
    %c0_i32 = arith.constant 0 : i32
    %c0_i32_0 = arith.constant 0 : i32
    return %c0_i32 : i32
  }
  func.func @transform_2(%arg0: i32) -> (i32, i32) {
    %c0_i32 = arith.constant 0 : i32
    %c0_i32_0 = arith.constant 0 : i32
    %c0_i32_1 = arith.constant 0 : i32
    return %c0_i32, %c0_i32_0 : i32, i32
  }
  func.func @transform_3(%arg0: i32) -> (i32, i32) {
    %c0_i32 = arith.constant 0 : i32
    %c0_i32_0 = arith.constant 0 : i32
    %c0_i32_1 = arith.constant 0 : i32
    return %c0_i32, %c0_i32_0 : i32, i32
  }
  func.func @transform_4(%arg0: i32) -> (i32, i32, i32) {
    %c0_i32 = arith.constant 0 : i32
    %c0_i32_0 = arith.constant 0 : i32
    %c0_i32_1 = arith.constant 0 : i32
    %c0_i32_2 = arith.constant 0 : i32
    return %c0_i32, %c0_i32_0, %c0_i32_1 : i32, i32, i32
  }
  func.func @transform_5(%arg0: i32) -> (i32, i32, i32) {
    %c0_i32 = arith.constant 0 : i32
    %c0_i32_0 = arith.constant 0 : i32
    %c0_i32_1 = arith.constant 0 : i32
    return %arg0, %c0_i32, %c0_i32_0 : i32, i32, i32
  }
}

</mosaic_0001>

<bundles_post_ra>
// kernel: tpu_custom_call.1
= control target key start
LH: loop header
LB: loop body
LE: loop exit
PB: predicated region body
PF: predicated region fallthrough
CT: control target
= control target key end

     0   :  { %10 = vsyncpa [#allocation4], 0  ;;  %s8993_s0 = inlined_call_operand.vmem [shape: f32[2,16,16,4], index: 0, kind: input, shape index: {}]   ;;  %s8994_s1 = inlined_call_operand.vmem [shape: f32[3], index: 1, kind: input, shape index: {}]   ;;  %s8995_s2 = inlined_call_operand.vmem [shape: f32[4,8], index: 2, kind: input, shape index: {}]   ;;  %s8996_s3 = inlined_call_operand.vmem [shape: f32[4,2], index: 3, kind: input, shape index: {}]   ;;  %s8997_s4 = inlined_call_operand.vmem [shape: bf16[2,36,8], index: 4, kind: input, shape index: {}]   ;;  %s8998_s5 = inlined_call_operand.hbm [shape: f32[2,8,196], index: 5, kind: output, shape index: {}]  }
   0x1   :  { %11 = vsyncpa [#allocation3], 0 }
   0x2   :  { %13 = vsyncpa [#allocation3 + $0x1], 0  ;;  %s5276_s18 = smov 0   ;;  %s5278_s19 = smov 0  }
   0x3   :  { %s5280_s20 = smov 0   ;;  %s5282_s21 = smov 0  }
   0x4 LB: > { %s5297_s22 = sadd.s32 4294967295, %s5240_s21   ;;  %s4801_s23 = sadd.s32 4294967294, %s5240_s21   ;;  %s5240_s21 = sphi %s5282_s21, %s10757_s21   ;;  %s5236_s20 = sphi %s5280_s20, %s10756_s20   ;;  %s5232_s19 = sphi %s5278_s19, %s10755_s19   ;;  %s5228_s18 = sphi %s5276_s18, %s10754_s18  }
   0x5   : > { %s5301_s24 = sadd.s32 1, %s5240_s21   ;;  %s136_s25 = sadd.s32 1, %s5236_s20 }
   0x6   : > { %s133_s26 = ssub.s32 %s5240_s21, %s5301_s24  ;;  %p146_p0 = scmp.ne.s32.totalorder %s5236_s20, %s5232_s19 }
   0x7   : > { %p134_p1 = scmp.eq.s32.totalorder %s133_s26, 0  ;;  %p147_p2 = scmp.eq.s32.totalorder %s5297_s22, 1 }
   0x8   : > { %p152_p3 = scmp.ne.s32.totalorder %s5232_s19, %s5228_s18  ;;  %p153_p4 = scmp.eq.s32.totalorder %s4801_s23, 1 }
   0x9   : > { %s5312_s27 = scalar_select %p134_p1, %s5236_s20, %s136_s25  }
   0xa   : > { %p5314_p5 = por %p147_p2, %p146_p0  ;;  %p5318_p6 = por %p153_p4, %p152_p3 }
   0xb   : > { %p4802_p7 = scmp.ge.s32.totalorder %s5240_s21, 1  ;;  %p160_p8 = scmp.lt.s32.totalorder %s5240_s21, 3 }
   0xc   : > { %p5094_p9 = scmp.eq.s32.totalorder %s5297_s22, 0  ;;  %s172_s7 = sshll.u32 %s8994_s1, 4  ;;  %s173_s7 = int_to_ptr.vmem [resolvable:$true] %s172_s7 }
   0xd   : > { %p161_p10 = pnand %p4802_p7, %p160_p8  ;;  %s5242_s8 = smov [#allocation2]  }
   0xf   : > { %p5086_p11 = pneg %p161_p10  ;;  %202 = sbr.rel (%p161_p10) target bundleno = 2736 (0xab0), region = 40 }
  0x11   : > { %p5087_p12 = pnand %p5094_p9, %p5086_p11 }
  0x13   : > { %5089 = dma.vmem_to_smem (!%p5087_p12), %s173_s7, 16, %s5242_s8, [#allocation4]  }
  0x14   : > { %5219 = dma.done.wait (%p5094_p9), [#allocation4], 16  }
  0x15   : > { %5221 = vsyncadd (%p5094_p9), [#allocation4], 4294967280 }
  0x16   : > { %209 = sfence }
  0x17   : > { %p232_p13 = scmp.lt.s32.totalorder %s5297_s22, 1  ;;  %vm8999_vm0 = vcmask 31744   ;;  %vm676_vm1 = vcmask 1041409   ;;  %vm680_vm2 = vcmask 1042434   ;;  %vm684_vm3 = vcmask 1043459   ;;  %s5243_s14 = smov 1  }
  0x18   : > { %vm672_vm4 = vcmask 1040384   ;;  %vm1012_vm5 = vsmask.f32 256  ;;  %vm1013_vm6 = vsmask.f32 1284  ;;  %s5244_s15 = smov 127  }
  0x19   : > { %s233_s9 = scalar_select %p232_p13, %s5297_s22, 1  ;;  %vm1014_vm7 = vmor %vm1012_vm5, %vm1013_vm6  ;;  %vm1015_vm8 = vsmask.f32 2312  ;;  %vm1017_vm9 = vsmask.f32 3340 }
  0x1a   : > { %vm1019_vm10 = vsmask.f32 4368  ;;  %vm1016_vm11 = vmor %vm1014_vm7, %vm1015_vm8  ;;  %vm1021_vm12 = vsmask.f32 5396  ;;  %vm1023_vm14 = vsmask.f32 6424 }
  0x1b   : > { %s5057_s10 = sshll.u32 %s233_s9, 8  ;;  %vm1018_vm13 = vmor %vm1016_vm11, %vm1017_vm9  ;;  %vm1025_vm15 = vsmask.f32 7452  ;;  %s341_s16 = sld [smem:[#allocation2]]  ;;  %vm348_vm7 = vcmask 7168   ;;  %vm353_vm8 = vcmask 23552  }
  0x1c   : > { %s5333_s13 = scalar_lea.vmem %s8993_s0, %s5057_s10  ;;  %s4810_s17 = sld [smem:[#allocation2 + $0x1]]  ;;  %vm386_vm9 = vcmask 1043456  }
  0x1d   : > { %v5336_v0 = vld [vmem:[%s5333_s13] sm:$0xff]  ;;  %v5339_v1 = vld [vmem:[%s5333_s13 + $0x8] sm:$0xff]  ;;  %v5342_v2 = vld [vmem:[%s5333_s13 + $0x10] sm:$0xff]  ;;  %s4811_s23 = sld [smem:[#allocation2 + $0x2]]  ;;  %s5058_s10 = sshll.u32 %s5297_s22, 4 }
  0x1e   : > { %v5345_v3 = vld [vmem:[%s5333_s13 + $0x18] sm:$0xff]  ;;  %v271_v4 = vsel %vm8999_vm0, %v5336_v0, 0.0  ;;  %v272_v5 = vsel %vm8999_vm0, %v5339_v1, 0.0  ;;  %v274_v6 = vsel %vm8999_vm0, %v5342_v2, 0.0  ;;  %v5354_v7 = vld [vmem:[%s5333_s13 + $0x20] sm:$0xff]  ;;  %v5359_v10 = vld [vmem:[%s5333_s13 + $0x28] sm:$0xff] }
  0x1f   : > { %v273_v8 = vadd.f32 %v272_v5, %v271_v4  ;;  %v276_v9 = vsel %vm8999_vm0, %v5345_v3, 0.0  ;;  %v278_v12 = vsel %vm8999_vm0, %v5354_v7, 0.0  ;;  %v5364_v13 = vld [vmem:[%s5333_s13 + $0x30] sm:$0xff]  ;;  %v280_v15 = vsel %vm8999_vm0, %v5359_v10, 0.0  ;;  %v5369_v16 = vld [vmem:[%s5333_s13 + $0x38] sm:$0xff]  ;;  %v5374_v19 = vld [vmem:[%s5333_s13 + $0x40] sm:$0xff] }
  0x20   : > { %v282_v18 = vsel %vm8999_vm0, %v5364_v13, 0.0  ;;  %v284_v21 = vsel %vm8999_vm0, %v5369_v16, 0.0  ;;  %v5379_v22 = vld [vmem:[%s5333_s13 + $0x48] sm:$0xff]  ;;  %v286_v24 = vsel %vm8999_vm0, %v5374_v19, 0.0  ;;  %v5384_v25 = vld [vmem:[%s5333_s13 + $0x50] sm:$0xff]  ;;  %v5389_v28 = vld [vmem:[%s5333_s13 + $0x58] sm:$0xff] }
  0x21   : > { %v275_v11 = vadd.f32 %v274_v6, %v273_v8  ;;  %v288_v27 = vsel %vm8999_vm0, %v5379_v22, 0.0  ;;  %v290_v30 = vsel %vm8999_vm0, %v5384_v25, 0.0  ;;  %v5394_v31 = vld [vmem:[%s5333_s13 + $0x60] sm:$0xff]  ;;  %v292_v33 = vsel %vm8999_vm0, %v5389_v28, 0.0  ;;  %v5399_v34 = vld [vmem:[%s5333_s13 + $0x68] sm:$0xff]  ;;  %v5404_v37 = vld [vmem:[%s5333_s13 + $0x70] sm:$0xff] }
  0x22   : > { %v294_v36 = vsel %vm8999_vm0, %v5394_v31, 0.0  ;;  %v296_v39 = vsel %vm8999_vm0, %v5399_v34, 0.0  ;;  %v5409_v40 = vld [vmem:[%s5333_s13 + $0x78] sm:$0xff]  ;;  %v298_v42 = vsel %vm8999_vm0, %v5404_v37, 0.0  ;;  %v5414_v43 = vld [vmem:[%s5333_s13 + $0x80] sm:$0xff]  ;;  %v5419_v46 = vld [vmem:[%s5333_s13 + $0x88] sm:$0xff] }
  0x23   : > { %v277_v14 = vadd.f32 %v276_v9, %v275_v11  ;;  %v300_v45 = vsel %vm8999_vm0, %v5409_v40, 0.0  ;;  %v302_v48 = vsel %vm8999_vm0, %v5414_v43, 0.0  ;;  %v5424_v49 = vld [vmem:[%s5333_s13 + $0x90] sm:$0xff]  ;;  %v304_v51 = vsel %vm8999_vm0, %v5419_v46, 0.0  ;;  %v5429_v52 = vld [vmem:[%s5333_s13 + $0x98] sm:$0xff]  ;;  %v5434_v55 = vld [vmem:[%s5333_s13 + $0xa0] sm:$0xff] }
  0x24   : > { %v306_v54 = vsel %vm8999_vm0, %v5424_v49, 0.0  ;;  %v308_v57 = vsel %vm8999_vm0, %v5429_v52, 0.0  ;;  %v259_v58 = vld [vmem:[%s5333_s13 + $0xa8] sm:$0xff]  ;;  %v310_v60 = vsel %vm8999_vm0, %v5434_v55, 0.0  ;;  %v260_v61 = vld [vmem:[%s5333_s13 + $0xb0] sm:$0xff]  ;;  %v261_v4 = vld [vmem:[%s5333_s13 + $0xb8] sm:$0xff] }
  0x25   : > { %v279_v17 = vadd.f32 %v278_v12, %v277_v14  ;;  %v312_v63 = vsel %vm8999_vm0, %v259_v58, 0.0  ;;  %v314_v6 = vsel %vm8999_vm0, %v260_v61, 0.0  ;;  %v262_v8 = vld [vmem:[%s5333_s13 + $0xc0] sm:$0xff]  ;;  %v316_v11 = vsel %vm8999_vm0, %v261_v4, 0.0  ;;  %v263_v12 = vld [vmem:[%s5333_s13 + $0xc8] sm:$0xff]  ;;  %s5194_s26 = scalar_lea.hbm %s8998_s5, 32 }
  0x27   : > { %v281_v20 = vadd.f32 %v280_v15, %v279_v17  ;;  %v318_v15 = vsel %vm8999_vm0, %v262_v8, 0.0  ;;  %v264_v17 = vld [vmem:[%s5333_s13 + $0xd0] sm:$0xff] }
  0x29   : > { %v283_v23 = vadd.f32 %v282_v18, %v281_v20  ;;  %v320_v20 = vsel %vm8999_vm0, %v263_v12, 0.0 }
  0x2b   : > { %v285_v26 = vadd.f32 %v284_v21, %v283_v23  ;;  %v265_v21 = vld [vmem:[%s5333_s13 + $0xd8] sm:$0xff] }
  0x2d   : > { %v287_v29 = vadd.f32 %v286_v24, %v285_v26  ;;  %v322_v24 = vsel %vm8999_vm0, %v264_v17, 0.0  ;;  %v266_v26 = vld [vmem:[%s5333_s13 + $0xe0] sm:$0xff] }
  0x2f   : > { %v289_v32 = vadd.f32 %v288_v27, %v287_v29  ;;  %v324_v29 = vsel %vm8999_vm0, %v265_v21, 0.0 }
  0x31   : > { %v291_v35 = vadd.f32 %v290_v30, %v289_v32  ;;  %v267_v30 = vld [vmem:[%s5333_s13 + $0xe8] sm:$0xff] }
  0x33   : > { %v293_v38 = vadd.f32 %v292_v33, %v291_v35  ;;  %v326_v33 = vsel %vm8999_vm0, %v266_v26, 0.0  ;;  %v268_v35 = vld [vmem:[%s5333_s13 + $0xf0] sm:$0xff] }
  0x35   : > { %v295_v41 = vadd.f32 %v294_v36, %v293_v38  ;;  %v328_v38 = vsel %vm8999_vm0, %v267_v30, 0.0 }
  0x37   : > { %v297_v44 = vadd.f32 %v296_v39, %v295_v41  ;;  %v269_v39 = vld [vmem:[%s5333_s13 + $0xf8] sm:$0xff] }
  0x39   : > { %v299_v47 = vadd.f32 %v298_v42, %v297_v44  ;;  %v330_v42 = vsel %vm8999_vm0, %v268_v35, 0.0 }
  0x3b   : > { %v301_v50 = vadd.f32 %v300_v45, %v299_v47  ;;  %v332_v45 = vsel %vm8999_vm0, %v269_v39, 0.0  ;;  %vm1020_vm0 = vmor %vm1018_vm13, %vm1019_vm10  ;;  %vm9940_vm10 = vcmask 31744  }
  0x3c   : > { %vm1022_vm5 = vmor %vm1020_vm0, %vm1021_vm12  ;;  %vm453_vm12 = vcmask 8192  }
  0x3d   : > { %v303_v53 = vadd.f32 %v302_v48, %v301_v50  ;;  %vm1024_vm6 = vmor %vm1022_vm5, %vm1023_vm14 }
  0x3e   : > { %vm5538_vm0 = vmor %vm1024_vm6, %vm1025_vm15 }
  0x3f   : > { %v305_v56 = vadd.f32 %v304_v51, %v303_v53  ;;  %vm9942_vm11 = vmmov %vm9940_vm10 }
  0x41   : > { %v307_v59 = vadd.f32 %v306_v54, %v305_v56  ;;  %v5464_v56 = vpack.c.bf16 %v5336_v0, %v5336_v0 }
  0x43   : > { %v309_v62 = vadd.f32 %v308_v57, %v307_v59  ;;  %9427 = vst [vmem:[#allocation8_spill] sm:$0xff] %v5464_v56  ;;  %v5468_v57 = vpack.c.bf16 %v5339_v1, %v5339_v1 }
  0x45   : > { %v311_v5 = vadd.f32 %v310_v60, %v309_v62  ;;  %9428 = vst [vmem:[#allocation9_spill] sm:$0xff] %v5468_v57  ;;  %v644_v60 = vrot.slane %v5464_v56, 3  ;;  %v645_v61 = vrot.slane %v5468_v57, 3 }
  0x47   : > { %v313_v9 = vadd.f32 %v312_v63, %v311_v5  ;;  %v5476_v63 = vpack.c.bf16 %v5342_v2, %v5342_v2  ;;  %v677_v0 = vsel %vm676_vm1, %v5464_v56, %v644_v60  ;;  %v681_v1 = vsel %vm680_vm2, %v5464_v56, %v644_v60 }
  0x48   : > { %v685_v4 = vsel %vm684_vm3, %v5464_v56, %v644_v60  ;;  %v691_v5 = vsel %vm676_vm1, %v5468_v57, %v645_v61  ;;  %v5492_v8 = vrot.slane %v677_v0, 1  ;;  %v5498_v12 = vrot.slane %v681_v1, 2 }
  0x49   : > { %v315_v14 = vadd.f32 %v314_v6, %v313_v9  ;;  %9430 = vst [vmem:[#allocation11_spill] sm:$0xff] %v5476_v63  ;;  %v646_v2 = vrot.slane %v5476_v63, 3  ;;  %v5490_v6 = vsel %vm672_vm4, %v5464_v56, %v644_v60  ;;  %v694_v9 = vsel %vm680_vm2, %v5468_v57, %v645_v61 }
  0x4a   : > { %v5506_v17 = vsel %vm672_vm4, %v5468_v57, %v645_v61  ;;  %v1035_v26 = vshrl.u32 %v5492_v8, 16 }
  0x4b   : > { %v317_v18 = vadd.f32 %v316_v11, %v315_v14  ;;  %v970_v11 = vsel %vm684_vm3, %v5468_v57, %v645_v61  ;;  %v5500_v14 = vrot.slane %v685_v4, 3  ;;  %v1058_v39 = vshrl.u32 %v5506_v17, 16 }
  0x4c   : > { %v972_v21 = vrot.slane %v970_v11, 3  ;;  %v703_v60 = vsel %vm680_vm2, %v5476_v63, %v646_v2  ;;  %v706_v0 = vsel %vm684_vm3, %v5476_v63, %v646_v2 }
  0x4d   : > { %v319_v23 = vadd.f32 %v318_v15, %v317_v18  ;;  %v5502_v15 = vrot.slane %v691_v5, 1  ;;  %v5508_v18 = vrot.slane %v694_v9, 2  ;;  %v1048_v30 = vshll.u32 %v5500_v14, 16 }
  0x4e   : > { %v1051_v35 = vshrl.u32 %v5500_v14, 16  ;;  %v5567_v9 = vrot.slane %v703_v60, 2  ;;  %v5622_v60 = vpack.c.bf16 %v5364_v13, %v5364_v13 }
  0x4f   : > { %v321_v27 = vadd.f32 %v320_v20, %v319_v23  ;;  %v700_v20 = vsel %vm676_vm1, %v5476_v63, %v646_v2  ;;  %v1027_v23 = vshrl.u32 %v5490_v6, 16 }
  0x50   : > { %9438 = vst [vmem:[#allocation17_spill] sm:$0xff] %v5567_v9 }
  0x51   : > { %v323_v32 = vadd.f32 %v322_v24, %v321_v27  ;;  %v1032_v24 = vshll.u32 %v5492_v8, 16  ;;  %v1040_v27 = vshll.u32 %v5498_v12, 16  ;;  %9449 = vst [vmem:[#allocation28_spill] sm:$0xff] %v5622_v60 }
  0x53   : > { %v325_v36 = vadd.f32 %v324_v29, %v323_v32  ;;  %v1043_v29 = vshrl.u32 %v5498_v12, 16  ;;  %v5520_v32 = vpack.c.bf16 %v5345_v3, %v5345_v3  ;;  %v5535_v3 = vpack.c.bf16 %v5354_v7, %v5354_v7 }
  0x55   : > { %v327_v41 = vadd.f32 %v326_v33, %v325_v36  ;;  %9431 = vst [vmem:[#allocation12_spill] sm:$0xff] %v5520_v32  ;;  %v5522_v33 = vrot.slane %v700_v20, 1  ;;  %v1055_v36 = vshll.u32 %v5506_v17, 16  ;;  %v1050_v7 = vsel %vm5538_vm0, %v1043_v29, %v1048_v30 }
  0x56   : > { %9434 = vst [vmem:[#allocation15_spill] sm:$0xff] %v5535_v3  ;;  %v648_v4 = vrot.slane %v5535_v3, 3 }
  0x57   : > { %v329_v44 = vadd.f32 %v328_v38, %v327_v41  ;;  %9432 = vst [vmem:[#allocation13_spill] sm:$0xff] %v5522_v33  ;;  %v5528_v38 = vsel %vm672_vm4, %v5476_v63, %v646_v2  ;;  %v1063_v41 = vshll.u32 %v5502_v15, 16  ;;  %v5575_v2 = vrot.slane %v706_v0, 3 }
  0x58   : > { %9433 = vst [vmem:[#allocation14_spill] sm:$0xff] %v5528_v38  ;;  %v724_v30 = vsel %vm680_vm2, %v5535_v3, %v648_v4 }
  0x59   : > { %v331_v47 = vadd.f32 %v330_v42, %v329_v44  ;;  %v9435_v42 = vmov 0  ;;  %v1066_v44 = vshrl.u32 %v5502_v15, 16  ;;  %v1065_v61 = vsel %vm5538_vm0, %v1058_v39, %v1063_v41  ;;  %1804 = vst [vmem:[#allocation1 + $0x2] ss:$9 sm:$0xff] %v1050_v7 }
  0x5a   : > { %v9436_v42 = vsel %vm5538_vm0, 4294967295, %v9435_v42  ;;  %1810 = vst [vmem:[#allocation1 + $0x4] ss:$9 sm:$0xff] %v1065_v61  ;;  %v1098_v41 = vshrl.u32 %v5567_v9, 16  ;;  %v5608_v7 = vsel %vm672_vm4, %v5535_v3, %v648_v4 }
  0x5b   : > { %v333_v48 = vadd.f32 %v332_v45, %v331_v47  ;;  %9437 = vst [vmem:[#allocation16_spill] sm:$0xff] %v9436_v42  ;;  %v1071_v45 = vshll.u32 %v5508_v18, 16  ;;  %v1074_v47 = vshrl.u32 %v5508_v18, 16 }
  0x5c   : > { %9440 = vst [vmem:[#allocation19_spill] sm:$0xff] %v5575_v2 }
  0x5d   : > { %v334_v50 = vrot.slane %v333_v48, 4  ;;  %v1073_v1 = vsel %vm5538_vm0, %v1066_v44, %v1071_v45  ;;  %v1103_v44 = vshll.u32 %v5575_v2, 16  ;;  %v5600_v45 = vpack.c.bf16 %v5359_v10, %v5359_v10  ;;  %9446 = vst [vmem:[#allocation25_spill] sm:$0xff] %v5608_v7 }
  0x5e   : > { %1813 = vst [vmem:[#allocation1 + $0x5] ss:$9 sm:$0xff] %v1073_v1 }
  0x5f   : > { %v335_v51 = vadd.f32 %v334_v50, %v333_v48  ;;  %v1034_v48 = vsel %vm5538_vm0, %v1027_v23, %v1032_v24  ;;  %v1042_v50 = vsel %vm5538_vm0, %v1035_v26, %v1040_v27  ;;  %v721_v27 = vsel %vm676_vm1, %v5535_v3, %v648_v4  ;;  %9444 = vst [vmem:[#allocation23_spill] sm:$0xff] %v5600_v45 }
  0x60   : > { %1798 = vst [vmem:[#allocation1] ss:$9 sm:$0xff] %v1034_v48  ;;  %v1106_v48 = vshrl.u32 %v5575_v2, 16  ;;  %v5626_v61 = vsel %vm5538_vm0, %v1098_v41, %v1103_v44  ;;  %v650_v41 = vrot.slane %v5622_v60, 3 }
  0x61   : > { %v336_v53 = vrot.slane %v335_v51, 2  ;;  %1801 = vst [vmem:[#allocation1 + $0x1] ss:$9 sm:$0xff] %v1042_v50 }
  0x62   : > { %9450 = vst [vmem:[#allocation29_spill] sm:$0xff] %v5626_v61 }
  0x63   : > { %v337_v54 = vadd.f32 %v336_v53, %v335_v51  ;;  %v1079_v51 = vshll.u32 %v972_v21, 16  ;;  %v647_v53 = vrot.slane %v5520_v32, 3 }
  0x65   : > { %v338_v58 = vrot.slane %v337_v54, 1  ;;  %v1081_v5 = vsel %vm5538_vm0, %v1074_v47, %v1079_v51  ;;  %v712_v11 = vsel %vm676_vm1, %v5520_v32, %v647_v53  ;;  %v715_v21 = vsel %vm680_vm2, %v5520_v32, %v647_v53 }
  0x66   : > { %v973_v23 = vsel %vm684_vm3, %v5520_v32, %v647_v53  ;;  %1816 = vst [vmem:[#allocation1 + $0x6] ss:$9 sm:$0xff] %v1081_v5  ;;  %v5583_v24 = vsel %vm672_vm4, %v5520_v32, %v647_v53  ;;  %v5585_v26 = vrot.slane %v712_v11, 1  ;;  %v5590_v29 = vrot.slane %v715_v21, 2 }
  0x67   : > { %v339_v59 = vadd.f32 %v338_v58, %v337_v54  ;;  %v1057_v54 = vsel %vm5538_vm0, %v1051_v35, %v1055_v36  ;;  %v1082_v58 = vshrl.u32 %v5528_v38, 16  ;;  %9441 = vst [vmem:[#allocation20_spill] sm:$0xff] %v5583_v24  ;;  %v1090_v35 = vshrl.u32 %v5522_v33, 16 }
  0x68   : > { %1807 = vst [vmem:[#allocation1 + $0x3] ss:$9 sm:$0xff] %v1057_v54  ;;  %v1095_v36 = vshll.u32 %v5567_v9, 16  ;;  %v975_v39 = vrot.slane %v973_v23, 3  ;;  %v5602_v47 = vrot.slane %v721_v27, 1  ;;  %v1110_v50 = vshll.u32 %v5583_v24, 16 }
  0x69   : > { %v5472_v62 = vmul.f32 0.00390625, %v339_v59  ;;  %v1087_v59 = vshll.u32 %v5522_v33, 16  ;;  %9442 = vst [vmem:[#allocation21_spill] sm:$0xff] %v5585_v26  ;;  %v5610_v51 = vrot.slane %v724_v30, 2  ;;  %v1113_v53 = vshrl.u32 %v5583_v24, 16 }
  0x6a   : > { %9443 = vst [vmem:[#allocation22_spill] sm:$0xff] %v5590_v29  ;;  %v1118_v54 = vshll.u32 %v5585_v26, 16  ;;  %v5616_v10 = vsel %vm5538_vm0, %v1090_v35, %v1095_v36  ;;  %v1129_v0 = vshrl.u32 %v5590_v29, 16  ;;  %v1134_v1 = vshll.u32 %v975_v39, 16 }
  0x6b   : > { %9429 = vst [vmem:[#allocation10_spill] sm:$0xff] %v5472_v62  ;;  %345 = vrot.lane.b32.xlu0 %v5472_v62, %s5243_s14  ;;  %v5573_v20 = vsel %vm5538_vm0, %v1082_v58, %v1087_v59  ;;  %v1121_v58 = vshrl.u32 %v5585_v26, 16  ;;  %v1126_v59 = vshll.u32 %v5590_v29, 16  ;;  %v649_v5 = vrot.slane %v5600_v45, 3 }
  0x6c   : > { %9439 = vst [vmem:[#allocation18_spill] sm:$0xff] %v5573_v20  ;;  %v5632_v11 = vsel %vm5538_vm0, %v1106_v48, %v1110_v50  ;;  %v1137_v21 = vshrl.u32 %v5608_v7, 16  ;;  %v1142_v23 = vshll.u32 %v5602_v47, 16  ;;  %v5640_v13 = vsel %vm5538_vm0, %v1113_v53, %v1118_v54 }
  0x6d   : > { %1819 = vst [vmem:[#allocation1 + $0x7] ss:$9 sm:$0xff] %v5573_v20  ;;  %v1145_v30 = vshrl.u32 %v5602_v47, 16  ;;  %v1150_v35 = vshll.u32 %v5610_v51, 16  ;;  %v727_v36 = vsel %vm684_vm3, %v5535_v3, %v648_v4  ;;  %v5649_v39 = vsel %vm5538_vm0, %v1121_v58, %v1126_v59 }
  0x6e   : > { %9445 = vst [vmem:[#allocation24_spill] sm:$0xff] %v5602_v47  ;;  %v5655_v44 = vsel %vm5538_vm0, %v1129_v0, %v1134_v1  ;;  %v733_v48 = vsel %vm676_vm1, %v5600_v45, %v649_v5  ;;  %v5662_v4 = vsel %vm5538_vm0, %v1137_v21, %v1142_v23  ;;  %v5665_v50 = vrot.slane %v727_v36, 3 }
  0x6f   : > { %9447 = vst [vmem:[#allocation26_spill] sm:$0xff] %v5610_v51  ;;  %v736_v53 = vsel %vm680_vm2, %v5600_v45, %v649_v5  ;;  %v5671_v54 = vsel %vm5538_vm0, %v1145_v30, %v1150_v35  ;;  %v976_v58 = vsel %vm684_vm3, %v5600_v45, %v649_v5  ;;  %v5679_v59 = vsel %vm672_vm4, %v5600_v45, %v649_v5 }
  0x70   : > { %9448 = vst [vmem:[#allocation27_spill] sm:$0xff] %v5616_v10  ;;  %v5681_v0 = vrot.slane %v733_v48, 1  ;;  %v742_v1 = vsel %vm676_vm1, %v5622_v60, %v650_v41  ;;  %v5686_v21 = vrot.slane %v736_v53, 2  ;;  %v745_v23 = vsel %vm680_vm2, %v5622_v60, %v650_v41 }
  0x71   : > { %9451 = vst [vmem:[#allocation30_spill] sm:$0xff] %v5632_v11  ;;  %v748_v30 = vsel %vm684_vm3, %v5622_v60, %v650_v41  ;;  %v978_v35 = vrot.slane %v976_v58, 3  ;;  %v1153_v5 = vshrl.u32 %v5610_v51, 16  ;;  %v1158_v36 = vshll.u32 %v5665_v50, 16 }
  0x72   : > { %9453 = vst [vmem:[#allocation32_spill] sm:$0xff] %v5640_v13  ;;  %v5697_v48 = vpack.c.bf16 %v5369_v16, %v5369_v16  ;;  %v1161_v53 = vshrl.u32 %v5665_v50, 16  ;;  %v1168_v58 = vshrl.u32 %v5679_v59, 16  ;;  %v1176_v16 = vshrl.u32 %v5681_v0, 16 }
  0x73   : > { %9454 = vst [vmem:[#allocation33_spill] sm:$0xff] %v5649_v39  ;;  %v5834_v32 = vpack.c.bf16 %v5389_v28, %v5389_v28 }
  0x74   : > { %v5636_v27 = vld [vmem:[#allocation1] sm:$0xff]  ;;  %9455 = vst [vmem:[#allocation34_spill] sm:$0xff] %v5655_v44 }
  0x75   : > { %9452 = vst [vmem:[#allocation31_spill] sm:$0xff] %v5636_v27  ;;  %v5699_v27 = vrot.slane %v742_v1, 1  ;;  %v1181_v1 = vshll.u32 %v5686_v21, 16 }
  0x76   : > { %1822 = vst [vmem:[#allocation1] ss:$9 sm:$0xff] %v5616_v10  ;;  %v651_v10 = vrot.slane %v5697_v48, 3 }
  0x77   : > { %1824 = vst [vmem:[#allocation1 + $0x1] ss:$9 sm:$0xff] %v5626_v61  ;;  %v1189_v61 = vshll.u32 %v978_v35, 16  ;;  %v1197_v62 = vshll.u32 %v5699_v27, 16  ;;  %v5741_v35 = vsel %vm5538_vm0, %v1176_v16, %v1181_v1 }
  0x78   : > { %1826 = vst [vmem:[#allocation1 + $0x2] ss:$9 sm:$0xff] %v5632_v11  ;;  %v5717_v11 = vpack.c.bf16 %v5374_v19, %v5374_v19  ;;  %v757_v1 = vsel %vm680_vm2, %v5697_v48, %v651_v10 }
  0x79   : > { %9456 = vst [vmem:[#allocation35_spill] sm:$0xff] %v5662_v4 }
  0x7a   : > { %1828 = vst [vmem:[#allocation1 + $0x3] ss:$9 sm:$0xff] %v5640_v13  ;;  %v5711_v13 = vrot.slane %v748_v30, 3  ;;  %v652_v3 = vrot.slane %v5717_v11, 3 }
  0x7b   : > { %9457 = vst [vmem:[#allocation36_spill] sm:$0xff] %v5665_v50 }
  0x7c   : > { %9458 = vst [vmem:[#allocation37_spill] sm:$0xff] %v5671_v54 }
  0x7d   : > { %1830 = vst [vmem:[#allocation1 + $0x4] ss:$9 sm:$0xff] %v5649_v39  ;;  %v1173_v39 = vshll.u32 %v5681_v0, 16 }
  0x7e   : > { %1832 = vst [vmem:[#allocation1 + $0x5] ss:$9 sm:$0xff] %v5655_v44  ;;  %v5707_v44 = vrot.slane %v745_v23, 2  ;;  %v1184_v23 = vshrl.u32 %v5686_v21, 16 }
  0x7f   : > { %9459 = vst [vmem:[#allocation38_spill] sm:$0xff] %v5679_v59  ;;  %v5733_v19 = vsel %vm5538_vm0, %v1168_v58, %v1173_v39  ;;  %v754_v58 = vsel %vm676_vm1, %v5697_v48, %v651_v10 }
  0x80   : > { %9460 = vst [vmem:[#allocation39_spill] sm:$0xff] %v5681_v0  ;;  %v5749_v39 = vsel %vm5538_vm0, %v1184_v23, %v1189_v61  ;;  %v5768_v61 = vpack.c.bf16 %v5379_v22, %v5379_v22  ;;  %v979_v23 = vsel %vm684_vm3, %v5697_v48, %v651_v10  ;;  %v5786_v22 = vrot.slane %v757_v1, 2 }
  0x81   : > { %1834 = vst [vmem:[#allocation1 + $0x6] ss:$9 sm:$0xff] %v5662_v4  ;;  %v1165_v4 = vshll.u32 %v5679_v59, 16 }
  0x82   : > { %9461 = vst [vmem:[#allocation40_spill] sm:$0xff] %v5686_v21 }
  0x83   : > { %1836 = vst [vmem:[#allocation1 + $0x7] ss:$9 sm:$0xff] %v5671_v54  ;;  %v5705_v54 = vsel %vm672_vm4, %v5622_v60, %v650_v41  ;;  %v5721_v41 = vsel %vm5538_vm0, %v1153_v5, %v1158_v36  ;;  %v5727_v30 = vsel %vm5538_vm0, %v1161_v53, %v1165_v4  ;;  %v1200_v5 = vshrl.u32 %v5699_v27, 16 }
  0x84   : > { %9462 = vst [vmem:[#allocation41_spill] sm:$0xff] %v5697_v48  ;;  %v1192_v20 = vshrl.u32 %v5705_v54, 16  ;;  %v1205_v36 = vshll.u32 %v5707_v44, 16  ;;  %v1208_v4 = vshrl.u32 %v5707_v44, 16  ;;  %v1213_v53 = vshll.u32 %v5711_v13, 16 }
  0x85   : > { %9463 = vst [vmem:[#allocation42_spill] sm:$0xff] %v5699_v27 }
  0x86   : > { %9464 = vst [vmem:[#allocation43_spill] sm:$0xff] %v5705_v54  ;;  %v5756_v16 = vsel %vm5538_vm0, %v1192_v20, %v1197_v62  ;;  %v5774_v62 = vsel %vm5538_vm0, %v1208_v4, %v1213_v53  ;;  %v5779_v20 = vsel %vm672_vm4, %v5697_v48, %v651_v10  ;;  %v769_v4 = vsel %vm684_vm3, %v5717_v11, %v652_v3 }
  0x87   : > { %9465 = vst [vmem:[#allocation44_spill] sm:$0xff] %v5707_v44  ;;  %v981_v53 = vrot.slane %v979_v23, 3  ;;  %v653_v10 = vrot.slane %v5768_v61, 3  ;;  %v1220_v1 = vshll.u32 %v5779_v20, 16  ;;  %v1239_v48 = vshrl.u32 %v5786_v22, 16 }
  0x88   : > { %9466 = vst [vmem:[#allocation45_spill] sm:$0xff] %v5711_v13 }
  0x89   : > { %9467 = vst [vmem:[#allocation46_spill] sm:$0xff] %v5717_v11 }
  0x8a   : > { %9468 = vst [vmem:[#allocation47_spill] sm:$0xff] %v5721_v41  ;;  %v5737_v60 = vld [vmem:[#allocation1] sm:$0xff] }
  0x8b   : > { %9469 = vst [vmem:[#allocation48_spill] sm:$0xff] %v5727_v30 }
  0x8c   : > { %9470 = vst [vmem:[#allocation49_spill] sm:$0xff] %v5733_v19 }
  0x8d   : > { %9471 = vst [vmem:[#allocation50_spill] sm:$0xff] %v5737_v60  ;;  %v5763_v60 = vsel %vm5538_vm0, %v1200_v5, %v1205_v36  ;;  %v5781_v5 = vrot.slane %v754_v58, 1  ;;  %v763_v36 = vsel %vm676_vm1, %v5717_v11, %v652_v3 }
  0x8e   : > { %9472 = vst [vmem:[#allocation51_spill] sm:$0xff] %v5741_v35  ;;  %v5795_v58 = vrot.slane %v763_v36, 1  ;;  %v1236_v36 = vshll.u32 %v5786_v22, 16 }
  0x8f   : > { %1839 = vst [vmem:[#allocation1] ss:$9 sm:$0xff] %v5721_v41  ;;  %v1228_v23 = vshll.u32 %v5781_v5, 16  ;;  %v5813_v41 = vpack.c.bf16 %v5384_v25, %v5384_v25 }
  0x90   : > { %9473 = vst [vmem:[#allocation52_spill] sm:$0xff] %v5749_v39  ;;  %v1252_v45 = vshll.u32 %v5795_v58, 16  ;;  %v1255_v25 = vshrl.u32 %v5795_v58, 16 }
  0x91   : > { %1841 = vst [vmem:[#allocation1 + $0x1] ss:$9 sm:$0xff] %v5727_v30  ;;  %v5807_v30 = vrot.slane %v769_v4, 3 }
  0x92   : > { %9474 = vst [vmem:[#allocation53_spill] sm:$0xff] %v5756_v16 }
  0x93   : > { %1843 = vst [vmem:[#allocation1 + $0x2] ss:$9 sm:$0xff] %v5733_v19  ;;  %v1268_v56 = vshll.u32 %v5807_v30, 16 }
  0x94   : > { %9475 = vst [vmem:[#allocation54_spill] sm:$0xff] %v5763_v60 }
  0x95   : > { %1845 = vst [vmem:[#allocation1 + $0x3] ss:$9 sm:$0xff] %v5741_v35  ;;  %v766_v35 = vsel %vm680_vm2, %v5717_v11, %v652_v3 }
  0x96   : > { %9476 = vst [vmem:[#allocation55_spill] sm:$0xff] %v5768_v61  ;;  %v5803_v19 = vrot.slane %v766_v35, 2  ;;  %v5818_v35 = vsel %vm672_vm4, %v5768_v61, %v653_v10 }
  0x97   : > { %9477 = vst [vmem:[#allocation56_spill] sm:$0xff] %v5774_v62  ;;  %v1275_v28 = vshll.u32 %v5818_v35, 16 }
  0x98   : > { %1847 = vst [vmem:[#allocation1 + $0x4] ss:$9 sm:$0xff] %v5749_v39  ;;  %v1216_v39 = vshrl.u32 %v5711_v13, 16 }
  0x99   : > { %9478 = vst [vmem:[#allocation57_spill] sm:$0xff] %v5779_v20 }
  0x9a   : > { %9479 = vst [vmem:[#allocation58_spill] sm:$0xff] %v5781_v5 }
  0x9b   : > { %1849 = vst [vmem:[#allocation1 + $0x5] ss:$9 sm:$0xff] %v5756_v16  ;;  %v5801_v16 = vsel %vm672_vm4, %v5717_v11, %v652_v3  ;;  %v1244_v3 = vshll.u32 %v981_v53, 16  ;;  %v5822_v11 = vsel %vm5538_vm0, %v1216_v39, %v1220_v1  ;;  %v1260_v53 = vshll.u32 %v5803_v19, 16 }
  0x9c   : > { %9480 = vst [vmem:[#allocation59_spill] sm:$0xff] %v5786_v22  ;;  %v1247_v4 = vshrl.u32 %v5801_v16, 16  ;;  %v1263_v1 = vshrl.u32 %v5803_v19, 16 }
  0x9d   : > { %1851 = vst [vmem:[#allocation1 + $0x6] ss:$9 sm:$0xff] %v5763_v60  ;;  %v1223_v60 = vshrl.u32 %v5779_v20, 16 }
  0x9e   : > { %1853 = vst [vmem:[#allocation1 + $0x7] ss:$9 sm:$0xff] %v5774_v62  ;;  %v1231_v62 = vshrl.u32 %v5781_v5, 16 }
  0x9f   : > { %9481 = vst [vmem:[#allocation60_spill] sm:$0xff] %v5795_v58  ;;  %v5828_v63 = vsel %vm5538_vm0, %v1223_v60, %v1228_v23  ;;  %v654_v60 = vrot.slane %v5813_v41, 3  ;;  %v5847_v23 = vsel %vm5538_vm0, %v1239_v48, %v1244_v3  ;;  %v1271_v58 = vshrl.u32 %v5807_v30, 16 }
  0xa0   : > { %9482 = vst [vmem:[#allocation61_spill] sm:$0xff] %v5801_v16  ;;  %v5838_v39 = vsel %vm5538_vm0, %v1231_v62, %v1236_v36  ;;  %v775_v62 = vsel %vm676_vm1, %v5768_v61, %v653_v10  ;;  %v5856_v36 = vsel %vm5538_vm0, %v1247_v4, %v1252_v45  ;;  %v5863_v48 = vsel %vm5538_vm0, %v1255_v25, %v1260_v53 }
  0xa1   : > { %9483 = vst [vmem:[#allocation62_spill] sm:$0xff] %v5803_v19  ;;  %v982_v3 = vsel %vm684_vm3, %v5768_v61, %v653_v10  ;;  %v655_v45 = vrot.slane %v5834_v32, 3  ;;  %v5874_v4 = vrot.slane %v775_v62, 1  ;;  %v5880_v25 = vsel %vm5538_vm0, %v1271_v58, %v1275_v28 }
  0xa2   : > { %9484 = vst [vmem:[#allocation63_spill] sm:$0xff] %v5807_v30  ;;  %v790_v53 = vsel %vm684_vm3, %v5813_v41, %v654_v60  ;;  %v5893_v62 = vsel %vm672_vm4, %v5813_v41, %v654_v60 }
  0xa3   : > { %9485 = vst [vmem:[#allocation64_spill] sm:$0xff] %v5813_v41  ;;  %v796_v28 = vsel %vm676_vm1, %v5834_v32, %v655_v45 }
  0xa4   : > { %9486 = vst [vmem:[#allocation65_spill] sm:$0xff] %v5818_v35 }
  0xa5   : > { %9487 = vst [vmem:[#allocation66_spill] sm:$0xff] %v5822_v11  ;;  %v5842_v57 = vld [vmem:[#allocation1] sm:$0xff] }
  0xa6   : > { %9488 = vst [vmem:[#allocation67_spill] sm:$0xff] %v5828_v63 }
  0xa7   : > { %9489 = vst [vmem:[#allocation68_spill] sm:$0xff] %v5834_v32 }
  0xa8   : > { %9490 = vst [vmem:[#allocation69_spill] sm:$0xff] %v5838_v39 }
  0xa9   : > { %9491 = vst [vmem:[#allocation70_spill] sm:$0xff] %v5842_v57  ;;  %v778_v57 = vsel %vm680_vm2, %v5768_v61, %v653_v10 }
  0xaa   : > { %9492 = vst [vmem:[#allocation71_spill] sm:$0xff] %v5847_v23  ;;  %v5883_v10 = vrot.slane %v778_v57, 2 }
  0xab   : > { %1856 = vst [vmem:[#allocation1] ss:$9 sm:$0xff] %v5822_v11  ;;  %v5870_v11 = vsel %vm5538_vm0, %v1263_v1, %v1268_v56  ;;  %v787_v56 = vsel %vm680_vm2, %v5813_v41, %v654_v60  ;;  %v984_v1 = vrot.slane %v982_v3, 3  ;;  %v5904_v3 = vrot.slane %v790_v53, 3 }
  0xac   : > { %9493 = vst [vmem:[#allocation72_spill] sm:$0xff] %v5856_v36  ;;  %v5898_v57 = vrot.slane %v787_v56, 2  ;;  %v1294_v56 = vshrl.u32 %v5883_v10, 16  ;;  %v1302_v53 = vshrl.u32 %v5893_v62, 16 }
  0xad   : > { %1858 = vst [vmem:[#allocation1 + $0x1] ss:$9 sm:$0xff] %v5828_v63  ;;  %v784_v63 = vsel %vm676_vm1, %v5813_v41, %v654_v60  ;;  %v1291_v60 = vshll.u32 %v5883_v10, 16 }
  0xae   : > { %9494 = vst [vmem:[#allocation73_spill] sm:$0xff] %v5863_v48  ;;  %v5895_v58 = vrot.slane %v784_v63, 1  ;;  %v5910_v63 = vpack.c.bf16 %v5394_v31, %v5394_v31 }
  0xaf   : > { %1860 = vst [vmem:[#allocation1 + $0x2] ss:$9 sm:$0xff] %v5838_v39  ;;  %v5917_v39 = vrot.slane %v796_v28, 1 }
  0xb0   : > { %9495 = vst [vmem:[#allocation74_spill] sm:$0xff] %v5870_v11  ;;  %v1307_v41 = vshll.u32 %v5895_v58, 16  ;;  %v1310_v31 = vshrl.u32 %v5895_v58, 16 }
  0xb1   : > { %1862 = vst [vmem:[#allocation1 + $0x3] ss:$9 sm:$0xff] %v5847_v23  ;;  %v5915_v23 = vsel %vm672_vm4, %v5834_v32, %v655_v45 }
  0xb2   : > { %9496 = vst [vmem:[#allocation75_spill] sm:$0xff] %v5874_v4 }
  0xb3   : > { %9497 = vst [vmem:[#allocation76_spill] sm:$0xff] %v5880_v25 }
  0xb4   : > { %1864 = vst [vmem:[#allocation1 + $0x4] ss:$9 sm:$0xff] %v5856_v36  ;;  %v1283_v36 = vshll.u32 %v5874_v4, 16 }
  0xb5   : > { %9498 = vst [vmem:[#allocation77_spill] sm:$0xff] %v5883_v10  ;;  %v1323_v10 = vshll.u32 %v5904_v3, 16 }
  0xb6   : > { %1866 = vst [vmem:[#allocation1 + $0x5] ss:$9 sm:$0xff] %v5863_v48  ;;  %v1278_v48 = vshrl.u32 %v5818_v35, 16  ;;  %v656_v35 = vrot.slane %v5910_v63, 3 }
  0xb7   : > { %1868 = vst [vmem:[#allocation1 + $0x6] ss:$9 sm:$0xff] %v5870_v11  ;;  %v1286_v11 = vshrl.u32 %v5874_v4, 16  ;;  %v1315_v4 = vshll.u32 %v5898_v57, 16 }
  0xb8   : > { %9499 = vst [vmem:[#allocation78_spill] sm:$0xff] %v5893_v62  ;;  %v5923_v61 = vsel %vm5538_vm0, %v1278_v48, %v1283_v36  ;;  %v1318_v62 = vshrl.u32 %v5898_v57, 16  ;;  %v1326_v48 = vshrl.u32 %v5904_v3, 16 }
  0xb9   : > { %9500 = vst [vmem:[#allocation79_spill] sm:$0xff] %v5895_v58  ;;  %v5933_v28 = vsel %vm5538_vm0, %v1286_v11, %v1291_v60  ;;  %v1330_v58 = vshll.u32 %v5915_v23, 16  ;;  %v5948_v11 = vsel %vm5538_vm0, %v1302_v53, %v1307_v41  ;;  %v1333_v60 = vshrl.u32 %v5915_v23, 16 }
  0xba   : > { %1870 = vst [vmem:[#allocation1 + $0x7] ss:$9 sm:$0xff] %v5880_v25  ;;  %v1299_v25 = vshll.u32 %v984_v1, 16  ;;  %v5929_v1 = vpack.c.bf16 %v5399_v34, %v5399_v34  ;;  %v5964_v41 = vsel %vm5538_vm0, %v1318_v62, %v1323_v10  ;;  %v811_v62 = vsel %vm684_vm3, %v5910_v63, %v656_v35 }
  0xbb   : > { %9501 = vst [vmem:[#allocation80_spill] sm:$0xff] %v5898_v57  ;;  %v1338_v57 = vshll.u32 %v5917_v39, 16 }
  0xbc   : > { %9502 = vst [vmem:[#allocation81_spill] sm:$0xff] %v5904_v3  ;;  %v5940_v36 = vsel %vm5538_vm0, %v1294_v56, %v1299_v25  ;;  %v799_v25 = vsel %vm680_vm2, %v5834_v32, %v655_v45  ;;  %v5957_v56 = vsel %vm5538_vm0, %v1310_v31, %v1315_v4  ;;  %v657_v53 = vrot.slane %v5929_v1, 3 }
  0xbd   : > { %9503 = vst [vmem:[#allocation82_spill] sm:$0xff] %v5910_v63  ;;  %v5972_v4 = vsel %vm5538_vm0, %v1326_v48, %v1330_v58  ;;  %v5975_v31 = vrot.slane %v799_v25, 2  ;;  %v5981_v10 = vsel %vm5538_vm0, %v1333_v60, %v1338_v57  ;;  %v5992_v48 = vsel %vm672_vm4, %v5910_v63, %v656_v35 }
  0xbe   : > { %9504 = vst [vmem:[#allocation83_spill] sm:$0xff] %v5915_v23  ;;  %v817_v57 = vsel %vm676_vm1, %v5929_v1, %v657_v53  ;;  %v5999_v60 = vrot.slane %v811_v62, 3 }
  0xbf   : > { %9505 = vst [vmem:[#allocation84_spill] sm:$0xff] %v5917_v39  ;;  %v6014_v62 = vrot.slane %v817_v57, 1 }
  0xc0   : > { %9506 = vst [vmem:[#allocation85_spill] sm:$0xff] %v5923_v61 }
  0xc1   : > { %9507 = vst [vmem:[#allocation86_spill] sm:$0xff] %v5929_v1  ;;  %v5944_v34 = vld [vmem:[#allocation1] sm:$0xff] }
  0xc2   : > { %9508 = vst [vmem:[#allocation87_spill] sm:$0xff] %v5933_v28 }
  0xc3   : > { %9509 = vst [vmem:[#allocation88_spill] sm:$0xff] %v5940_v36 }
  0xc4   : > { %9510 = vst [vmem:[#allocation89_spill] sm:$0xff] %v5944_v34  ;;  %v985_v34 = vsel %vm684_vm3, %v5834_v32, %v655_v45  ;;  %v808_v45 = vsel %vm680_vm2, %v5910_v63, %v656_v35  ;;  %v6024_v32 = vpack.c.bf16 %v5409_v40, %v5409_v40 }
  0xc5   : > { %9511 = vst [vmem:[#allocation90_spill] sm:$0xff] %v5948_v11  ;;  %v5994_v25 = vrot.slane %v808_v45, 2  ;;  %v1349_v45 = vshrl.u32 %v5975_v31, 16 }
  0xc6   : > { %1873 = vst [vmem:[#allocation1] ss:$9 sm:$0xff] %v5923_v61  ;;  %v805_v61 = vsel %vm676_vm1, %v5910_v63, %v656_v35  ;;  %v6007_v35 = vpack.c.bf16 %v5404_v37, %v5404_v37 }
  0xc7   : > { %9512 = vst [vmem:[#allocation91_spill] sm:$0xff] %v5957_v56  ;;  %v5987_v58 = vrot.slane %v805_v61, 1  ;;  %v1341_v61 = vshrl.u32 %v5917_v39, 16  ;;  %v1370_v37 = vshll.u32 %v5994_v25, 16  ;;  %v1373_v57 = vshrl.u32 %v5994_v25, 16 }
  0xc8   : > { %1875 = vst [vmem:[#allocation1 + $0x1] ss:$9 sm:$0xff] %v5933_v28 }
  0xc9   : > { %9513 = vst [vmem:[#allocation92_spill] sm:$0xff] %v5964_v41  ;;  %v1365_v63 = vshrl.u32 %v5987_v58, 16 }
  0xca   : > { %1877 = vst [vmem:[#allocation1 + $0x2] ss:$9 sm:$0xff] %v5940_v36  ;;  %v987_v36 = vrot.slane %v985_v34, 3  ;;  %v820_v34 = vsel %vm680_vm2, %v5929_v1, %v657_v53 }
  0xcb   : > { %9514 = vst [vmem:[#allocation93_spill] sm:$0xff] %v5972_v4  ;;  %v6018_v28 = vrot.slane %v820_v34, 2  ;;  %v6049_v23 = vsel %vm5538_vm0, %v1365_v63, %v1370_v37 }
  0xcc   : > { %1879 = vst [vmem:[#allocation1 + $0x3] ss:$9 sm:$0xff] %v5948_v11  ;;  %v1362_v11 = vshll.u32 %v5987_v58, 16 }
  0xcd   : > { %9515 = vst [vmem:[#allocation94_spill] sm:$0xff] %v5975_v31 }
  0xce   : > { %9516 = vst [vmem:[#allocation95_spill] sm:$0xff] %v5981_v10 }
  0xcf   : > { %1881 = vst [vmem:[#allocation1 + $0x4] ss:$9 sm:$0xff] %v5957_v56  ;;  %v6012_v56 = vsel %vm672_vm4, %v5929_v1, %v657_v53 }
  0xd0   : > { %1883 = vst [vmem:[#allocation1 + $0x5] ss:$9 sm:$0xff] %v5964_v41  ;;  %v1354_v41 = vshll.u32 %v987_v36, 16  ;;  %v1385_v39 = vshll.u32 %v6012_v56, 16 }
  0xd1   : > { %9517 = vst [vmem:[#allocation96_spill] sm:$0xff] %v5987_v58  ;;  %v1381_v58 = vshrl.u32 %v5999_v60, 16 }
  0xd2   : > { %1885 = vst [vmem:[#allocation1 + $0x6] ss:$9 sm:$0xff] %v5972_v4  ;;  %v1346_v4 = vshll.u32 %v5975_v31, 16  ;;  %v658_v31 = vrot.slane %v6007_v35, 3  ;;  %v6035_v34 = vsel %vm5538_vm0, %v1349_v45, %v1354_v41  ;;  %v1396_v41 = vshrl.u32 %v6014_v62, 16 }
  0xd3   : > { %9518 = vst [vmem:[#allocation97_spill] sm:$0xff] %v5992_v48  ;;  %v1401_v45 = vshll.u32 %v6018_v28, 16  ;;  %v6066_v37 = vsel %vm5538_vm0, %v1381_v58, %v1385_v39 }
  0xd4   : > { %9519 = vst [vmem:[#allocation98_spill] sm:$0xff] %v5994_v25  ;;  %v6028_v36 = vsel %vm5538_vm0, %v1341_v61, %v1346_v4  ;;  %v1388_v4 = vshrl.u32 %v6012_v56, 16  ;;  %v1393_v61 = vshll.u32 %v6014_v62, 16  ;;  %v826_v63 = vsel %vm676_vm1, %v6007_v35, %v658_v31 }
  0xd5   : > { %1887 = vst [vmem:[#allocation1 + $0x7] ss:$9 sm:$0xff] %v5981_v10  ;;  %v1357_v10 = vshrl.u32 %v5992_v48, 16  ;;  %v1378_v48 = vshll.u32 %v5999_v60, 16  ;;  %v6083_v39 = vrot.slane %v826_v63, 1  ;;  %v6088_v58 = vsel %vm672_vm4, %v6007_v35, %v658_v31 }
  0xd6   : > { %9520 = vst [vmem:[#allocation99_spill] sm:$0xff] %v5999_v60  ;;  %v1404_v63 = vshrl.u32 %v6018_v28, 16 }
  0xd7   : > { %9521 = vst [vmem:[#allocation100_spill] sm:$0xff] %v6007_v35  ;;  %v6041_v40 = vsel %vm5538_vm0, %v1357_v10, %v1362_v11  ;;  %v988_v11 = vsel %vm684_vm3, %v5929_v1, %v657_v53  ;;  %v6058_v10 = vsel %vm5538_vm0, %v1373_v57, %v1378_v48  ;;  %v829_v53 = vsel %vm680_vm2, %v6007_v35, %v658_v31 }
  0xd8   : > { %9522 = vst [vmem:[#allocation101_spill] sm:$0xff] %v6012_v56  ;;  %v6073_v48 = vsel %vm5538_vm0, %v1388_v4, %v1393_v61  ;;  %v832_v57 = vsel %vm684_vm3, %v6007_v35, %v658_v31  ;;  %v6090_v4 = vrot.slane %v829_v53, 2 }
  0xd9   : > { %9523 = vst [vmem:[#allocation102_spill] sm:$0xff] %v6014_v62 }
  0xda   : > { %9524 = vst [vmem:[#allocation103_spill] sm:$0xff] %v6018_v28 }
  0xdb   : > { %9525 = vst [vmem:[#allocation104_spill] sm:$0xff] %v6024_v32 }
  0xdc   : > { %9526 = vst [vmem:[#allocation105_spill] sm:$0xff] %v6028_v36  ;;  %v6045_v25 = vld [vmem:[#allocation1] sm:$0xff] }
  0xdd   : > { %9527 = vst [vmem:[#allocation106_spill] sm:$0xff] %v6035_v34 }
  0xde   : > { %9528 = vst [vmem:[#allocation107_spill] sm:$0xff] %v6041_v40 }
  0xdf   : > { %9529 = vst [vmem:[#allocation108_spill] sm:$0xff] %v6045_v25  ;;  %v659_v25 = vrot.slane %v6024_v32, 3 }
  0xe0   : > { %9530 = vst [vmem:[#allocation109_spill] sm:$0xff] %v6049_v23 }
  0xe1   : > { %1890 = vst [vmem:[#allocation1] ss:$9 sm:$0xff] %v6028_v36  ;;  %v6080_v36 = vsel %vm5538_vm0, %v1396_v41, %v1401_v45  ;;  %v838_v61 = vsel %vm676_vm1, %v6024_v32, %v659_v25  ;;  %v841_v41 = vsel %vm680_vm2, %v6024_v32, %v659_v25  ;;  %v6102_v45 = vpack.c.bf16 %v5414_v43, %v5414_v43 }
  0xe2   : > { %9531 = vst [vmem:[#allocation110_spill] sm:$0xff] %v6058_v10  ;;  %v991_v31 = vsel %vm684_vm3, %v6024_v32, %v659_v25  ;;  %v1420_v43 = vshrl.u32 %v6083_v39, 16 }
  0xe3   : > { %1892 = vst [vmem:[#allocation1 + $0x1] ss:$9 sm:$0xff] %v6035_v34  ;;  %v990_v34 = vrot.slane %v988_v11, 3  ;;  %v6095_v11 = vrot.slane %v832_v57, 3  ;;  %v6111_v57 = vrot.slane %v838_v61, 1 }
  0xe4   : > { %9532 = vst [vmem:[#allocation111_spill] sm:$0xff] %v6066_v37 }
  0xe5   : > { %1894 = vst [vmem:[#allocation1 + $0x2] ss:$9 sm:$0xff] %v6041_v40  ;;  %v1409_v53 = vshll.u32 %v990_v34, 16  ;;  %v6121_v40 = vpack.c.bf16 %v5419_v46, %v5419_v46  ;;  %v993_v34 = vrot.slane %v991_v31, 3  ;;  %v1433_v61 = vshll.u32 %v6095_v11, 16 }
  0xe6   : > { %9533 = vst [vmem:[#allocation112_spill] sm:$0xff] %v6073_v48  ;;  %v1448_v31 = vshll.u32 %v6111_v57, 16 }
  0xe7   : > { %1896 = vst [vmem:[#allocation1 + $0x3] ss:$9 sm:$0xff] %v6049_v23  ;;  %v1425_v23 = vshll.u32 %v6090_v4, 16  ;;  %v6128_v35 = vsel %vm5538_vm0, %v1404_v63, %v1409_v53 }
  0xe8   : > { %9534 = vst [vmem:[#allocation113_spill] sm:$0xff] %v6080_v36 }
  0xe9   : > { %1898 = vst [vmem:[#allocation1 + $0x4] ss:$9 sm:$0xff] %v6058_v10  ;;  %v6115_v10 = vrot.slane %v841_v41, 2  ;;  %v1436_v41 = vshrl.u32 %v6095_v11, 16 }
  0xea   : > { %9535 = vst [vmem:[#allocation114_spill] sm:$0xff] %v6083_v39 }
  0xeb   : > { %1900 = vst [vmem:[#allocation1 + $0x5] ss:$9 sm:$0xff] %v6066_v37  ;;  %v1412_v37 = vshrl.u32 %v6088_v58, 16  ;;  %v1456_v63 = vshll.u32 %v6115_v10, 16 }
  0xec   : > { %9536 = vst [vmem:[#allocation115_spill] sm:$0xff] %v6088_v58  ;;  %v1451_v58 = vshrl.u32 %v6111_v57, 16 }
  0xed   : > { %9537 = vst [vmem:[#allocation116_spill] sm:$0xff] %v6090_v4 }
  0xee   : > { %1902 = vst [vmem:[#allocation1 + $0x6] ss:$9 sm:$0xff] %v6073_v48  ;;  %v6109_v48 = vsel %vm672_vm4, %v6024_v32, %v659_v25  ;;  %v1428_v25 = vshrl.u32 %v6090_v4, 16  ;;  %v660_v32 = vrot.slane %v6102_v45, 3  ;;  %v6140_v4 = vsel %vm5538_vm0, %v1420_v43, %v1425_v23 }
  0xef   : > { %9538 = vst [vmem:[#allocation117_spill] sm:$0xff] %v6095_v11  ;;  %v1440_v1 = vshll.u32 %v6109_v48, 16  ;;  %v1443_v46 = vshrl.u32 %v6109_v48, 16  ;;  %v6148_v11 = vpack.c.bf16 %v5424_v49, %v5424_v49  ;;  %v661_v23 = vrot.slane %v6121_v40, 3 }
  0xf0   : > { %1904 = vst [vmem:[#allocation1 + $0x7] ss:$9 sm:$0xff] %v6080_v36  ;;  %v1417_v36 = vshll.u32 %v6083_v39, 16  ;;  %v847_v43 = vsel %vm676_vm1, %v6102_v45, %v660_v32  ;;  %v850_v49 = vsel %vm680_vm2, %v6102_v45, %v660_v32 }
  0xf1   : > { %9539 = vst [vmem:[#allocation118_spill] sm:$0xff] %v6102_v45 }
  0xf2   : > { %9540 = vst [vmem:[#allocation119_spill] sm:$0xff] %v6109_v48  ;;  %v6134_v39 = vsel %vm5538_vm0, %v1412_v37, %v1417_v36  ;;  %v6152_v36 = vsel %vm5538_vm0, %v1428_v25, %v1433_v61  ;;  %v1459_v37 = vshrl.u32 %v6115_v10, 16  ;;  %v1464_v48 = vshll.u32 %v993_v34, 16 }
  0xf3   : > { %9541 = vst [vmem:[#allocation120_spill] sm:$0xff] %v6111_v57  ;;  %v6168_v25 = vsel %vm5538_vm0, %v1443_v46, %v1448_v31  ;;  %v853_v34 = vsel %vm684_vm3, %v6102_v45, %v660_v32  ;;  %v6175_v61 = vsel %vm5538_vm0, %v1451_v58, %v1456_v63  ;;  %v6188_v46 = vsel %vm672_vm4, %v6102_v45, %v660_v32 }
  0xf4   : > { %9542 = vst [vmem:[#allocation121_spill] sm:$0xff] %v6115_v10  ;;  %v6190_v31 = vrot.slane %v850_v49, 2  ;;  %v859_v58 = vsel %vm676_vm1, %v6121_v40, %v661_v23  ;;  %v6195_v63 = vrot.slane %v853_v34, 3  ;;  %v994_v32 = vsel %vm684_vm3, %v6121_v40, %v661_v23 }
  0xf5   : > { %9543 = vst [vmem:[#allocation122_spill] sm:$0xff] %v6121_v40  ;;  %v1467_v34 = vshrl.u32 %v6188_v46, 16 }
  0xf6   : > { %9544 = vst [vmem:[#allocation123_spill] sm:$0xff] %v6128_v35 }
  0xf7   : > { %9545 = vst [vmem:[#allocation124_spill] sm:$0xff] %v6134_v39  ;;  %v6144_v53 = vld [vmem:[#allocation1] sm:$0xff] }
  0xf8   : > { %9546 = vst [vmem:[#allocation125_spill] sm:$0xff] %v6140_v4 }
  0xf9   : > { %9547 = vst [vmem:[#allocation126_spill] sm:$0xff] %v6144_v53  ;;  %v6161_v53 = vsel %vm5538_vm0, %v1436_v41, %v1440_v1  ;;  %v662_v1 = vrot.slane %v6148_v11, 3  ;;  %v6179_v41 = vrot.slane %v847_v43, 1  ;;  %v862_v43 = vsel %vm680_vm2, %v6121_v40, %v661_v23  ;;  %v9677_v42 = vld [vmem:[#allocation119_spill] sm:$0xff] }
  0xfa   : > { %9548 = vst [vmem:[#allocation127_spill] sm:$0xff] %v6148_v11 }
  0xfb   : > { %9549 = vst [vmem:[#allocation128_spill] sm:$0xff] %v6152_v36  ;;  %v868_v49 = vsel %vm676_vm1, %v6148_v11, %v662_v1  ;;  %v6229_v45 = vsel %vm672_vm4, %v6148_v11, %v662_v1 }
  0xfc   : > { %1907 = vst [vmem:[#allocation1] ss:$9 sm:$0xff] %v6128_v35  ;;  %v6223_v35 = vrot.slane %v868_v49, 1 }
  0xfd   : > { %9550 = vst [vmem:[#allocation129_spill] sm:$0xff] %v6161_v53 }
  0xfe   : > { %1909 = vst [vmem:[#allocation1 + $0x1] ss:$9 sm:$0xff] %v6134_v39  ;;  %v6183_v39 = vsel %vm5538_vm0, %v1459_v37, %v1464_v48  ;;  %v6202_v48 = vsel %vm672_vm4, %v6121_v40, %v661_v23  ;;  %v6207_v37 = vrot.slane %v859_v58, 1  ;;  %v1483_v23 = vshrl.u32 %v6190_v31, 16 }
  0xff   : > { %9551 = vst [vmem:[#allocation130_spill] sm:$0xff] %v6168_v25  ;;  %v6221_v58 = vpack.c.bf16 %v5429_v52, %v5429_v52  ;;  %v1491_v40 = vshrl.u32 %v6195_v63, 16 }
 0x100   : > { %1911 = vst [vmem:[#allocation1 + $0x2] ss:$9 sm:$0xff] %v6140_v4  ;;  %v996_v4 = vrot.slane %v994_v32, 3  ;;  %v1506_v49 = vshrl.u32 %v6207_v37, 16 }
 0x101   : > { %9552 = vst [vmem:[#allocation131_spill] sm:$0xff] %v6175_v61 }
 0x102   : > { %1913 = vst [vmem:[#allocation1 + $0x3] ss:$9 sm:$0xff] %v6152_v36  ;;  %v1480_v36 = vshll.u32 %v6190_v31, 16 }
 0x103   : > { %9553 = vst [vmem:[#allocation132_spill] sm:$0xff] %v6179_v41 }
 0x104   : > { %9554 = vst [vmem:[#allocation133_spill] sm:$0xff] %v6183_v39 }
 0x105   : > { %1915 = vst [vmem:[#allocation1 + $0x4] ss:$9 sm:$0xff] %v6161_v53  ;;  %v6213_v53 = vrot.slane %v862_v43, 2  ;;  %v1495_v43 = vshll.u32 %v6202_v48, 16 }
 0x106   : > { %9555 = vst [vmem:[#allocation134_spill] sm:$0xff] %v6188_v46  ;;  %v6245_v46 = vpack.c.bf16 %v5434_v55, %v5434_v55  ;;  %v1527_v55 = vshll.u32 %v6223_v35, 16 }
 0x107   : > { %9556 = vst [vmem:[#allocation135_spill] sm:$0xff] %v6190_v31  ;;  %v1498_v31 = vshrl.u32 %v6202_v48, 16 }
 0x108   : > { %1917 = vst [vmem:[#allocation1 + $0x5] ss:$9 sm:$0xff] %v6168_v25  ;;  %v1472_v25 = vshll.u32 %v6179_v41, 16 }
 0x109   : > { %9557 = vst [vmem:[#allocation136_spill] sm:$0xff] %v6195_v63 }
 0x10a   : > { %1919 = vst [vmem:[#allocation1 + $0x6] ss:$9 sm:$0xff] %v6175_v61  ;;  %v1475_v61 = vshrl.u32 %v6179_v41, 16  ;;  %v6233_v32 = vsel %vm5538_vm0, %v1467_v34, %v1472_v25  ;;  %v1503_v41 = vshll.u32 %v6207_v37, 16  ;;  %v1514_v34 = vshrl.u32 %v6213_v53, 16 }
 0x10b   : > { %9558 = vst [vmem:[#allocation137_spill] sm:$0xff] %v6202_v48  ;;  %v1519_v48 = vshll.u32 %v996_v4, 16 }
 0x10c   : > { %1921 = vst [vmem:[#allocation1 + $0x7] ss:$9 sm:$0xff] %v6183_v39  ;;  %v1488_v39 = vshll.u32 %v6195_v63, 16  ;;  %v6239_v52 = vsel %vm5538_vm0, %v1475_v61, %v1480_v36  ;;  %v1511_v63 = vshll.u32 %v6213_v53, 16  ;;  %v663_v36 = vrot.slane %v6221_v58, 3 }
 0x10d   : > { %9559 = vst [vmem:[#allocation138_spill] sm:$0xff] %v6207_v37  ;;  %v6257_v61 = vsel %vm5538_vm0, %v1491_v40, %v1495_v43  ;;  %v1522_v37 = vshrl.u32 %v6229_v45, 16  ;;  %v6266_v4 = vsel %vm5538_vm0, %v1498_v31, %v1503_v41  ;;  %v664_v43 = vrot.slane %v6245_v46, 3 }
 0x10e   : > { %9560 = vst [vmem:[#allocation139_spill] sm:$0xff] %v6213_v53  ;;  %v6249_v25 = vsel %vm5538_vm0, %v1483_v23, %v1488_v39  ;;  %v871_v39 = vsel %vm680_vm2, %v6148_v11, %v662_v1  ;;  %v874_v23 = vsel %vm684_vm3, %v6148_v11, %v662_v1  ;;  %v6273_v40 = vsel %vm5538_vm0, %v1506_v49, %v1511_v63 }
 0x10f   : > { %9561 = vst [vmem:[#allocation140_spill] sm:$0xff] %v6221_v58  ;;  %v6282_v41 = vrot.slane %v871_v39, 2  ;;  %v880_v31 = vsel %vm676_vm1, %v6221_v58, %v663_v36  ;;  %v6288_v1 = vsel %vm5538_vm0, %v1522_v37, %v1527_v55  ;;  %v6291_v63 = vrot.slane %v874_v23, 3 }
 0x110   : > { %9562 = vst [vmem:[#allocation141_spill] sm:$0xff] %v6223_v35  ;;  %v997_v49 = vsel %vm684_vm3, %v6221_v58, %v663_v36  ;;  %v6303_v37 = vrot.slane %v880_v31, 1  ;;  %v889_v55 = vsel %vm676_vm1, %v6245_v46, %v664_v43  ;;  %v892_v23 = vsel %vm680_vm2, %v6245_v46, %v664_v43 }
 0x111   : > { %9563 = vst [vmem:[#allocation142_spill] sm:$0xff] %v6229_v45  ;;  %v1543_v31 = vshll.u32 %v6291_v63, 16 }
 0x112   : > { %9564 = vst [vmem:[#allocation143_spill] sm:$0xff] %v6233_v32  ;;  %v1558_v11 = vshll.u32 %v6303_v37, 16 }
 0x113   : > { %9565 = vst [vmem:[#allocation144_spill] sm:$0xff] %v6239_v52  ;;  %v6252_v10 = vld [vmem:[#allocation1] sm:$0xff] }
 0x114   : > { %9566 = vst [vmem:[#allocation145_spill] sm:$0xff] %v6245_v46 }
 0x115   : > { %9567 = vst [vmem:[#allocation146_spill] sm:$0xff] %v6249_v25 }
 0x116   : > { %9568 = vst [vmem:[#allocation147_spill] sm:$0xff] %v6252_v10  ;;  %v6279_v10 = vsel %vm5538_vm0, %v1514_v34, %v1519_v48  ;;  %v883_v48 = vsel %vm680_vm2, %v6221_v58, %v663_v36  ;;  %v6301_v34 = vsel %vm672_vm4, %v6221_v58, %v663_v36  ;;  %v1538_v36 = vshrl.u32 %v6282_v41, 16 }
 0x117   : > { %9569 = vst [vmem:[#allocation148_spill] sm:$0xff] %v6257_v61  ;;  %v6308_v39 = vrot.slane %v883_v48, 2  ;;  %v1546_v48 = vshrl.u32 %v6291_v63, 16  ;;  %v6327_v58 = vrot.slane %v892_v23, 2 }
 0x118   : > { %1924 = vst [vmem:[#allocation1] ss:$9 sm:$0xff] %v6233_v32  ;;  %v6325_v32 = vsel %vm672_vm4, %v6245_v46, %v664_v43  ;;  %v6342_v45 = vsel %vm5538_vm0, %v1538_v36, %v1543_v31 }
 0x119   : > { %9570 = vst [vmem:[#allocation149_spill] sm:$0xff] %v6266_v4  ;;  %v1569_v23 = vshrl.u32 %v6308_v39, 16 }
 0x11a   : > { %1926 = vst [vmem:[#allocation1 + $0x1] ss:$9 sm:$0xff] %v6239_v52  ;;  %v6319_v52 = vrot.slane %v889_v55, 1  ;;  %v1561_v55 = vshrl.u32 %v6303_v37, 16 }
 0x11b   : > { %9571 = vst [vmem:[#allocation150_spill] sm:$0xff] %v6273_v40 }
 0x11c   : > { %1928 = vst [vmem:[#allocation1 + $0x2] ss:$9 sm:$0xff] %v6249_v25  ;;  %v1585_v36 = vshrl.u32 %v6319_v52, 16 }
 0x11d   : > { %9572 = vst [vmem:[#allocation151_spill] sm:$0xff] %v6279_v10 }
 0x11e   : > { %1930 = vst [vmem:[#allocation1 + $0x3] ss:$9 sm:$0xff] %v6257_v61  ;;  %v5148_v61 = vld [vmem:[%s5333_s13 + $0xa8] sm:$0xff] }
 0x11f   : > { %9573 = vst [vmem:[#allocation152_spill] sm:$0xff] %v6282_v41  ;;  %v6317_v25 = vpack.c.bf16 %v5148_v61, %v5148_v61 }
 0x120   : > { %9574 = vst [vmem:[#allocation153_spill] sm:$0xff] %v6288_v1 }
 0x121   : > { %1932 = vst [vmem:[#allocation1 + $0x4] ss:$9 sm:$0xff] %v6266_v4  ;;  %v999_v4 = vrot.slane %v997_v49, 3  ;;  %v1553_v49 = vshrl.u32 %v6301_v34, 16  ;;  %v665_v53 = vrot.slane %v6317_v25, 3 }
 0x122   : > { %9575 = vst [vmem:[#allocation154_spill] sm:$0xff] %v6291_v63  ;;  %v1566_v63 = vshll.u32 %v6308_v39, 16 }
 0x123   : > { %1934 = vst [vmem:[#allocation1 + $0x5] ss:$9 sm:$0xff] %v6273_v40  ;;  %v1530_v40 = vshrl.u32 %v6223_v35, 16 }
 0x124   : > { %1936 = vst [vmem:[#allocation1 + $0x6] ss:$9 sm:$0xff] %v6279_v10  ;;  %v1535_v10 = vshll.u32 %v6282_v41, 16  ;;  %v5149_v41 = vld [vmem:[%s5333_s13 + $0xb0] sm:$0xff]  ;;  %v6365_v31 = vsel %vm5538_vm0, %v1561_v55, %v1566_v63  ;;  %v904_v55 = vsel %vm680_vm2, %v6317_v25, %v665_v53 }
 0x125   : > { %9576 = vst [vmem:[#allocation155_spill] sm:$0xff] %v6301_v34  ;;  %v6338_v35 = vpack.c.bf16 %v5149_v41, %v5149_v41  ;;  %v6356_v41 = vsel %vm5538_vm0, %v1553_v49, %v1558_v11  ;;  %v901_v49 = vsel %vm676_vm1, %v6317_v25, %v665_v53 }
 0x126   : > { %9577 = vst [vmem:[#allocation156_spill] sm:$0xff] %v6303_v37  ;;  %v6333_v61 = vsel %vm5538_vm0, %v1530_v40, %v1535_v10  ;;  %v1577_v40 = vshrl.u32 %v6325_v32, 16  ;;  %v1582_v37 = vshll.u32 %v6319_v52, 16 }
 0x127   : > { %1938 = vst [vmem:[#allocation1 + $0x7] ss:$9 sm:$0xff] %v6288_v1  ;;  %v1550_v1 = vshll.u32 %v6301_v34, 16  ;;  %v1574_v34 = vshll.u32 %v999_v4, 16  ;;  %v1590_v4 = vshll.u32 %v6327_v58, 16 }
 0x128   : > { %9578 = vst [vmem:[#allocation157_spill] sm:$0xff] %v6308_v39 }
 0x129   : > { %9579 = vst [vmem:[#allocation158_spill] sm:$0xff] %v6317_v25  ;;  %v6348_v10 = vsel %vm5538_vm0, %v1546_v48, %v1550_v1  ;;  %v895_v1 = vsel %vm684_vm3, %v6245_v46, %v664_v43  ;;  %v666_v48 = vrot.slane %v6338_v35, 3  ;;  %v6371_v11 = vsel %vm5538_vm0, %v1569_v23, %v1574_v34  ;;  %v5151_v46 = vld [vmem:[%s5333_s13 + $0xc0] sm:$0xff] }
 0x12a   : > { %9580 = vst [vmem:[#allocation159_spill] sm:$0xff] %v6319_v52  ;;  %v6378_v43 = vsel %vm5538_vm0, %v1577_v40, %v1582_v37  ;;  %v6381_v63 = vrot.slane %v895_v1, 3  ;;  %v6387_v34 = vsel %vm5538_vm0, %v1585_v36, %v1590_v4  ;;  %v1000_v23 = vsel %vm684_vm3, %v6317_v25, %v665_v53 }
 0x12b   : > { %9581 = vst [vmem:[#allocation160_spill] sm:$0xff] %v6325_v32  ;;  %v6395_v37 = vsel %vm672_vm4, %v6317_v25, %v665_v53  ;;  %v6397_v40 = vrot.slane %v901_v49, 1  ;;  %v910_v1 = vsel %vm676_vm1, %v6338_v35, %v666_v48  ;;  %v6402_v36 = vrot.slane %v904_v55, 2 }
 0x12c   : > { %9582 = vst [vmem:[#allocation161_spill] sm:$0xff] %v6327_v58  ;;  %v913_v4 = vsel %vm680_vm2, %v6338_v35, %v666_v48  ;;  %v1002_v53 = vrot.slane %v1000_v23, 3  ;;  %v1593_v49 = vshrl.u32 %v6327_v58, 16  ;;  %v1601_v55 = vshrl.u32 %v6381_v63, 16 }
 0x12d   : > { %9583 = vst [vmem:[#allocation162_spill] sm:$0xff] %v6333_v61  ;;  %v1608_v23 = vshrl.u32 %v6395_v37, 16 }
 0x12e   : > { %9584 = vst [vmem:[#allocation163_spill] sm:$0xff] %v6338_v35  ;;  %v6352_v57 = vld [vmem:[#allocation1] sm:$0xff] }
 0x12f   : > { %9585 = vst [vmem:[#allocation164_spill] sm:$0xff] %v6342_v45 }
 0x130   : > { %9586 = vst [vmem:[#allocation165_spill] sm:$0xff] %v6348_v10 }
 0x131   : > { %9587 = vst [vmem:[#allocation166_spill] sm:$0xff] %v6352_v57  ;;  %v916_v57 = vsel %vm684_vm3, %v6338_v35, %v666_v48 }
 0x132   : > { %9588 = vst [vmem:[#allocation167_spill] sm:$0xff] %v6356_v41  ;;  %v6426_v25 = vrot.slane %v916_v57, 3 }
 0x133   : > { %1941 = vst [vmem:[#allocation1] ss:$9 sm:$0xff] %v6333_v61  ;;  %v1613_v61 = vshll.u32 %v6397_v40, 16 }
 0x134   : > { %9589 = vst [vmem:[#allocation168_spill] sm:$0xff] %v6365_v31 }
 0x135   : > { %1943 = vst [vmem:[#allocation1 + $0x1] ss:$9 sm:$0xff] %v6342_v45  ;;  %v6422_v45 = vrot.slane %v913_v4, 2  ;;  %v1629_v4 = vshll.u32 %v1002_v53, 16 }
 0x136   : > { %9590 = vst [vmem:[#allocation169_spill] sm:$0xff] %v6371_v11 }
 0x137   : > { %1945 = vst [vmem:[#allocation1 + $0x2] ss:$9 sm:$0xff] %v6348_v10  ;;  %v1605_v10 = vshll.u32 %v6395_v37, 16 }
 0x138   : > { %9591 = vst [vmem:[#allocation170_spill] sm:$0xff] %v6378_v43 }
 0x139   : > { %1947 = vst [vmem:[#allocation1 + $0x3] ss:$9 sm:$0xff] %v6356_v41  ;;  %v6441_v57 = vsel %vm5538_vm0, %v1601_v55, %v1605_v10  ;;  %v1648_v10 = vshrl.u32 %v6422_v45, 16  ;;  %v1653_v55 = vshll.u32 %v6426_v25, 16 }
 0x13a   : > { %9592 = vst [vmem:[#allocation171_spill] sm:$0xff] %v6381_v63 }
 0x13b   : > { %9593 = vst [vmem:[#allocation172_spill] sm:$0xff] %v6387_v34 }
 0x13c   : > { %1949 = vst [vmem:[#allocation1 + $0x4] ss:$9 sm:$0xff] %v6365_v31  ;;  %v5150_v31 = vld [vmem:[%s5333_s13 + $0xb8] sm:$0xff] }
 0x13d   : > { %1951 = vst [vmem:[#allocation1 + $0x5] ss:$9 sm:$0xff] %v6371_v11  ;;  %v1598_v11 = vshll.u32 %v6381_v63, 16  ;;  %v6412_v41 = vpack.c.bf16 %v5150_v31, %v5150_v31  ;;  %v1616_v31 = vshrl.u32 %v6397_v40, 16  ;;  %v6431_v63 = vpack.c.bf16 %v5151_v46, %v5151_v46 }
 0x13e   : > { %9594 = vst [vmem:[#allocation173_spill] sm:$0xff] %v6395_v37  ;;  %v6447_v46 = vsel %vm5538_vm0, %v1608_v23, %v1613_v61 }
 0x13f   : > { %9595 = vst [vmem:[#allocation174_spill] sm:$0xff] %v6397_v40  ;;  %v6435_v58 = vsel %vm5538_vm0, %v1593_v49, %v1598_v11  ;;  %v1645_v49 = vshll.u32 %v6422_v45, 16  ;;  %v668_v61 = vrot.slane %v6431_v63, 3 }
 0x140   : > { %1953 = vst [vmem:[#allocation1 + $0x6] ss:$9 sm:$0xff] %v6378_v43  ;;  %v6414_v43 = vrot.slane %v910_v1, 1  ;;  %v1621_v1 = vshll.u32 %v6402_v36, 16 }
 0x141   : > { %9596 = vst [vmem:[#allocation175_spill] sm:$0xff] %v6402_v36 }
 0x142   : > { %1955 = vst [vmem:[#allocation1 + $0x7] ss:$9 sm:$0xff] %v6387_v34  ;;  %v6420_v34 = vsel %vm672_vm4, %v6338_v35, %v666_v48  ;;  %v1624_v48 = vshrl.u32 %v6402_v36, 16  ;;  %v667_v35 = vrot.slane %v6412_v41, 3  ;;  %v1637_v37 = vshll.u32 %v6414_v43, 16 }
 0x143   : > { %9597 = vst [vmem:[#allocation176_spill] sm:$0xff] %v6412_v41  ;;  %v1632_v40 = vshrl.u32 %v6420_v34, 16  ;;  %v1640_v11 = vshrl.u32 %v6414_v43, 16  ;;  %v6455_v36 = vsel %vm5538_vm0, %v1616_v31, %v1621_v1 }
 0x144   : > { %9598 = vst [vmem:[#allocation177_spill] sm:$0xff] %v6414_v43  ;;  %v6463_v23 = vsel %vm5538_vm0, %v1624_v48, %v1629_v4  ;;  %v925_v1 = vsel %vm680_vm2, %v6412_v41, %v667_v35  ;;  %v5152_v48 = vld [vmem:[%s5333_s13 + $0xc8] sm:$0xff] }
 0x145   : > { %9599 = vst [vmem:[#allocation178_spill] sm:$0xff] %v6420_v34  ;;  %v6470_v31 = vsel %vm5538_vm0, %v1632_v40, %v1637_v37  ;;  %v6481_v4 = vpack.c.bf16 %v5152_v48, %v5152_v48  ;;  %v6487_v37 = vsel %vm5538_vm0, %v1648_v10, %v1653_v55  ;;  %v6492_v40 = vsel %vm672_vm4, %v6412_v41, %v667_v35 }
 0x146   : > { %9600 = vst [vmem:[#allocation179_spill] sm:$0xff] %v6422_v45  ;;  %v6499_v48 = vrot.slane %v925_v1, 2  ;;  %v937_v10 = vsel %vm684_vm3, %v6431_v63, %v668_v61  ;;  %v1660_v1 = vshll.u32 %v6492_v40, 16 }
 0x147   : > { %9601 = vst [vmem:[#allocation180_spill] sm:$0xff] %v6426_v25 }
 0x148   : > { %9602 = vst [vmem:[#allocation181_spill] sm:$0xff] %v6431_v63  ;;  %v1679_v43 = vshrl.u32 %v6499_v48, 16 }
 0x149   : > { %9603 = vst [vmem:[#allocation182_spill] sm:$0xff] %v6435_v58  ;;  %v6451_v53 = vld [vmem:[#allocation1] sm:$0xff] }
 0x14a   : > { %9604 = vst [vmem:[#allocation183_spill] sm:$0xff] %v6441_v57 }
 0x14b   : > { %9605 = vst [vmem:[#allocation184_spill] sm:$0xff] %v6447_v46 }
 0x14c   : > { %9606 = vst [vmem:[#allocation185_spill] sm:$0xff] %v6451_v53  ;;  %v922_v53 = vsel %vm676_vm1, %v6412_v41, %v667_v35 }
 0x14d   : > { %9607 = vst [vmem:[#allocation186_spill] sm:$0xff] %v6455_v36 }
 0x14e   : > { %1958 = vst [vmem:[#allocation1] ss:$9 sm:$0xff] %v6435_v58  ;;  %v6477_v58 = vsel %vm5538_vm0, %v1640_v11, %v1645_v49  ;;  %v6494_v11 = vrot.slane %v922_v53, 1  ;;  %v931_v49 = vsel %vm676_vm1, %v6431_v63, %v668_v61  ;;  %v669_v53 = vrot.slane %v6481_v4, 3 }
 0x14f   : > { %9608 = vst [vmem:[#allocation187_spill] sm:$0xff] %v6463_v23  ;;  %v6508_v55 = vrot.slane %v931_v49, 1 }
 0x150   : > { %1960 = vst [vmem:[#allocation1 + $0x1] ss:$9 sm:$0xff] %v6441_v57  ;;  %v1003_v57 = vsel %vm684_vm3, %v6412_v41, %v667_v35  ;;  %v1671_v49 = vshrl.u32 %v6494_v11, 16  ;;  %v1676_v41 = vshll.u32 %v6499_v48, 16 }
 0x151   : > { %9609 = vst [vmem:[#allocation188_spill] sm:$0xff] %v6470_v31  ;;  %v1005_v35 = vrot.slane %v1003_v57, 3  ;;  %v1668_v57 = vshll.u32 %v6494_v11, 16 }
 0x152   : > { %1962 = vst [vmem:[#allocation1 + $0x2] ss:$9 sm:$0xff] %v6447_v46  ;;  %v6549_v52 = vsel %vm5538_vm0, %v1671_v49, %v1676_v41  ;;  %v943_v41 = vsel %vm676_vm1, %v6481_v4, %v669_v53 }
 0x153   : > { %9610 = vst [vmem:[#allocation189_spill] sm:$0xff] %v6477_v58 }
 0x154   : > { %1964 = vst [vmem:[#allocation1 + $0x3] ss:$9 sm:$0xff] %v6455_v36  ;;  %v934_v36 = vsel %vm680_vm2, %v6431_v63, %v668_v61 }
 0x155   : > { %9611 = vst [vmem:[#allocation190_spill] sm:$0xff] %v6481_v4  ;;  %v6516_v46 = vrot.slane %v934_v36, 2  ;;  %v6530_v36 = vsel %vm672_vm4, %v6481_v4, %v669_v53 }
 0x156   : > { %9612 = vst [vmem:[#allocation191_spill] sm:$0xff] %v6487_v37 }
 0x157   : > { %1966 = vst [vmem:[#allocation1 + $0x4] ss:$9 sm:$0xff] %v6463_v23  ;;  %v6514_v23 = vsel %vm672_vm4, %v6431_v63, %v668_v61  ;;  %v1684_v61 = vshll.u32 %v1005_v35, 16  ;;  %v1700_v35 = vshll.u32 %v6516_v46, 16 }
 0x158   : > { %9613 = vst [vmem:[#allocation192_spill] sm:$0xff] %v6492_v40 }
 0x159   : > { %9614 = vst [vmem:[#allocation193_spill] sm:$0xff] %v6494_v11  ;;  %v1692_v11 = vshll.u32 %v6508_v55, 16 }
 0x15a   : > { %1968 = vst [vmem:[#allocation1 + $0x5] ss:$9 sm:$0xff] %v6470_v31  ;;  %v1656_v31 = vshrl.u32 %v6426_v25, 16  ;;  %v5153_v25 = vld [vmem:[%s5333_s13 + $0xd0] sm:$0xff] }
 0x15b   : > { %9615 = vst [vmem:[#allocation194_spill] sm:$0xff] %v6499_v48  ;;  %v6525_v45 = vpack.c.bf16 %v5153_v25, %v5153_v25  ;;  %v1695_v25 = vshrl.u32 %v6508_v55, 16  ;;  %v5154_v48 = vld [vmem:[%s5333_s13 + $0xd8] sm:$0xff] }
 0x15c   : > { %1970 = vst [vmem:[#allocation1 + $0x6] ss:$9 sm:$0xff] %v6477_v58  ;;  %v1663_v58 = vshrl.u32 %v6492_v40, 16  ;;  %v6534_v63 = vsel %vm5538_vm0, %v1656_v31, %v1660_v1  ;;  %v6545_v34 = vpack.c.bf16 %v5154_v48, %v5154_v48  ;;  %v1703_v31 = vshrl.u32 %v6516_v46, 16 }
 0x15d   : > { %1972 = vst [vmem:[#allocation1 + $0x7] ss:$9 sm:$0xff] %v6487_v37  ;;  %v6520_v37 = vrot.slane %v937_v10, 3  ;;  %v1687_v10 = vshrl.u32 %v6514_v23, 16  ;;  %v1715_v48 = vshll.u32 %v6530_v36, 16 }
 0x15e   : > { %9616 = vst [vmem:[#allocation195_spill] sm:$0xff] %v6508_v55  ;;  %v6540_v40 = vsel %vm5538_vm0, %v1663_v58, %v1668_v57  ;;  %v670_v58 = vrot.slane %v6525_v45, 3  ;;  %v6558_v57 = vsel %vm5538_vm0, %v1679_v43, %v1684_v61  ;;  %v6574_v43 = vsel %vm5538_vm0, %v1695_v25, %v1700_v35 }
 0x15f   : > { %9617 = vst [vmem:[#allocation196_spill] sm:$0xff] %v6514_v23  ;;  %v1708_v1 = vshll.u32 %v6520_v37, 16  ;;  %v1711_v55 = vshrl.u32 %v6520_v37, 16  ;;  %v6567_v49 = vsel %vm5538_vm0, %v1687_v10, %v1692_v11  ;;  %v1006_v61 = vsel %vm684_vm3, %v6481_v4, %v669_v53 }
 0x160   : > { %9618 = vst [vmem:[#allocation197_spill] sm:$0xff] %v6516_v46  ;;  %v671_v11 = vrot.slane %v6545_v34, 3  ;;  %v6585_v10 = vrot.slane %v943_v41, 1  ;;  %v955_v35 = vsel %vm680_vm2, %v6525_v45, %v670_v58  ;;  %v6604_v41 = vsel %vm672_vm4, %v6525_v45, %v670_v58 }
 0x161   : > { %9619 = vst [vmem:[#allocation198_spill] sm:$0xff] %v6520_v37  ;;  %v6591_v25 = vsel %vm5538_vm0, %v1711_v55, %v1715_v48 }
 0x162   : > { %9620 = vst [vmem:[#allocation199_spill] sm:$0xff] %v6525_v45  ;;  %v964_v48 = vsel %vm676_vm1, %v6545_v34, %v671_v11 }
 0x163   : > { %9621 = vst [vmem:[#allocation200_spill] sm:$0xff] %v6530_v36 }
 0x164   : > { %9622 = vst [vmem:[#allocation201_spill] sm:$0xff] %v6534_v63  ;;  %v6553_v23 = vld [vmem:[#allocation1] sm:$0xff] }
 0x165   : > { %9623 = vst [vmem:[#allocation202_spill] sm:$0xff] %v6540_v40 }
 0x166   : > { %9624 = vst [vmem:[#allocation203_spill] sm:$0xff] %v6545_v34 }
 0x167   : > { %9625 = vst [vmem:[#allocation204_spill] sm:$0xff] %v6549_v52 }
 0x168   : > { %9626 = vst [vmem:[#allocation205_spill] sm:$0xff] %v6553_v23  ;;  %v946_v23 = vsel %vm680_vm2, %v6481_v4, %v669_v53 }
 0x169   : > { %9627 = vst [vmem:[#allocation206_spill] sm:$0xff] %v6558_v57  ;;  %v6594_v53 = vrot.slane %v946_v23, 2  ;;  %v6609_v23 = vrot.slane %v955_v35, 2  ;;  %v6622_v35 = vsel %vm672_vm4, %v6545_v34, %v671_v11 }
 0x16a   : > { %1975 = vst [vmem:[#allocation1] ss:$9 sm:$0xff] %v6534_v63  ;;  %v6581_v63 = vsel %vm5538_vm0, %v1703_v31, %v1708_v1  ;;  %v958_v31 = vsel %vm684_vm3, %v6525_v45, %v670_v58  ;;  %v1008_v1 = vrot.slane %v1006_v61, 3 }
 0x16b   : > { %9628 = vst [vmem:[#allocation207_spill] sm:$0xff] %v6567_v49  ;;  %v6615_v61 = vrot.slane %v958_v31, 3 }
 0x16c   : > { %1977 = vst [vmem:[#allocation1 + $0x1] ss:$9 sm:$0xff] %v6540_v40  ;;  %v952_v40 = vsel %vm676_vm1, %v6525_v45, %v670_v58  ;;  %v1731_v58 = vshll.u32 %v6594_v53, 16 }
 0x16d   : > { %9629 = vst [vmem:[#allocation208_spill] sm:$0xff] %v6574_v43  ;;  %v6606_v55 = vrot.slane %v952_v40, 1  ;;  %v1734_v40 = vshrl.u32 %v6594_v53, 16 }
 0x16e   : > { %1979 = vst [vmem:[#allocation1 + $0x2] ss:$9 sm:$0xff] %v6549_v52  ;;  %v1742_v52 = vshrl.u32 %v6604_v41, 16 }
 0x16f   : > { %9630 = vst [vmem:[#allocation209_spill] sm:$0xff] %v6581_v63  ;;  %v1747_v45 = vshll.u32 %v6606_v55, 16  ;;  %v1750_v4 = vshrl.u32 %v6606_v55, 16 }
 0x170   : > { %1981 = vst [vmem:[#allocation1 + $0x3] ss:$9 sm:$0xff] %v6558_v57  ;;  %v1739_v57 = vshll.u32 %v1008_v1, 16 }
 0x171   : > { %9631 = vst [vmem:[#allocation210_spill] sm:$0xff] %v6585_v10 }
 0x172   : > { %9632 = vst [vmem:[#allocation211_spill] sm:$0xff] %v6591_v25 }
 0x173   : > { %1983 = vst [vmem:[#allocation1 + $0x4] ss:$9 sm:$0xff] %v6567_v49  ;;  %v1723_v49 = vshll.u32 %v6585_v10, 16 }
 0x174   : > { %9633 = vst [vmem:[#allocation212_spill] sm:$0xff] %v6594_v53  ;;  %v1758_v53 = vshrl.u32 %v6609_v23, 16 }
 0x175   : > { %1985 = vst [vmem:[#allocation1 + $0x5] ss:$9 sm:$0xff] %v6574_v43  ;;  %v1718_v43 = vshrl.u32 %v6530_v36, 16  ;;  %v1766_v36 = vshrl.u32 %v6615_v61, 16 }
 0x176   : > { %1987 = vst [vmem:[#allocation1 + $0x6] ss:$9 sm:$0xff] %v6581_v63  ;;  %v1726_v63 = vshrl.u32 %v6585_v10, 16  ;;  %v1755_v10 = vshll.u32 %v6609_v23, 16 }
 0x177   : > { %9634 = vst [vmem:[#allocation213_spill] sm:$0xff] %v6604_v41  ;;  %v6630_v31 = vsel %vm5538_vm0, %v1718_v43, %v1723_v49  ;;  %v6642_v41 = vsel %vm5538_vm0, %v1734_v40, %v1739_v57  ;;  %v1770_v49 = vshll.u32 %v6622_v35, 16  ;;  %v967_v57 = vsel %vm680_vm2, %v6545_v34, %v671_v11 }
 0x178   : > { %9635 = vst [vmem:[#allocation214_spill] sm:$0xff] %v6606_v55  ;;  %v6636_v1 = vsel %vm5538_vm0, %v1726_v63, %v1731_v58  ;;  %v6650_v55 = vsel %vm5538_vm0, %v1742_v52, %v1747_v45  ;;  %v1773_v63 = vshrl.u32 %v6622_v35, 16  ;;  %v6659_v40 = vsel %vm5538_vm0, %v1750_v4, %v1755_v10 }
 0x179   : > { %1989 = vst [vmem:[#allocation1 + $0x7] ss:$9 sm:$0xff] %v6591_v25  ;;  %v6624_v25 = vrot.slane %v964_v48, 1  ;;  %v1763_v48 = vshll.u32 %v6615_v61, 16  ;;  %v6671_v52 = vsel %vm5538_vm0, %v1766_v36, %v1770_v49 }
 0x17a   : > { %9636 = vst [vmem:[#allocation215_spill] sm:$0xff] %v6609_v23 }
 0x17b   : > { %9637 = vst [vmem:[#allocation216_spill] sm:$0xff] %v6615_v61  ;;  %v1778_v58 = vshll.u32 %v6624_v25, 16  ;;  %v6666_v45 = vsel %vm5538_vm0, %v1758_v53, %v1763_v48  ;;  %v1781_v36 = vshrl.u32 %v6624_v25, 16 }
 0x17c   : > { %9638 = vst [vmem:[#allocation217_spill] sm:$0xff] %v6622_v35 }
 0x17d   : > { %9639 = vst [vmem:[#allocation218_spill] sm:$0xff] %v6624_v25  ;;  %v6678_v4 = vsel %vm5538_vm0, %v1773_v63, %v1778_v58 }
 0x17e   : > { %9640 = vst [vmem:[#allocation219_spill] sm:$0xff] %v6630_v31 }
 0x17f   : > { %9641 = vst [vmem:[#allocation220_spill] sm:$0xff] %v6636_v1 }
 0x180   : > { %9642 = vst [vmem:[#allocation221_spill] sm:$0xff] %v6642_v41  ;;  %v6646_v43 = vld [vmem:[#allocation1] sm:$0xff] }
 0x181   : > { %9643 = vst [vmem:[#allocation222_spill] sm:$0xff] %v6646_v43  ;;  %v1009_v43 = vsel %vm684_vm3, %v6545_v34, %v671_v11 }
 0x182   : > { %9644 = vst [vmem:[#allocation223_spill] sm:$0xff] %v6650_v55  ;;  %v1011_v11 = vrot.slane %v1009_v43, 3 }
 0x183   : > { %1992 = vst [vmem:[#allocation1] ss:$9 sm:$0xff] %v6630_v31  ;;  %v6674_v31 = vrot.slane %v967_v57, 2 }
 0x184   : > { %9645 = vst [vmem:[#allocation224_spill] sm:$0xff] %v6659_v40  ;;  %v1794_v48 = vshll.u32 %v1011_v11, 16  ;;  %v9662_v11 = vld [vmem:[#allocation78_spill] sm:$0xff] }
 0x185   : > { %1994 = vst [vmem:[#allocation1 + $0x1] ss:$9 sm:$0xff] %v6636_v1  ;;  %v1786_v10 = vshll.u32 %v6674_v31, 16  ;;  %v1789_v53 = vshrl.u32 %v6674_v31, 16  ;;  %v9684_v1 = vld [vmem:[#allocation136_spill] sm:$0xff] }
 0x186   : > { %9646 = vst [vmem:[#allocation225_spill] sm:$0xff] %v6666_v45 }
 0x187   : > { %1996 = vst [vmem:[#allocation1 + $0x2] ss:$9 sm:$0xff] %v6642_v41  ;;  %v6689_v49 = vsel %vm5538_vm0, %v1781_v36, %v1786_v10  ;;  %v6693_v43 = vsel %vm5538_vm0, %v1789_v53, %v1794_v48  ;;  %v9663_v36 = vld [vmem:[#allocation79_spill] sm:$0xff]  ;;  %v9664_v10 = vld [vmem:[#allocation80_spill] sm:$0xff] }
 0x188   : > { %9647 = vst [vmem:[#allocation226_spill] sm:$0xff] %v6671_v52  ;;  %v9665_v53 = vld [vmem:[#allocation83_spill] sm:$0xff] }
 0x189   : > { %1998 = vst [vmem:[#allocation1 + $0x3] ss:$9 sm:$0xff] %v6650_v55  ;;  %v9681_v55 = vld [vmem:[#allocation134_spill] sm:$0xff]  ;;  %v9683_v41 = vld [vmem:[#allocation135_spill] sm:$0xff] }
 0x18a   : > { %9648 = vst [vmem:[#allocation227_spill] sm:$0xff] %v6674_v31 }
 0x18b   : > { %9649 = vst [vmem:[#allocation228_spill] sm:$0xff] %v6678_v4 }
 0x18c   : > { %2000 = vst [vmem:[#allocation1 + $0x4] ss:$9 sm:$0xff] %v6659_v40 }
 0x18d   : > { %2002 = vst [vmem:[#allocation1 + $0x5] ss:$9 sm:$0xff] %v6666_v45  ;;  %v9679_v45 = vld [vmem:[#allocation121_spill] sm:$0xff] }
 0x18e   : > { %2004 = vst [vmem:[#allocation1 + $0x6] ss:$9 sm:$0xff] %v6671_v52  ;;  %v9678_v52 = vld [vmem:[#allocation120_spill] sm:$0xff] }
 0x18f   : > { %2006 = vst [vmem:[#allocation1 + $0x7] ss:$9 sm:$0xff] %v6678_v4  ;;  %v9676_v4 = vld [vmem:[#allocation117_spill] sm:$0xff] }
 0x190   : > { %9650 = vst [vmem:[#allocation229_spill] sm:$0xff] %v6689_v49 }
 0x191   : > { %9651 = vst [vmem:[#allocation230_spill] sm:$0xff] %v6693_v43 }
 0x196   : > { %v6695_v63 = vld [vmem:[#allocation1] sm:$0xff] }
 0x197   : > { %9652 = vst [vmem:[#allocation231_spill] sm:$0xff] %v6695_v63 }
 0x198   : > { %2009 = vst [vmem:[#allocation1] ss:$9 sm:$0xff] %v6689_v49  ;;  %v9675_v49 = vld [vmem:[#allocation116_spill] sm:$0xff] }
 0x199   : > { %2011 = vst [vmem:[#allocation1 + $0x1] ss:$9 sm:$0xff] %v6693_v43  ;;  %v9674_v43 = vld [vmem:[#allocation114_spill] sm:$0xff] }
 0x1a0   : > { %v6699_v58 = vld [vmem:[#allocation1] sm:$0xff] }
 0x1a1   : > { %9653 = vst [vmem:[#allocation232_spill] sm:$0xff] %v6699_v58  ;;  %v9671_v58 = vld [vmem:[#allocation98_spill] sm:$0xff] }
 0x1a2   : > { %2120 = vst [vmem:[#allocation1] ss:$9 sm:$0xff] %v5490_v6 }
 0x1a3   : > { %2122 = vst [vmem:[#allocation1 + $0x1] ss:$9 sm:$0xff] %v5492_v8 }
 0x1a4   : > { %2124 = vst [vmem:[#allocation1 + $0x2] ss:$9 sm:$0xff] %v5498_v12  ;;  %v9657_v12 = vld [vmem:[#allocation60_spill] sm:$0xff] }
 0x1a5   : > { %2126 = vst [vmem:[#allocation1 + $0x3] ss:$9 sm:$0xff] %v5500_v14 }
 0x1a6   : > { %2128 = vst [vmem:[#allocation1 + $0x4] ss:$9 sm:$0xff] %v5506_v17  ;;  %v9660_v17 = vld [vmem:[#allocation75_spill] sm:$0xff] }
 0x1a7   : > { %2130 = vst [vmem:[#allocation1 + $0x5] ss:$9 sm:$0xff] %v5502_v15  ;;  %v9659_v15 = vld [vmem:[#allocation65_spill] sm:$0xff] }
 0x1a8   : > { %2132 = vst [vmem:[#allocation1 + $0x6] ss:$9 sm:$0xff] %v5508_v18  ;;  %v9661_v18 = vld [vmem:[#allocation77_spill] sm:$0xff] }
 0x1a9   : > { %2134 = vst [vmem:[#allocation1 + $0x7] ss:$9 sm:$0xff] %v5528_v38 }
 0x1b0   : > { %v6709_v57 = vld [vmem:[#allocation1] sm:$0xff] }
 0x1b1   : > { %9654 = vst [vmem:[#allocation233_spill] sm:$0xff] %v6709_v57  ;;  %v9670_v57 = vld [vmem:[#allocation96_spill] sm:$0xff] }
 0x1b2   : > { %2136 = vst [vmem:[#allocation1] ss:$9 sm:$0xff] %v5522_v33 }
 0x1b3   : > { %2137 = vst [vmem:[#allocation1 + $0x1] ss:$9 sm:$0xff] %v5567_v9 }
 0x1b4   : > { %2138 = vst [vmem:[#allocation1 + $0x2] ss:$9 sm:$0xff] %v5575_v2  ;;  %v9741_v2 = vld [vmem:[#allocation122_spill] sm:$0xff] }
 0x1b5   : > { %2139 = vst [vmem:[#allocation1 + $0x3] ss:$9 sm:$0xff] %v5583_v24  ;;  %v9740_v24 = vld [vmem:[#allocation118_spill] sm:$0xff] }
 0x1b6   : > { %2140 = vst [vmem:[#allocation1 + $0x4] ss:$9 sm:$0xff] %v5585_v26 }
 0x1b7   : > { %2141 = vst [vmem:[#allocation1 + $0x5] ss:$9 sm:$0xff] %v5590_v29 }
 0x1b8   : > { %2142 = vst [vmem:[#allocation1 + $0x6] ss:$9 sm:$0xff] %v5608_v7 }
 0x1b9   : > { %2143 = vst [vmem:[#allocation1 + $0x7] ss:$9 sm:$0xff] %v5602_v47 }
 0x1c0   : > { %v6719_v6 = vld [vmem:[#allocation1] sm:$0xff] }
 0x1c1   : > { %9655 = vst [vmem:[#allocation234_spill] sm:$0xff] %v6719_v6  ;;  %v9669_v6 = vld [vmem:[#allocation97_spill] sm:$0xff] }
 0x1c2   : > { %2145 = vst [vmem:[#allocation1] ss:$9 sm:$0xff] %v5610_v51 }
 0x1c3   : > { %2146 = vst [vmem:[#allocation1 + $0x1] ss:$9 sm:$0xff] %v5665_v50  ;;  %v9735_v50 = vld [vmem:[#allocation104_spill] sm:$0xff] }
 0x1c4   : > { %2147 = vst [vmem:[#allocation1 + $0x2] ss:$9 sm:$0xff] %v5679_v59  ;;  %v9734_v59 = vld [vmem:[#allocation100_spill] sm:$0xff] }
 0x1c5   : > { %2148 = vst [vmem:[#allocation1 + $0x3] ss:$9 sm:$0xff] %v5681_v0 }
 0x1c6   : > { %2149 = vst [vmem:[#allocation1 + $0x4] ss:$9 sm:$0xff] %v5686_v21 }
 0x1c7   : > { %2150 = vst [vmem:[#allocation1 + $0x5] ss:$9 sm:$0xff] %v5705_v54 }
 0x1c8   : > { %2151 = vst [vmem:[#allocation1 + $0x6] ss:$9 sm:$0xff] %v5699_v27 }
 0x1c9   : > { %2152 = vst [vmem:[#allocation1 + $0x7] ss:$9 sm:$0xff] %v5707_v44 }
 0x1d0   : > { %v6729_v8 = vld [vmem:[#allocation1] sm:$0xff] }
 0x1d1   : > { %9656 = vst [vmem:[#allocation235_spill] sm:$0xff] %v6729_v8  ;;  %v9667_v8 = vld [vmem:[#allocation84_spill] sm:$0xff] }
 0x1d2   : > { %2154 = vst [vmem:[#allocation1] ss:$9 sm:$0xff] %v5711_v13 }
 0x1d3   : > { %2155 = vst [vmem:[#allocation1 + $0x1] ss:$9 sm:$0xff] %v5779_v20  ;;  %v9733_v20 = vld [vmem:[#allocation86_spill] sm:$0xff] }
 0x1d4   : > { %2156 = vst [vmem:[#allocation1 + $0x2] ss:$9 sm:$0xff] %v5781_v5  ;;  %v9732_v5 = vld [vmem:[#allocation82_spill] sm:$0xff] }
 0x1d5   : > { %2157 = vst [vmem:[#allocation1 + $0x3] ss:$9 sm:$0xff] %v5786_v22 }
 0x1d6   : > { %2158 = vst [vmem:[#allocation1 + $0x4] ss:$9 sm:$0xff] %v5801_v16 }
 0x1d7   : > { %2159 = vst [vmem:[#allocation1 + $0x5] ss:$9 sm:$0xff] %v9657_v12 }
 0x1d8   : > { %2160 = vst [vmem:[#allocation1 + $0x6] ss:$9 sm:$0xff] %v5803_v19 }
 0x1d9   : > { %2161 = vst [vmem:[#allocation1 + $0x7] ss:$9 sm:$0xff] %v5807_v30 }
 0x1e0   : > { %v6739_v14 = vld [vmem:[#allocation1] sm:$0xff] }
 0x1e1   : > { %9658 = vst [vmem:[#allocation236_spill] sm:$0xff] %v6739_v14  ;;  %v9668_v14 = vld [vmem:[#allocation94_spill] sm:$0xff] }
 0x1e2   : > { %2163 = vst [vmem:[#allocation1] ss:$9 sm:$0xff] %v9659_v15  ;;  %v9731_v15 = vld [vmem:[#allocation64_spill] sm:$0xff] }
 0x1e3   : > { %2164 = vst [vmem:[#allocation1 + $0x1] ss:$9 sm:$0xff] %v9660_v17 }
 0x1e4   : > { %2165 = vst [vmem:[#allocation1 + $0x2] ss:$9 sm:$0xff] %v9661_v18 }
 0x1e5   : > { %2166 = vst [vmem:[#allocation1 + $0x3] ss:$9 sm:$0xff] %v9662_v11  ;;  %v9730_v11 = vld [vmem:[#allocation68_spill] sm:$0xff] }
 0x1e6   : > { %2167 = vst [vmem:[#allocation1 + $0x4] ss:$9 sm:$0xff] %v9663_v36 }
 0x1e7   : > { %2168 = vst [vmem:[#allocation1 + $0x5] ss:$9 sm:$0xff] %v9664_v10 }
 0x1e8   : > { %2169 = vst [vmem:[#allocation1 + $0x6] ss:$9 sm:$0xff] %v5904_v3 }
 0x1e9   : > { %2170 = vst [vmem:[#allocation1 + $0x7] ss:$9 sm:$0xff] %v9665_v53  ;;  %v9729_v53 = vld [vmem:[#allocation46_spill] sm:$0xff] }
 0x1f0   : > { %v6749_v48 = vld [vmem:[#allocation1] sm:$0xff] }
 0x1f1   : > { %9666 = vst [vmem:[#allocation237_spill] sm:$0xff] %v6749_v48  ;;  %v9673_v48 = vld [vmem:[#allocation115_spill] sm:$0xff] }
 0x1f2   : > { %2172 = vst [vmem:[#allocation1] ss:$9 sm:$0xff] %v9667_v8 }
 0x1f3   : > { %2173 = vst [vmem:[#allocation1 + $0x1] ss:$9 sm:$0xff] %v9668_v14 }
 0x1f4   : > { %2174 = vst [vmem:[#allocation1 + $0x2] ss:$9 sm:$0xff] %v9669_v6  ;;  %v9728_v6 = vld [vmem:[#allocation55_spill] sm:$0xff] }
 0x1f5   : > { %2175 = vst [vmem:[#allocation1 + $0x3] ss:$9 sm:$0xff] %v9670_v57 }
 0x1f6   : > { %2176 = vst [vmem:[#allocation1 + $0x4] ss:$9 sm:$0xff] %v9671_v58 }
 0x1f7   : > { %2177 = vst [vmem:[#allocation1 + $0x5] ss:$9 sm:$0xff] %v5999_v60 }
 0x1f8   : > { %2178 = vst [vmem:[#allocation1 + $0x6] ss:$9 sm:$0xff] %v6012_v56  ;;  %v9727_v56 = vld [vmem:[#allocation28_spill] sm:$0xff] }
 0x1f9   : > { %2179 = vst [vmem:[#allocation1 + $0x7] ss:$9 sm:$0xff] %v6014_v62 }
 0x200   : > { %v6759_v63 = vld [vmem:[#allocation1] sm:$0xff] }
 0x201   : > { %9672 = vst [vmem:[#allocation238_spill] sm:$0xff] %v6759_v63  ;;  %v9682_v63 = vld [vmem:[#allocation132_spill] sm:$0xff] }
 0x202   : > { %2181 = vst [vmem:[#allocation1] ss:$9 sm:$0xff] %v6018_v28 }
 0x203   : > { %2182 = vst [vmem:[#allocation1 + $0x1] ss:$9 sm:$0xff] %v9673_v48  ;;  %v9726_v48 = vld [vmem:[#allocation41_spill] sm:$0xff] }
 0x204   : > { %2183 = vst [vmem:[#allocation1 + $0x2] ss:$9 sm:$0xff] %v9674_v43  ;;  %v9685_v43 = vld [vmem:[#allocation137_spill] sm:$0xff] }
 0x205   : > { %2184 = vst [vmem:[#allocation1 + $0x3] ss:$9 sm:$0xff] %v9675_v49  ;;  %v9686_v49 = vld [vmem:[#allocation138_spill] sm:$0xff] }
 0x206   : > { %2185 = vst [vmem:[#allocation1 + $0x4] ss:$9 sm:$0xff] %v9676_v4  ;;  %v9687_v4 = vld [vmem:[#allocation139_spill] sm:$0xff] }
 0x207   : > { %2186 = vst [vmem:[#allocation1 + $0x5] ss:$9 sm:$0xff] %v9677_v42  ;;  %v9688_v42 = vld [vmem:[#allocation142_spill] sm:$0xff] }
 0x208   : > { %2187 = vst [vmem:[#allocation1 + $0x6] ss:$9 sm:$0xff] %v9678_v52 }
 0x209   : > { %2188 = vst [vmem:[#allocation1 + $0x7] ss:$9 sm:$0xff] %v9679_v45  ;;  %v9690_v45 = vld [vmem:[#allocation141_spill] sm:$0xff] }
 0x210   : > { %v6769_v40 = vld [vmem:[#allocation1] sm:$0xff] }
 0x211   : > { %9680 = vst [vmem:[#allocation239_spill] sm:$0xff] %v6769_v40  ;;  %v9691_v40 = vld [vmem:[#allocation152_spill] sm:$0xff] }
 0x212   : > { %2190 = vst [vmem:[#allocation1] ss:$9 sm:$0xff] %v9681_v55  ;;  %v9692_v55 = vld [vmem:[#allocation154_spill] sm:$0xff] }
 0x213   : > { %2191 = vst [vmem:[#allocation1 + $0x1] ss:$9 sm:$0xff] %v9682_v63  ;;  %v9693_v63 = vld [vmem:[#allocation155_spill] sm:$0xff] }
 0x214   : > { %2192 = vst [vmem:[#allocation1 + $0x2] ss:$9 sm:$0xff] %v9683_v41  ;;  %v9694_v41 = vld [vmem:[#allocation156_spill] sm:$0xff] }
 0x215   : > { %2193 = vst [vmem:[#allocation1 + $0x3] ss:$9 sm:$0xff] %v9684_v1 }
 0x216   : > { %2194 = vst [vmem:[#allocation1 + $0x4] ss:$9 sm:$0xff] %v9685_v43 }
 0x217   : > { %2195 = vst [vmem:[#allocation1 + $0x5] ss:$9 sm:$0xff] %v9686_v49  ;;  %v9695_v49 = vld [vmem:[#allocation159_spill] sm:$0xff] }
 0x218   : > { %2196 = vst [vmem:[#allocation1 + $0x6] ss:$9 sm:$0xff] %v9687_v4 }
 0x219   : > { %2197 = vst [vmem:[#allocation1 + $0x7] ss:$9 sm:$0xff] %v9688_v42  ;;  %v9697_v42 = vld [vmem:[#allocation161_spill] sm:$0xff] }
 0x220   : > { %v6779_v52 = vld [vmem:[#allocation1] sm:$0xff] }
 0x221   : > { %9689 = vst [vmem:[#allocation240_spill] sm:$0xff] %v6779_v52  ;;  %v9698_v52 = vld [vmem:[#allocation171_spill] sm:$0xff] }
 0x222   : > { %2199 = vst [vmem:[#allocation1] ss:$9 sm:$0xff] %v9690_v45  ;;  %v9699_v45 = vld [vmem:[#allocation173_spill] sm:$0xff] }
 0x223   : > { %2200 = vst [vmem:[#allocation1 + $0x1] ss:$9 sm:$0xff] %v9691_v40  ;;  %v9700_v40 = vld [vmem:[#allocation174_spill] sm:$0xff] }
 0x224   : > { %2201 = vst [vmem:[#allocation1 + $0x2] ss:$9 sm:$0xff] %v9692_v55  ;;  %v9701_v55 = vld [vmem:[#allocation175_spill] sm:$0xff] }
 0x225   : > { %2202 = vst [vmem:[#allocation1 + $0x3] ss:$9 sm:$0xff] %v9693_v63  ;;  %v9702_v63 = vld [vmem:[#allocation178_spill] sm:$0xff] }
 0x226   : > { %2203 = vst [vmem:[#allocation1 + $0x4] ss:$9 sm:$0xff] %v9694_v41  ;;  %v9703_v41 = vld [vmem:[#allocation177_spill] sm:$0xff] }
 0x227   : > { %2204 = vst [vmem:[#allocation1 + $0x5] ss:$9 sm:$0xff] %v6308_v39  ;;  %v9704_v39 = vld [vmem:[#allocation179_spill] sm:$0xff] }
 0x228   : > { %2205 = vst [vmem:[#allocation1 + $0x6] ss:$9 sm:$0xff] %v6325_v32 }
 0x229   : > { %2206 = vst [vmem:[#allocation1 + $0x7] ss:$9 sm:$0xff] %v9695_v49  ;;  %v9706_v49 = vld [vmem:[#allocation180_spill] sm:$0xff] }
 0x230   : > { %v6789_v4 = vld [vmem:[#allocation1] sm:$0xff] }
 0x231   : > { %9696 = vst [vmem:[#allocation241_spill] sm:$0xff] %v6789_v4  ;;  %v9707_v4 = vld [vmem:[#allocation192_spill] sm:$0xff] }
 0x232   : > { %2208 = vst [vmem:[#allocation1] ss:$9 sm:$0xff] %v9697_v42  ;;  %v9708_v42 = vld [vmem:[#allocation193_spill] sm:$0xff] }
 0x233   : > { %2209 = vst [vmem:[#allocation1 + $0x1] ss:$9 sm:$0xff] %v9698_v52  ;;  %v9709_v52 = vld [vmem:[#allocation194_spill] sm:$0xff] }
 0x234   : > { %2210 = vst [vmem:[#allocation1 + $0x2] ss:$9 sm:$0xff] %v9699_v45  ;;  %v9710_v45 = vld [vmem:[#allocation196_spill] sm:$0xff] }
 0x235   : > { %2211 = vst [vmem:[#allocation1 + $0x3] ss:$9 sm:$0xff] %v9700_v40  ;;  %v9711_v40 = vld [vmem:[#allocation195_spill] sm:$0xff] }
 0x236   : > { %2212 = vst [vmem:[#allocation1 + $0x4] ss:$9 sm:$0xff] %v9701_v55 }
 0x237   : > { %2213 = vst [vmem:[#allocation1 + $0x5] ss:$9 sm:$0xff] %v9702_v63  ;;  %v9725_v63 = vld [vmem:[#allocation15_spill] sm:$0xff] }
 0x238   : > { %2214 = vst [vmem:[#allocation1 + $0x6] ss:$9 sm:$0xff] %v9703_v41 }
 0x239   : > { %2215 = vst [vmem:[#allocation1 + $0x7] ss:$9 sm:$0xff] %v9704_v39  ;;  %v9713_v39 = vld [vmem:[#allocation200_spill] sm:$0xff] }
 0x240   : > { %v6799_v32 = vld [vmem:[#allocation1] sm:$0xff] }
 0x241   : > { %9705 = vst [vmem:[#allocation242_spill] sm:$0xff] %v6799_v32  ;;  %v9714_v32 = vld [vmem:[#allocation210_spill] sm:$0xff] }
 0x242   : > { %2217 = vst [vmem:[#allocation1] ss:$9 sm:$0xff] %v9706_v49  ;;  %v9715_v49 = vld [vmem:[#allocation212_spill] sm:$0xff] }
 0x243   : > { %2218 = vst [vmem:[#allocation1 + $0x1] ss:$9 sm:$0xff] %v9707_v4  ;;  %v9716_v4 = vld [vmem:[#allocation213_spill] sm:$0xff] }
 0x244   : > { %2219 = vst [vmem:[#allocation1 + $0x2] ss:$9 sm:$0xff] %v9708_v42  ;;  %v9717_v42 = vld [vmem:[#allocation214_spill] sm:$0xff] }
 0x245   : > { %2220 = vst [vmem:[#allocation1 + $0x3] ss:$9 sm:$0xff] %v9709_v52 }
 0x246   : > { %2221 = vst [vmem:[#allocation1 + $0x4] ss:$9 sm:$0xff] %v9710_v45 }
 0x247   : > { %2222 = vst [vmem:[#allocation1 + $0x5] ss:$9 sm:$0xff] %v9711_v40  ;;  %v9724_v40 = vld [vmem:[#allocation23_spill] sm:$0xff] }
 0x248   : > { %2223 = vst [vmem:[#allocation1 + $0x6] ss:$9 sm:$0xff] %v6516_v46 }
 0x249   : > { %2224 = vst [vmem:[#allocation1 + $0x7] ss:$9 sm:$0xff] %v6520_v37 }
 0x250   : > { %v6809_v41 = vld [vmem:[#allocation1] sm:$0xff] }
 0x251   : > { %9712 = vst [vmem:[#allocation243_spill] sm:$0xff] %v6809_v41  ;;  %v9719_v41 = vld [vmem:[#allocation9_spill] sm:$0xff] }
 0x252   : > { %2226 = vst [vmem:[#allocation1] ss:$9 sm:$0xff] %v9713_v39 }
 0x253   : > { %2227 = vst [vmem:[#allocation1 + $0x1] ss:$9 sm:$0xff] %v9714_v32 }
 0x254   : > { %2228 = vst [vmem:[#allocation1 + $0x2] ss:$9 sm:$0xff] %v9715_v49  ;;  %v9721_v49 = vld [vmem:[#allocation8_spill] sm:$0xff] }
 0x255   : > { %2229 = vst [vmem:[#allocation1 + $0x3] ss:$9 sm:$0xff] %v9716_v4 }
 0x256   : > { %2230 = vst [vmem:[#allocation1 + $0x4] ss:$9 sm:$0xff] %v9717_v42 }
 0x257   : > { %2231 = vst [vmem:[#allocation1 + $0x5] ss:$9 sm:$0xff] %v6609_v23 }
 0x258   : > { %2232 = vst [vmem:[#allocation1 + $0x6] ss:$9 sm:$0xff] %v6615_v61 }
 0x259   : > { %2233 = vst [vmem:[#allocation1 + $0x7] ss:$9 sm:$0xff] %v6622_v35  ;;  %v9722_v35 = vld [vmem:[#allocation12_spill] sm:$0xff] }
 0x260   : > { %v6819_v46 = vld [vmem:[#allocation1] sm:$0xff] }
 0x261   : > { %9718 = vst [vmem:[#allocation244_spill] sm:$0xff] %v6819_v46 }
 0x262   : > { %2235 = vst [vmem:[#allocation1] ss:$9 sm:$0xff] %v6624_v25 }
 0x263   : > { %2236 = vst [vmem:[#allocation1 + $0x1] ss:$9 sm:$0xff] %v6674_v31 }
 0x264   : > { %2341 = vst [vmem:[#allocation1 + $0x20] sm:$0xff] %v9719_v41  ;;  %v9723_v41 = vld [vmem:[#allocation11_spill] sm:$0xff] }
 0x26a   : > { %v6824_v32 = vld [vmem:[#allocation1] sm:$0xff] }
 0x26b   : > { %9720 = vst [vmem:[#allocation9_spill] sm:$0xff] %v6824_v32  ;;  %v6827_v4 = vld [vmem:[#allocation1 + $0x20] ss:$4 sm:$0xff]  ;;  %v6829_v42 = vld [vmem:[#allocation1 + $0x21] ss:$4 sm:$0xff] }
 0x26c   : > { %2340 = vst [vmem:[#allocation1] sm:$0xff] %v9721_v49  ;;  %v6831_v23 = vld [vmem:[#allocation1 + $0x22] ss:$4 sm:$0xff]  ;;  %v6833_v61 = vld [vmem:[#allocation1 + $0x23] ss:$4 sm:$0xff] }
 0x26d   : > { %2357 = vst [vmem:[#allocation1 + $0x20] sm:$0xff] %v9722_v35 }
 0x273   : > { %v6836_v46 = vld [vmem:[#allocation1 + $0x1] ss:$4 sm:$0xff]  ;;  %v6838_v25 = vld [vmem:[#allocation1 + $0x2] ss:$4 sm:$0xff]  ;;  %v6840_v31 = vld [vmem:[#allocation1 + $0x3] ss:$4 sm:$0xff] }
 0x274   : > { %2356 = vst [vmem:[#allocation1] sm:$0xff] %v9723_v41  ;;  %v6843_v32 = vld [vmem:[#allocation1 + $0x20] ss:$4 sm:$0xff]  ;;  %v6845_v49 = vld [vmem:[#allocation1 + $0x21] ss:$4 sm:$0xff] }
 0x275   : > { %v6847_v39 = vld [vmem:[#allocation1 + $0x22] ss:$4 sm:$0xff]  ;;  %v6849_v37 = vld [vmem:[#allocation1 + $0x23] ss:$4 sm:$0xff] }
 0x276   : > { %2366 = vst [vmem:[#allocation1 + $0x20] sm:$0xff] %v9724_v40 }
 0x27b   : > { %v6852_v45 = vld [vmem:[#allocation1 + $0x1] ss:$4 sm:$0xff]  ;;  %v6854_v35 = vld [vmem:[#allocation1 + $0x2] ss:$4 sm:$0xff]  ;;  %v6856_v52 = vld [vmem:[#allocation1 + $0x3] ss:$4 sm:$0xff] }
 0x27c   : > { %2365 = vst [vmem:[#allocation1] sm:$0xff] %v9725_v63 }
 0x27d   : > { %v6859_v55 = vld [vmem:[#allocation1 + $0x20] ss:$4 sm:$0xff]  ;;  %v6861_v41 = vld [vmem:[#allocation1 + $0x21] ss:$4 sm:$0xff]  ;;  %v6863_v43 = vld [vmem:[#allocation1 + $0x22] ss:$4 sm:$0xff] }
 0x27e   : > { %v6865_v1 = vld [vmem:[#allocation1 + $0x23] ss:$4 sm:$0xff] }
 0x27f   : > { %2375 = vst [vmem:[#allocation1 + $0x20] sm:$0xff] %v9726_v48 }
 0x283   : > { %v6868_v28 = vld [vmem:[#allocation1 + $0x1] ss:$4 sm:$0xff]  ;;  %v6870_v40 = vld [vmem:[#allocation1 + $0x2] ss:$4 sm:$0xff]  ;;  %v6872_v62 = vld [vmem:[#allocation1 + $0x3] ss:$4 sm:$0xff] }
 0x284   : > { %2374 = vst [vmem:[#allocation1] sm:$0xff] %v9727_v56 }
 0x286   : > { %v6875_v60 = vld [vmem:[#allocation1 + $0x20] ss:$4 sm:$0xff]  ;;  %v6877_v63 = vld [vmem:[#allocation1 + $0x21] ss:$4 sm:$0xff]  ;;  %v6879_v58 = vld [vmem:[#allocation1 + $0x22] ss:$4 sm:$0xff] }
 0x287   : > { %v6881_v57 = vld [vmem:[#allocation1 + $0x23] ss:$4 sm:$0xff] }
 0x288   : > { %2384 = vst [vmem:[#allocation1 + $0x20] sm:$0xff] %v9728_v6 }
 0x28b   : > { %v6884_v14 = vld [vmem:[#allocation1 + $0x1] ss:$4 sm:$0xff]  ;;  %v6886_v48 = vld [vmem:[#allocation1 + $0x2] ss:$4 sm:$0xff]  ;;  %v6888_v8 = vld [vmem:[#allocation1 + $0x3] ss:$4 sm:$0xff] }
 0x28c   : > { %2383 = vst [vmem:[#allocation1] sm:$0xff] %v9729_v53 }
 0x28f   : > { %v6891_v3 = vld [vmem:[#allocation1 + $0x20] ss:$4 sm:$0xff]  ;;  %v6893_v56 = vld [vmem:[#allocation1 + $0x21] ss:$4 sm:$0xff]  ;;  %v6895_v10 = vld [vmem:[#allocation1 + $0x22] ss:$4 sm:$0xff] }
 0x290   : > { %v6897_v36 = vld [vmem:[#allocation1 + $0x23] ss:$4 sm:$0xff] }
 0x291   : > { %2393 = vst [vmem:[#allocation1 + $0x20] sm:$0xff] %v9730_v11 }
 0x293   : > { %v6900_v18 = vld [vmem:[#allocation1 + $0x1] ss:$4 sm:$0xff]  ;;  %v6902_v6 = vld [vmem:[#allocation1 + $0x2] ss:$4 sm:$0xff]  ;;  %v6904_v17 = vld [vmem:[#allocation1 + $0x3] ss:$4 sm:$0xff] }
 0x294   : > { %2392 = vst [vmem:[#allocation1] sm:$0xff] %v9731_v15 }
 0x298   : > { %v6907_v30 = vld [vmem:[#allocation1 + $0x20] ss:$4 sm:$0xff]  ;;  %v6909_v53 = vld [vmem:[#allocation1 + $0x21] ss:$4 sm:$0xff]  ;;  %v6911_v19 = vld [vmem:[#allocation1 + $0x22] ss:$4 sm:$0xff] }
 0x299   : > { %v6913_v12 = vld [vmem:[#allocation1 + $0x23] ss:$4 sm:$0xff] }
 0x29a   : > { %2402 = vst [vmem:[#allocation1 + $0x20] sm:$0xff] %v9733_v20 }
 0x29b   : > { %v6915_v16 = vld [vmem:[#allocation1 + $0x1] ss:$4 sm:$0xff]  ;;  %v6917_v22 = vld [vmem:[#allocation1 + $0x2] ss:$4 sm:$0xff]  ;;  %v6919_v11 = vld [vmem:[#allocation1 + $0x3] ss:$4 sm:$0xff] }
 0x29c   : > { %2401 = vst [vmem:[#allocation1] sm:$0xff] %v9732_v5 }
 0x2a1   : > { %v6929_v27 = vld [vmem:[#allocation1 + $0x20] ss:$4 sm:$0xff]  ;;  %v6931_v54 = vld [vmem:[#allocation1 + $0x21] ss:$4 sm:$0xff]  ;;  %v6933_v21 = vld [vmem:[#allocation1 + $0x22] ss:$4 sm:$0xff] }
 0x2a2   : > { %v6935_v0 = vld [vmem:[#allocation1 + $0x23] ss:$4 sm:$0xff] }
 0x2a3   : > { %v6923_v13 = vld [vmem:[#allocation1 + $0x1] ss:$4 sm:$0xff]  ;;  %v6925_v15 = vld [vmem:[#allocation1 + $0x2] ss:$4 sm:$0xff]  ;;  %v6927_v44 = vld [vmem:[#allocation1 + $0x3] ss:$4 sm:$0xff] }
 0x2a4   : > { %2410 = vst [vmem:[#allocation1] sm:$0xff] %v9734_v59 }
 0x2a5   : > { %2411 = vst [vmem:[#allocation1 + $0x20] sm:$0xff] %v9735_v50 }
 0x2ab   : > { %v6939_v5 = vld [vmem:[#allocation1 + $0x1] ss:$4 sm:$0xff]  ;;  %v6941_v20 = vld [vmem:[#allocation1 + $0x2] ss:$4 sm:$0xff]  ;;  %v6943_v51 = vld [vmem:[#allocation1 + $0x3] ss:$4 sm:$0xff] }
 0x2ac   : > { %v6945_v47 = vld [vmem:[#allocation1 + $0x20] ss:$4 sm:$0xff]  ;;  %v6947_v7 = vld [vmem:[#allocation1 + $0x21] ss:$4 sm:$0xff]  ;;  %v6949_v29 = vld [vmem:[#allocation1 + $0x22] ss:$4 sm:$0xff] }
 0x2ad   : > { %9736 = vst [vmem:[#allocation8_spill] sm:$0xff] %v6945_v47  ;;  %v6951_v26 = vld [vmem:[#allocation1 + $0x23] ss:$4 sm:$0xff] }
 0x2ae   : > { %9737 = vst [vmem:[#allocation245_spill] sm:$0xff] %v6947_v7 }
 0x2af   : > { %9738 = vst [vmem:[#allocation246_spill] sm:$0xff] %v6949_v29  ;;  %v9749_v29 = vld [vmem:[#allocation127_spill] sm:$0xff] }
 0x2b0   : > { %9739 = vst [vmem:[#allocation247_spill] sm:$0xff] %v6951_v26  ;;  %v9750_v26 = vld [vmem:[#allocation140_spill] sm:$0xff] }
 0x2b1   : > { %2419 = vst [vmem:[#allocation1] sm:$0xff] %v9740_v24 }
 0x2b2   : > { %2420 = vst [vmem:[#allocation1 + $0x20] sm:$0xff] %v9741_v2 }
 0x2b8   : > { %v6955_v59 = vld [vmem:[#allocation1 + $0x1] ss:$4 sm:$0xff]  ;;  %v6957_v50 = vld [vmem:[#allocation1 + $0x2] ss:$4 sm:$0xff]  ;;  %v6959_v9 = vld [vmem:[#allocation1 + $0x3] ss:$4 sm:$0xff] }
 0x2b9   : > { %9742 = vst [vmem:[#allocation248_spill] sm:$0xff] %v6955_v59  ;;  %v6961_v33 = vld [vmem:[#allocation1 + $0x20] ss:$4 sm:$0xff]  ;;  %v6963_v38 = vld [vmem:[#allocation1 + $0x21] ss:$4 sm:$0xff] }
 0x2ba   : > { %9743 = vst [vmem:[#allocation249_spill] sm:$0xff] %v6957_v50  ;;  %v6965_v47 = vld [vmem:[#allocation1 + $0x22] ss:$4 sm:$0xff]  ;;  %v6967_v7 = vld [vmem:[#allocation1 + $0x23] ss:$4 sm:$0xff] }
 0x2bb   : > { %9744 = vst [vmem:[#allocation250_spill] sm:$0xff] %v6959_v9 }
 0x2bc   : > { %9745 = vst [vmem:[#allocation251_spill] sm:$0xff] %v6961_v33 }
 0x2bd   : > { %9746 = vst [vmem:[#allocation252_spill] sm:$0xff] %v6963_v38 }
 0x2be   : > { %9747 = vst [vmem:[#allocation253_spill] sm:$0xff] %v6965_v47  ;;  %v9758_v47 = vld [vmem:[#allocation145_spill] sm:$0xff] }
 0x2bf   : > { %9748 = vst [vmem:[#allocation254_spill] sm:$0xff] %v6967_v7  ;;  %v9759_v7 = vld [vmem:[#allocation158_spill] sm:$0xff] }
 0x2c0   : > { %2428 = vst [vmem:[#allocation1] sm:$0xff] %v9749_v29 }
 0x2c1   : > { %2429 = vst [vmem:[#allocation1 + $0x20] sm:$0xff] %v9750_v26 }
 0x2c7   : > { %v6971_v24 = vld [vmem:[#allocation1 + $0x1] ss:$4 sm:$0xff]  ;;  %v6973_v2 = vld [vmem:[#allocation1 + $0x2] ss:$4 sm:$0xff]  ;;  %v6975_v59 = vld [vmem:[#allocation1 + $0x3] ss:$4 sm:$0xff] }
 0x2c8   : > { %9751 = vst [vmem:[#allocation255_spill] sm:$0xff] %v6971_v24  ;;  %v6977_v50 = vld [vmem:[#allocation1 + $0x20] ss:$4 sm:$0xff]  ;;  %v6979_v9 = vld [vmem:[#allocation1 + $0x21] ss:$4 sm:$0xff] }
 0x2c9   : > { %9752 = vst [vmem:[#allocation256_spill] sm:$0xff] %v6973_v2  ;;  %v6981_v33 = vld [vmem:[#allocation1 + $0x22] ss:$4 sm:$0xff]  ;;  %v6983_v38 = vld [vmem:[#allocation1 + $0x23] ss:$4 sm:$0xff] }
 0x2ca   : > { %9753 = vst [vmem:[#allocation257_spill] sm:$0xff] %v6975_v59 }
 0x2cb   : > { %9754 = vst [vmem:[#allocation258_spill] sm:$0xff] %v6977_v50 }
 0x2cc   : > { %9755 = vst [vmem:[#allocation259_spill] sm:$0xff] %v6979_v9 }
 0x2cd   : > { %9756 = vst [vmem:[#allocation260_spill] sm:$0xff] %v6981_v33  ;;  %v9767_v33 = vld [vmem:[#allocation163_spill] sm:$0xff] }
 0x2ce   : > { %9757 = vst [vmem:[#allocation261_spill] sm:$0xff] %v6983_v38  ;;  %v9768_v38 = vld [vmem:[#allocation176_spill] sm:$0xff] }
 0x2cf   : > { %2437 = vst [vmem:[#allocation1] sm:$0xff] %v9758_v47 }
 0x2d0   : > { %2438 = vst [vmem:[#allocation1 + $0x20] sm:$0xff] %v9759_v7 }
 0x2d6   : > { %v6987_v29 = vld [vmem:[#allocation1 + $0x1] ss:$4 sm:$0xff]  ;;  %v6989_v26 = vld [vmem:[#allocation1 + $0x2] ss:$4 sm:$0xff]  ;;  %v6991_v24 = vld [vmem:[#allocation1 + $0x3] ss:$4 sm:$0xff] }
 0x2d7   : > { %9760 = vst [vmem:[#allocation262_spill] sm:$0xff] %v6987_v29  ;;  %v6993_v2 = vld [vmem:[#allocation1 + $0x20] ss:$4 sm:$0xff]  ;;  %v6995_v59 = vld [vmem:[#allocation1 + $0x21] ss:$4 sm:$0xff] }
 0x2d8   : > { %9761 = vst [vmem:[#allocation263_spill] sm:$0xff] %v6989_v26  ;;  %v6997_v50 = vld [vmem:[#allocation1 + $0x22] ss:$4 sm:$0xff]  ;;  %v6999_v9 = vld [vmem:[#allocation1 + $0x23] ss:$4 sm:$0xff] }
 0x2d9   : > { %9762 = vst [vmem:[#allocation264_spill] sm:$0xff] %v6991_v24 }
 0x2da   : > { %9763 = vst [vmem:[#allocation265_spill] sm:$0xff] %v6993_v2 }
 0x2db   : > { %9764 = vst [vmem:[#allocation266_spill] sm:$0xff] %v6995_v59 }
 0x2dc   : > { %9765 = vst [vmem:[#allocation267_spill] sm:$0xff] %v6997_v50  ;;  %v9775_v50 = vld [vmem:[#allocation181_spill] sm:$0xff] }
 0x2dd   : > { %9766 = vst [vmem:[#allocation268_spill] sm:$0xff] %v6999_v9  ;;  %v9776_v9 = vld [vmem:[#allocation190_spill] sm:$0xff] }
 0x2de   : > { %2446 = vst [vmem:[#allocation1] sm:$0xff] %v9767_v33 }
 0x2df   : > { %2447 = vst [vmem:[#allocation1 + $0x20] sm:$0xff] %v9768_v38 }
 0x2e5   : > { %v7003_v47 = vld [vmem:[#allocation1 + $0x1] ss:$4 sm:$0xff]  ;;  %v7005_v7 = vld [vmem:[#allocation1 + $0x2] ss:$4 sm:$0xff]  ;;  %v7007_v29 = vld [vmem:[#allocation1 + $0x3] ss:$4 sm:$0xff] }
 0x2e6   : > { %9769 = vst [vmem:[#allocation269_spill] sm:$0xff] %v7003_v47  ;;  %v7009_v26 = vld [vmem:[#allocation1 + $0x20] ss:$4 sm:$0xff]  ;;  %v7011_v24 = vld [vmem:[#allocation1 + $0x21] ss:$4 sm:$0xff] }
 0x2e7   : > { %9770 = vst [vmem:[#allocation270_spill] sm:$0xff] %v7005_v7  ;;  %v7013_v2 = vld [vmem:[#allocation1 + $0x22] ss:$4 sm:$0xff]  ;;  %v7015_v59 = vld [vmem:[#allocation1 + $0x23] ss:$4 sm:$0xff] }
 0x2e8   : > { %9771 = vst [vmem:[#allocation271_spill] sm:$0xff] %v7007_v29 }
 0x2e9   : > { %9772 = vst [vmem:[#allocation272_spill] sm:$0xff] %v7009_v26 }
 0x2ea   : > { %9773 = vst [vmem:[#allocation273_spill] sm:$0xff] %v7011_v24 }
 0x2eb   : > { %9774 = vst [vmem:[#allocation274_spill] sm:$0xff] %v7013_v2  ;;  %v9782_v2 = vld [vmem:[#allocation199_spill] sm:$0xff] }
 0x2ec   : > { %2455 = vst [vmem:[#allocation1] sm:$0xff] %v9775_v50 }
 0x2ed   : > { %2456 = vst [vmem:[#allocation1 + $0x20] sm:$0xff] %v9776_v9 }
 0x2f3   : > { %v7019_v33 = vld [vmem:[#allocation1 + $0x1] ss:$4 sm:$0xff]  ;;  %v7021_v38 = vld [vmem:[#allocation1 + $0x2] ss:$4 sm:$0xff]  ;;  %v7023_v47 = vld [vmem:[#allocation1 + $0x3] ss:$4 sm:$0xff] }
 0x2f4   : > { %9777 = vst [vmem:[#allocation275_spill] sm:$0xff] %v7019_v33  ;;  %v7025_v7 = vld [vmem:[#allocation1 + $0x20] ss:$4 sm:$0xff]  ;;  %v7027_v29 = vld [vmem:[#allocation1 + $0x21] ss:$4 sm:$0xff] }
 0x2f5   : > { %9778 = vst [vmem:[#allocation276_spill] sm:$0xff] %v7021_v38  ;;  %v7029_v26 = vld [vmem:[#allocation1 + $0x22] ss:$4 sm:$0xff]  ;;  %v7031_v24 = vld [vmem:[#allocation1 + $0x23] ss:$4 sm:$0xff] }
 0x2f6   : > { %9779 = vst [vmem:[#allocation277_spill] sm:$0xff] %v7023_v47 }
 0x2f7   : > { %9780 = vst [vmem:[#allocation278_spill] sm:$0xff] %v7025_v7 }
 0x2f8   : > { %9781 = vst [vmem:[#allocation279_spill] sm:$0xff] %v7027_v29 }
 0x2f9   : > { %2464 = vst [vmem:[#allocation1] sm:$0xff] %v9782_v2 }
 0x2fa   : > { %2465 = vst [vmem:[#allocation1 + $0x20] sm:$0xff] %v6545_v34 }
 0x300   : > { %v7035_v50 = vld [vmem:[#allocation1 + $0x1] ss:$4 sm:$0xff]  ;;  %v7037_v9 = vld [vmem:[#allocation1 + $0x2] ss:$4 sm:$0xff]  ;;  %v7039_v33 = vld [vmem:[#allocation1 + $0x3] ss:$4 sm:$0xff] }
 0x301   : > { %v7041_v38 = vld [vmem:[#allocation1 + $0x20] ss:$4 sm:$0xff]  ;;  %v7043_v47 = vld [vmem:[#allocation1 + $0x21] ss:$4 sm:$0xff]  ;;  %v7045_v7 = vld [vmem:[#allocation1 + $0x22] ss:$4 sm:$0xff] }
 0x302   : > { %v7047_v29 = vld [vmem:[#allocation1 + $0x23] ss:$4 sm:$0xff]  ;;  %2481 = vst [vmem:[#allocation1 + $0x4] ss:$9 sm:$0xff] %v6829_v42 }
 0x303   : > { %2473 = vst [vmem:[#allocation1] ss:$9 sm:$0xff] %v6836_v46  ;;  %v9805_v46 = vld [vmem:[#allocation258_spill] sm:$0xff] }
 0x304   : > { %2475 = vst [vmem:[#allocation1 + $0x1] ss:$9 sm:$0xff] %v6838_v25  ;;  %v9807_v25 = vld [vmem:[#allocation260_spill] sm:$0xff] }
 0x305   : > { %2477 = vst [vmem:[#allocation1 + $0x2] ss:$9 sm:$0xff] %v6840_v31  ;;  %v9812_v31 = vld [vmem:[#allocation264_spill] sm:$0xff] }
 0x306   : > { %2479 = vst [vmem:[#allocation1 + $0x3] ss:$9 sm:$0xff] %v6827_v4  ;;  %v9817_v4 = vld [vmem:[#allocation268_spill] sm:$0xff] }
 0x307   : > { %2483 = vst [vmem:[#allocation1 + $0x5] ss:$9 sm:$0xff] %v6831_v23  ;;  %v9809_v23 = vld [vmem:[#allocation262_spill] sm:$0xff] }
 0x308   : > { %2485 = vst [vmem:[#allocation1 + $0x6] ss:$9 sm:$0xff] %v6833_v61  ;;  %v9810_v61 = vld [vmem:[#allocation263_spill] sm:$0xff] }
 0x309   : > { %2487 = vst [vmem:[#allocation1 + $0x7] ss:$9 sm:$0xff] %v6852_v45  ;;  %v9815_v45 = vld [vmem:[#allocation10_spill] sm:$0xff] }
 0x30a   : > { %350 = vrot.lane.b32.xlu0 %v9815_v45, %s5244_s15 }
 0x310   : > { %v7057_v34 = vld [vmem:[#allocation1] sm:$0xff] }
 0x311   : > { %9783 = vst [vmem:[#allocation280_spill] sm:$0xff] %v7057_v34  ;;  %v9908_v34 = vld [vmem:[#allocation173_spill] sm:$0xff] }
 0x312   : > { %2489 = vst [vmem:[#allocation1] ss:$9 sm:$0xff] %v6854_v35 }
 0x313   : > { %2490 = vst [vmem:[#allocation1 + $0x1] ss:$9 sm:$0xff] %v6856_v52  ;;  %v9816_v52 = vld [vmem:[#allocation267_spill] sm:$0xff] }
 0x314   : > { %2491 = vst [vmem:[#allocation1 + $0x2] ss:$9 sm:$0xff] %v6843_v32  ;;  %v9803_v32 = vld [vmem:[#allocation256_spill] sm:$0xff] }
 0x315   : > { %2492 = vst [vmem:[#allocation1 + $0x3] ss:$9 sm:$0xff] %v6845_v49  ;;  %v9845_v49 = vld [vmem:[#allocation38_spill] sm:$0xff] }
 0x316   : > { %2493 = vst [vmem:[#allocation1 + $0x4] ss:$9 sm:$0xff] %v6847_v39  ;;  %v9804_v39 = vld [vmem:[#allocation257_spill] sm:$0xff] }
 0x317   : > { %2494 = vst [vmem:[#allocation1 + $0x5] ss:$9 sm:$0xff] %v6849_v37  ;;  %v9806_v37 = vld [vmem:[#allocation259_spill] sm:$0xff] }
 0x318   : > { %2495 = vst [vmem:[#allocation1 + $0x6] ss:$9 sm:$0xff] %v6868_v28 }
 0x319   : > { %2496 = vst [vmem:[#allocation1 + $0x7] ss:$9 sm:$0xff] %v6870_v40  ;;  %v9814_v40 = vld [vmem:[#allocation266_spill] sm:$0xff] }
 0x320   : > { %v7067_v42 = vld [vmem:[#allocation1] sm:$0xff] }
 0x321   : > { %9784 = vst [vmem:[#allocation281_spill] sm:$0xff] %v7067_v42  ;;  %v9907_v42 = vld [vmem:[#allocation171_spill] sm:$0xff] }
 0x322   : > { %2498 = vst [vmem:[#allocation1] ss:$9 sm:$0xff] %v6872_v62 }
 0x323   : > { %2499 = vst [vmem:[#allocation1 + $0x1] ss:$9 sm:$0xff] %v6859_v55  ;;  %v9808_v55 = vld [vmem:[#allocation261_spill] sm:$0xff] }
 0x324   : > { %2500 = vst [vmem:[#allocation1 + $0x2] ss:$9 sm:$0xff] %v6861_v41  ;;  %v9844_v41 = vld [vmem:[#allocation36_spill] sm:$0xff] }
 0x325   : > { %2501 = vst [vmem:[#allocation1 + $0x3] ss:$9 sm:$0xff] %v6863_v43  ;;  %v9818_v43 = vld [vmem:[#allocation269_spill] sm:$0xff] }
 0x326   : > { %2502 = vst [vmem:[#allocation1 + $0x4] ss:$9 sm:$0xff] %v6865_v1  ;;  %v9813_v1 = vld [vmem:[#allocation265_spill] sm:$0xff] }
 0x327   : > { %2503 = vst [vmem:[#allocation1 + $0x5] ss:$9 sm:$0xff] %v6884_v14  ;;  %v9825_v14 = vld [vmem:[#allocation275_spill] sm:$0xff] }
 0x328   : > { %2504 = vst [vmem:[#allocation1 + $0x6] ss:$9 sm:$0xff] %v6886_v48  ;;  %v9843_v48 = vld [vmem:[#allocation26_spill] sm:$0xff] }
 0x329   : > { %2505 = vst [vmem:[#allocation1 + $0x7] ss:$9 sm:$0xff] %v6888_v8  ;;  %v9823_v8 = vld [vmem:[#allocation273_spill] sm:$0xff] }
 0x330   : > { %v7077_v28 = vld [vmem:[#allocation1] sm:$0xff] }
 0x331   : > { %9785 = vst [vmem:[#allocation282_spill] sm:$0xff] %v7077_v28  ;;  %v9905_v28 = vld [vmem:[#allocation159_spill] sm:$0xff] }
 0x332   : > { %2507 = vst [vmem:[#allocation1] ss:$9 sm:$0xff] %v6875_v60 }
 0x333   : > { %2508 = vst [vmem:[#allocation1 + $0x1] ss:$9 sm:$0xff] %v6877_v63  ;;  %v9819_v63 = vld [vmem:[#allocation270_spill] sm:$0xff] }
 0x334   : > { %2509 = vst [vmem:[#allocation1 + $0x2] ss:$9 sm:$0xff] %v6879_v58  ;;  %v9820_v58 = vld [vmem:[#allocation271_spill] sm:$0xff] }
 0x335   : > { %2510 = vst [vmem:[#allocation1 + $0x3] ss:$9 sm:$0xff] %v6881_v57 }
 0x336   : > { %2511 = vst [vmem:[#allocation1 + $0x4] ss:$9 sm:$0xff] %v6900_v18  ;;  %v9828_v18 = vld [vmem:[#allocation278_spill] sm:$0xff] }
 0x337   : > { %2512 = vst [vmem:[#allocation1 + $0x5] ss:$9 sm:$0xff] %v6902_v6  ;;  %v9822_v6 = vld [vmem:[#allocation272_spill] sm:$0xff] }
 0x338   : > { %2513 = vst [vmem:[#allocation1 + $0x6] ss:$9 sm:$0xff] %v6904_v17  ;;  %v9827_v17 = vld [vmem:[#allocation277_spill] sm:$0xff] }
 0x339   : > { %2514 = vst [vmem:[#allocation1 + $0x7] ss:$9 sm:$0xff] %v6891_v3  ;;  %v9801_v3 = vld [vmem:[#allocation255_spill] sm:$0xff] }
 0x340   : > { %v7087_v62 = vld [vmem:[#allocation1] sm:$0xff] }
 0x341   : > { %9786 = vst [vmem:[#allocation283_spill] sm:$0xff] %v7087_v62  ;;  %v9903_v62 = vld [vmem:[#allocation160_spill] sm:$0xff] }
 0x342   : > { %2516 = vst [vmem:[#allocation1] ss:$9 sm:$0xff] %v6893_v56 }
 0x343   : > { %2517 = vst [vmem:[#allocation1 + $0x1] ss:$9 sm:$0xff] %v6895_v10 }
 0x344   : > { %2518 = vst [vmem:[#allocation1 + $0x2] ss:$9 sm:$0xff] %v6897_v36  ;;  %v9830_v36 = vld [vmem:[#allocation279_spill] sm:$0xff] }
 0x345   : > { %2519 = vst [vmem:[#allocation1 + $0x3] ss:$9 sm:$0xff] %v6915_v16  ;;  %v9795_v16 = vld [vmem:[#allocation249_spill] sm:$0xff] }
 0x346   : > { %2520 = vst [vmem:[#allocation1 + $0x4] ss:$9 sm:$0xff] %v6917_v22  ;;  %v9800_v22 = vld [vmem:[#allocation254_spill] sm:$0xff] }
 0x347   : > { %2521 = vst [vmem:[#allocation1 + $0x5] ss:$9 sm:$0xff] %v6919_v11 }
 0x348   : > { %2522 = vst [vmem:[#allocation1 + $0x6] ss:$9 sm:$0xff] %v6907_v30 }
 0x349   : > { %2523 = vst [vmem:[#allocation1 + $0x7] ss:$9 sm:$0xff] %v6909_v53  ;;  %v9840_v53 = vld [vmem:[#allocation25_spill] sm:$0xff] }
 0x350   : > { %v7097_v60 = vld [vmem:[#allocation1] sm:$0xff] }
 0x351   : > { %9787 = vst [vmem:[#allocation284_spill] sm:$0xff] %v7097_v60  ;;  %v9901_v60 = vld [vmem:[#allocation156_spill] sm:$0xff] }
 0x352   : > { %2525 = vst [vmem:[#allocation1] ss:$9 sm:$0xff] %v6911_v19  ;;  %v9790_v19 = vld [vmem:[#allocation245_spill] sm:$0xff] }
 0x353   : > { %2526 = vst [vmem:[#allocation1 + $0x1] ss:$9 sm:$0xff] %v6913_v12  ;;  %v9824_v12 = vld [vmem:[#allocation274_spill] sm:$0xff] }
 0x354   : > { %2527 = vst [vmem:[#allocation1 + $0x2] ss:$9 sm:$0xff] %v6923_v13  ;;  %v9789_v13 = vld [vmem:[#allocation8_spill] sm:$0xff] }
 0x355   : > { %2528 = vst [vmem:[#allocation1 + $0x3] ss:$9 sm:$0xff] %v6925_v15  ;;  %v9826_v15 = vld [vmem:[#allocation276_spill] sm:$0xff] }
 0x356   : > { %2529 = vst [vmem:[#allocation1 + $0x4] ss:$9 sm:$0xff] %v6927_v44  ;;  %v9791_v44 = vld [vmem:[#allocation246_spill] sm:$0xff] }
 0x357   : > { %2530 = vst [vmem:[#allocation1 + $0x5] ss:$9 sm:$0xff] %v6929_v27  ;;  %v9792_v27 = vld [vmem:[#allocation247_spill] sm:$0xff] }
 0x358   : > { %2531 = vst [vmem:[#allocation1 + $0x6] ss:$9 sm:$0xff] %v6931_v54 }
 0x359   : > { %2532 = vst [vmem:[#allocation1 + $0x7] ss:$9 sm:$0xff] %v6933_v21  ;;  %v9794_v21 = vld [vmem:[#allocation248_spill] sm:$0xff] }
 0x360   : > { %v7107_v30 = vld [vmem:[#allocation1] sm:$0xff] }
 0x361   : > { %9788 = vst [vmem:[#allocation285_spill] sm:$0xff] %v7107_v30  ;;  %v9899_v30 = vld [vmem:[#allocation154_spill] sm:$0xff] }
 0x362   : > { %2534 = vst [vmem:[#allocation1] ss:$9 sm:$0xff] %v6935_v0  ;;  %v9796_v0 = vld [vmem:[#allocation250_spill] sm:$0xff] }
 0x363   : > { %2535 = vst [vmem:[#allocation1 + $0x1] ss:$9 sm:$0xff] %v6939_v5  ;;  %v9797_v5 = vld [vmem:[#allocation251_spill] sm:$0xff] }
 0x364   : > { %2536 = vst [vmem:[#allocation1 + $0x2] ss:$9 sm:$0xff] %v6941_v20  ;;  %v9798_v20 = vld [vmem:[#allocation252_spill] sm:$0xff] }
 0x365   : > { %2537 = vst [vmem:[#allocation1 + $0x3] ss:$9 sm:$0xff] %v6943_v51  ;;  %v9799_v51 = vld [vmem:[#allocation253_spill] sm:$0xff] }
 0x366   : > { %2538 = vst [vmem:[#allocation1 + $0x4] ss:$9 sm:$0xff] %v9789_v13  ;;  %v9846_v13 = vld [vmem:[#allocation39_spill] sm:$0xff] }
 0x367   : > { %2539 = vst [vmem:[#allocation1 + $0x5] ss:$9 sm:$0xff] %v9790_v19  ;;  %v9847_v19 = vld [vmem:[#allocation40_spill] sm:$0xff] }
 0x368   : > { %2540 = vst [vmem:[#allocation1 + $0x6] ss:$9 sm:$0xff] %v9791_v44  ;;  %v9848_v44 = vld [vmem:[#allocation43_spill] sm:$0xff] }
 0x369   : > { %2541 = vst [vmem:[#allocation1 + $0x7] ss:$9 sm:$0xff] %v9792_v27  ;;  %v9849_v27 = vld [vmem:[#allocation42_spill] sm:$0xff] }
 0x370   : > { %v7117_v54 = vld [vmem:[#allocation1] sm:$0xff] }
 0x371   : > { %9793 = vst [vmem:[#allocation8_spill] sm:$0xff] %v7117_v54  ;;  %v9896_v54 = vld [vmem:[#allocation142_spill] sm:$0xff] }
 0x372   : > { %2543 = vst [vmem:[#allocation1] ss:$9 sm:$0xff] %v9794_v21 }
 0x373   : > { %2544 = vst [vmem:[#allocation1 + $0x1] ss:$9 sm:$0xff] %v9795_v16  ;;  %v9851_v16 = vld [vmem:[#allocation44_spill] sm:$0xff] }
 0x374   : > { %2545 = vst [vmem:[#allocation1 + $0x2] ss:$9 sm:$0xff] %v9796_v0  ;;  %v9852_v0 = vld [vmem:[#allocation45_spill] sm:$0xff] }
 0x375   : > { %2546 = vst [vmem:[#allocation1 + $0x3] ss:$9 sm:$0xff] %v9797_v5  ;;  %v9853_v5 = vld [vmem:[#allocation57_spill] sm:$0xff] }
 0x376   : > { %2547 = vst [vmem:[#allocation1 + $0x4] ss:$9 sm:$0xff] %v9798_v20  ;;  %v9854_v20 = vld [vmem:[#allocation58_spill] sm:$0xff] }
 0x377   : > { %2548 = vst [vmem:[#allocation1 + $0x5] ss:$9 sm:$0xff] %v9799_v51  ;;  %v9855_v51 = vld [vmem:[#allocation59_spill] sm:$0xff] }
 0x378   : > { %2549 = vst [vmem:[#allocation1 + $0x6] ss:$9 sm:$0xff] %v9800_v22  ;;  %v9856_v22 = vld [vmem:[#allocation61_spill] sm:$0xff] }
 0x379   : > { %2550 = vst [vmem:[#allocation1 + $0x7] ss:$9 sm:$0xff] %v9801_v3  ;;  %v9857_v3 = vld [vmem:[#allocation60_spill] sm:$0xff] }
 0x380   : > { %v7127_v56 = vld [vmem:[#allocation1] sm:$0xff] }
 0x381   : > { %9802 = vst [vmem:[#allocation245_spill] sm:$0xff] %v7127_v56  ;;  %v9894_v56 = vld [vmem:[#allocation139_spill] sm:$0xff] }
 0x382   : > { %2552 = vst [vmem:[#allocation1] ss:$9 sm:$0xff] %v9803_v32  ;;  %v9858_v32 = vld [vmem:[#allocation62_spill] sm:$0xff] }
 0x383   : > { %2553 = vst [vmem:[#allocation1 + $0x1] ss:$9 sm:$0xff] %v9804_v39 }
 0x384   : > { %2554 = vst [vmem:[#allocation1 + $0x2] ss:$9 sm:$0xff] %v9805_v46  ;;  %v9860_v46 = vld [vmem:[#allocation63_spill] sm:$0xff] }
 0x385   : > { %2555 = vst [vmem:[#allocation1 + $0x3] ss:$9 sm:$0xff] %v9806_v37  ;;  %v9861_v37 = vld [vmem:[#allocation65_spill] sm:$0xff] }
 0x386   : > { %2556 = vst [vmem:[#allocation1 + $0x4] ss:$9 sm:$0xff] %v9807_v25  ;;  %v9862_v25 = vld [vmem:[#allocation75_spill] sm:$0xff] }
 0x387   : > { %2557 = vst [vmem:[#allocation1 + $0x5] ss:$9 sm:$0xff] %v9808_v55  ;;  %v9863_v55 = vld [vmem:[#allocation77_spill] sm:$0xff] }
 0x388   : > { %2558 = vst [vmem:[#allocation1 + $0x6] ss:$9 sm:$0xff] %v9809_v23  ;;  %v9864_v23 = vld [vmem:[#allocation78_spill] sm:$0xff] }
 0x389   : > { %2559 = vst [vmem:[#allocation1 + $0x7] ss:$9 sm:$0xff] %v9810_v61  ;;  %v9865_v61 = vld [vmem:[#allocation79_spill] sm:$0xff] }
 0x390   : > { %v7137_v35 = vld [vmem:[#allocation1] sm:$0xff] }
 0x391   : > { %9811 = vst [vmem:[#allocation246_spill] sm:$0xff] %v7137_v35  ;;  %v9893_v35 = vld [vmem:[#allocation138_spill] sm:$0xff] }
 0x392   : > { %2561 = vst [vmem:[#allocation1] ss:$9 sm:$0xff] %v9812_v31  ;;  %v9866_v31 = vld [vmem:[#allocation80_spill] sm:$0xff] }
 0x393   : > { %2562 = vst [vmem:[#allocation1 + $0x1] ss:$9 sm:$0xff] %v9813_v1  ;;  %v9867_v1 = vld [vmem:[#allocation81_spill] sm:$0xff] }
 0x394   : > { %2563 = vst [vmem:[#allocation1 + $0x2] ss:$9 sm:$0xff] %v9814_v40 }
 0x395   : > { %2564 = vst [vmem:[#allocation1 + $0x3] ss:$9 sm:$0xff] %v9816_v52  ;;  %v9869_v52 = vld [vmem:[#allocation83_spill] sm:$0xff] }
 0x396   : > { %2565 = vst [vmem:[#allocation1 + $0x4] ss:$9 sm:$0xff] %v9817_v4  ;;  %v9870_v4 = vld [vmem:[#allocation84_spill] sm:$0xff] }
 0x397   : > { %2566 = vst [vmem:[#allocation1 + $0x5] ss:$9 sm:$0xff] %v9818_v43  ;;  %v9871_v43 = vld [vmem:[#allocation94_spill] sm:$0xff] }
 0x398   : > { %2567 = vst [vmem:[#allocation1 + $0x6] ss:$9 sm:$0xff] %v9819_v63  ;;  %v9872_v63 = vld [vmem:[#allocation97_spill] sm:$0xff] }
 0x399   : > { %2568 = vst [vmem:[#allocation1 + $0x7] ss:$9 sm:$0xff] %v9820_v58  ;;  %v9873_v58 = vld [vmem:[#allocation96_spill] sm:$0xff] }
 0x3a0   : > { %v7149_v57 = vld [vmem:[#allocation1] sm:$0xff] }
 0x3a1   : > { %9821 = vst [vmem:[#allocation247_spill] sm:$0xff] %v7149_v57  ;;  %v9892_v57 = vld [vmem:[#allocation137_spill] sm:$0xff] }
 0x3a2   : > { %2570 = vst [vmem:[#allocation1] ss:$9 sm:$0xff] %v9822_v6  ;;  %v9874_v6 = vld [vmem:[#allocation98_spill] sm:$0xff] }
 0x3a3   : > { %2571 = vst [vmem:[#allocation1 + $0x1] ss:$9 sm:$0xff] %v9823_v8  ;;  %v9875_v8 = vld [vmem:[#allocation99_spill] sm:$0xff] }
 0x3a4   : > { %2572 = vst [vmem:[#allocation1 + $0x2] ss:$9 sm:$0xff] %v9824_v12  ;;  %v9876_v12 = vld [vmem:[#allocation101_spill] sm:$0xff] }
 0x3a5   : > { %2573 = vst [vmem:[#allocation1 + $0x3] ss:$9 sm:$0xff] %v7015_v59 }
 0x3a6   : > { %2574 = vst [vmem:[#allocation1 + $0x4] ss:$9 sm:$0xff] %v9825_v14 }
 0x3a7   : > { %2575 = vst [vmem:[#allocation1 + $0x5] ss:$9 sm:$0xff] %v9826_v15  ;;  %v9878_v15 = vld [vmem:[#allocation102_spill] sm:$0xff] }
 0x3a8   : > { %2576 = vst [vmem:[#allocation1 + $0x6] ss:$9 sm:$0xff] %v9827_v17  ;;  %v9879_v17 = vld [vmem:[#allocation103_spill] sm:$0xff] }
 0x3a9   : > { %2577 = vst [vmem:[#allocation1 + $0x7] ss:$9 sm:$0xff] %v9828_v18  ;;  %v9880_v18 = vld [vmem:[#allocation115_spill] sm:$0xff] }
 0x3b0   : > { %v7159_v11 = vld [vmem:[#allocation1] sm:$0xff] }
 0x3b1   : > { %9829 = vst [vmem:[#allocation248_spill] sm:$0xff] %v7159_v11  ;;  %v9891_v11 = vld [vmem:[#allocation136_spill] sm:$0xff] }
 0x3b2   : > { %2579 = vst [vmem:[#allocation1] ss:$9 sm:$0xff] %v9830_v36  ;;  %v9881_v36 = vld [vmem:[#allocation114_spill] sm:$0xff] }
 0x3b3   : > { %2580 = vst [vmem:[#allocation1 + $0x1] ss:$9 sm:$0xff] %v7029_v26  ;;  %v9833_v26 = vld [vmem:[#allocation14_spill] sm:$0xff] }
 0x3b4   : > { %2581 = vst [vmem:[#allocation1 + $0x2] ss:$9 sm:$0xff] %v7031_v24  ;;  %v9834_v24 = vld [vmem:[#allocation13_spill] sm:$0xff] }
 0x3b5   : > { %2582 = vst [vmem:[#allocation1 + $0x3] ss:$9 sm:$0xff] %v7035_v50  ;;  %v9835_v50 = vld [vmem:[#allocation17_spill] sm:$0xff] }
 0x3b6   : > { %2583 = vst [vmem:[#allocation1 + $0x4] ss:$9 sm:$0xff] %v7037_v9  ;;  %v9836_v9 = vld [vmem:[#allocation19_spill] sm:$0xff] }
 0x3b7   : > { %2584 = vst [vmem:[#allocation1 + $0x5] ss:$9 sm:$0xff] %v7039_v33  ;;  %v9837_v33 = vld [vmem:[#allocation20_spill] sm:$0xff] }
 0x3b8   : > { %2585 = vst [vmem:[#allocation1 + $0x6] ss:$9 sm:$0xff] %v7041_v38  ;;  %v9838_v38 = vld [vmem:[#allocation21_spill] sm:$0xff] }
 0x3b9   : > { %2586 = vst [vmem:[#allocation1 + $0x7] ss:$9 sm:$0xff] %v7043_v47  ;;  %v9839_v47 = vld [vmem:[#allocation22_spill] sm:$0xff] }
 0x3c0   : > { %v7169_v59 = vld [vmem:[#allocation1] sm:$0xff] }
 0x3c1   : > { %9831 = vst [vmem:[#allocation249_spill] sm:$0xff] %v7169_v59  ;;  %v9890_v59 = vld [vmem:[#allocation135_spill] sm:$0xff] }
 0x3c2   : > { %2588 = vst [vmem:[#allocation1] ss:$9 sm:$0xff] %v7045_v7 }
 0x3c3   : > { %2589 = vst [vmem:[#allocation1 + $0x1] ss:$9 sm:$0xff] %v7047_v29  ;;  %v9842_v29 = vld [vmem:[#allocation24_spill] sm:$0xff] }
 0x3ca   : > { %v7173_v10 = vld [vmem:[#allocation1] sm:$0xff] }
 0x3cb   : > { %9832 = vst [vmem:[#allocation250_spill] sm:$0xff] %v7173_v10  ;;  %v9889_v10 = vld [vmem:[#allocation132_spill] sm:$0xff] }
 0x3cc   : > { %2743 = vst [vmem:[#allocation1] ss:$9 sm:$0xff] %v9833_v26  ;;  %v9882_v26 = vld [vmem:[#allocation116_spill] sm:$0xff] }
 0x3cd   : > { %2745 = vst [vmem:[#allocation1 + $0x1] ss:$9 sm:$0xff] %v9834_v24  ;;  %v9883_v24 = vld [vmem:[#allocation117_spill] sm:$0xff] }
 0x3ce   : > { %2747 = vst [vmem:[#allocation1 + $0x2] ss:$9 sm:$0xff] %v9835_v50  ;;  %v9884_v50 = vld [vmem:[#allocation119_spill] sm:$0xff] }
 0x3cf   : > { %2749 = vst [vmem:[#allocation1 + $0x3] ss:$9 sm:$0xff] %v9836_v9  ;;  %v9885_v9 = vld [vmem:[#allocation120_spill] sm:$0xff] }
 0x3d0   : > { %2751 = vst [vmem:[#allocation1 + $0x4] ss:$9 sm:$0xff] %v9837_v33 }
 0x3d1   : > { %2753 = vst [vmem:[#allocation1 + $0x5] ss:$9 sm:$0xff] %v9838_v38  ;;  %v9887_v38 = vld [vmem:[#allocation121_spill] sm:$0xff] }
 0x3d2   : > { %2755 = vst [vmem:[#allocation1 + $0x6] ss:$9 sm:$0xff] %v9839_v47  ;;  %v9888_v47 = vld [vmem:[#allocation134_spill] sm:$0xff] }
 0x3d3   : > { %2757 = vst [vmem:[#allocation1 + $0x7] ss:$9 sm:$0xff] %v9840_v53  ;;  %v10084_v53 = vld [vmem:[#allocation127_spill] sm:$0xff] }
 0x3da   : > { %v7183_v7 = vld [vmem:[#allocation1] sm:$0xff] }
 0x3db   : > { %9841 = vst [vmem:[#allocation251_spill] sm:$0xff] %v7183_v7 }
 0x3dc   : > { %2759 = vst [vmem:[#allocation1] ss:$9 sm:$0xff] %v9842_v29 }
 0x3dd   : > { %2760 = vst [vmem:[#allocation1 + $0x1] ss:$9 sm:$0xff] %v9843_v48 }
 0x3de   : > { %2761 = vst [vmem:[#allocation1 + $0x2] ss:$9 sm:$0xff] %v9844_v41 }
 0x3df   : > { %2762 = vst [vmem:[#allocation1 + $0x3] ss:$9 sm:$0xff] %v9845_v49 }
 0x3e0   : > { %2763 = vst [vmem:[#allocation1 + $0x4] ss:$9 sm:$0xff] %v9846_v13 }
 0x3e1   : > { %2764 = vst [vmem:[#allocation1 + $0x5] ss:$9 sm:$0xff] %v9847_v19 }
 0x3e2   : > { %2765 = vst [vmem:[#allocation1 + $0x6] ss:$9 sm:$0xff] %v9848_v44  ;;  %v10076_v44 = vld [vmem:[#allocation122_spill] sm:$0xff] }
 0x3e3   : > { %2766 = vst [vmem:[#allocation1 + $0x7] ss:$9 sm:$0xff] %v9849_v27 }
 0x3ea   : > { %v7193_v21 = vld [vmem:[#allocation1] sm:$0xff] }
 0x3eb   : > { %9850 = vst [vmem:[#allocation252_spill] sm:$0xff] %v7193_v21  ;;  %v9902_v21 = vld [vmem:[#allocation157_spill] sm:$0xff] }
 0x3ec   : > { %2768 = vst [vmem:[#allocation1] ss:$9 sm:$0xff] %v9851_v16 }
 0x3ed   : > { %2769 = vst [vmem:[#allocation1 + $0x1] ss:$9 sm:$0xff] %v9852_v0 }
 0x3ee   : > { %2770 = vst [vmem:[#allocation1 + $0x2] ss:$9 sm:$0xff] %v9853_v5 }
 0x3ef   : > { %2771 = vst [vmem:[#allocation1 + $0x3] ss:$9 sm:$0xff] %v9854_v20  ;;  %v10072_v20 = vld [vmem:[#allocation100_spill] sm:$0xff] }
 0x3f0   : > { %2772 = vst [vmem:[#allocation1 + $0x4] ss:$9 sm:$0xff] %v9855_v51 }
 0x3f1   : > { %2773 = vst [vmem:[#allocation1 + $0x5] ss:$9 sm:$0xff] %v9856_v22 }
 0x3f2   : > { %2774 = vst [vmem:[#allocation1 + $0x6] ss:$9 sm:$0xff] %v9857_v3 }
 0x3f3   : > { %2775 = vst [vmem:[#allocation1 + $0x7] ss:$9 sm:$0xff] %v9858_v32 }
 0x3fa   : > { %v7203_v39 = vld [vmem:[#allocation1] sm:$0xff] }
 0x3fb   : > { %9859 = vst [vmem:[#allocation253_spill] sm:$0xff] %v7203_v39  ;;  %v9900_v39 = vld [vmem:[#allocation155_spill] sm:$0xff] }
 0x3fc   : > { %2777 = vst [vmem:[#allocation1] ss:$9 sm:$0xff] %v9860_v46 }
 0x3fd   : > { %2778 = vst [vmem:[#allocation1 + $0x1] ss:$9 sm:$0xff] %v9861_v37 }
 0x3fe   : > { %2779 = vst [vmem:[#allocation1 + $0x2] ss:$9 sm:$0xff] %v9862_v25 }
 0x3ff   : > { %2780 = vst [vmem:[#allocation1 + $0x3] ss:$9 sm:$0xff] %v9863_v55  ;;  %v10071_v55 = vld [vmem:[#allocation82_spill] sm:$0xff] }
 0x400   : > { %2781 = vst [vmem:[#allocation1 + $0x4] ss:$9 sm:$0xff] %v9864_v23 }
 0x401   : > { %2782 = vst [vmem:[#allocation1 + $0x5] ss:$9 sm:$0xff] %v9865_v61 }
 0x402   : > { %2783 = vst [vmem:[#allocation1 + $0x6] ss:$9 sm:$0xff] %v9866_v31 }
 0x403   : > { %2784 = vst [vmem:[#allocation1 + $0x7] ss:$9 sm:$0xff] %v9867_v1  ;;  %v10070_v1 = vld [vmem:[#allocation86_spill] sm:$0xff] }
 0x40a   : > { %v7213_v40 = vld [vmem:[#allocation1] sm:$0xff] }
 0x40b   : > { %9868 = vst [vmem:[#allocation254_spill] sm:$0xff] %v7213_v40  ;;  %v9898_v40 = vld [vmem:[#allocation152_spill] sm:$0xff] }
 0x40c   : > { %2786 = vst [vmem:[#allocation1] ss:$9 sm:$0xff] %v9869_v52 }
 0x40d   : > { %2787 = vst [vmem:[#allocation1 + $0x1] ss:$9 sm:$0xff] %v9870_v4 }
 0x40e   : > { %2788 = vst [vmem:[#allocation1 + $0x2] ss:$9 sm:$0xff] %v9871_v43 }
 0x40f   : > { %2789 = vst [vmem:[#allocation1 + $0x3] ss:$9 sm:$0xff] %v9872_v63  ;;  %v10069_v63 = vld [vmem:[#allocation64_spill] sm:$0xff] }
 0x410   : > { %2790 = vst [vmem:[#allocation1 + $0x4] ss:$9 sm:$0xff] %v9873_v58 }
 0x411   : > { %2791 = vst [vmem:[#allocation1 + $0x5] ss:$9 sm:$0xff] %v9874_v6 }
 0x412   : > { %2792 = vst [vmem:[#allocation1 + $0x6] ss:$9 sm:$0xff] %v9875_v8  ;;  %v10068_v8 = vld [vmem:[#allocation68_spill] sm:$0xff] }
 0x413   : > { %2793 = vst [vmem:[#allocation1 + $0x7] ss:$9 sm:$0xff] %v9876_v12 }
 0x41a   : > { %v7223_v14 = vld [vmem:[#allocation1] sm:$0xff] }
 0x41b   : > { %9877 = vst [vmem:[#allocation255_spill] sm:$0xff] %v7223_v14 }
 0x41c   : > { %2795 = vst [vmem:[#allocation1] ss:$9 sm:$0xff] %v9878_v15 }
 0x41d   : > { %2796 = vst [vmem:[#allocation1 + $0x1] ss:$9 sm:$0xff] %v9879_v17 }
 0x41e   : > { %2797 = vst [vmem:[#allocation1 + $0x2] ss:$9 sm:$0xff] %v9880_v18  ;;  %v10067_v18 = vld [vmem:[#allocation46_spill] sm:$0xff] }
 0x41f   : > { %2798 = vst [vmem:[#allocation1 + $0x3] ss:$9 sm:$0xff] %v9881_v36 }
 0x420   : > { %2799 = vst [vmem:[#allocation1 + $0x4] ss:$9 sm:$0xff] %v9882_v26 }
 0x421   : > { %2800 = vst [vmem:[#allocation1 + $0x5] ss:$9 sm:$0xff] %v9883_v24  ;;  %v10051_v24 = vld [vmem:[#allocation229_spill] sm:$0xff] }
 0x422   : > { %2801 = vst [vmem:[#allocation1 + $0x6] ss:$9 sm:$0xff] %v9884_v50  ;;  %v10049_v50 = vld [vmem:[#allocation228_spill] sm:$0xff] }
 0x423   : > { %2802 = vst [vmem:[#allocation1 + $0x7] ss:$9 sm:$0xff] %v9885_v9 }
 0x42a   : > { %v7233_v33 = vld [vmem:[#allocation1] sm:$0xff] }
 0x42b   : > { %9886 = vst [vmem:[#allocation256_spill] sm:$0xff] %v7233_v33  ;;  %v9897_v33 = vld [vmem:[#allocation141_spill] sm:$0xff] }
 0x42c   : > { %2804 = vst [vmem:[#allocation1] ss:$9 sm:$0xff] %v9887_v38  ;;  %v9956_v38 = vld [vmem:[#allocation37_spill] sm:$0xff] }
 0x42d   : > { %2805 = vst [vmem:[#allocation1 + $0x1] ss:$9 sm:$0xff] %v9888_v47 }
 0x42e   : > { %2806 = vst [vmem:[#allocation1 + $0x2] ss:$9 sm:$0xff] %v9889_v10  ;;  %v9953_v10 = vld [vmem:[#allocation34_spill] sm:$0xff] }
 0x42f   : > { %2807 = vst [vmem:[#allocation1 + $0x3] ss:$9 sm:$0xff] %v9890_v59  ;;  %v9950_v59 = vld [vmem:[#allocation30_spill] sm:$0xff] }
 0x430   : > { %2808 = vst [vmem:[#allocation1 + $0x4] ss:$9 sm:$0xff] %v9891_v11  ;;  %v9935_v11 = vld [vmem:[#allocation217_spill] sm:$0xff] }
 0x431   : > { %2809 = vst [vmem:[#allocation1 + $0x5] ss:$9 sm:$0xff] %v9892_v57 }
 0x432   : > { %2810 = vst [vmem:[#allocation1 + $0x6] ss:$9 sm:$0xff] %v9893_v35  ;;  %v5156_v35 = vld [vmem:[%s5333_s13 + $0xe8] sm:$0xff] }
 0x433   : > { %2811 = vst [vmem:[#allocation1 + $0x7] ss:$9 sm:$0xff] %v9894_v56 }
 0x43a   : > { %v7243_v14 = vld [vmem:[#allocation1] sm:$0xff] }
 0x43b   : > { %9895 = vst [vmem:[#allocation257_spill] sm:$0xff] %v7243_v14  ;;  %v9906_v14 = vld [vmem:[#allocation161_spill] sm:$0xff] }
 0x43c   : > { %2813 = vst [vmem:[#allocation1] ss:$9 sm:$0xff] %v9896_v54 }
 0x43d   : > { %2814 = vst [vmem:[#allocation1 + $0x1] ss:$9 sm:$0xff] %v9897_v33 }
 0x43e   : > { %2815 = vst [vmem:[#allocation1 + $0x2] ss:$9 sm:$0xff] %v9898_v40  ;;  %v9909_v40 = vld [vmem:[#allocation174_spill] sm:$0xff] }
 0x43f   : > { %2816 = vst [vmem:[#allocation1 + $0x3] ss:$9 sm:$0xff] %v9899_v30  ;;  %v9910_v30 = vld [vmem:[#allocation175_spill] sm:$0xff] }
 0x440   : > { %2817 = vst [vmem:[#allocation1 + $0x4] ss:$9 sm:$0xff] %v9900_v39  ;;  %v9911_v39 = vld [vmem:[#allocation178_spill] sm:$0xff] }
 0x441   : > { %2818 = vst [vmem:[#allocation1 + $0x5] ss:$9 sm:$0xff] %v9901_v60  ;;  %v9912_v60 = vld [vmem:[#allocation177_spill] sm:$0xff] }
 0x442   : > { %2819 = vst [vmem:[#allocation1 + $0x6] ss:$9 sm:$0xff] %v9902_v21 }
 0x443   : > { %2820 = vst [vmem:[#allocation1 + $0x7] ss:$9 sm:$0xff] %v9903_v62  ;;  %v9914_v62 = vld [vmem:[#allocation179_spill] sm:$0xff] }
 0x44a   : > { %v7253_v7 = vld [vmem:[#allocation1] sm:$0xff] }
 0x44b   : > { %9904 = vst [vmem:[#allocation258_spill] sm:$0xff] %v7253_v7  ;;  %v9915_v7 = vld [vmem:[#allocation180_spill] sm:$0xff] }
 0x44c   : > { %2822 = vst [vmem:[#allocation1] ss:$9 sm:$0xff] %v9905_v28  ;;  %v9916_v28 = vld [vmem:[#allocation192_spill] sm:$0xff] }
 0x44d   : > { %2823 = vst [vmem:[#allocation1 + $0x1] ss:$9 sm:$0xff] %v9906_v14  ;;  %v9917_v14 = vld [vmem:[#allocation193_spill] sm:$0xff] }
 0x44e   : > { %2824 = vst [vmem:[#allocation1 + $0x2] ss:$9 sm:$0xff] %v9907_v42  ;;  %v357_v42 = vstv %s4810_s17 }
 0x44f   : > { %2825 = vst [vmem:[#allocation1 + $0x3] ss:$9 sm:$0xff] %v9908_v34  ;;  %v9918_v34 = vld [vmem:[#allocation194_spill] sm:$0xff]  ;;  %v358_v54 = vmul.f32 %v357_v42, %v9815_v45 }
 0x450   : > { %2826 = vst [vmem:[#allocation1 + $0x4] ss:$9 sm:$0xff] %v9909_v40  ;;  %v9919_v40 = vld [vmem:[#allocation196_spill] sm:$0xff] }
 0x451   : > { %2827 = vst [vmem:[#allocation1 + $0x5] ss:$9 sm:$0xff] %v9910_v30  ;;  %v9920_v30 = vld [vmem:[#allocation195_spill] sm:$0xff] }
 0x452   : > { %2828 = vst [vmem:[#allocation1 + $0x6] ss:$9 sm:$0xff] %v9911_v39  ;;  %v9921_v39 = vld [vmem:[#allocation197_spill] sm:$0xff] }
 0x453   : > { %2829 = vst [vmem:[#allocation1 + $0x7] ss:$9 sm:$0xff] %v9912_v60  ;;  %v9924_v60 = vld [vmem:[#allocation200_spill] sm:$0xff] }
 0x45a   : > { %v7263_v21 = vld [vmem:[#allocation1] sm:$0xff] }
 0x45b   : > { %9913 = vst [vmem:[#allocation259_spill] sm:$0xff] %v7263_v21 }
 0x45c   : > { %2831 = vst [vmem:[#allocation1] ss:$9 sm:$0xff] %v9914_v62  ;;  %v9923_v62 = vld [vmem:[#allocation198_spill] sm:$0xff] }
 0x45d   : > { %2832 = vst [vmem:[#allocation1 + $0x1] ss:$9 sm:$0xff] %v9915_v7  ;;  %v346_v7 = vpop.permute.xlu0 %345 }
 0x45e   : > { %2833 = vst [vmem:[#allocation1 + $0x2] ss:$9 sm:$0xff] %v9916_v28  ;;  %v9925_v28 = vld [vmem:[#allocation210_spill] sm:$0xff]  ;;  %v349_v33 = vsel %vm348_vm7, 0.0, %v346_v7  ;;  %v382_v7 = vld [vmem:[%s8995_s2] sm:$0xf] }
 0x45f   : > { %2834 = vst [vmem:[#allocation1 + $0x3] ss:$9 sm:$0xff] %v9917_v14  ;;  %v9926_v14 = vld [vmem:[#allocation212_spill] sm:$0xff]  ;;  %4813 = vmatpush.msk.msra.mxu0 %vm386_vm9, %v382_v7  ;;  %v9939_v7 = vld [vmem:[#allocation227_spill] sm:$0xff] }
 0x460   : > { %2835 = vst [vmem:[#allocation1 + $0x4] ss:$9 sm:$0xff] %v9918_v34  ;;  %v9929_v34 = vld [vmem:[#allocation214_spill] sm:$0xff] }
 0x461   : > { %2836 = vst [vmem:[#allocation1 + $0x5] ss:$9 sm:$0xff] %v9919_v40  ;;  %v5155_v40 = vld [vmem:[%s5333_s13 + $0xe0] sm:$0xff] }
 0x462   : > { %2837 = vst [vmem:[#allocation1 + $0x6] ss:$9 sm:$0xff] %v9920_v30  ;;  %v7280_v30 = vpack.c.bf16 %v5155_v40, %v5155_v40  ;;  %v7289_v40 = vpack.c.bf16 %v5156_v35, %v5156_v35 }
 0x463   : > { %2838 = vst [vmem:[#allocation1 + $0x7] ss:$9 sm:$0xff] %v9921_v39  ;;  %v9928_v39 = vld [vmem:[#allocation213_spill] sm:$0xff] }
 0x464   : > { %9927 = vst [vmem:[#allocation261_spill] sm:$0xff] %v7280_v30 }
 0x465   : > { %v351_v56 = vpop.permute.xlu0 %350 }
 0x46a   : > { %v7273_v21 = vld [vmem:[#allocation1] sm:$0xff] }
 0x46b   : > { %9922 = vst [vmem:[#allocation260_spill] sm:$0xff] %v7273_v21  ;;  %v9930_v21 = vld [vmem:[#allocation215_spill] sm:$0xff] }
 0x46c   : > { %2840 = vst [vmem:[#allocation1] ss:$9 sm:$0xff] %v9923_v62  ;;  %v355_v62 = vstv %s341_s16 }
 0x46d   : > { %2841 = vst [vmem:[#allocation1 + $0x1] ss:$9 sm:$0xff] %v9924_v60  ;;  %v9931_v60 = vld [vmem:[#allocation216_spill] sm:$0xff] }
 0x46e   : > { %2842 = vst [vmem:[#allocation1 + $0x2] ss:$9 sm:$0xff] %v9925_v28  ;;  %v2720_v28 = vrot.slane %v7280_v30, 3 }
 0x46f   : > { %2843 = vst [vmem:[#allocation1 + $0x3] ss:$9 sm:$0xff] %v9926_v14  ;;  %v356_v14 = vmul.f32 %v355_v62, %v349_v33 }
 0x470   : > { %2844 = vst [vmem:[#allocation1 + $0x4] ss:$9 sm:$0xff] %v9928_v39  ;;  %v360_v39 = vstv %s4811_s23  ;;  %v2728_v62 = vsel %vm680_vm2, %v7280_v30, %v2720_v28  ;;  %v2731_v35 = vsel %vm684_vm3, %v7280_v30, %v2720_v28 }
 0x471   : > { %2845 = vst [vmem:[#allocation1 + $0x5] ss:$9 sm:$0xff] %v9929_v34  ;;  %v2725_v34 = vsel %vm676_vm1, %v7280_v30, %v2720_v28  ;;  %v359_v33 = vadd.f32 %v358_v54, %v356_v14  ;;  %v7318_v14 = vrot.slane %v2731_v35, 3 }
 0x472   : > { %2846 = vst [vmem:[#allocation1 + $0x6] ss:$9 sm:$0xff] %v9930_v21  ;;  %v354_v21 = vsel %vm353_vm8, %v351_v56, 0.0  ;;  %v7308_v56 = vsel %vm672_vm4, %v7280_v30, %v2720_v28  ;;  %v7310_v57 = vrot.slane %v2725_v34, 1  ;;  %v429_v28 = vld [vmem:[%s8996_s3] sm:$0xf] }
 0x473   : > { %2847 = vst [vmem:[#allocation1 + $0x7] ss:$9 sm:$0xff] %v9931_v60  ;;  %v361_v42 = vmul.f32 %v360_v39, %v354_v21  ;;  %v7304_v60 = vrot.slane %v7289_v40, 3  ;;  %v7315_v21 = vrot.slane %v2728_v62, 2  ;;  %v9937_v39 = vld [vmem:[#allocation218_spill] sm:$0xff]  ;;  %4816 = vmatpush.msk.msrb.mxu0 %vm386_vm9, %v429_v28 }
 0x474   : > { %9933 = vst [vmem:[#allocation263_spill] sm:$0xff] %v7308_v56 }
 0x475   : > { %9934 = vst [vmem:[#allocation264_spill] sm:$0xff] %v7310_v57  ;;  %v7313_v54 = vadd.f32 %v361_v42, %v359_v33  ;;  %v7327_v34 = vsel %vm672_vm4, %v7289_v40, %v7304_v60  ;;  %v2737_v62 = vsel %vm676_vm1, %v7289_v40, %v7304_v60  ;;  %v2740_v33 = vsel %vm680_vm2, %v7289_v40, %v7304_v60 }
 0x476   : > { %9936 = vst [vmem:[#allocation265_spill] sm:$0xff] %v7315_v21  ;;  %v7345_v42 = vrot.slane %v2737_v62, 1  ;;  %v7347_v35 = vrot.slane %v2740_v33, 2  ;;  %v9951_v62 = vld [vmem:[#allocation32_spill] sm:$0xff]  ;;  %v9952_v33 = vld [vmem:[#allocation33_spill] sm:$0xff] }
 0x477   : > { %9938 = vst [vmem:[#allocation266_spill] sm:$0xff] %v7318_v14  ;;  %4814 = vmatmul.msk.f32.vlgmr.msra.gmra.mxu0 %vm9940_vm10, %v7313_v54 }
 0x478   : > { %9941 = vst [vmem:[#allocation10_spill] sm:$0xff] %v7327_v34 }
 0x479   : > { %9943 = vst [vmem:[#allocation267_spill] sm:$0xff] %v7345_v42 }
 0x47a   : > { %v7301_v45 = vld [vmem:[#allocation1] sm:$0xff]  ;;  %9944 = vst [vmem:[#allocation268_spill] sm:$0xff] %v7347_v35 }
 0x47b   : > { %9932 = vst [vmem:[#allocation262_spill] sm:$0xff] %v7301_v45 }
 0x47c   : > { %2849 = vst [vmem:[#allocation1] ss:$9 sm:$0xff] %v9935_v11  ;;  %v9949_v11 = vld [vmem:[#allocation29_spill] sm:$0xff] }
 0x47d   : > { %2850 = vst [vmem:[#allocation1 + $0x1] ss:$9 sm:$0xff] %v9937_v39  ;;  %v9948_v39 = vld [vmem:[#allocation27_spill] sm:$0xff] }
 0x47e   : > { %2851 = vst [vmem:[#allocation1 + $0x2] ss:$9 sm:$0xff] %v9939_v7  ;;  %v9947_v7 = vld [vmem:[#allocation18_spill] sm:$0xff] }
 0x47f   : > { %2852 = vst [vmem:[#allocation1 + $0x3] ss:$9 sm:$0xff] %v7308_v56  ;;  %4817 = vmatmul.msk.f32.vlgmr.msrb.gmra.mxu0 %vm9942_vm11, %v7313_v54  ;;  %vm2043_vm11 = vcmask 1041408  }
 0x480   : > { %2854 = vst [vmem:[#allocation1 + $0x4] ss:$9 sm:$0xff] %v7310_v57 }
 0x481   : > { %2856 = vst [vmem:[#allocation1 + $0x5] ss:$9 sm:$0xff] %v7315_v21 }
 0x482   : > { %2858 = vst [vmem:[#allocation1 + $0x6] ss:$9 sm:$0xff] %v7318_v14 }
 0x483   : > { %2859 = vst [vmem:[#allocation1 + $0x7] ss:$9 sm:$0xff] %v7327_v34 }
 0x48a   : > { %v7349_v45 = vld [vmem:[#allocation1] sm:$0xff] }
 0x48b   : > { %9945 = vst [vmem:[#allocation269_spill] sm:$0xff] %v7349_v45  ;;  %v9954_v45 = vld [vmem:[#allocation35_spill] sm:$0xff] }
 0x48c   : > { %2862 = vst [vmem:[#allocation1] ss:$9 sm:$0xff] %v7345_v42 }
 0x48d   : > { %2864 = vst [vmem:[#allocation1 + $0x1] ss:$9 sm:$0xff] %v7347_v35 }
 0x494   : > { %v7353_v28 = vld [vmem:[#allocation1] sm:$0xff] }
 0x495   : > { %9946 = vst [vmem:[#allocation270_spill] sm:$0xff] %v7353_v28  ;;  %v9957_v28 = vld [vmem:[#allocation47_spill] sm:$0xff] }
 0x496   : > { %3050 = vst [vmem:[#allocation1] ss:$9 sm:$0xff] %v9947_v7  ;;  %v9958_v7 = vld [vmem:[#allocation48_spill] sm:$0xff] }
 0x497   : > { %3052 = vst [vmem:[#allocation1 + $0x1] ss:$9 sm:$0xff] %v9948_v39  ;;  %v9959_v39 = vld [vmem:[#allocation49_spill] sm:$0xff] }
 0x498   : > { %3054 = vst [vmem:[#allocation1 + $0x2] ss:$9 sm:$0xff] %v9949_v11  ;;  %v9960_v11 = vld [vmem:[#allocation51_spill] sm:$0xff] }
 0x499   : > { %3056 = vst [vmem:[#allocation1 + $0x3] ss:$9 sm:$0xff] %v9950_v59  ;;  %v9961_v59 = vld [vmem:[#allocation52_spill] sm:$0xff] }
 0x49a   : > { %3058 = vst [vmem:[#allocation1 + $0x4] ss:$9 sm:$0xff] %v9951_v62  ;;  %v9962_v62 = vld [vmem:[#allocation53_spill] sm:$0xff] }
 0x49b   : > { %3060 = vst [vmem:[#allocation1 + $0x5] ss:$9 sm:$0xff] %v9952_v33  ;;  %v9963_v33 = vld [vmem:[#allocation54_spill] sm:$0xff] }
 0x49c   : > { %3062 = vst [vmem:[#allocation1 + $0x6] ss:$9 sm:$0xff] %v9953_v10 }
 0x49d   : > { %3064 = vst [vmem:[#allocation1 + $0x7] ss:$9 sm:$0xff] %v9954_v45  ;;  %v9965_v45 = vld [vmem:[#allocation56_spill] sm:$0xff] }
 0x4a4   : > { %v7363_v47 = vld [vmem:[#allocation1] sm:$0xff] }
 0x4a5   : > { %9955 = vst [vmem:[#allocation271_spill] sm:$0xff] %v7363_v47  ;;  %v9966_v47 = vld [vmem:[#allocation66_spill] sm:$0xff] }
 0x4a6   : > { %3066 = vst [vmem:[#allocation1] ss:$9 sm:$0xff] %v9956_v38  ;;  %v9967_v38 = vld [vmem:[#allocation67_spill] sm:$0xff] }
 0x4a7   : > { %3067 = vst [vmem:[#allocation1 + $0x1] ss:$9 sm:$0xff] %v9957_v28  ;;  %v9968_v28 = vld [vmem:[#allocation69_spill] sm:$0xff] }
 0x4a8   : > { %3068 = vst [vmem:[#allocation1 + $0x2] ss:$9 sm:$0xff] %v9958_v7  ;;  %v9969_v7 = vld [vmem:[#allocation71_spill] sm:$0xff] }
 0x4a9   : > { %3069 = vst [vmem:[#allocation1 + $0x3] ss:$9 sm:$0xff] %v9959_v39  ;;  %v9970_v39 = vld [vmem:[#allocation72_spill] sm:$0xff] }
 0x4aa   : > { %3070 = vst [vmem:[#allocation1 + $0x4] ss:$9 sm:$0xff] %v9960_v11  ;;  %v9971_v11 = vld [vmem:[#allocation73_spill] sm:$0xff] }
 0x4ab   : > { %3071 = vst [vmem:[#allocation1 + $0x5] ss:$9 sm:$0xff] %v9961_v59  ;;  %v9972_v59 = vld [vmem:[#allocation74_spill] sm:$0xff] }
 0x4ac   : > { %3072 = vst [vmem:[#allocation1 + $0x6] ss:$9 sm:$0xff] %v9962_v62 }
 0x4ad   : > { %3073 = vst [vmem:[#allocation1 + $0x7] ss:$9 sm:$0xff] %v9963_v33  ;;  %v9974_v33 = vld [vmem:[#allocation76_spill] sm:$0xff] }
 0x4b4   : > { %v7373_v10 = vld [vmem:[#allocation1] sm:$0xff] }
 0x4b5   : > { %9964 = vst [vmem:[#allocation272_spill] sm:$0xff] %v7373_v10  ;;  %v9975_v10 = vld [vmem:[#allocation85_spill] sm:$0xff] }
 0x4b6   : > { %3075 = vst [vmem:[#allocation1] ss:$9 sm:$0xff] %v9965_v45  ;;  %v9976_v45 = vld [vmem:[#allocation87_spill] sm:$0xff] }
 0x4b7   : > { %3076 = vst [vmem:[#allocation1 + $0x1] ss:$9 sm:$0xff] %v9966_v47  ;;  %v9977_v47 = vld [vmem:[#allocation88_spill] sm:$0xff] }
 0x4b8   : > { %3077 = vst [vmem:[#allocation1 + $0x2] ss:$9 sm:$0xff] %v9967_v38  ;;  %v9978_v38 = vld [vmem:[#allocation90_spill] sm:$0xff] }
 0x4b9   : > { %3078 = vst [vmem:[#allocation1 + $0x3] ss:$9 sm:$0xff] %v9968_v28  ;;  %v9979_v28 = vld [vmem:[#allocation91_spill] sm:$0xff] }
 0x4ba   : > { %3079 = vst [vmem:[#allocation1 + $0x4] ss:$9 sm:$0xff] %v9969_v7  ;;  %v9980_v7 = vld [vmem:[#allocation92_spill] sm:$0xff] }
 0x4bb   : > { %3080 = vst [vmem:[#allocation1 + $0x5] ss:$9 sm:$0xff] %v9970_v39  ;;  %v9981_v39 = vld [vmem:[#allocation93_spill] sm:$0xff] }
 0x4bc   : > { %3081 = vst [vmem:[#allocation1 + $0x6] ss:$9 sm:$0xff] %v9971_v11 }
 0x4bd   : > { %3082 = vst [vmem:[#allocation1 + $0x7] ss:$9 sm:$0xff] %v9972_v59  ;;  %v9983_v59 = vld [vmem:[#allocation95_spill] sm:$0xff] }
 0x4c4   : > { %v7383_v62 = vld [vmem:[#allocation1] sm:$0xff] }
 0x4c5   : > { %9973 = vst [vmem:[#allocation273_spill] sm:$0xff] %v7383_v62  ;;  %v9984_v62 = vld [vmem:[#allocation105_spill] sm:$0xff] }
 0x4c6   : > { %3084 = vst [vmem:[#allocation1] ss:$9 sm:$0xff] %v9974_v33  ;;  %v9985_v33 = vld [vmem:[#allocation106_spill] sm:$0xff] }
 0x4c7   : > { %3085 = vst [vmem:[#allocation1 + $0x1] ss:$9 sm:$0xff] %v9975_v10  ;;  %v9986_v10 = vld [vmem:[#allocation107_spill] sm:$0xff] }
 0x4c8   : > { %3086 = vst [vmem:[#allocation1 + $0x2] ss:$9 sm:$0xff] %v9976_v45  ;;  %v9987_v45 = vld [vmem:[#allocation109_spill] sm:$0xff] }
 0x4c9   : > { %3087 = vst [vmem:[#allocation1 + $0x3] ss:$9 sm:$0xff] %v9977_v47  ;;  %v9988_v47 = vld [vmem:[#allocation110_spill] sm:$0xff] }
 0x4ca   : > { %3088 = vst [vmem:[#allocation1 + $0x4] ss:$9 sm:$0xff] %v9978_v38  ;;  %v9989_v38 = vld [vmem:[#allocation111_spill] sm:$0xff] }
 0x4cb   : > { %3089 = vst [vmem:[#allocation1 + $0x5] ss:$9 sm:$0xff] %v9979_v28  ;;  %v9990_v28 = vld [vmem:[#allocation112_spill] sm:$0xff] }
 0x4cc   : > { %3090 = vst [vmem:[#allocation1 + $0x6] ss:$9 sm:$0xff] %v9980_v7 }
 0x4cd   : > { %3091 = vst [vmem:[#allocation1 + $0x7] ss:$9 sm:$0xff] %v9981_v39  ;;  %v9992_v39 = vld [vmem:[#allocation113_spill] sm:$0xff] }
 0x4d4   : > { %v7393_v11 = vld [vmem:[#allocation1] sm:$0xff] }
 0x4d5   : > { %9982 = vst [vmem:[#allocation274_spill] sm:$0xff] %v7393_v11  ;;  %v9993_v11 = vld [vmem:[#allocation123_spill] sm:$0xff] }
 0x4d6   : > { %3093 = vst [vmem:[#allocation1] ss:$9 sm:$0xff] %v9983_v59  ;;  %v9994_v59 = vld [vmem:[#allocation124_spill] sm:$0xff] }
 0x4d7   : > { %3094 = vst [vmem:[#allocation1 + $0x1] ss:$9 sm:$0xff] %v9984_v62  ;;  %v9995_v62 = vld [vmem:[#allocation125_spill] sm:$0xff] }
 0x4d8   : > { %3095 = vst [vmem:[#allocation1 + $0x2] ss:$9 sm:$0xff] %v9985_v33  ;;  %v9996_v33 = vld [vmem:[#allocation128_spill] sm:$0xff] }
 0x4d9   : > { %3096 = vst [vmem:[#allocation1 + $0x3] ss:$9 sm:$0xff] %v9986_v10  ;;  %v9997_v10 = vld [vmem:[#allocation129_spill] sm:$0xff] }
 0x4da   : > { %3097 = vst [vmem:[#allocation1 + $0x4] ss:$9 sm:$0xff] %v9987_v45  ;;  %v9998_v45 = vld [vmem:[#allocation130_spill] sm:$0xff] }
 0x4db   : > { %3098 = vst [vmem:[#allocation1 + $0x5] ss:$9 sm:$0xff] %v9988_v47  ;;  %v9999_v47 = vld [vmem:[#allocation131_spill] sm:$0xff] }
 0x4dc   : > { %3099 = vst [vmem:[#allocation1 + $0x6] ss:$9 sm:$0xff] %v9989_v38 }
 0x4dd   : > { %3100 = vst [vmem:[#allocation1 + $0x7] ss:$9 sm:$0xff] %v9990_v28  ;;  %v10001_v28 = vld [vmem:[#allocation133_spill] sm:$0xff] }
 0x4e4   : > { %v7403_v7 = vld [vmem:[#allocation1] sm:$0xff] }
 0x4e5   : > { %9991 = vst [vmem:[#allocation275_spill] sm:$0xff] %v7403_v7  ;;  %v10002_v7 = vld [vmem:[#allocation143_spill] sm:$0xff] }
 0x4e6   : > { %3102 = vst [vmem:[#allocation1] ss:$9 sm:$0xff] %v9992_v39  ;;  %v10003_v39 = vld [vmem:[#allocation144_spill] sm:$0xff] }
 0x4e7   : > { %3103 = vst [vmem:[#allocation1 + $0x1] ss:$9 sm:$0xff] %v9993_v11  ;;  %v10004_v11 = vld [vmem:[#allocation146_spill] sm:$0xff] }
 0x4e8   : > { %3104 = vst [vmem:[#allocation1 + $0x2] ss:$9 sm:$0xff] %v9994_v59  ;;  %v10005_v59 = vld [vmem:[#allocation148_spill] sm:$0xff] }
 0x4e9   : > { %3105 = vst [vmem:[#allocation1 + $0x3] ss:$9 sm:$0xff] %v9995_v62  ;;  %v10006_v62 = vld [vmem:[#allocation149_spill] sm:$0xff] }
 0x4ea   : > { %3106 = vst [vmem:[#allocation1 + $0x4] ss:$9 sm:$0xff] %v9996_v33  ;;  %v10007_v33 = vld [vmem:[#allocation150_spill] sm:$0xff] }
 0x4eb   : > { %3107 = vst [vmem:[#allocation1 + $0x5] ss:$9 sm:$0xff] %v9997_v10  ;;  %v10008_v10 = vld [vmem:[#allocation151_spill] sm:$0xff] }
 0x4ec   : > { %3108 = vst [vmem:[#allocation1 + $0x6] ss:$9 sm:$0xff] %v9998_v45 }
 0x4ed   : > { %3109 = vst [vmem:[#allocation1 + $0x7] ss:$9 sm:$0xff] %v9999_v47 }
 0x4f4   : > { %v7413_v38 = vld [vmem:[#allocation1] sm:$0xff]  ;;  %v7423_v45 = vpop.f32.mrf.mxu0 }
 0x4f5   : > { %10000 = vst [vmem:[#allocation276_spill] sm:$0xff] %v7413_v38  ;;  %v10011_v38 = vld [vmem:[#allocation153_spill] sm:$0xff] }
 0x4f6   : > { %3111 = vst [vmem:[#allocation1] ss:$9 sm:$0xff] %v10001_v28  ;;  %v10012_v28 = vld [vmem:[#allocation162_spill] sm:$0xff] }
 0x4f7   : > { %3112 = vst [vmem:[#allocation1 + $0x1] ss:$9 sm:$0xff] %v10002_v7  ;;  %v10013_v7 = vld [vmem:[#allocation164_spill] sm:$0xff] }
 0x4f8   : > { %3113 = vst [vmem:[#allocation1 + $0x2] ss:$9 sm:$0xff] %v10003_v39  ;;  %v10014_v39 = vld [vmem:[#allocation165_spill] sm:$0xff] }
 0x4f9   : > { %3114 = vst [vmem:[#allocation1 + $0x3] ss:$9 sm:$0xff] %v10004_v11  ;;  %v10015_v11 = vld [vmem:[#allocation167_spill] sm:$0xff] }
 0x4fa   : > { %3115 = vst [vmem:[#allocation1 + $0x4] ss:$9 sm:$0xff] %v10005_v59  ;;  %v10018_v59 = vld [vmem:[#allocation170_spill] sm:$0xff] }
 0x4fb   : > { %3116 = vst [vmem:[#allocation1 + $0x5] ss:$9 sm:$0xff] %v10006_v62  ;;  %v10016_v62 = vld [vmem:[#allocation168_spill] sm:$0xff] }
 0x4fc   : > { %3117 = vst [vmem:[#allocation1 + $0x6] ss:$9 sm:$0xff] %v10007_v33  ;;  %v10017_v33 = vld [vmem:[#allocation169_spill] sm:$0xff] }
 0x4fd   : > { %3118 = vst [vmem:[#allocation1 + $0x7] ss:$9 sm:$0xff] %v10008_v10  ;;  %v7434_v10 = vpop.f32.mrf.mxu0 }
 0x4fe   : > { %10009 = vst [vmem:[#allocation277_spill] sm:$0xff] %v7423_v45  ;;  %v10026_v45 = vld [vmem:[#allocation188_spill] sm:$0xff] }
 0x504   : > { %v7425_v47 = vld [vmem:[#allocation1] sm:$0xff] }
 0x505   : > { %10010 = vst [vmem:[#allocation278_spill] sm:$0xff] %v7425_v47  ;;  %v454_v47 = vsel %vm453_vm12, %v7434_v10, -inf }
 0x506   : > { %3120 = vst [vmem:[#allocation1] ss:$9 sm:$0xff] %v10011_v38  ;;  %455 = vmax.xlane.f32.xlu1 %v454_v47  ;;  %v10023_v38 = vld [vmem:[#allocation184_spill] sm:$0xff]  ;;  %v10029_v47 = vld [vmem:[#allocation191_spill] sm:$0xff] }
 0x507   : > { %3121 = vst [vmem:[#allocation1 + $0x1] ss:$9 sm:$0xff] %v10012_v28 }
 0x508   : > { %3122 = vst [vmem:[#allocation1 + $0x2] ss:$9 sm:$0xff] %v10013_v7  ;;  %v10020_v7 = vld [vmem:[#allocation172_spill] sm:$0xff] }
 0x509   : > { %3123 = vst [vmem:[#allocation1 + $0x3] ss:$9 sm:$0xff] %v10014_v39  ;;  %v10021_v39 = vld [vmem:[#allocation182_spill] sm:$0xff] }
 0x50a   : > { %3124 = vst [vmem:[#allocation1 + $0x4] ss:$9 sm:$0xff] %v10015_v11  ;;  %v10022_v11 = vld [vmem:[#allocation183_spill] sm:$0xff] }
 0x50b   : > { %3125 = vst [vmem:[#allocation1 + $0x5] ss:$9 sm:$0xff] %v10016_v62  ;;  %v10024_v62 = vld [vmem:[#allocation186_spill] sm:$0xff] }
 0x50c   : > { %3126 = vst [vmem:[#allocation1 + $0x6] ss:$9 sm:$0xff] %v10017_v33  ;;  %v10025_v33 = vld [vmem:[#allocation187_spill] sm:$0xff] }
 0x50d   : > { %3127 = vst [vmem:[#allocation1 + $0x7] ss:$9 sm:$0xff] %v10018_v59  ;;  %v10027_v59 = vld [vmem:[#allocation189_spill] sm:$0xff] }
 0x514   : > { %v7439_v28 = vld [vmem:[#allocation1] sm:$0xff] }
 0x515   : > { %10019 = vst [vmem:[#allocation279_spill] sm:$0xff] %v7439_v28  ;;  %v10030_v28 = vld [vmem:[#allocation201_spill] sm:$0xff] }
 0x516   : > { %3129 = vst [vmem:[#allocation1] ss:$9 sm:$0xff] %v10020_v7  ;;  %v10031_v7 = vld [vmem:[#allocation202_spill] sm:$0xff] }
 0x517   : > { %3130 = vst [vmem:[#allocation1 + $0x1] ss:$9 sm:$0xff] %v10021_v39  ;;  %v10032_v39 = vld [vmem:[#allocation204_spill] sm:$0xff] }
 0x518   : > { %3131 = vst [vmem:[#allocation1 + $0x2] ss:$9 sm:$0xff] %v10022_v11  ;;  %v10033_v11 = vld [vmem:[#allocation206_spill] sm:$0xff] }
 0x519   : > { %3132 = vst [vmem:[#allocation1 + $0x3] ss:$9 sm:$0xff] %v10023_v38  ;;  %v10034_v38 = vld [vmem:[#allocation207_spill] sm:$0xff] }
 0x51a   : > { %3133 = vst [vmem:[#allocation1 + $0x4] ss:$9 sm:$0xff] %v10024_v62  ;;  %v10035_v62 = vld [vmem:[#allocation208_spill] sm:$0xff] }
 0x51b   : > { %3134 = vst [vmem:[#allocation1 + $0x5] ss:$9 sm:$0xff] %v10025_v33  ;;  %v10036_v33 = vld [vmem:[#allocation209_spill] sm:$0xff] }
 0x51c   : > { %3135 = vst [vmem:[#allocation1 + $0x6] ss:$9 sm:$0xff] %v10026_v45 }
 0x51d   : > { %3136 = vst [vmem:[#allocation1 + $0x7] ss:$9 sm:$0xff] %v10027_v59  ;;  %v10038_v59 = vld [vmem:[#allocation211_spill] sm:$0xff] }
 0x524   : > { %v7449_v9 = vld [vmem:[#allocation1] sm:$0xff] }
 0x525   : > { %10028 = vst [vmem:[#allocation14_spill] sm:$0xff] %v7449_v9  ;;  %v10039_v9 = vld [vmem:[#allocation219_spill] sm:$0xff] }
 0x526   : > { %3138 = vst [vmem:[#allocation1] ss:$9 sm:$0xff] %v10029_v47  ;;  %v10040_v47 = vld [vmem:[#allocation220_spill] sm:$0xff] }
 0x527   : > { %3139 = vst [vmem:[#allocation1 + $0x1] ss:$9 sm:$0xff] %v10030_v28  ;;  %v10041_v28 = vld [vmem:[#allocation221_spill] sm:$0xff] }
 0x528   : > { %3140 = vst [vmem:[#allocation1 + $0x2] ss:$9 sm:$0xff] %v10031_v7  ;;  %v10042_v7 = vld [vmem:[#allocation223_spill] sm:$0xff] }
 0x529   : > { %3141 = vst [vmem:[#allocation1 + $0x3] ss:$9 sm:$0xff] %v10032_v39  ;;  %v10043_v39 = vld [vmem:[#allocation224_spill] sm:$0xff] }
 0x52a   : > { %3142 = vst [vmem:[#allocation1 + $0x4] ss:$9 sm:$0xff] %v10033_v11  ;;  %v10044_v11 = vld [vmem:[#allocation225_spill] sm:$0xff] }
 0x52b   : > { %3143 = vst [vmem:[#allocation1 + $0x5] ss:$9 sm:$0xff] %v10034_v38  ;;  %v10045_v38 = vld [vmem:[#allocation226_spill] sm:$0xff] }
 0x52c   : > { %3144 = vst [vmem:[#allocation1 + $0x6] ss:$9 sm:$0xff] %v10035_v62 }
 0x52d   : > { %3145 = vst [vmem:[#allocation1 + $0x7] ss:$9 sm:$0xff] %v10036_v33  ;;  %v3000_v33 = vshrl.u32 %v7308_v56, 16  ;;  %v3028_v56 = vshrl.u32 %v7327_v34, 16 }
 0x534   : > { %v7459_v45 = vld [vmem:[#allocation1] sm:$0xff] }
 0x535   : > { %10037 = vst [vmem:[#allocation13_spill] sm:$0xff] %v7459_v45  ;;  %v3004_v45 = vshll.u32 %v7310_v57, 16 }
 0x536   : > { %3147 = vst [vmem:[#allocation1] ss:$9 sm:$0xff] %v10038_v59  ;;  %v3007_v59 = vshrl.u32 %v7310_v57, 16  ;;  %v3032_v57 = vshll.u32 %v7345_v42, 16 }
 0x537   : > { %3148 = vst [vmem:[#allocation1 + $0x1] ss:$9 sm:$0xff] %v10039_v9  ;;  %v3011_v9 = vshll.u32 %v7315_v21, 16 }
 0x538   : > { %3149 = vst [vmem:[#allocation1 + $0x2] ss:$9 sm:$0xff] %v10040_v47  ;;  %v3014_v47 = vshrl.u32 %v7315_v21, 16 }
 0x539   : > { %3150 = vst [vmem:[#allocation1 + $0x3] ss:$9 sm:$0xff] %v10041_v28  ;;  %v3018_v28 = vshll.u32 %v7318_v14, 16  ;;  %v7488_v21 = vsel %vm5538_vm0, %v3007_v59, %v3011_v9  ;;  %v7506_v9 = vsel %vm5538_vm0, %v3028_v56, %v3032_v57 }
 0x53a   : > { %3151 = vst [vmem:[#allocation1 + $0x4] ss:$9 sm:$0xff] %v10042_v7  ;;  %v3021_v7 = vshrl.u32 %v7318_v14, 16  ;;  %v10066_v14 = vld [vmem:[#allocation55_spill] sm:$0xff] }
 0x53b   : > { %3152 = vst [vmem:[#allocation1 + $0x5] ss:$9 sm:$0xff] %v10043_v39  ;;  %v3025_v39 = vshll.u32 %v7327_v34, 16 }
 0x53c   : > { %3153 = vst [vmem:[#allocation1 + $0x6] ss:$9 sm:$0xff] %v10044_v11 }
 0x53d   : > { %3154 = vst [vmem:[#allocation1 + $0x7] ss:$9 sm:$0xff] %v10045_v38  ;;  %v7481_v38 = vsel %vm5538_vm0, %v3000_v33, %v3004_v45  ;;  %v7496_v45 = vsel %vm5538_vm0, %v3014_v47, %v3018_v28  ;;  %v10053_v33 = vld [vmem:[#allocation230_spill] sm:$0xff]  ;;  %v7501_v34 = vsel %vm5538_vm0, %v3021_v7, %v3025_v39  ;;  %v3039_v28 = vshll.u32 %v7347_v35, 16  ;;  %v10059_v47 = vld [vmem:[#allocation12_spill] sm:$0xff] }
 0x53e   : > { %10048 = vst [vmem:[#allocation19_spill] sm:$0xff] %v7481_v38  ;;  %v3042_v7 = vshrl.u32 %v7347_v35, 16 }
 0x53f   : > { %10050 = vst [vmem:[#allocation20_spill] sm:$0xff] %v7488_v21 }
 0x540   : > { %10052 = vst [vmem:[#allocation21_spill] sm:$0xff] %v7496_v45 }
 0x541   : > { %10054 = vst [vmem:[#allocation22_spill] sm:$0xff] %v7501_v34 }
 0x542   : > { %10055 = vst [vmem:[#allocation18_spill] sm:$0xff] %v7506_v9 }
 0x544   : > { %v7477_v62 = vld [vmem:[#allocation1] sm:$0xff] }
 0x545   : > { %10046 = vst [vmem:[#allocation17_spill] sm:$0xff] %v7477_v62  ;;  %v2997_v62 = vsel %vm684_vm3, %v7289_v40, %v7304_v60  ;;  %v3035_v60 = vshrl.u32 %v7345_v42, 16 }
 0x546   : > { %3156 = vst [vmem:[#allocation1] ss:$9 sm:$0xff] %v10049_v50  ;;  %v2999_v59 = vrot.slane %v2997_v62, 3  ;;  %v10065_v50 = vld [vmem:[#allocation28_spill] sm:$0xff] }
 0x547   : > { %3157 = vst [vmem:[#allocation1 + $0x1] ss:$9 sm:$0xff] %v10051_v24  ;;  %v7517_v57 = vsel %vm5538_vm0, %v3035_v60, %v3039_v28 }
 0x548   : > { %3158 = vst [vmem:[#allocation1 + $0x2] ss:$9 sm:$0xff] %v10053_v33  ;;  %v3047_v39 = vshll.u32 %v2999_v59, 16 }
 0x549   : > { %3160 = vst [vmem:[#allocation1 + $0x3] ss:$9 sm:$0xff] %v7481_v38  ;;  %v10064_v38 = vld [vmem:[#allocation41_spill] sm:$0xff] }
 0x54a   : > { %3162 = vst [vmem:[#allocation1 + $0x4] ss:$9 sm:$0xff] %v7488_v21  ;;  %v7521_v56 = vsel %vm5538_vm0, %v3042_v7, %v3047_v39  ;;  %v10062_v39 = vld [vmem:[#allocation23_spill] sm:$0xff] }
 0x54b   : > { %3164 = vst [vmem:[#allocation1 + $0x5] ss:$9 sm:$0xff] %v7496_v45 }
 0x54c   : > { %3166 = vst [vmem:[#allocation1 + $0x6] ss:$9 sm:$0xff] %v7501_v34  ;;  %v10061_v34 = vld [vmem:[#allocation11_spill] sm:$0xff] }
 0x54d   : > { %3168 = vst [vmem:[#allocation1 + $0x7] ss:$9 sm:$0xff] %v7506_v9 }
 0x54e   : > { %10056 = vst [vmem:[#allocation27_spill] sm:$0xff] %v7517_v57 }
 0x54f   : > { %10057 = vst [vmem:[#allocation29_spill] sm:$0xff] %v7521_v56 }
 0x554   : > { %v7523_v62 = vld [vmem:[#allocation1] sm:$0xff] }
 0x555   : > { %10058 = vst [vmem:[#allocation30_spill] sm:$0xff] %v7523_v62 }
 0x556   : > { %3171 = vst [vmem:[#allocation1] ss:$9 sm:$0xff] %v7517_v57 }
 0x557   : > { %3173 = vst [vmem:[#allocation1 + $0x1] ss:$9 sm:$0xff] %v7521_v56 }
 0x558   : > { %3303 = vst [vmem:[#allocation1 + $0x20] sm:$0xff] %v10059_v47  ;;  %v10063_v47 = vld [vmem:[#allocation15_spill] sm:$0xff] }
 0x55e   : > { %v7528_v9 = vld [vmem:[#allocation1] sm:$0xff] }
 0x55f   : > { %10060 = vst [vmem:[#allocation32_spill] sm:$0xff] %v7528_v9  ;;  %v7531_v59 = vld [vmem:[#allocation1 + $0x20] ss:$4 sm:$0xff]  ;;  %v7533_v60 = vld [vmem:[#allocation1 + $0x21] ss:$4 sm:$0xff] }
 0x560   : > { %3302 = vst [vmem:[#allocation1] sm:$0xff] %v10061_v34  ;;  %v7535_v28 = vld [vmem:[#allocation1 + $0x22] ss:$4 sm:$0xff]  ;;  %v7537_v7 = vld [vmem:[#allocation1 + $0x23] ss:$4 sm:$0xff] }
 0x561   : > { %3319 = vst [vmem:[#allocation1 + $0x20] sm:$0xff] %v10062_v39 }
 0x567   : > { %v7540_v62 = vld [vmem:[#allocation1 + $0x1] ss:$4 sm:$0xff]  ;;  %v7542_v57 = vld [vmem:[#allocation1 + $0x2] ss:$4 sm:$0xff]  ;;  %v7544_v56 = vld [vmem:[#allocation1 + $0x3] ss:$4 sm:$0xff] }
 0x568   : > { %3318 = vst [vmem:[#allocation1] sm:$0xff] %v10063_v47  ;;  %v7547_v9 = vld [vmem:[#allocation1 + $0x20] ss:$4 sm:$0xff]  ;;  %v7549_v34 = vld [vmem:[#allocation1 + $0x21] ss:$4 sm:$0xff] }
 0x569   : > { %v7551_v45 = vld [vmem:[#allocation1 + $0x22] ss:$4 sm:$0xff]  ;;  %v7553_v21 = vld [vmem:[#allocation1 + $0x23] ss:$4 sm:$0xff] }
 0x56a   : > { %3328 = vst [vmem:[#allocation1 + $0x20] sm:$0xff] %v10064_v38 }
 0x56f   : > { %v7556_v33 = vld [vmem:[#allocation1 + $0x1] ss:$4 sm:$0xff]  ;;  %v7558_v39 = vld [vmem:[#allocation1 + $0x2] ss:$4 sm:$0xff]  ;;  %v7560_v24 = vld [vmem:[#allocation1 + $0x3] ss:$4 sm:$0xff] }
 0x570   : > { %3327 = vst [vmem:[#allocation1] sm:$0xff] %v10065_v50 }
 0x571   : > { %v7563_v35 = vld [vmem:[#allocation1 + $0x20] ss:$4 sm:$0xff]  ;;  %v7565_v47 = vld [vmem:[#allocation1 + $0x21] ss:$4 sm:$0xff]  ;;  %v7567_v42 = vld [vmem:[#allocation1 + $0x22] ss:$4 sm:$0xff] }
 0x572   : > { %v7569_v11 = vld [vmem:[#allocation1 + $0x23] ss:$4 sm:$0xff] }
 0x573   : > { %3337 = vst [vmem:[#allocation1 + $0x20] sm:$0xff] %v10066_v14 }
 0x577   : > { %v7572_v26 = vld [vmem:[#allocation1 + $0x1] ss:$4 sm:$0xff]  ;;  %v7574_v38 = vld [vmem:[#allocation1 + $0x2] ss:$4 sm:$0xff]  ;;  %v7576_v36 = vld [vmem:[#allocation1 + $0x3] ss:$4 sm:$0xff] }
 0x578   : > { %3336 = vst [vmem:[#allocation1] sm:$0xff] %v10067_v18 }
 0x579   : > { %v456_v23 = vpop.xlane.xlu1 %455 }
 0x57a   : > { %v7579_v17 = vld [vmem:[#allocation1 + $0x20] ss:$4 sm:$0xff]  ;;  %v7581_v50 = vld [vmem:[#allocation1 + $0x21] ss:$4 sm:$0xff]  ;;  %v7583_v15 = vld [vmem:[#allocation1 + $0x22] ss:$4 sm:$0xff] }
 0x57b   : > { %v7585_v12 = vld [vmem:[#allocation1 + $0x23] ss:$4 sm:$0xff] }
 0x57c   : > { %3346 = vst [vmem:[#allocation1 + $0x20] sm:$0xff] %v10068_v8 }
 0x57f   : > { %v7588_v6 = vld [vmem:[#allocation1 + $0x1] ss:$4 sm:$0xff]  ;;  %v7590_v14 = vld [vmem:[#allocation1 + $0x2] ss:$4 sm:$0xff]  ;;  %v7592_v58 = vld [vmem:[#allocation1 + $0x3] ss:$4 sm:$0xff] }
 0x580   : > { %3345 = vst [vmem:[#allocation1] sm:$0xff] %v10069_v63  ;;  %v457_v63 = vsub.f32 %v7434_v10, %v456_v23 }
 0x582   : > { %v458_v25 = vmul.f32 1.442695, %v457_v63 }
 0x583   : > { %v7595_v43 = vld [vmem:[#allocation1 + $0x20] ss:$4 sm:$0xff]  ;;  %v7597_v18 = vld [vmem:[#allocation1 + $0x21] ss:$4 sm:$0xff]  ;;  %v7599_v4 = vld [vmem:[#allocation1 + $0x22] ss:$4 sm:$0xff] }
 0x584   : > { %v7601_v52 = vld [vmem:[#allocation1 + $0x23] ss:$4 sm:$0xff]  ;;  %5136 = vpow2.f32 %v458_v25 }
 0x585   : > { %3355 = vst [vmem:[#allocation1 + $0x20] sm:$0xff] %v10070_v1 }
 0x587   : > { %v7604_v31 = vld [vmem:[#allocation1 + $0x1] ss:$4 sm:$0xff]  ;;  %v7606_v8 = vld [vmem:[#allocation1 + $0x2] ss:$4 sm:$0xff]  ;;  %v7608_v61 = vld [vmem:[#allocation1 + $0x3] ss:$4 sm:$0xff] }
 0x588   : > { %3354 = vst [vmem:[#allocation1] sm:$0xff] %v10071_v55  ;;  %v10073_v55 = vld [vmem:[#allocation104_spill] sm:$0xff] }
 0x58a   : > { %v7628_v23 = vpop.eup %5136 }
 0x58b   : > { %v460_v25 = vsel %vm453_vm12, %v7628_v23, 0.0  ;;  %vm10284_vm12 = vcmask 31744  }
 0x58c   : > { %v7612_v37 = vld [vmem:[#allocation1 + $0x20] ss:$4 sm:$0xff]  ;;  %v7614_v46 = vld [vmem:[#allocation1 + $0x21] ss:$4 sm:$0xff]  ;;  %v7616_v32 = vld [vmem:[#allocation1 + $0x22] ss:$4 sm:$0xff]  ;;  %461 = vadd.xlane.f32.xlu1 %v460_v25 }
 0x58d   : > { %v7618_v1 = vld [vmem:[#allocation1 + $0x23] ss:$4 sm:$0xff] }
 0x58e   : > { %3364 = vst [vmem:[#allocation1 + $0x20] sm:$0xff] %v10073_v55  ;;  %v10075_v55 = vld [vmem:[#allocation118_spill] sm:$0xff] }
 0x58f   : > { %v7620_v3 = vld [vmem:[#allocation1 + $0x1] ss:$4 sm:$0xff]  ;;  %v7622_v22 = vld [vmem:[#allocation1 + $0x2] ss:$4 sm:$0xff]  ;;  %v7624_v51 = vld [vmem:[#allocation1 + $0x3] ss:$4 sm:$0xff] }
 0x590   : > { %3363 = vst [vmem:[#allocation1] sm:$0xff] %v10072_v20 }
 0x595   : > { %v7638_v0 = vld [vmem:[#allocation1 + $0x20] ss:$4 sm:$0xff]  ;;  %v7640_v16 = vld [vmem:[#allocation1 + $0x21] ss:$4 sm:$0xff]  ;;  %v7642_v27 = vld [vmem:[#allocation1 + $0x22] ss:$4 sm:$0xff] }
 0x596   : > { %v7644_v20 = vld [vmem:[#allocation1 + $0x23] ss:$4 sm:$0xff] }
 0x597   : > { %v7632_v63 = vld [vmem:[#allocation1 + $0x1] ss:$4 sm:$0xff]  ;;  %v7634_v10 = vld [vmem:[#allocation1 + $0x2] ss:$4 sm:$0xff]  ;;  %v7636_v5 = vld [vmem:[#allocation1 + $0x3] ss:$4 sm:$0xff] }
 0x598   : > { %10074 = vst [vmem:[#allocation33_spill] sm:$0xff] %v7644_v20  ;;  %v10085_v20 = vld [vmem:[#allocation140_spill] sm:$0xff] }
 0x599   : > { %3372 = vst [vmem:[#allocation1] sm:$0xff] %v10075_v55 }
 0x59a   : > { %3373 = vst [vmem:[#allocation1 + $0x20] sm:$0xff] %v10076_v44 }
 0x5a0   : > { %v7648_v19 = vld [vmem:[#allocation1 + $0x1] ss:$4 sm:$0xff]  ;;  %v7650_v25 = vld [vmem:[#allocation1 + $0x2] ss:$4 sm:$0xff]  ;;  %v7652_v13 = vld [vmem:[#allocation1 + $0x3] ss:$4 sm:$0xff] }
 0x5a1   : > { %10077 = vst [vmem:[#allocation34_spill] sm:$0xff] %v7648_v19  ;;  %v7654_v49 = vld [vmem:[#allocation1 + $0x20] ss:$4 sm:$0xff]  ;;  %v7656_v41 = vld [vmem:[#allocation1 + $0x21] ss:$4 sm:$0xff] }
 0x5a2   : > { %10078 = vst [vmem:[#allocation12_spill] sm:$0xff] %v7650_v25  ;;  %v7658_v48 = vld [vmem:[#allocation1 + $0x22] ss:$4 sm:$0xff]  ;;  %v7660_v29 = vld [vmem:[#allocation1 + $0x23] ss:$4 sm:$0xff] }
 0x5a3   : > { %10079 = vst [vmem:[#allocation11_spill] sm:$0xff] %v7652_v13 }
 0x5a4   : > { %10080 = vst [vmem:[#allocation286_spill] sm:$0xff] %v7654_v49 }
 0x5a5   : > { %10081 = vst [vmem:[#allocation287_spill] sm:$0xff] %v7656_v41 }
 0x5a6   : > { %10082 = vst [vmem:[#allocation288_spill] sm:$0xff] %v7658_v48  ;;  %v10093_v48 = vld [vmem:[#allocation145_spill] sm:$0xff] }
 0x5a7   : > { %10083 = vst [vmem:[#allocation289_spill] sm:$0xff] %v7660_v29  ;;  %v10094_v29 = vld [vmem:[#allocation158_spill] sm:$0xff] }
 0x5a8   : > { %3381 = vst [vmem:[#allocation1] sm:$0xff] %v10084_v53 }
 0x5a9   : > { %3382 = vst [vmem:[#allocation1 + $0x20] sm:$0xff] %v10085_v20 }
 0x5af   : > { %v7664_v55 = vld [vmem:[#allocation1 + $0x1] ss:$4 sm:$0xff]  ;;  %v7666_v44 = vld [vmem:[#allocation1 + $0x2] ss:$4 sm:$0xff]  ;;  %v7668_v19 = vld [vmem:[#allocation1 + $0x3] ss:$4 sm:$0xff] }
 0x5b0   : > { %10086 = vst [vmem:[#allocation290_spill] sm:$0xff] %v7664_v55  ;;  %v7670_v25 = vld [vmem:[#allocation1 + $0x20] ss:$4 sm:$0xff]  ;;  %v7672_v13 = vld [vmem:[#allocation1 + $0x21] ss:$4 sm:$0xff] }
 0x5b1   : > { %10087 = vst [vmem:[#allocation291_spill] sm:$0xff] %v7666_v44  ;;  %v7674_v49 = vld [vmem:[#allocation1 + $0x22] ss:$4 sm:$0xff]  ;;  %v7676_v41 = vld [vmem:[#allocation1 + $0x23] ss:$4 sm:$0xff] }
 0x5b2   : > { %10088 = vst [vmem:[#allocation292_spill] sm:$0xff] %v7668_v19 }
 0x5b3   : > { %10089 = vst [vmem:[#allocation293_spill] sm:$0xff] %v7670_v25 }
 0x5b4   : > { %10090 = vst [vmem:[#allocation294_spill] sm:$0xff] %v7672_v13 }
 0x5b5   : > { %10091 = vst [vmem:[#allocation295_spill] sm:$0xff] %v7674_v49  ;;  %v10102_v49 = vld [vmem:[#allocation163_spill] sm:$0xff] }
 0x5b6   : > { %10092 = vst [vmem:[#allocation296_spill] sm:$0xff] %v7676_v41  ;;  %v10103_v41 = vld [vmem:[#allocation176_spill] sm:$0xff] }
 0x5b7   : > { %3390 = vst [vmem:[#allocation1] sm:$0xff] %v10093_v48 }
 0x5b8   : > { %3391 = vst [vmem:[#allocation1 + $0x20] sm:$0xff] %v10094_v29 }
 0x5be   : > { %v7680_v53 = vld [vmem:[#allocation1 + $0x1] ss:$4 sm:$0xff]  ;;  %v7682_v20 = vld [vmem:[#allocation1 + $0x2] ss:$4 sm:$0xff]  ;;  %v7684_v55 = vld [vmem:[#allocation1 + $0x3] ss:$4 sm:$0xff] }
 0x5bf   : > { %10095 = vst [vmem:[#allocation297_spill] sm:$0xff] %v7680_v53  ;;  %v7686_v44 = vld [vmem:[#allocation1 + $0x20] ss:$4 sm:$0xff]  ;;  %v7688_v19 = vld [vmem:[#allocation1 + $0x21] ss:$4 sm:$0xff] }
 0x5c0   : > { %10096 = vst [vmem:[#allocation298_spill] sm:$0xff] %v7682_v20  ;;  %v7690_v25 = vld [vmem:[#allocation1 + $0x22] ss:$4 sm:$0xff]  ;;  %v7692_v13 = vld [vmem:[#allocation1 + $0x23] ss:$4 sm:$0xff] }
 0x5c1   : > { %10097 = vst [vmem:[#allocation299_spill] sm:$0xff] %v7684_v55 }
 0x5c2   : > { %10098 = vst [vmem:[#allocation300_spill] sm:$0xff] %v7686_v44 }
 0x5c3   : > { %10099 = vst [vmem:[#allocation301_spill] sm:$0xff] %v7688_v19 }
 0x5c4   : > { %10100 = vst [vmem:[#allocation302_spill] sm:$0xff] %v7690_v25  ;;  %v10110_v25 = vld [vmem:[#allocation181_spill] sm:$0xff] }
 0x5c5   : > { %10101 = vst [vmem:[#allocation303_spill] sm:$0xff] %v7692_v13  ;;  %v10111_v13 = vld [vmem:[#allocation190_spill] sm:$0xff] }
 0x5c6   : > { %3399 = vst [vmem:[#allocation1] sm:$0xff] %v10102_v49 }
 0x5c7   : > { %3400 = vst [vmem:[#allocation1 + $0x20] sm:$0xff] %v10103_v41 }
 0x5cd   : > { %v7696_v48 = vld [vmem:[#allocation1 + $0x1] ss:$4 sm:$0xff]  ;;  %v7698_v29 = vld [vmem:[#allocation1 + $0x2] ss:$4 sm:$0xff]  ;;  %v7700_v53 = vld [vmem:[#allocation1 + $0x3] ss:$4 sm:$0xff] }
 0x5ce   : > { %10104 = vst [vmem:[#allocation304_spill] sm:$0xff] %v7696_v48  ;;  %v7702_v20 = vld [vmem:[#allocation1 + $0x20] ss:$4 sm:$0xff]  ;;  %v7704_v55 = vld [vmem:[#allocation1 + $0x21] ss:$4 sm:$0xff] }
 0x5cf   : > { %10105 = vst [vmem:[#allocation305_spill] sm:$0xff] %v7698_v29  ;;  %v7706_v44 = vld [vmem:[#allocation1 + $0x22] ss:$4 sm:$0xff]  ;;  %v7708_v19 = vld [vmem:[#allocation1 + $0x23] ss:$4 sm:$0xff] }
 0x5d0   : > { %10106 = vst [vmem:[#allocation306_spill] sm:$0xff] %v7700_v53 }
 0x5d1   : > { %10107 = vst [vmem:[#allocation307_spill] sm:$0xff] %v7702_v20 }
 0x5d2   : > { %10108 = vst [vmem:[#allocation308_spill] sm:$0xff] %v7704_v55 }
 0x5d3   : > { %10109 = vst [vmem:[#allocation309_spill] sm:$0xff] %v7708_v19  ;;  %v10117_v19 = vld [vmem:[#allocation203_spill] sm:$0xff] }
 0x5d4   : > { %3408 = vst [vmem:[#allocation1] sm:$0xff] %v10110_v25 }
 0x5d5   : > { %3409 = vst [vmem:[#allocation1 + $0x20] sm:$0xff] %v10111_v13 }
 0x5db   : > { %v7712_v49 = vld [vmem:[#allocation1 + $0x1] ss:$4 sm:$0xff]  ;;  %v7714_v41 = vld [vmem:[#allocation1 + $0x2] ss:$4 sm:$0xff]  ;;  %v7716_v48 = vld [vmem:[#allocation1 + $0x3] ss:$4 sm:$0xff] }
 0x5dc   : > { %10112 = vst [vmem:[#allocation310_spill] sm:$0xff] %v7712_v49  ;;  %v7718_v29 = vld [vmem:[#allocation1 + $0x20] ss:$4 sm:$0xff]  ;;  %v7720_v53 = vld [vmem:[#allocation1 + $0x21] ss:$4 sm:$0xff] }
 0x5dd   : > { %10113 = vst [vmem:[#allocation311_spill] sm:$0xff] %v7714_v41  ;;  %v7722_v20 = vld [vmem:[#allocation1 + $0x22] ss:$4 sm:$0xff]  ;;  %v7724_v55 = vld [vmem:[#allocation1 + $0x23] ss:$4 sm:$0xff] }
 0x5de   : > { %10114 = vst [vmem:[#allocation312_spill] sm:$0xff] %v7716_v48 }
 0x5df   : > { %10115 = vst [vmem:[#allocation313_spill] sm:$0xff] %v7718_v29 }
 0x5e0   : > { %10116 = vst [vmem:[#allocation314_spill] sm:$0xff] %v7720_v53 }
 0x5e1   : > { %3417 = vst [vmem:[#allocation1] sm:$0xff] %v9782_v2 }
 0x5e2   : > { %3418 = vst [vmem:[#allocation1 + $0x20] sm:$0xff] %v10117_v19 }
 0x5e8   : > { %v7728_v25 = vld [vmem:[#allocation1 + $0x1] ss:$4 sm:$0xff]  ;;  %v7730_v13 = vld [vmem:[#allocation1 + $0x2] ss:$4 sm:$0xff]  ;;  %v7732_v49 = vld [vmem:[#allocation1 + $0x3] ss:$4 sm:$0xff] }
 0x5e9   : > { %10118 = vst [vmem:[#allocation315_spill] sm:$0xff] %v7728_v25  ;;  %v7734_v41 = vld [vmem:[#allocation1 + $0x20] ss:$4 sm:$0xff]  ;;  %v7736_v48 = vld [vmem:[#allocation1 + $0x21] ss:$4 sm:$0xff] }
 0x5ea   : > { %10119 = vst [vmem:[#allocation316_spill] sm:$0xff] %v7730_v13  ;;  %v7738_v29 = vld [vmem:[#allocation1 + $0x22] ss:$4 sm:$0xff]  ;;  %v7740_v53 = vld [vmem:[#allocation1 + $0x23] ss:$4 sm:$0xff] }
 0x5eb   : > { %10120 = vst [vmem:[#allocation317_spill] sm:$0xff] %v7732_v49 }
 0x5ec   : > { %10121 = vst [vmem:[#allocation318_spill] sm:$0xff] %v7734_v41 }
 0x5ed   : > { %10122 = vst [vmem:[#allocation319_spill] sm:$0xff] %v7736_v48 }
 0x5ee   : > { %3426 = vst [vmem:[#allocation1] sm:$0xff] %v7280_v30 }
 0x5ef   : > { %3427 = vst [vmem:[#allocation1 + $0x20] sm:$0xff] %v7289_v40 }
 0x5f5   : > { %v7744_v2 = vld [vmem:[#allocation1 + $0x1] ss:$4 sm:$0xff]  ;;  %v7746_v19 = vld [vmem:[#allocation1 + $0x2] ss:$4 sm:$0xff]  ;;  %v7748_v25 = vld [vmem:[#allocation1 + $0x3] ss:$4 sm:$0xff] }
 0x5f6   : > { %v7750_v13 = vld [vmem:[#allocation1 + $0x20] ss:$4 sm:$0xff]  ;;  %v7752_v49 = vld [vmem:[#allocation1 + $0x21] ss:$4 sm:$0xff]  ;;  %v7754_v41 = vld [vmem:[#allocation1 + $0x22] ss:$4 sm:$0xff] }
 0x5f7   : > { %v7756_v48 = vld [vmem:[#allocation1 + $0x23] ss:$4 sm:$0xff]  ;;  %3443 = vst [vmem:[#allocation1 + $0x4] ss:$9 sm:$0xff] %v7533_v60 }
 0x5f8   : > { %3435 = vst [vmem:[#allocation1] ss:$9 sm:$0xff] %v7540_v62  ;;  %v10135_v62 = vld [vmem:[#allocation290_spill] sm:$0xff]  ;;  %v10137_v60 = vld [vmem:[#allocation292_spill] sm:$0xff] }
 0x5f9   : > { %3437 = vst [vmem:[#allocation1 + $0x1] ss:$9 sm:$0xff] %v7542_v57 }
 0x5fa   : > { %3439 = vst [vmem:[#allocation1 + $0x2] ss:$9 sm:$0xff] %v7544_v56 }
 0x5fb   : > { %3441 = vst [vmem:[#allocation1 + $0x3] ss:$9 sm:$0xff] %v7531_v59  ;;  %v10136_v59 = vld [vmem:[#allocation291_spill] sm:$0xff] }
 0x5fc   : > { %3445 = vst [vmem:[#allocation1 + $0x5] ss:$9 sm:$0xff] %v7535_v28  ;;  %v10138_v28 = vld [vmem:[#allocation293_spill] sm:$0xff] }
 0x5fd   : > { %3447 = vst [vmem:[#allocation1 + $0x6] ss:$9 sm:$0xff] %v7537_v7  ;;  %v10139_v7 = vld [vmem:[#allocation294_spill] sm:$0xff] }
 0x5fe   : > { %3449 = vst [vmem:[#allocation1 + $0x7] ss:$9 sm:$0xff] %v7556_v33 }
 0x605   : > { %v7766_v30 = vld [vmem:[#allocation1] sm:$0xff] }
 0x606   : > { %3451 = vst [vmem:[#allocation1] ss:$9 sm:$0xff] %v7558_v39  ;;  %v10140_v39 = vld [vmem:[#allocation295_spill] sm:$0xff] }
 0x607   : > { %3452 = vst [vmem:[#allocation1 + $0x1] ss:$9 sm:$0xff] %v7560_v24 }
 0x608   : > { %3453 = vst [vmem:[#allocation1 + $0x2] ss:$9 sm:$0xff] %v7547_v9 }
 0x609   : > { %3454 = vst [vmem:[#allocation1 + $0x3] ss:$9 sm:$0xff] %v7549_v34  ;;  %v10142_v34 = vld [vmem:[#allocation297_spill] sm:$0xff] }
 0x60a   : > { %3455 = vst [vmem:[#allocation1 + $0x4] ss:$9 sm:$0xff] %v7551_v45 }
 0x60b   : > { %3456 = vst [vmem:[#allocation1 + $0x5] ss:$9 sm:$0xff] %v7553_v21  ;;  %v10129_v21 = vld [vmem:[#allocation11_spill] sm:$0xff] }
 0x60c   : > { %3457 = vst [vmem:[#allocation1 + $0x6] ss:$9 sm:$0xff] %v7572_v26 }
 0x60d   : > { %3458 = vst [vmem:[#allocation1 + $0x7] ss:$9 sm:$0xff] %v7574_v38 }
 0x614   : > { %v7776_v57 = vld [vmem:[#allocation1] sm:$0xff] }
 0x615   : > { %3460 = vst [vmem:[#allocation1] ss:$9 sm:$0xff] %v7576_v36  ;;  %v462_v36 = vpop.xlane.xlu1 %461 }
 0x616   : > { %3461 = vst [vmem:[#allocation1 + $0x1] ss:$9 sm:$0xff] %v7563_v35  ;;  %5138 = vrcp.f32 %v462_v36  ;;  %vm468_vm14 = vweird.f32 %v462_v36 }
 0x617   : > { %3462 = vst [vmem:[#allocation1 + $0x2] ss:$9 sm:$0xff] %v7565_v47  ;;  %v10141_v47 = vld [vmem:[#allocation296_spill] sm:$0xff] }
 0x618   : > { %3463 = vst [vmem:[#allocation1 + $0x3] ss:$9 sm:$0xff] %v7567_v42 }
 0x619   : > { %3464 = vst [vmem:[#allocation1 + $0x4] ss:$9 sm:$0xff] %v7569_v11 }
 0x61a   : > { %3465 = vst [vmem:[#allocation1 + $0x5] ss:$9 sm:$0xff] %v7588_v6 }
 0x61b   : > { %3466 = vst [vmem:[#allocation1 + $0x6] ss:$9 sm:$0xff] %v7590_v14  ;;  %v10130_v14 = vld [vmem:[#allocation286_spill] sm:$0xff] }
 0x61c   : > { %3467 = vst [vmem:[#allocation1 + $0x7] ss:$9 sm:$0xff] %v7592_v58  ;;  %v5139_v58 = vpop.eup %5138 }
 0x61d   : > { %v464_v6 = vmul.f32 %v5139_v58, %v462_v36  ;;  %vm469_vm13 = vweird.f32 %v5139_v58 }
 0x61e   : > { %vm470_vm15 = vmor %vm468_vm14, %vm469_vm13 }
 0x61f   : > { %v465_v24 = vsub.f32 1.0, %v464_v6  ;;  %v10148_v6 = vld [vmem:[#allocation302_spill] sm:$0xff]  ;;  %vm10286_vm13 = vmmov %vm10284_vm12 }
 0x620   : > { %vm10289_vm14 = vmmov %vm10284_vm12 }
 0x623   : > { %v7786_v26 = vld [vmem:[#allocation1] sm:$0xff] }
 0x624   : > { %3469 = vst [vmem:[#allocation1] ss:$9 sm:$0xff] %v7579_v17  ;;  %v474_v17 = vand.u32 2147483648, %v462_v36 }
 0x625   : > { %3470 = vst [vmem:[#allocation1 + $0x1] ss:$9 sm:$0xff] %v7581_v50  ;;  %v466_v50 = vmul.f32 %v5139_v58, %v465_v24  ;;  %v10149_v24 = vld [vmem:[#allocation303_spill] sm:$0xff] }
 0x626   : > { %3471 = vst [vmem:[#allocation1 + $0x2] ss:$9 sm:$0xff] %v7583_v15  ;;  %v4812_v15 = vmul.f32 -1.442695, %v7313_v54  ;;  %v10128_v54 = vld [vmem:[#allocation12_spill] sm:$0xff] }
 0x627   : > { %3472 = vst [vmem:[#allocation1 + $0x3] ss:$9 sm:$0xff] %v7585_v12  ;;  %v472_v12 = vand.u32 2147483647, %v462_v36  ;;  %v10146_v36 = vld [vmem:[#allocation300_spill] sm:$0xff] }
 0x628   : > { %3473 = vst [vmem:[#allocation1 + $0x4] ss:$9 sm:$0xff] %v7604_v31  ;;  %v467_v31 = vadd.f32 %v5139_v58, %v466_v50  ;;  %5140 = vpow2.f32 %v4812_v15  ;;  %v10151_v15 = vld [vmem:[#allocation305_spill] sm:$0xff] }
 0x629   : > { %3474 = vst [vmem:[#allocation1 + $0x5] ss:$9 sm:$0xff] %v7606_v8  ;;  %vm473_vm5 = vcmp.eq.f32.partialorder %v472_v12, 8.507059e+37  ;;  %v10153_v12 = vld [vmem:[#allocation306_spill] sm:$0xff] }
 0x62a   : > { %3475 = vst [vmem:[#allocation1 + $0x6] ss:$9 sm:$0xff] %v7608_v61  ;;  %v475_v61 = vor.u32 1.1754944e-38, %v474_v17  ;;  %v10150_v17 = vld [vmem:[#allocation304_spill] sm:$0xff] }
 0x62b   : > { %3476 = vst [vmem:[#allocation1 + $0x7] ss:$9 sm:$0xff] %v7595_v43  ;;  %v471_v43 = vsel %vm470_vm15, %v5139_v58, %v467_v31  ;;  %v10147_v58 = vld [vmem:[#allocation301_spill] sm:$0xff]  ;;  %v10154_v31 = vld [vmem:[#allocation307_spill] sm:$0xff]  ;;  %vm10291_vm15 = vmmov %vm10284_vm12 }
 0x62c   : > { %v476_v8 = vsel %vm473_vm5, %v475_v61, %v471_v43  ;;  %v10155_v61 = vld [vmem:[#allocation308_spill] sm:$0xff]  ;;  %v10156_v43 = vld [vmem:[#allocation309_spill] sm:$0xff]  ;;  %vm10301_vm5 = vmmov %vm10284_vm12 }
 0x632   : > { %v7796_v38 = vld [vmem:[#allocation1] sm:$0xff] }
 0x633   : > { %10123 = vst [vmem:[#allocation320_spill] sm:$0xff] %v7796_v38  ;;  %v10506_v38 = vld [vmem:[#allocation242_spill] sm:$0xff] }
 0x634   : > { %3478 = vst [vmem:[#allocation1] ss:$9 sm:$0xff] %v7597_v18  ;;  %v477_v18 = vmul.f32 %v7628_v23, %v476_v8  ;;  %v10157_v8 = vld [vmem:[#allocation310_spill] sm:$0xff] }
 0x635   : > { %3479 = vst [vmem:[#allocation1 + $0x1] ss:$9 sm:$0xff] %v7599_v4 }
 0x636   : > { %3480 = vst [vmem:[#allocation1 + $0x2] ss:$9 sm:$0xff] %v7601_v52  ;;  %508 = vrot.lane.b32.xlu2 %v477_v18, %s5244_s15  ;;  %v5141_v52 = vpop.eup %5140 }
 0x637   : > { %3481 = vst [vmem:[#allocation1 + $0x3] ss:$9 sm:$0xff] %v7620_v3  ;;  %v366_v4 = vadd.f32 1.0, %v5141_v52  ;;  %v10159_v52 = vld [vmem:[#allocation312_spill] sm:$0xff] }
 0x638   : > { %3482 = vst [vmem:[#allocation1 + $0x4] ss:$9 sm:$0xff] %v7622_v22 }
 0x639   : > { %3483 = vst [vmem:[#allocation1 + $0x5] ss:$9 sm:$0xff] %v7624_v51  ;;  %5142 = vrcp.f32 %v366_v4  ;;  %v378_v35 = vand.u32 2147483648, %v366_v4  ;;  %vm372_vm7 = vweird.f32 %v366_v4  ;;  %v376_v11 = vand.u32 2147483647, %v366_v4 }
 0x63a   : > { %3484 = vst [vmem:[#allocation1 + $0x6] ss:$9 sm:$0xff] %v7612_v37  ;;  %v10126_v37 = vld [vmem:[#allocation33_spill] sm:$0xff] }
 0x63b   : > { %3485 = vst [vmem:[#allocation1 + $0x7] ss:$9 sm:$0xff] %v7614_v46  ;;  %v379_v33 = vor.u32 1.1754944e-38, %v378_v35  ;;  %vm377_vm10 = vcmp.eq.f32.partialorder %v376_v11, 8.507059e+37  ;;  %v10184_v35 = vld [vmem:[#allocation59_spill] sm:$0xff]  ;;  %v10185_v11 = vld [vmem:[#allocation61_spill] sm:$0xff] }
 0x63c   : > { %5076 = vpush %v477_v18  ;;  %v10158_v18 = vld [vmem:[#allocation311_spill] sm:$0xff] }
 0x63f   : > { %v5143_v51 = vpop.eup %5142 }
 0x640   : > { %v368_v22 = vmul.f32 %v5143_v51, %v366_v4  ;;  %vm373_vm6 = vweird.f32 %v5143_v51 }
 0x641   : > { %vm374_vm8 = vmor %vm372_vm7, %vm373_vm6 }
 0x642   : > { %v7809_v3 = vld [vmem:[#allocation1] sm:$0xff]  ;;  %vm10303_vm6 = vmmov %vm10301_vm5 }
 0x643   : > { %10124 = vst [vmem:[#allocation321_spill] sm:$0xff] %v7809_v3  ;;  %vm10306_vm7 = vmmov %vm10301_vm5 }
 0x644   : > { %3487 = vst [vmem:[#allocation1] ss:$9 sm:$0xff] %v7616_v32  ;;  %v369_v32 = vsub.f32 1.0, %v368_v22  ;;  %v10162_v22 = vld [vmem:[#allocation314_spill] sm:$0xff] }
 0x645   : > { %3488 = vst [vmem:[#allocation1 + $0x1] ss:$9 sm:$0xff] %v7618_v1  ;;  %v10127_v1 = vld [vmem:[#allocation34_spill] sm:$0xff] }
 0x646   : > { %3489 = vst [vmem:[#allocation1 + $0x2] ss:$9 sm:$0xff] %v7632_v63  ;;  %v10144_v63 = vld [vmem:[#allocation298_spill] sm:$0xff] }
 0x647   : > { %3490 = vst [vmem:[#allocation1 + $0x3] ss:$9 sm:$0xff] %v7634_v10  ;;  %v10145_v10 = vld [vmem:[#allocation299_spill] sm:$0xff] }
 0x648   : > { %3491 = vst [vmem:[#allocation1 + $0x4] ss:$9 sm:$0xff] %v7636_v5  ;;  %v370_v5 = vmul.f32 %v5143_v51, %v369_v32  ;;  %v10163_v32 = vld [vmem:[#allocation315_spill] sm:$0xff] }
 0x649   : > { %3492 = vst [vmem:[#allocation1 + $0x5] ss:$9 sm:$0xff] %v7638_v0  ;;  %v10131_v0 = vld [vmem:[#allocation287_spill] sm:$0xff] }
 0x64a   : > { %3493 = vst [vmem:[#allocation1 + $0x6] ss:$9 sm:$0xff] %v7640_v16  ;;  %v10132_v16 = vld [vmem:[#allocation288_spill] sm:$0xff]  ;;  %v371_v42 = vadd.f32 %v5143_v51, %v370_v5  ;;  %v10168_v5 = vld [vmem:[#allocation319_spill] sm:$0xff] }
 0x64b   : > { %3494 = vst [vmem:[#allocation1 + $0x7] ss:$9 sm:$0xff] %v7642_v27  ;;  %v10133_v27 = vld [vmem:[#allocation289_spill] sm:$0xff] }
 0x64c   : > { %v375_v45 = vsel %vm374_vm8, %v5143_v51, %v371_v42  ;;  %v10161_v51 = vld [vmem:[#allocation313_spill] sm:$0xff]  ;;  %v10183_v42 = vld [vmem:[#allocation58_spill] sm:$0xff]  ;;  %vm10308_vm8 = vmmov %vm10301_vm5 }
 0x64d   : > { %v380_v56 = vsel %vm377_vm10, %v379_v33, %v375_v45  ;;  %v10186_v45 = vld [vmem:[#allocation60_spill] sm:$0xff]  ;;  %vm10318_vm10 = vmmov %vm10301_vm5 }
 0x652   : > { %v7819_v46 = vld [vmem:[#allocation1] sm:$0xff] }
 0x653   : > { %10125 = vst [vmem:[#allocation322_spill] sm:$0xff] %v7819_v46  ;;  %v10492_v46 = vld [vmem:[#allocation68_spill] sm:$0xff] }
 0x654   : > { %3496 = vst [vmem:[#allocation1] ss:$9 sm:$0xff] %v10126_v37  ;;  %v10165_v37 = vld [vmem:[#allocation317_spill] sm:$0xff] }
 0x655   : > { %3497 = vst [vmem:[#allocation1 + $0x1] ss:$9 sm:$0xff] %v10127_v1  ;;  %v10166_v1 = vld [vmem:[#allocation318_spill] sm:$0xff] }
 0x656   : > { %3498 = vst [vmem:[#allocation1 + $0x2] ss:$9 sm:$0xff] %v10128_v54 }
 0x657   : > { %3499 = vst [vmem:[#allocation1 + $0x3] ss:$9 sm:$0xff] %v10129_v21 }
 0x658   : > { %3500 = vst [vmem:[#allocation1 + $0x4] ss:$9 sm:$0xff] %v10130_v14  ;;  %v10178_v14 = vld [vmem:[#allocation43_spill] sm:$0xff] }
 0x659   : > { %3501 = vst [vmem:[#allocation1 + $0x5] ss:$9 sm:$0xff] %v10131_v0  ;;  %v10180_v0 = vld [vmem:[#allocation44_spill] sm:$0xff] }
 0x65a   : > { %3502 = vst [vmem:[#allocation1 + $0x6] ss:$9 sm:$0xff] %v10132_v16  ;;  %v10181_v16 = vld [vmem:[#allocation45_spill] sm:$0xff] }
 0x65b   : > { %3503 = vst [vmem:[#allocation1 + $0x7] ss:$9 sm:$0xff] %v10133_v27  ;;  %v10182_v27 = vld [vmem:[#allocation57_spill] sm:$0xff] }
 0x65c   : > { %523 = vxpose.xlu2.b32.start.end [1/1] (short) (narrow) %v380_v56, 8  ;;  %v10187_v56 = vld [vmem:[#allocation62_spill] sm:$0xff] }
 0x662   : > { %v7829_v9 = vld [vmem:[#allocation1] sm:$0xff] }
 0x663   : > { %10134 = vst [vmem:[#allocation33_spill] sm:$0xff] %v7829_v9 }
 0x664   : > { %3505 = vst [vmem:[#allocation1] ss:$9 sm:$0xff] %v10135_v62  ;;  %v10188_v62 = vld [vmem:[#allocation63_spill] sm:$0xff] }
 0x665   : > { %3506 = vst [vmem:[#allocation1 + $0x1] ss:$9 sm:$0xff] %v10136_v59  ;;  %v10189_v59 = vld [vmem:[#allocation65_spill] sm:$0xff] }
 0x666   : > { %3507 = vst [vmem:[#allocation1 + $0x2] ss:$9 sm:$0xff] %v10137_v60  ;;  %v10190_v60 = vld [vmem:[#allocation75_spill] sm:$0xff] }
 0x667   : > { %3508 = vst [vmem:[#allocation1 + $0x3] ss:$9 sm:$0xff] %v10138_v28  ;;  %v10191_v28 = vld [vmem:[#allocation77_spill] sm:$0xff] }
 0x668   : > { %3509 = vst [vmem:[#allocation1 + $0x4] ss:$9 sm:$0xff] %v10139_v7  ;;  %v10192_v7 = vld [vmem:[#allocation78_spill] sm:$0xff] }
 0x669   : > { %3510 = vst [vmem:[#allocation1 + $0x5] ss:$9 sm:$0xff] %v10140_v39  ;;  %v10193_v39 = vld [vmem:[#allocation79_spill] sm:$0xff] }
 0x66a   : > { %3511 = vst [vmem:[#allocation1 + $0x6] ss:$9 sm:$0xff] %v10141_v47  ;;  %v10194_v47 = vld [vmem:[#allocation80_spill] sm:$0xff] }
 0x66b   : > { %3512 = vst [vmem:[#allocation1 + $0x7] ss:$9 sm:$0xff] %v10142_v34 }
 0x66d   : > { %s5077_s7 = spop %5076 }
 0x672   : > { %v7839_v23 = vld [vmem:[#allocation1] sm:$0xff] }
 0x673   : > { %10143 = vst [vmem:[#allocation34_spill] sm:$0xff] %v7839_v23 }
 0x674   : > { %3514 = vst [vmem:[#allocation1] ss:$9 sm:$0xff] %v10144_v63  ;;  %v10195_v63 = vld [vmem:[#allocation81_spill] sm:$0xff] }
 0x675   : > { %3515 = vst [vmem:[#allocation1 + $0x1] ss:$9 sm:$0xff] %v10145_v10  ;;  %v10196_v10 = vld [vmem:[#allocation83_spill] sm:$0xff] }
 0x676   : > { %3516 = vst [vmem:[#allocation1 + $0x2] ss:$9 sm:$0xff] %v10146_v36  ;;  %v10197_v36 = vld [vmem:[#allocation84_spill] sm:$0xff] }
 0x677   : > { %3517 = vst [vmem:[#allocation1 + $0x3] ss:$9 sm:$0xff] %v10147_v58  ;;  %v10198_v58 = vld [vmem:[#allocation94_spill] sm:$0xff] }
 0x678   : > { %3518 = vst [vmem:[#allocation1 + $0x4] ss:$9 sm:$0xff] %v10148_v6  ;;  %v10199_v6 = vld [vmem:[#allocation97_spill] sm:$0xff] }
 0x679   : > { %3519 = vst [vmem:[#allocation1 + $0x5] ss:$9 sm:$0xff] %v10149_v24  ;;  %v10200_v24 = vld [vmem:[#allocation96_spill] sm:$0xff] }
 0x67a   : > { %3520 = vst [vmem:[#allocation1 + $0x6] ss:$9 sm:$0xff] %v10150_v17  ;;  %v10201_v17 = vld [vmem:[#allocation98_spill] sm:$0xff] }
 0x67b   : > { %3521 = vst [vmem:[#allocation1 + $0x7] ss:$9 sm:$0xff] %v10151_v15  ;;  %v10202_v15 = vld [vmem:[#allocation99_spill] sm:$0xff] }
 0x682   : > { %v7849_v50 = vld [vmem:[#allocation1] sm:$0xff] }
 0x683   : > { %10152 = vst [vmem:[#allocation12_spill] sm:$0xff] %v7849_v50 }
 0x684   : > { %3523 = vst [vmem:[#allocation1] ss:$9 sm:$0xff] %v10153_v12 }
 0x685   : > { %3524 = vst [vmem:[#allocation1 + $0x1] ss:$9 sm:$0xff] %v10154_v31  ;;  %v10203_v31 = vld [vmem:[#allocation101_spill] sm:$0xff] }
 0x686   : > { %3525 = vst [vmem:[#allocation1 + $0x2] ss:$9 sm:$0xff] %v10155_v61  ;;  %v10204_v61 = vld [vmem:[#allocation102_spill] sm:$0xff] }
 0x687   : > { %3526 = vst [vmem:[#allocation1 + $0x3] ss:$9 sm:$0xff] %v7706_v44  ;;  %v10164_v44 = vld [vmem:[#allocation316_spill] sm:$0xff] }
 0x688   : > { %3527 = vst [vmem:[#allocation1 + $0x4] ss:$9 sm:$0xff] %v10156_v43  ;;  %v10205_v43 = vld [vmem:[#allocation103_spill] sm:$0xff] }
 0x689   : > { %3528 = vst [vmem:[#allocation1 + $0x5] ss:$9 sm:$0xff] %v10157_v8  ;;  %v10206_v8 = vld [vmem:[#allocation115_spill] sm:$0xff] }
 0x68a   : > { %3529 = vst [vmem:[#allocation1 + $0x6] ss:$9 sm:$0xff] %v10158_v18  ;;  %v10207_v18 = vld [vmem:[#allocation114_spill] sm:$0xff] }
 0x68b   : > { %3530 = vst [vmem:[#allocation1 + $0x7] ss:$9 sm:$0xff] %v10159_v52  ;;  %v10208_v52 = vld [vmem:[#allocation116_spill] sm:$0xff] }
 0x690   : > { %v509_v54 = vpop.permute.xlu2 %508 }
 0x691   : > { %5078 = vpush %v509_v54 }
 0x692   : > { %v7859_v4 = vld [vmem:[#allocation1] sm:$0xff] }
 0x693   : > { %10160 = vst [vmem:[#allocation11_spill] sm:$0xff] %v7859_v4  ;;  %v10476_v4 = vld [vmem:[#allocation248_spill] sm:$0xff] }
 0x694   : > { %3532 = vst [vmem:[#allocation1] ss:$9 sm:$0xff] %v10161_v51  ;;  %v10209_v51 = vld [vmem:[#allocation117_spill] sm:$0xff] }
 0x695   : > { %3533 = vst [vmem:[#allocation1 + $0x1] ss:$9 sm:$0xff] %v10162_v22  ;;  %v5245_v22 = vmov 0  }
 0x696   : > { %3534 = vst [vmem:[#allocation1 + $0x2] ss:$9 sm:$0xff] %v7722_v20  ;;  %5135 = vset.pattern.permute.xlu1 %v5245_v22  ;;  %5134 = vset.pattern.permute.xlu0 %v5245_v22 }
 0x697   : > { %3535 = vst [vmem:[#allocation1 + $0x3] ss:$9 sm:$0xff] %v7724_v55 }
 0x698   : > { %3536 = vst [vmem:[#allocation1 + $0x4] ss:$9 sm:$0xff] %v10163_v32  ;;  %v10210_v32 = vld [vmem:[#allocation119_spill] sm:$0xff] }
 0x699   : > { %3537 = vst [vmem:[#allocation1 + $0x5] ss:$9 sm:$0xff] %v10164_v44 }
 0x69a   : > { %3538 = vst [vmem:[#allocation1 + $0x6] ss:$9 sm:$0xff] %v10165_v37 }
 0x69b   : > { %3539 = vst [vmem:[#allocation1 + $0x7] ss:$9 sm:$0xff] %v10166_v1 }
 0x6a2   : > { %v7869_v21 = vld [vmem:[#allocation1] sm:$0xff] }
 0x6a3   : > { %10167 = vst [vmem:[#allocation286_spill] sm:$0xff] %v7869_v21 }
 0x6a4   : > { %3541 = vst [vmem:[#allocation1] ss:$9 sm:$0xff] %v10168_v5  ;;  %v10211_v5 = vld [vmem:[#allocation120_spill] sm:$0xff] }
 0x6a5   : > { %3542 = vst [vmem:[#allocation1 + $0x1] ss:$9 sm:$0xff] %v7738_v29  ;;  %v10171_v29 = vld [vmem:[#allocation25_spill] sm:$0xff] }
 0x6a6   : > { %3543 = vst [vmem:[#allocation1 + $0x2] ss:$9 sm:$0xff] %v7740_v53  ;;  %v10172_v53 = vld [vmem:[#allocation24_spill] sm:$0xff] }
 0x6a7   : > { %3544 = vst [vmem:[#allocation1 + $0x3] ss:$9 sm:$0xff] %v7744_v2  ;;  %v10173_v2 = vld [vmem:[#allocation26_spill] sm:$0xff] }
 0x6a8   : > { %3545 = vst [vmem:[#allocation1 + $0x4] ss:$9 sm:$0xff] %v7746_v19  ;;  %v10174_v19 = vld [vmem:[#allocation36_spill] sm:$0xff] }
 0x6a9   : > { %3546 = vst [vmem:[#allocation1 + $0x5] ss:$9 sm:$0xff] %v7748_v25  ;;  %v10175_v25 = vld [vmem:[#allocation38_spill] sm:$0xff] }
 0x6aa   : > { %3547 = vst [vmem:[#allocation1 + $0x6] ss:$9 sm:$0xff] %v7750_v13  ;;  %v10176_v13 = vld [vmem:[#allocation39_spill] sm:$0xff] }
 0x6ab   : > { %3548 = vst [vmem:[#allocation1 + $0x7] ss:$9 sm:$0xff] %v7752_v49  ;;  %v10177_v49 = vld [vmem:[#allocation40_spill] sm:$0xff] }
 0x6b2   : > { %v7879_v20 = vld [vmem:[#allocation1] sm:$0xff] }
 0x6b3   : > { %10169 = vst [vmem:[#allocation287_spill] sm:$0xff] %v7879_v20 }
 0x6b4   : > { %3550 = vst [vmem:[#allocation1] ss:$9 sm:$0xff] %v7754_v41 }
 0x6b5   : > { %3551 = vst [vmem:[#allocation1 + $0x1] ss:$9 sm:$0xff] %v7756_v48  ;;  %v10179_v48 = vld [vmem:[#allocation42_spill] sm:$0xff] }
 0x6bc   : > { %v7883_v55 = vld [vmem:[#allocation1] sm:$0xff] }
 0x6bd   : > { %10170 = vst [vmem:[#allocation288_spill] sm:$0xff] %v7883_v55 }
 0x6be   : > { %3709 = vst [vmem:[#allocation1] ss:$9 sm:$0xff] %v10171_v29  ;;  %v10212_v29 = vld [vmem:[#allocation121_spill] sm:$0xff] }
 0x6bf   : > { %3711 = vst [vmem:[#allocation1 + $0x1] ss:$9 sm:$0xff] %v10172_v53  ;;  %v10213_v53 = vld [vmem:[#allocation134_spill] sm:$0xff] }
 0x6c0   : > { %3713 = vst [vmem:[#allocation1 + $0x2] ss:$9 sm:$0xff] %v10173_v2  ;;  %v10214_v2 = vld [vmem:[#allocation132_spill] sm:$0xff] }
 0x6c1   : > { %3715 = vst [vmem:[#allocation1 + $0x3] ss:$9 sm:$0xff] %v10174_v19  ;;  %v10215_v19 = vld [vmem:[#allocation135_spill] sm:$0xff] }
 0x6c2   : > { %3717 = vst [vmem:[#allocation1 + $0x4] ss:$9 sm:$0xff] %v10175_v25  ;;  %v10216_v25 = vld [vmem:[#allocation136_spill] sm:$0xff]  ;;  %s5079_s14 = spop %5078 }
 0x6c3   : > { %3719 = vst [vmem:[#allocation1 + $0x5] ss:$9 sm:$0xff] %v10176_v13  ;;  %v10217_v13 = vld [vmem:[#allocation137_spill] sm:$0xff] }
 0x6c4   : > { %3721 = vst [vmem:[#allocation1 + $0x6] ss:$9 sm:$0xff] %v10177_v49  ;;  %v10218_v49 = vld [vmem:[#allocation138_spill] sm:$0xff] }
 0x6c5   : > { %3723 = vst [vmem:[#allocation1 + $0x7] ss:$9 sm:$0xff] %v10178_v14 }
 0x6cc   : > { %v7893_v41 = vld [vmem:[#allocation1] sm:$0xff] }
 0x6cd   : > { %3725 = vst [vmem:[#allocation1] ss:$9 sm:$0xff] %v10179_v48  ;;  %v10219_v48 = vld [vmem:[#allocation139_spill] sm:$0xff] }
 0x6ce   : > { %3726 = vst [vmem:[#allocation1 + $0x1] ss:$9 sm:$0xff] %v10180_v0  ;;  %v10220_v0 = vld [vmem:[#allocation142_spill] sm:$0xff] }
 0x6cf   : > { %3727 = vst [vmem:[#allocation1 + $0x2] ss:$9 sm:$0xff] %v10181_v16  ;;  %v10221_v16 = vld [vmem:[#allocation141_spill] sm:$0xff] }
 0x6d0   : > { %3728 = vst [vmem:[#allocation1 + $0x3] ss:$9 sm:$0xff] %v10182_v27  ;;  %v10222_v27 = vld [vmem:[#allocation152_spill] sm:$0xff] }
 0x6d1   : > { %3729 = vst [vmem:[#allocation1 + $0x4] ss:$9 sm:$0xff] %v10183_v42  ;;  %v10223_v42 = vld [vmem:[#allocation154_spill] sm:$0xff] }
 0x6d2   : > { %3730 = vst [vmem:[#allocation1 + $0x5] ss:$9 sm:$0xff] %v10184_v35  ;;  %v10224_v35 = vld [vmem:[#allocation155_spill] sm:$0xff] }
 0x6d3   : > { %3731 = vst [vmem:[#allocation1 + $0x6] ss:$9 sm:$0xff] %v10185_v11  ;;  %v10225_v11 = vld [vmem:[#allocation156_spill] sm:$0xff] }
 0x6d4   : > { %3732 = vst [vmem:[#allocation1 + $0x7] ss:$9 sm:$0xff] %v10186_v45  ;;  %v10226_v45 = vld [vmem:[#allocation157_spill] sm:$0xff] }
 0x6db   : > { %v7903_v33 = vld [vmem:[#allocation1] sm:$0xff] }
 0x6dc   : > { %3734 = vst [vmem:[#allocation1] ss:$9 sm:$0xff] %v10187_v56 }
 0x6dd   : > { %3735 = vst [vmem:[#allocation1 + $0x1] ss:$9 sm:$0xff] %v10188_v62  ;;  %v10228_v62 = vld [vmem:[#allocation160_spill] sm:$0xff] }
 0x6de   : > { %3736 = vst [vmem:[#allocation1 + $0x2] ss:$9 sm:$0xff] %v10189_v59  ;;  %v10229_v59 = vld [vmem:[#allocation159_spill] sm:$0xff] }
 0x6df   : > { %3737 = vst [vmem:[#allocation1 + $0x3] ss:$9 sm:$0xff] %v10190_v60  ;;  %v10230_v60 = vld [vmem:[#allocation161_spill] sm:$0xff] }
 0x6e0   : > { %3738 = vst [vmem:[#allocation1 + $0x4] ss:$9 sm:$0xff] %v10191_v28  ;;  %v10231_v28 = vld [vmem:[#allocation171_spill] sm:$0xff] }
 0x6e1   : > { %3739 = vst [vmem:[#allocation1 + $0x5] ss:$9 sm:$0xff] %v10192_v7  ;;  %v10232_v7 = vld [vmem:[#allocation173_spill] sm:$0xff] }
 0x6e2   : > { %3740 = vst [vmem:[#allocation1 + $0x6] ss:$9 sm:$0xff] %v10193_v39  ;;  %v10233_v39 = vld [vmem:[#allocation174_spill] sm:$0xff] }
 0x6e3   : > { %3741 = vst [vmem:[#allocation1 + $0x7] ss:$9 sm:$0xff] %v10194_v47  ;;  %v10234_v47 = vld [vmem:[#allocation175_spill] sm:$0xff] }
 0x6ea   : > { %v7913_v34 = vld [vmem:[#allocation1] sm:$0xff] }
 0x6eb   : > { %3743 = vst [vmem:[#allocation1] ss:$9 sm:$0xff] %v10195_v63  ;;  %v10235_v63 = vld [vmem:[#allocation178_spill] sm:$0xff] }
 0x6ec   : > { %3744 = vst [vmem:[#allocation1 + $0x1] ss:$9 sm:$0xff] %v10196_v10 }
 0x6ed   : > { %3745 = vst [vmem:[#allocation1 + $0x2] ss:$9 sm:$0xff] %v10197_v36  ;;  %v10237_v36 = vld [vmem:[#allocation177_spill] sm:$0xff] }
 0x6ee   : > { %3746 = vst [vmem:[#allocation1 + $0x3] ss:$9 sm:$0xff] %v10198_v58  ;;  %v10238_v58 = vld [vmem:[#allocation179_spill] sm:$0xff] }
 0x6ef   : > { %3747 = vst [vmem:[#allocation1 + $0x4] ss:$9 sm:$0xff] %v10199_v6  ;;  %v10239_v6 = vld [vmem:[#allocation180_spill] sm:$0xff] }
 0x6f0   : > { %3748 = vst [vmem:[#allocation1 + $0x5] ss:$9 sm:$0xff] %v10200_v24  ;;  %v10240_v24 = vld [vmem:[#allocation192_spill] sm:$0xff] }
 0x6f1   : > { %3749 = vst [vmem:[#allocation1 + $0x6] ss:$9 sm:$0xff] %v10201_v17  ;;  %v10241_v17 = vld [vmem:[#allocation193_spill] sm:$0xff] }
 0x6f2   : > { %3750 = vst [vmem:[#allocation1 + $0x7] ss:$9 sm:$0xff] %v10202_v15  ;;  %v10242_v15 = vld [vmem:[#allocation194_spill] sm:$0xff] }
 0x6f5   : > { %v539_v44 = vpop.trf.xlu2 }
 0x6f6   : > { %v556_v37 = vrot.slane %v539_v44, 4  ;;  %565 = vperm.xlu1 %5135, %v539_v44  }
 0x6f8   : > { %v558_v1 = vsel %vm386_vm9, %v539_v44, %v556_v37  ;;  %v10251_v44 = vld [vmem:[#allocation212_spill] sm:$0xff]  ;;  %v10252_v37 = vld [vmem:[#allocation213_spill] sm:$0xff] }
 0x6f9   : > { %v7923_v12 = vld [vmem:[#allocation1] sm:$0xff]  ;;  %561 = vperm.xlu0 %5134, %v558_v1   ;;  %v10253_v1 = vld [vmem:[#allocation214_spill] sm:$0xff] }
 0x6fa   : > { %3752 = vst [vmem:[#allocation1] ss:$9 sm:$0xff] %v10203_v31  ;;  %v10243_v31 = vld [vmem:[#allocation196_spill] sm:$0xff] }
 0x6fb   : > { %3753 = vst [vmem:[#allocation1 + $0x1] ss:$9 sm:$0xff] %v10204_v61  ;;  %v10244_v61 = vld [vmem:[#allocation195_spill] sm:$0xff] }
 0x6fc   : > { %3754 = vst [vmem:[#allocation1 + $0x2] ss:$9 sm:$0xff] %v10205_v43 }
 0x6fd   : > { %3755 = vst [vmem:[#allocation1 + $0x3] ss:$9 sm:$0xff] %v10206_v8  ;;  %v10246_v8 = vld [vmem:[#allocation197_spill] sm:$0xff] }
 0x6fe   : > { %3756 = vst [vmem:[#allocation1 + $0x4] ss:$9 sm:$0xff] %v10207_v18  ;;  %v10247_v18 = vld [vmem:[#allocation198_spill] sm:$0xff] }
 0x6ff   : > { %3757 = vst [vmem:[#allocation1 + $0x5] ss:$9 sm:$0xff] %v10208_v52  ;;  %v10248_v52 = vld [vmem:[#allocation200_spill] sm:$0xff] }
 0x700   : > { %3758 = vst [vmem:[#allocation1 + $0x6] ss:$9 sm:$0xff] %v10209_v51  ;;  %v10249_v51 = vld [vmem:[#allocation277_spill] sm:$0xff] }
 0x701   : > { %3759 = vst [vmem:[#allocation1 + $0x7] ss:$9 sm:$0xff] %v10210_v32  ;;  %v4815_v22 = vmul.f32 -1.442695, %v10249_v51  ;;  %v10250_v32 = vld [vmem:[#allocation210_spill] sm:$0xff] }
 0x703   : > { %5144 = vpow2.f32 %v4815_v22 }
 0x708   : > { %v7934_v54 = vld [vmem:[#allocation1] sm:$0xff] }
 0x709   : > { %3761 = vst [vmem:[#allocation1] ss:$9 sm:$0xff] %v10211_v5  ;;  %v10254_v5 = vld [vmem:[#allocation215_spill] sm:$0xff] }
 0x70a   : > { %3762 = vst [vmem:[#allocation1 + $0x1] ss:$9 sm:$0xff] %v10212_v29  ;;  %v5157_v29 = vld [vmem:[%s5333_s13 + $0xf0] sm:$0xff] }
 0x70b   : > { %3763 = vst [vmem:[#allocation1 + $0x2] ss:$9 sm:$0xff] %v10213_v53  ;;  %v7986_v53 = vpack.c.bf16 %v5157_v29, %v5157_v29 }
 0x70c   : > { %3764 = vst [vmem:[#allocation1 + $0x3] ss:$9 sm:$0xff] %v10214_v2  ;;  %v5145_v2 = vpop.eup %5144 }
 0x70d   : > { %3765 = vst [vmem:[#allocation1 + $0x4] ss:$9 sm:$0xff] %v10215_v19  ;;  %v5158_v19 = vld [vmem:[%s5333_s13 + $0xf8] sm:$0xff]  ;;  %s4725_s13 = scalar_lea.hbm %s8998_s5, %s5058_s10 }
 0x70e   : > { %3766 = vst [vmem:[#allocation1 + $0x5] ss:$9 sm:$0xff] %v10216_v25  ;;  %v7989_v25 = vpack.c.bf16 %v5158_v19, %v5158_v19  ;;  %s4729_s15 = sshll.u32 %s4725_s13, 4  ;;  %s4730_s15 = int_to_ptr.hbm [resolvable:$true] %s4729_s15 }
 0x70f   : > { %3767 = vst [vmem:[#allocation1 + $0x6] ss:$9 sm:$0xff] %v10217_v13  ;;  %v3686_v13 = vrot.slane %v7986_v53, 3  ;;  %s5188_s17 = sshra.s32 %s4730_s15, 4  ;;  %s5189_s17 = int_to_ptr.hbm [resolvable:$true] %s5188_s17 }
 0x710   : > { %3768 = vst [vmem:[#allocation1 + $0x7] ss:$9 sm:$0xff] %v10218_v49  ;;  %s5190_s23 = scalar_lea.hbm %s5189_s17, 16  ;;  %p5195_p3 = scmp.lt.s32.totalorder %s5189_s17, %s8998_s5 }
 0x711   : > { %p5191_p0 = scmp.ne.s32.totalorder %s5189_s17, %s5190_s23  ;;  %p5196_p4 = scmp.lt.s32.totalorder %s5194_s26, %s5190_s23 }
 0x713   : > { %p5192_p1 = pnand %p5191_p0, %p5314_p5  ;;  %p5197_p7 = por %p5196_p4, %p5195_p3 }
 0x715   : > { %p5193_p2 = pneg %p5192_p1 }
 0x717   : > { %v7944_v14 = vld [vmem:[#allocation1] sm:$0xff]  ;;  %p5198_p8 = pnand %p5197_p7, %p5193_p2 }
 0x718   : > { %3770 = vst [vmem:[#allocation1] ss:$9 sm:$0xff] %v10219_v48  ;;  %v10256_v48 = vld [vmem:[#allocation216_spill] sm:$0xff] }
 0x719   : > { %3771 = vst [vmem:[#allocation1 + $0x1] ss:$9 sm:$0xff] %v10220_v0  ;;  %v7995_v0 = vadd.f32 1.0, %v5145_v2 }
 0x71a   : > { %3772 = vst [vmem:[#allocation1 + $0x2] ss:$9 sm:$0xff] %v10221_v16  ;;  %v7998_v16 = vrot.slane %v7989_v25, 3 }
 0x71b   : > { %3773 = vst [vmem:[#allocation1 + $0x3] ss:$9 sm:$0xff] %v10222_v27  ;;  %v3691_v27 = vsel %vm676_vm1, %v7986_v53, %v3686_v13  ;;  %5146 = vrcp.f32 %v7995_v0 }
 0x71c   : > { %3774 = vst [vmem:[#allocation1 + $0x4] ss:$9 sm:$0xff] %v10223_v42  ;;  %v10257_v42 = vld [vmem:[#allocation217_spill] sm:$0xff] }
 0x71d   : > { %3775 = vst [vmem:[#allocation1 + $0x5] ss:$9 sm:$0xff] %v10224_v35  ;;  %v3694_v35 = vsel %vm680_vm2, %v7986_v53, %v3686_v13 }
 0x71e   : > { %3776 = vst [vmem:[#allocation1 + $0x6] ss:$9 sm:$0xff] %v10225_v11  ;;  %v3697_v11 = vsel %vm684_vm3, %v7986_v53, %v3686_v13 }
 0x71f   : > { %3777 = vst [vmem:[#allocation1 + $0x7] ss:$9 sm:$0xff] %v10226_v45  ;;  %v10258_v45 = vld [vmem:[#allocation218_spill] sm:$0xff] }
 0x726   : > { %v7954_v56 = vld [vmem:[#allocation1] sm:$0xff] }
 0x727   : > { %10227 = vst [vmem:[#allocation289_spill] sm:$0xff] %v7954_v56  ;;  %v10503_v56 = vld [vmem:[#allocation64_spill] sm:$0xff] }
 0x728   : > { %3779 = vst [vmem:[#allocation1] ss:$9 sm:$0xff] %v10228_v62  ;;  %v3703_v62 = vsel %vm676_vm1, %v7989_v25, %v7998_v16 }
 0x729   : > { %3780 = vst [vmem:[#allocation1 + $0x1] ss:$9 sm:$0xff] %v10229_v59  ;;  %v10259_v59 = vld [vmem:[#allocation227_spill] sm:$0xff] }
 0x72a   : > { %3781 = vst [vmem:[#allocation1 + $0x2] ss:$9 sm:$0xff] %v10230_v60  ;;  %v3693_v60 = vrot.slane %v3691_v27, 1 }
 0x72b   : > { %3782 = vst [vmem:[#allocation1 + $0x3] ss:$9 sm:$0xff] %v10231_v28  ;;  %v3706_v28 = vsel %vm680_vm2, %v7989_v25, %v7998_v16  ;;  %vm419_vm2 = vweird.f32 %v7995_v0 }
 0x72c   : > { %3783 = vst [vmem:[#allocation1 + $0x4] ss:$9 sm:$0xff] %v10232_v7  ;;  %v10260_v7 = vld [vmem:[#allocation263_spill] sm:$0xff] }
 0x72d   : > { %3784 = vst [vmem:[#allocation1 + $0x5] ss:$9 sm:$0xff] %v10233_v39  ;;  %v3690_v39 = vsel %vm672_vm4, %v7986_v53, %v3686_v13  ;;  %v5147_v13 = vpop.eup %5146 }
 0x72e   : > { %3785 = vst [vmem:[#allocation1 + $0x6] ss:$9 sm:$0xff] %v10234_v47  ;;  %v3696_v47 = vrot.slane %v3694_v35, 2  ;;  %vm420_vm1 = vweird.f32 %v5147_v13 }
 0x72f   : > { %3786 = vst [vmem:[#allocation1 + $0x7] ss:$9 sm:$0xff] %v10235_v63  ;;  %v3699_v63 = vrot.slane %v3697_v11, 3  ;;  %v415_v11 = vmul.f32 %v5147_v13, %v7995_v0 }
 0x731   : > { %v3980_v51 = vshll.u32 %v3699_v63, 16 }
 0x736   : > { %v7964_v10 = vld [vmem:[#allocation1] sm:$0xff] }
 0x737   : > { %10236 = vst [vmem:[#allocation290_spill] sm:$0xff] %v7964_v10  ;;  %v10495_v10 = vld [vmem:[#allocation249_spill] sm:$0xff] }
 0x738   : > { %3788 = vst [vmem:[#allocation1] ss:$9 sm:$0xff] %v10237_v36  ;;  %v3702_v36 = vsel %vm672_vm4, %v7989_v25, %v7998_v16  ;;  %vm8076_vm4 = vmor %vm419_vm2, %vm420_vm1 }
 0x739   : > { %3789 = vst [vmem:[#allocation1 + $0x1] ss:$9 sm:$0xff] %v10238_v58  ;;  %v10261_v58 = vld [vmem:[#allocation264_spill] sm:$0xff]  ;;  %vm10320_vm1 = vmmov %vm10301_vm5 }
 0x73a   : > { %3790 = vst [vmem:[#allocation1 + $0x2] ss:$9 sm:$0xff] %v10239_v6  ;;  %v3705_v6 = vrot.slane %v3703_v62, 1  ;;  %v10266_v62 = vld [vmem:[#allocation10_spill] sm:$0xff]  ;;  %vm10323_vm2 = vmmov %vm10320_vm1 }
 0x73b   : > { %3791 = vst [vmem:[#allocation1 + $0x3] ss:$9 sm:$0xff] %v10240_v24  ;;  %v10262_v24 = vld [vmem:[#allocation265_spill] sm:$0xff] }
 0x73c   : > { %3792 = vst [vmem:[#allocation1 + $0x4] ss:$9 sm:$0xff] %v10241_v17  ;;  %v3962_v17 = vshrl.u32 %v3690_v39, 16  ;;  %v3994_v2 = vshll.u32 %v3705_v6, 16  ;;  %v3997_v19 = vshrl.u32 %v3705_v6, 16 }
 0x73d   : > { %3793 = vst [vmem:[#allocation1 + $0x5] ss:$9 sm:$0xff] %v10242_v15  ;;  %v3966_v15 = vshll.u32 %v3693_v60, 16 }
 0x73e   : > { %3794 = vst [vmem:[#allocation1 + $0x6] ss:$9 sm:$0xff] %v10243_v31  ;;  %v3969_v31 = vshrl.u32 %v3693_v60, 16 }
 0x73f   : > { %3795 = vst [vmem:[#allocation1 + $0x7] ss:$9 sm:$0xff] %v10244_v61  ;;  %v8024_v61 = vrot.slane %v3706_v28, 2  ;;  %v10268_v28 = vld [vmem:[#allocation268_spill] sm:$0xff] }
 0x741   : > { %v4001_v27 = vshll.u32 %v8024_v61, 16 }
 0x743   : > { %v8050_v35 = vsel %vm5538_vm0, %v3997_v19, %v4001_v27 }
 0x746   : > { %v7974_v43 = vld [vmem:[#allocation1] sm:$0xff] }
 0x747   : > { %10245 = vst [vmem:[#allocation291_spill] sm:$0xff] %v7974_v43 }
 0x748   : > { %3797 = vst [vmem:[#allocation1] ss:$9 sm:$0xff] %v10246_v8  ;;  %v10263_v8 = vld [vmem:[#allocation266_spill] sm:$0xff] }
 0x749   : > { %3798 = vst [vmem:[#allocation1 + $0x1] ss:$9 sm:$0xff] %v10247_v18  ;;  %v3973_v18 = vshll.u32 %v3696_v47, 16 }
 0x74a   : > { %3799 = vst [vmem:[#allocation1 + $0x2] ss:$9 sm:$0xff] %v10248_v52  ;;  %v3976_v52 = vshrl.u32 %v3696_v47, 16 }
 0x74b   : > { %3800 = vst [vmem:[#allocation1 + $0x3] ss:$9 sm:$0xff] %v10250_v32  ;;  %v8029_v32 = vsel %vm5538_vm0, %v3962_v17, %v3966_v15  ;;  %v4818_v17 = vld [vmem:[%s8997_s4 + $0x14] sm:$0xf]  ;;  %v5072_v15 = vld [vmem:[%s8997_s4 + $0x18] sm:$0xff]  }
 0x74c   : > { %3801 = vst [vmem:[#allocation1 + $0x4] ss:$9 sm:$0xff] %v10251_v44  ;;  %v3983_v44 = vshrl.u32 %v3699_v63, 16  ;;  %v8037_v29 = vsel %vm5538_vm0, %v3976_v52, %v3980_v51  ;;  %v503_v52 = vunpack.c.l.bf16 %v4818_v17  ;;  %v4822_v17 = vld [vmem:[%s8997_s4 + $0x24] sm:$0x3] }
 0x74d   : > { %3802 = vst [vmem:[#allocation1 + $0x5] ss:$9 sm:$0xff] %v10252_v37  ;;  %v3987_v37 = vshll.u32 %v3702_v36, 16 }
 0x74e   : > { %3803 = vst [vmem:[#allocation1 + $0x6] ss:$9 sm:$0xff] %v10253_v1  ;;  %v3990_v1 = vshrl.u32 %v3702_v36, 16 }
 0x74f   : > { %3804 = vst [vmem:[#allocation1 + $0x7] ss:$9 sm:$0xff] %v10254_v5  ;;  %v8033_v5 = vsel %vm5538_vm0, %v3969_v31, %v3973_v18  ;;  %v5070_v18 = vunpack.c.h.bf16 %v5072_v15 }
 0x756   : > { %v7992_v49 = vld [vmem:[#allocation1] sm:$0xff] }
 0x757   : > { %10255 = vst [vmem:[#allocation292_spill] sm:$0xff] %v7992_v49 }
 0x758   : > { %3806 = vst [vmem:[#allocation1] ss:$9 sm:$0xff] %v10256_v48  ;;  %v8041_v48 = vsel %vm5538_vm0, %v3983_v44, %v3987_v37  ;;  %v511_v37 = vstv %s5079_s14 }
 0x759   : > { %3807 = vst [vmem:[#allocation1 + $0x1] ss:$9 sm:$0xff] %v10257_v42  ;;  %v8046_v42 = vsel %vm5538_vm0, %v3990_v1, %v3994_v2 }
 0x75a   : > { %3808 = vst [vmem:[#allocation1 + $0x2] ss:$9 sm:$0xff] %v10258_v45 }
 0x75b   : > { %3809 = vst [vmem:[#allocation1 + $0x3] ss:$9 sm:$0xff] %v10259_v59  ;;  %v10267_v59 = vld [vmem:[#allocation267_spill] sm:$0xff] }
 0x75c   : > { %3810 = vst [vmem:[#allocation1 + $0x4] ss:$9 sm:$0xff] %v10260_v7  ;;  %v416_v7 = vsub.f32 1.0, %v415_v11 }
 0x75d   : > { %3811 = vst [vmem:[#allocation1 + $0x5] ss:$9 sm:$0xff] %v10261_v58 }
 0x75e   : > { %3812 = vst [vmem:[#allocation1 + $0x6] ss:$9 sm:$0xff] %v10262_v24  ;;  %v417_v58 = vmul.f32 %v5147_v13, %v416_v7  ;;  %v515_v7 = vmul.f32 %v5070_v18, %v511_v37 }
 0x75f   : > { %3813 = vst [vmem:[#allocation1 + $0x7] ss:$9 sm:$0xff] %v10263_v8  ;;  %v5069_v8 = vunpack.c.l.bf16 %v5072_v15 }
 0x760   : > { %v418_v24 = vadd.f32 %v5147_v13, %v417_v58 }
 0x766   : > { %v8053_v45 = vld [vmem:[#allocation1] sm:$0xff] }
 0x767   : > { %10265 = vst [vmem:[#allocation293_spill] sm:$0xff] %v8053_v45 }
 0x768   : > { %3815 = vst [vmem:[#allocation1] ss:$9 sm:$0xff] %v10266_v62  ;;  %v490_v62 = vstv %s5077_s7  ;;  %s229_s7 = sand.u32 1, %s5232_s19  }
 0x769   : > { %3816 = vst [vmem:[#allocation1 + $0x1] ss:$9 sm:$0xff] %v10267_v59  ;;  %v513_v59 = vmul.f32 %v511_v37, %v503_v52  ;;  %s4807_s8 = sshll.u32 %s229_s7, 4  ;;  %s4714_s16 = scalar_lea.sflag [#allocation3], %s229_s7 }
 0x76a   : > { %3817 = vst [vmem:[#allocation1 + $0x2] ss:$9 sm:$0xff] %v10268_v28  ;;  %v514_v28 = vmul.f32 %v5069_v8, %v511_v37  ;;  %s231_s9 = scalar_lea.vmem [#allocation5], %s4807_s8 }
 0x76b   : > { %3818 = vst [vmem:[#allocation1 + $0x3] ss:$9 sm:$0xff] %v3690_v39  ;;  %v4821_v39 = vld [vmem:[%s8997_s4 + $0x20] sm:$0xf]  ;;  %s4727_s14 = sshll.u32 %s231_s9, 4  ;;  %s4728_s14 = int_to_ptr.vmem [resolvable:$true] %s4727_s14 }
 0x76c   : > { %3820 = vst [vmem:[#allocation1 + $0x4] ss:$9 sm:$0xff] %v3693_v60  ;;  %v423_v60 = vand.u32 2147483647, %v7995_v0  ;;  %v506_v51 = vunpack.c.l.bf16 %v4821_v39 }
 0x76d   : > { %3822 = vst [vmem:[#allocation1 + $0x5] ss:$9 sm:$0xff] %v3696_v47  ;;  %v425_v47 = vand.u32 2147483648, %v7995_v0  ;;  %v422_v0 = vsel %vm8076_vm4, %v5147_v13, %v418_v24  ;;  %vm10325_vm4 = vmmov %vm10320_vm1 }
 0x76e   : > { %3824 = vst [vmem:[#allocation1 + $0x6] ss:$9 sm:$0xff] %v3699_v63  ;;  %v5060_v63 = vld [vmem:[%s8997_s4] sm:$0xff]   ;;  %vm424_vm9 = vcmp.eq.f32.partialorder %v423_v60, 8.507059e+37  ;;  %v516_v58 = vmul.f32 %v511_v37, %v506_v51  ;;  %v507_v60 = vunpack.c.l.bf16 %v4822_v17  ;;  %v562_v51 = vpop.permute.xlu0 %561 }
 0x76f   : > { %3825 = vst [vmem:[#allocation1 + $0x7] ss:$9 sm:$0xff] %v3702_v36  ;;  %v5071_v36 = vld [vmem:[%s8997_s4 + $0x8] sm:$0xff]   ;;  %v5061_v1 = vunpack.c.l.bf16 %v5060_v63  ;;  %v5062_v2 = vunpack.c.h.bf16 %v5060_v63  ;;  %v426_v11 = vor.u32 1.1754944e-38, %v425_v47  ;;  %v482_v63 = vld [vmem:[%s8997_s4 + $0x10] sm:$0x3] }
 0x770   : > { %v5065_v19 = vunpack.c.l.bf16 %v5071_v36  ;;  %v5066_v27 = vunpack.c.h.bf16 %v5071_v36  ;;  %v487_v18 = vunpack.c.l.bf16 %v482_v63 }
 0x771   : > { %v427_v15 = vsel %vm424_vm9, %v426_v11, %v422_v0  ;;  %v492_v13 = vmul.f32 %v5061_v1, %v490_v62  ;;  %v10274_v11 = vld [vmem:[#allocation37_spill] sm:$0xff]  ;;  %vm10336_vm9 = vmmov %vm10320_vm1 }
 0x772   : > { %v494_v24 = vmul.f32 %v5065_v19, %v490_v62  ;;  %v495_v39 = vmul.f32 %v5066_v27, %v490_v62  ;;  %v573_v52 = vperm.slane %v427_v15, 0  ;;  %v10273_v19 = vld [vmem:[#allocation35_spill] sm:$0xff]  ;;  %v517_v27 = vmul.f32 %v511_v37, %v507_v60  ;;  %v10276_v15 = vld [vmem:[#allocation48_spill] sm:$0xff] }
 0x773   : > { %v518_v47 = vadd.f32 %v513_v59, %v492_v13  ;;  %v566_v13 = vpop.permute.xlu1 %565  ;;  %v10278_v37 = vld [vmem:[#allocation51_spill] sm:$0xff] }
 0x774   : > { %v521_v31 = vadd.f32 %v516_v58, %v495_v39  ;;  %v520_v8 = vadd.f32 %v515_v7, %v494_v24  ;;  %v10275_v58 = vld [vmem:[#allocation47_spill] sm:$0xff]  ;;  %v496_v7 = vmul.f32 %v490_v62, %v487_v18 }
 0x775   : > { %v568_v20 = vmul.f32 %v562_v51, %v518_v47  ;;  %v10277_v47 = vld [vmem:[#allocation49_spill] sm:$0xff] }
 0x776   : > { %v8080_v44 = vld [vmem:[#allocation1] sm:$0xff]  ;;  %v571_v1 = vmul.f32 %v562_v51, %v521_v31  ;;  %v10279_v31 = vld [vmem:[#allocation52_spill] sm:$0xff] }
 0x777   : > { %10271 = vst [vmem:[#allocation294_spill] sm:$0xff] %v8080_v44  ;;  %v574_v21 = vmul.f32 %v573_v52, %v568_v20 }
 0x778   : > { %3828 = vst [vmem:[#allocation1] ss:$9 sm:$0xff] %v3705_v6  ;;  %v493_v6 = vmul.f32 %v5062_v2, %v490_v62  ;;  %v570_v2 = vmul.f32 %v562_v51, %v520_v8  ;;  %v10280_v62 = vld [vmem:[#allocation53_spill] sm:$0xff] }
 0x779   : > { %3830 = vst [vmem:[#allocation1 + $0x1] ss:$9 sm:$0xff] %v8024_v61 }
 0x77a   : > { %v519_v36 = vadd.f32 %v514_v28, %v493_v6  ;;  %v576_v59 = vmul.f32 %v573_v52, %v570_v2  ;;  %v577_v28 = vmul.f32 %v573_v52, %v571_v1  ;;  %v579_v6 = vpack.c.bf16 %v574_v21, %v574_v21 }
 0x77c   : > { %v569_v0 = vmul.f32 %v562_v51, %v519_v36  ;;  %v581_v39 = vpack.c.bf16 %v576_v59, %v576_v59  ;;  %v582_v63 = vpack.c.bf16 %v577_v28, %v577_v28  ;;  %v522_v36 = vadd.f32 %v517_v27, %v496_v7 }
 0x77d   : > { %v2014_v60 = vunpack.c.l.b16 %v579_v6  ;;  %v2265_v28 = vsel %vm2043_vm11, %v579_v6, 0  ;;  %v10285_v6 = vld [vmem:[#allocation205_spill] sm:$0xff] }
 0x77e   : > { %v575_v17 = vmul.f32 %v573_v52, %v569_v0  ;;  %v572_v8 = vmul.f32 %v566_v13, %v522_v36  ;;  %v3554_v51 = vunpack.c.l.b16 %v581_v39  ;;  %v4138_v0 = vunpack.c.l.b16 %v582_v63  ;;  %v10281_v36 = vld [vmem:[#allocation54_spill] sm:$0xff] }
 0x77f   : > { %v2015_v18 = vpack.c.b16 %v2014_v60, %v2014_v60  ;;  %v10283_v60 = vld [vmem:[#allocation126_spill] sm:$0xff] }
 0x780   : > { %v8091_v55 = vld [vmem:[#allocation1] sm:$0xff]  ;;  %v580_v24 = vpack.c.bf16 %v575_v17, %v575_v17  ;;  %v4139_v17 = vpack.c.b16 %v4138_v0, %v4138_v0 }
 0x781   : > { %10272 = vst [vmem:[#allocation295_spill] sm:$0xff] %v8091_v55  ;;  %v2016_v21 = vrot.slane %v2015_v18, 2  ;;  %v10293_v18 = vld [vmem:[#allocation69_spill] sm:$0xff]  ;;  %v10472_v55 = vld [vmem:[#allocation279_spill] sm:$0xff] }
 0x782   : > { %4012 = vst [vmem:[#allocation1] ss:$9 sm:$0xff] %v10273_v19  ;;  %v2867_v20 = vunpack.c.l.b16 %v580_v24  ;;  %v3555_v19 = vpack.c.b16 %v3554_v51, %v3554_v51  ;;  %v10292_v51 = vld [vmem:[#allocation67_spill] sm:$0xff] }
 0x783   : > { %4014 = vst [vmem:[#allocation1 + $0x1] ss:$9 sm:$0xff] %v10274_v11  ;;  %v578_v11 = vmul.f32 %v573_v52, %v572_v8  ;;  %v2045_v27 = vsel %vm2043_vm11, %v2016_v21, 0  ;;  %v3202_v52 = vsel %vm2043_vm11, %v581_v39, 0  ;;  %v3859_v8 = vsel %vm2043_vm11, %v582_v63, 0  ;;  %v10295_v21 = vld [vmem:[#allocation72_spill] sm:$0xff] }
 0x784   : > { %4016 = vst [vmem:[#allocation1 + $0x2] ss:$9 sm:$0xff] %v10275_v58  ;;  %v2868_v1 = vpack.c.b16 %v2867_v20, %v2867_v20  ;;  %2054 = vmatpush.bf16.msra.mxu0 %v2045_v27  ;;  %5073 = vmatpush.bf16.msra.mxu1 %v2045_v27  ;;  %v2618_v58 = vsel %vm2043_vm11, %v580_v24, 0  ;;  %v3556_v7 = vrot.slane %v3555_v19, 2  ;;  %v10287_v24 = vld [vmem:[#allocation66_spill] sm:$0xff]  ;;  %v10288_v20 = vld [vmem:[#allocation31_spill] sm:$0xff] }
 0x785   : > { %4018 = vst [vmem:[#allocation1 + $0x3] ss:$9 sm:$0xff] %v10276_v15  ;;  %5074 = vmatpush.bf16.msra.mxu2 %v2045_v27  ;;  %5075 = vmatpush.bf16.msra.mxu3 %v2045_v27  ;;  %v583_v13 = vpack.c.bf16 %v578_v11, %v578_v11  ;;  %v10297_v63 = vld [vmem:[#allocation74_spill] sm:$0xff]  ;;  %v10298_v11 = vld [vmem:[#allocation76_spill] sm:$0xff]  ;;  %v10300_v27 = vld [vmem:[#allocation147_spill] sm:$0xff] }
 0x786   : > { %4020 = vst [vmem:[#allocation1 + $0x4] ss:$9 sm:$0xff] %v10277_v47  ;;  %v2869_v2 = vrot.slane %v2868_v1, 2  ;;  %v4140_v47 = vrot.slane %v4139_v17, 2  ;;  %v3584_v39 = vsel %vm2043_vm11, %v3556_v7, 0  ;;  %v10294_v1 = vld [vmem:[#allocation71_spill] sm:$0xff] }
 0x787   : > { %4022 = vst [vmem:[#allocation1 + $0x5] ss:$9 sm:$0xff] %v10278_v37  ;;  %v10282_v37 = vld [vmem:[#allocation56_spill] sm:$0xff]  ;;  %4921 = vmatmul.msk.bf16.vlgmr.msra.gmra.mxu0 %vm10289_vm14, %v10288_v20  ;;  %v10299_v17 = vld [vmem:[#allocation85_spill] sm:$0xff]  ;;  %v10316_v20 = vld [vmem:[#allocation106_spill] sm:$0xff] }
 0x788   : > { %4024 = vst [vmem:[#allocation1 + $0x6] ss:$9 sm:$0xff] %v10279_v31  ;;  %v2897_v59 = vsel %vm2043_vm11, %v2869_v2, 0  ;;  %2627 = vmatpush.bf16.msrb.mxu0 %v2618_v58  ;;  %4926 = vmatmul.msk.bf16.vlgmr.msra.gmra.mxu2 %vm10284_vm12, %v10283_v60  ;;  %v10290_v31 = vld [vmem:[#allocation50_spill] sm:$0xff]  ;;  %v4168_v0 = vsel %vm2043_vm11, %v4140_v47, 0  ;;  %v10296_v2 = vld [vmem:[#allocation73_spill] sm:$0xff]  ;;  %vm10341_vm12 = vmmov %vm10320_vm1 }
 0x789   : > { %4026 = vst [vmem:[#allocation1 + $0x7] ss:$9 sm:$0xff] %v10280_v62  ;;  %2274 = vmatpush.bf16.msrb.mxu3 %v2265_v28  ;;  %2906 = vmatpush.bf16.msrb.mxu1 %v2897_v59  ;;  %v4546_v62 = vsel %vm2043_vm11, %v583_v13, 0  ;;  %v10302_v59 = vld [vmem:[#allocation222_spill] sm:$0xff]  ;;  %v10304_v28 = vld [vmem:[#allocation87_spill] sm:$0xff]  ;;  %v10307_v7 = vld [vmem:[#allocation280_spill] sm:$0xff] }
 0x78a   : > { %3211 = vmatpush.bf16.msrb.mxu2 %v3202_v52  ;;  %4930 = vmatmul.msk.bf16.vlgmr.msra.gmra.mxu3 %vm10286_vm13, %v10285_v6  ;;  %v10305_v58 = vld [vmem:[#allocation70_spill] sm:$0xff]  ;;  %v10309_v13 = vld [vmem:[#allocation88_spill] sm:$0xff]  ;;  %v10311_v47 = vld [vmem:[#allocation91_spill] sm:$0xff] }
 0x78b   : > { %4922 = vmatmul.msk.bf16.vlgmr.msra.gmra.mxu1 %vm10291_vm15, %v10290_v31  ;;  %v10310_v52 = vld [vmem:[#allocation90_spill] sm:$0xff]  ;;  %v10313_v60 = vld [vmem:[#allocation93_spill] sm:$0xff]  ;;  %v10314_v6 = vld [vmem:[#allocation95_spill] sm:$0xff] }
 0x78c   : > { %3868 = vmatpush.bf16.msra.mxu0 %v3859_v8  ;;  %v10317_v31 = vld [vmem:[#allocation166_spill] sm:$0xff]  ;;  %v10321_v8 = vld [vmem:[#allocation107_spill] sm:$0xff]  ;;  %vm10338_vm11 = vmmov %vm10320_vm1 }
 0x78d   : > { %3593 = vmatpush.bf16.msra.mxu3 %v3584_v39  ;;  %4177 = vmatpush.bf16.msra.mxu1 %v4168_v0  ;;  %v10319_v39 = vld [vmem:[#allocation231_spill] sm:$0xff]  ;;  %v10324_v0 = vld [vmem:[#allocation281_spill] sm:$0xff]  ;;  %vm10343_vm13 = vmmov %vm10320_vm1 }
 0x78e   : > { %4555 = vmatpush.bf16.msra.mxu2 %v4546_v62  ;;  %v10326_v62 = vld [vmem:[#allocation109_spill] sm:$0xff]  ;;  %vm10354_vm14 = vmmov %vm10320_vm1 }
 0x78f   : > { %vm10356_vm15 = vmmov %vm10320_vm1 }
 0x790   : > { %v8105_v15 = vld [vmem:[#allocation1] sm:$0xff] }
 0x791   : > { %4028 = vst [vmem:[#allocation1] ss:$9 sm:$0xff] %v10281_v36  ;;  %v10312_v36 = vld [vmem:[#allocation92_spill] sm:$0xff] }
 0x792   : > { %4029 = vst [vmem:[#allocation1 + $0x1] ss:$9 sm:$0xff] %v10282_v37 }
 0x793   : > { %4030 = vst [vmem:[#allocation1 + $0x2] ss:$9 sm:$0xff] %v10287_v24  ;;  %v10315_v24 = vld [vmem:[#allocation105_spill] sm:$0xff] }
 0x794   : > { %4031 = vst [vmem:[#allocation1 + $0x3] ss:$9 sm:$0xff] %v10292_v51  ;;  %v10322_v51 = vld [vmem:[#allocation89_spill] sm:$0xff] }
 0x795   : > { %4032 = vst [vmem:[#allocation1 + $0x4] ss:$9 sm:$0xff] %v10293_v18  ;;  %v10327_v18 = vld [vmem:[#allocation110_spill] sm:$0xff] }
 0x796   : > { %4033 = vst [vmem:[#allocation1 + $0x5] ss:$9 sm:$0xff] %v10294_v1  ;;  %v10328_v1 = vld [vmem:[#allocation111_spill] sm:$0xff] }
 0x797   : > { %4034 = vst [vmem:[#allocation1 + $0x6] ss:$9 sm:$0xff] %v10295_v21  ;;  %4947 = vmatmul.msk.bf16.vlgmr.msrb.gmra.mxu0 %vm10308_vm8, %v10307_v7  ;;  %v10340_v7 = vld [vmem:[#allocation108_spill] sm:$0xff]  ;;  %vm10374_vm8 = vmmov %vm10320_vm1 }
 0x798   : > { %4035 = vst [vmem:[#allocation1 + $0x7] ss:$9 sm:$0xff] %v10296_v2  ;;  %4927 = vmatmul.msk.bf16.gmra.mxu2 %vm10301_vm5, %v10300_v27  ;;  %v10330_v2 = vld [vmem:[#allocation112_spill] sm:$0xff]  ;;  %v10334_v27 = vld [vmem:[#allocation125_spill] sm:$0xff]  ;;  %vm10359_vm5 = vmmov %vm10320_vm1 }
 0x79a   : > { %4931 = vmatmul.msk.bf16.gmra.mxu3 %vm10303_vm6, %v10302_v59  ;;  %v10335_v59 = vld [vmem:[#allocation185_spill] sm:$0xff]  ;;  %vm10361_vm6 = vmmov %vm10320_vm1 }
 0x79b   : > { %4923 = vmatmul.msk.bf16.gmra.mxu1 %vm10306_vm7, %v10305_v58  ;;  %v10339_v58 = vld [vmem:[#allocation128_spill] sm:$0xff]  ;;  %vm10372_vm7 = vmmov %vm10320_vm1 }
 0x79f   : > { %v8128_v19 = vld [vmem:[#allocation1] sm:$0xff] }
 0x7a0   : > { %4037 = vst [vmem:[#allocation1] ss:$9 sm:$0xff] %v10297_v63  ;;  %v10331_v63 = vld [vmem:[#allocation113_spill] sm:$0xff] }
 0x7a1   : > { %4038 = vst [vmem:[#allocation1 + $0x1] ss:$9 sm:$0xff] %v10298_v11  ;;  %v10332_v11 = vld [vmem:[#allocation123_spill] sm:$0xff] }
 0x7a2   : > { %4039 = vst [vmem:[#allocation1 + $0x2] ss:$9 sm:$0xff] %v10299_v17  ;;  %v10333_v17 = vld [vmem:[#allocation124_spill] sm:$0xff] }
 0x7a3   : > { %4040 = vst [vmem:[#allocation1 + $0x3] ss:$9 sm:$0xff] %v10304_v28  ;;  %v10337_v28 = vld [vmem:[#allocation232_spill] sm:$0xff] }
 0x7a4   : > { %4041 = vst [vmem:[#allocation1 + $0x4] ss:$9 sm:$0xff] %v10309_v13  ;;  %v10342_v13 = vld [vmem:[#allocation282_spill] sm:$0xff] }
 0x7a5   : > { %4042 = vst [vmem:[#allocation1 + $0x5] ss:$9 sm:$0xff] %v10310_v52  ;;  %v10344_v52 = vld [vmem:[#allocation129_spill] sm:$0xff] }
 0x7a6   : > { %4043 = vst [vmem:[#allocation1 + $0x6] ss:$9 sm:$0xff] %v10311_v47  ;;  %v10345_v47 = vld [vmem:[#allocation130_spill] sm:$0xff] }
 0x7a7   : > { %4044 = vst [vmem:[#allocation1 + $0x7] ss:$9 sm:$0xff] %v10312_v36  ;;  %4948 = vmatmul.msk.bf16.gmra.mxu0 %vm10325_vm4, %v10324_v0  ;;  %v10357_v0 = vld [vmem:[#allocation149_spill] sm:$0xff]  ;;  %vm10391_vm4 = vmmov %vm10320_vm1 }
 0x7a8   : > { %4928 = vmatmul.msk.bf16.gmra.mxu2 %vm10318_vm10, %v10317_v31  ;;  %v10351_v31 = vld [vmem:[#allocation146_spill] sm:$0xff]  ;;  %vm10377_vm10 = vmmov %vm10320_vm1 }
 0x7aa   : > { %4932 = vmatmul.msk.bf16.gmra.mxu3 %vm10320_vm1, %v10319_v39  ;;  %v10352_v39 = vld [vmem:[#allocation148_spill] sm:$0xff] }
 0x7ab   : > { %4924 = vmatmul.msk.bf16.gmra.mxu1 %vm10323_vm2, %v10322_v51  ;;  %v10355_v51 = vld [vmem:[#allocation271_spill] sm:$0xff]  ;;  %vm10389_vm2 = vmmov %vm10320_vm1 }
 0x7ae   : > { %v8146_v37 = vld [vmem:[#allocation1] sm:$0xff] }
 0x7af   : > { %4046 = vst [vmem:[#allocation1] ss:$9 sm:$0xff] %v10313_v60  ;;  %v10347_v60 = vld [vmem:[#allocation131_spill] sm:$0xff] }
 0x7b0   : > { %4047 = vst [vmem:[#allocation1 + $0x1] ss:$9 sm:$0xff] %v10314_v6  ;;  %v10348_v6 = vld [vmem:[#allocation133_spill] sm:$0xff] }
 0x7b1   : > { %4048 = vst [vmem:[#allocation1 + $0x2] ss:$9 sm:$0xff] %v10315_v24  ;;  %v10349_v24 = vld [vmem:[#allocation143_spill] sm:$0xff] }
 0x7b2   : > { %4049 = vst [vmem:[#allocation1 + $0x3] ss:$9 sm:$0xff] %v10316_v20  ;;  %v10350_v20 = vld [vmem:[#allocation144_spill] sm:$0xff] }
 0x7b3   : > { %4050 = vst [vmem:[#allocation1 + $0x4] ss:$9 sm:$0xff] %v10321_v8  ;;  %v10353_v8 = vld [vmem:[#allocation233_spill] sm:$0xff] }
 0x7b4   : > { %4051 = vst [vmem:[#allocation1 + $0x5] ss:$9 sm:$0xff] %v10326_v62  ;;  %v10358_v62 = vld [vmem:[#allocation251_spill] sm:$0xff] }
 0x7b5   : > { %4052 = vst [vmem:[#allocation1 + $0x6] ss:$9 sm:$0xff] %v10327_v18  ;;  %v10360_v18 = vld [vmem:[#allocation283_spill] sm:$0xff] }
 0x7b6   : > { %4053 = vst [vmem:[#allocation1 + $0x7] ss:$9 sm:$0xff] %v10328_v1  ;;  %v10362_v1 = vld [vmem:[#allocation150_spill] sm:$0xff] }
 0x7b7   : > { %4949 = vmatmul.msk.bf16.gmra.mxu0 %vm10343_vm13, %v10342_v13  ;;  %v10373_v13 = vld [vmem:[#allocation272_spill] sm:$0xff]  ;;  %vm10408_vm13 = vmmov %vm10320_vm1 }
 0x7b8   : > { %4929 = vmatmul.msk.bf16.gmra.mxu2 %vm10336_vm9, %v10335_v59  ;;  %v10368_v59 = vld [vmem:[#allocation165_spill] sm:$0xff]  ;;  %vm10393_vm9 = vmmov %vm10320_vm1 }
 0x7ba   : > { %4933 = vmatmul.msk.bf16.gmra.mxu3 %vm10338_vm11, %v10337_v28  ;;  %v10369_v28 = vld [vmem:[#allocation167_spill] sm:$0xff]  ;;  %vm10395_vm11 = vmmov %vm10320_vm1 }
 0x7bb   : > { %4925 = vmatmul.msk.bf16.gmra.mxu1 %vm10341_vm12, %v10340_v7  ;;  %v10371_v7 = vld [vmem:[#allocation234_spill] sm:$0xff]  ;;  %vm10406_vm12 = vmmov %vm10320_vm1 }
 0x7bd   : > { %v8164_v21 = vld [vmem:[#allocation1] sm:$0xff] }
 0x7be   : > { %10329 = vst [vmem:[#allocation296_spill] sm:$0xff] %v8164_v21 }
 0x7bf   : > { %4055 = vst [vmem:[#allocation1] ss:$9 sm:$0xff] %v10330_v2 }
 0x7c0   : > { %4056 = vst [vmem:[#allocation1 + $0x1] ss:$9 sm:$0xff] %v10331_v63  ;;  %v10364_v63 = vld [vmem:[#allocation151_spill] sm:$0xff] }
 0x7c1   : > { %4057 = vst [vmem:[#allocation1 + $0x2] ss:$9 sm:$0xff] %v10332_v11  ;;  %v10365_v11 = vld [vmem:[#allocation153_spill] sm:$0xff] }
 0x7c2   : > { %4058 = vst [vmem:[#allocation1 + $0x3] ss:$9 sm:$0xff] %v10333_v17  ;;  %v10366_v17 = vld [vmem:[#allocation162_spill] sm:$0xff] }
 0x7c3   : > { %4059 = vst [vmem:[#allocation1 + $0x4] ss:$9 sm:$0xff] %v10334_v27  ;;  %v10367_v27 = vld [vmem:[#allocation164_spill] sm:$0xff] }
 0x7c4   : > { %4060 = vst [vmem:[#allocation1 + $0x5] ss:$9 sm:$0xff] %v10339_v58  ;;  %v10370_v58 = vld [vmem:[#allocation168_spill] sm:$0xff] }
 0x7c5   : > { %4061 = vst [vmem:[#allocation1 + $0x6] ss:$9 sm:$0xff] %v10344_v52  ;;  %v10375_v52 = vld [vmem:[#allocation169_spill] sm:$0xff] }
 0x7c6   : > { %4062 = vst [vmem:[#allocation1 + $0x7] ss:$9 sm:$0xff] %v10345_v47  ;;  %v10376_v47 = vld [vmem:[#allocation252_spill] sm:$0xff] }
 0x7c7   : > { %4950 = vmatmul.msk.bf16.gmra.mxu0 %vm10361_vm6, %v10360_v18  ;;  %v10388_v18 = vld [vmem:[#allocation235_spill] sm:$0xff]  ;;  %vm10425_vm6 = vmmov %vm10320_vm1 }
 0x7c8   : > { %4980 = vmatmul.msk.bf16.vlgmr.msrb.gmra.mxu2 %vm10356_vm15, %v10355_v51  ;;  %v10385_v51 = vld [vmem:[#allocation186_spill] sm:$0xff]  ;;  %vm10412_vm15 = vmmov %vm10320_vm1 }
 0x7ca   : > { %4934 = vmatmul.msk.bf16.vlgmr.msrb.gmra.mxu3 %vm10354_vm14, %v10353_v8  ;;  %v10384_v8 = vld [vmem:[#allocation184_spill] sm:$0xff]  ;;  %vm10410_vm14 = vmmov %vm10320_vm1 }
 0x7cb   : > { %4960 = vmatmul.msk.bf16.vlgmr.msrb.gmra.mxu1 %vm10359_vm5, %v10358_v62  ;;  %v10387_v62 = vld [vmem:[#allocation188_spill] sm:$0xff]  ;;  %vm10423_vm5 = vmmov %vm10320_vm1 }
 0x7cd   : > { %v8182_v36 = vld [vmem:[#allocation1] sm:$0xff] }
 0x7ce   : > { %10346 = vst [vmem:[#allocation297_spill] sm:$0xff] %v8182_v36 }
 0x7cf   : > { %4064 = vst [vmem:[#allocation1] ss:$9 sm:$0xff] %v10347_v60  ;;  %v10378_v60 = vld [vmem:[#allocation284_spill] sm:$0xff] }
 0x7d0   : > { %4065 = vst [vmem:[#allocation1 + $0x1] ss:$9 sm:$0xff] %v10348_v6 }
 0x7d1   : > { %4066 = vst [vmem:[#allocation1 + $0x2] ss:$9 sm:$0xff] %v10349_v24  ;;  %v10380_v24 = vld [vmem:[#allocation170_spill] sm:$0xff] }
 0x7d2   : > { %4067 = vst [vmem:[#allocation1 + $0x3] ss:$9 sm:$0xff] %v10350_v20  ;;  %v10381_v20 = vld [vmem:[#allocation172_spill] sm:$0xff] }
 0x7d3   : > { %4068 = vst [vmem:[#allocation1 + $0x4] ss:$9 sm:$0xff] %v10351_v31  ;;  %v10382_v31 = vld [vmem:[#allocation182_spill] sm:$0xff] }
 0x7d4   : > { %4069 = vst [vmem:[#allocation1 + $0x5] ss:$9 sm:$0xff] %v10352_v39  ;;  %v10383_v39 = vld [vmem:[#allocation183_spill] sm:$0xff] }
 0x7d5   : > { %4070 = vst [vmem:[#allocation1 + $0x6] ss:$9 sm:$0xff] %v10357_v0  ;;  %v10386_v0 = vld [vmem:[#allocation187_spill] sm:$0xff] }
 0x7d6   : > { %4071 = vst [vmem:[#allocation1 + $0x7] ss:$9 sm:$0xff] %v10362_v1  ;;  %v10390_v1 = vld [vmem:[#allocation273_spill] sm:$0xff] }
 0x7d7   : > { %4951 = vmatmul.msk.bf16.gmra.mxu0 %vm10320_vm1, %v10378_v60  ;;  %v10405_v60 = vld [vmem:[#allocation236_spill] sm:$0xff] }
 0x7d8   : > { %4981 = vmatmul.msk.bf16.gmra.mxu2 %vm10374_vm8, %v10373_v13  ;;  %v10402_v13 = vld [vmem:[#allocation206_spill] sm:$0xff]  ;;  %vm10429_vm8 = vmmov %vm10320_vm1 }
 0x7da   : > { %4935 = vmatmul.msk.bf16.gmra.mxu3 %vm10372_vm7, %v10371_v7  ;;  %v10401_v7 = vld [vmem:[#allocation204_spill] sm:$0xff]  ;;  %vm10427_vm7 = vmmov %vm10320_vm1 }
 0x7db   : > { %4961 = vmatmul.msk.bf16.gmra.mxu1 %vm10377_vm10, %v10376_v47  ;;  %v10404_v47 = vld [vmem:[#allocation208_spill] sm:$0xff]  ;;  %vm10442_vm10 = vmmov %vm10320_vm1 }
 0x7dd   : > { %v8200_v2 = vld [vmem:[#allocation1] sm:$0xff] }
 0x7de   : > { %10363 = vst [vmem:[#allocation298_spill] sm:$0xff] %v8200_v2  ;;  %v10489_v2 = vld [vmem:[#allocation14_spill] sm:$0xff] }
 0x7df   : > { %4073 = vst [vmem:[#allocation1] ss:$9 sm:$0xff] %v10364_v63  ;;  %v10392_v63 = vld [vmem:[#allocation253_spill] sm:$0xff] }
 0x7e0   : > { %4074 = vst [vmem:[#allocation1 + $0x1] ss:$9 sm:$0xff] %v10365_v11  ;;  %v10394_v11 = vld [vmem:[#allocation285_spill] sm:$0xff] }
 0x7e1   : > { %4075 = vst [vmem:[#allocation1 + $0x2] ss:$9 sm:$0xff] %v10366_v17 }
 0x7e2   : > { %4076 = vst [vmem:[#allocation1 + $0x3] ss:$9 sm:$0xff] %v10367_v27  ;;  %v10397_v27 = vld [vmem:[#allocation189_spill] sm:$0xff] }
 0x7e3   : > { %4077 = vst [vmem:[#allocation1 + $0x4] ss:$9 sm:$0xff] %v10368_v59  ;;  %v10398_v59 = vld [vmem:[#allocation191_spill] sm:$0xff] }
 0x7e4   : > { %4078 = vst [vmem:[#allocation1 + $0x5] ss:$9 sm:$0xff] %v10369_v28  ;;  %v10399_v28 = vld [vmem:[#allocation201_spill] sm:$0xff] }
 0x7e5   : > { %4079 = vst [vmem:[#allocation1 + $0x6] ss:$9 sm:$0xff] %v10370_v58  ;;  %v10400_v58 = vld [vmem:[#allocation202_spill] sm:$0xff] }
 0x7e6   : > { %4080 = vst [vmem:[#allocation1 + $0x7] ss:$9 sm:$0xff] %v10375_v52  ;;  %v10403_v52 = vld [vmem:[#allocation207_spill] sm:$0xff] }
 0x7e7   : > { %4952 = vmatmul.msk.bf16.gmra.mxu0 %vm10395_vm11, %v10394_v11  ;;  %v10421_v11 = vld [vmem:[#allocation225_spill] sm:$0xff]  ;;  %vm10459_vm11 = vmmov %vm10320_vm1 }
 0x7e8   : > { %4982 = vmatmul.msk.bf16.gmra.mxu2 %vm10391_vm4, %v10390_v1  ;;  %v10419_v1 = vld [vmem:[#allocation223_spill] sm:$0xff]  ;;  %vm10447_vm4 = vmmov %vm10320_vm1 }
 0x7ea   : > { %4936 = vmatmul.msk.bf16.gmra.mxu3 %vm10389_vm2, %v10388_v18  ;;  %v10418_v18 = vld [vmem:[#allocation221_spill] sm:$0xff]  ;;  %vm10445_vm2 = vmmov %vm10320_vm1 }
 0x7eb   : > { %4962 = vmatmul.msk.bf16.gmra.mxu1 %vm10393_vm9, %v10392_v63  ;;  %v10420_v63 = vld [vmem:[#allocation224_spill] sm:$0xff]  ;;  %vm10457_vm9 = vmmov %vm10320_vm1 }
 0x7ed   : > { %v8218_v6 = vld [vmem:[#allocation1] sm:$0xff] }
 0x7ee   : > { %10379 = vst [vmem:[#allocation299_spill] sm:$0xff] %v8218_v6 }
 0x7ef   : > { %4082 = vst [vmem:[#allocation1] ss:$9 sm:$0xff] %v10380_v24  ;;  %v10407_v24 = vld [vmem:[#allocation274_spill] sm:$0xff] }
 0x7f0   : > { %4083 = vst [vmem:[#allocation1 + $0x1] ss:$9 sm:$0xff] %v10381_v20  ;;  %v10409_v20 = vld [vmem:[#allocation254_spill] sm:$0xff] }
 0x7f1   : > { %4084 = vst [vmem:[#allocation1 + $0x2] ss:$9 sm:$0xff] %v10382_v31  ;;  %v10411_v31 = vld [vmem:[#allocation8_spill] sm:$0xff] }
 0x7f2   : > { %4085 = vst [vmem:[#allocation1 + $0x3] ss:$9 sm:$0xff] %v10383_v39 }
 0x7f3   : > { %4086 = vst [vmem:[#allocation1 + $0x4] ss:$9 sm:$0xff] %v10384_v8  ;;  %v10414_v8 = vld [vmem:[#allocation209_spill] sm:$0xff] }
 0x7f4   : > { %4087 = vst [vmem:[#allocation1 + $0x5] ss:$9 sm:$0xff] %v10385_v51  ;;  %v10415_v51 = vld [vmem:[#allocation211_spill] sm:$0xff] }
 0x7f5   : > { %4088 = vst [vmem:[#allocation1 + $0x6] ss:$9 sm:$0xff] %v10386_v0  ;;  %v10416_v0 = vld [vmem:[#allocation219_spill] sm:$0xff] }
 0x7f6   : > { %4089 = vst [vmem:[#allocation1 + $0x7] ss:$9 sm:$0xff] %v10387_v62  ;;  %v10417_v62 = vld [vmem:[#allocation220_spill] sm:$0xff] }
 0x7f7   : > { %4953 = vmatmul.msk.bf16.gmra.mxu0 %vm10412_vm15, %v10411_v31  ;;  %v10434_v31 = vld [vmem:[#allocation229_spill] sm:$0xff] }
 0x7f8   : > { %4983 = vmatmul.msk.bf16.gmra.mxu2 %vm10408_vm13, %v10407_v24 }
 0x7fa   : > { %4937 = vmatmul.msk.bf16.gmra.mxu3 %vm10406_vm12, %v10405_v60  ;;  %v10432_v60 = vld [vmem:[#allocation226_spill] sm:$0xff]  ;;  %vm10461_vm12 = vmmov %vm10320_vm1 }
 0x7fb   : > { %4963 = vmatmul.msk.bf16.gmra.mxu1 %vm10410_vm14, %v10409_v20  ;;  %v10433_v20 = vld [vmem:[#allocation228_spill] sm:$0xff] }
 0x7fd   : > { %v8236_v17 = vld [vmem:[#allocation1] sm:$0xff] }
 0x7fe   : > { %10396 = vst [vmem:[#allocation300_spill] sm:$0xff] %v8236_v17  ;;  %v10481_v17 = vld [vmem:[#allocation55_spill] sm:$0xff] }
 0x7ff   : > { %4091 = vst [vmem:[#allocation1] ss:$9 sm:$0xff] %v10397_v27 }
 0x800   : > { %4092 = vst [vmem:[#allocation1 + $0x1] ss:$9 sm:$0xff] %v10398_v59  ;;  %v10422_v59 = vld [vmem:[#allocation237_spill] sm:$0xff] }
 0x801   : > { %4093 = vst [vmem:[#allocation1 + $0x2] ss:$9 sm:$0xff] %v10399_v28  ;;  %v10424_v28 = vld [vmem:[#allocation275_spill] sm:$0xff] }
 0x802   : > { %4094 = vst [vmem:[#allocation1 + $0x3] ss:$9 sm:$0xff] %v10400_v58  ;;  %v10426_v58 = vld [vmem:[#allocation255_spill] sm:$0xff] }
 0x803   : > { %4095 = vst [vmem:[#allocation1 + $0x4] ss:$9 sm:$0xff] %v10401_v7  ;;  %v10428_v7 = vld [vmem:[#allocation245_spill] sm:$0xff] }
 0x804   : > { %4096 = vst [vmem:[#allocation1 + $0x5] ss:$9 sm:$0xff] %v10402_v13 }
 0x805   : > { %4097 = vst [vmem:[#allocation1 + $0x6] ss:$9 sm:$0xff] %v10403_v52 }
 0x806   : > { %4098 = vst [vmem:[#allocation1 + $0x7] ss:$9 sm:$0xff] %v10404_v47 }
 0x807   : > { %4954 = vmatmul.msk.bf16.gmra.mxu0 %vm10429_vm8, %v10428_v7  ;;  %v10446_v7 = vld [vmem:[#allocation246_spill] sm:$0xff] }
 0x808   : > { %v8264_v27 = vpop.f32.mrf.mxu1  ;;  %4984 = vmatmul.msk.bf16.gmra.mxu2 %vm10425_vm6, %v10424_v28  ;;  %v10443_v28 = vld [vmem:[#allocation276_spill] sm:$0xff] }
 0x80a   : > { %4938 = vmatmul.msk.bf16.gmra.mxu3 %vm10423_vm5, %v10422_v59  ;;  %v10441_v59 = vld [vmem:[#allocation238_spill] sm:$0xff] }
 0x80b   : > { %4964 = vmatmul.msk.bf16.gmra.mxu1 %vm10427_vm7, %v10426_v58  ;;  %v8274_v13 = vpop.f32.mrf.mxu2  ;;  %v10444_v58 = vld [vmem:[#allocation256_spill] sm:$0xff] }
 0x80d   : > { %v8254_v39 = vld [vmem:[#allocation1] sm:$0xff]  ;;  %v8276_v52 = vpop.f32.mrf.mxu3 }
 0x80e   : > { %10413 = vst [vmem:[#allocation301_spill] sm:$0xff] %v8254_v39 }
 0x80f   : > { %4100 = vst [vmem:[#allocation1] ss:$9 sm:$0xff] %v10414_v8  ;;  %v10435_v8 = vld [vmem:[#allocation230_spill] sm:$0xff] }
 0x810   : > { %4101 = vst [vmem:[#allocation1 + $0x1] ss:$9 sm:$0xff] %v10415_v51  ;;  %v8281_v24 = vpop.f32.mrf.mxu1  ;;  %v10436_v51 = vld [vmem:[#allocation19_spill] sm:$0xff] }
 0x811   : > { %4102 = vst [vmem:[#allocation1 + $0x2] ss:$9 sm:$0xff] %v10416_v0  ;;  %v10437_v0 = vld [vmem:[#allocation20_spill] sm:$0xff] }
 0x812   : > { %4103 = vst [vmem:[#allocation1 + $0x3] ss:$9 sm:$0xff] %v10417_v62 }
 0x813   : > { %4104 = vst [vmem:[#allocation1 + $0x4] ss:$9 sm:$0xff] %v10418_v18  ;;  %v8288_v62 = vpop.f32.mrf.mxu2 }
 0x814   : > { %4105 = vst [vmem:[#allocation1 + $0x5] ss:$9 sm:$0xff] %v10419_v1  ;;  %v10439_v1 = vld [vmem:[#allocation21_spill] sm:$0xff] }
 0x815   : > { %4106 = vst [vmem:[#allocation1 + $0x6] ss:$9 sm:$0xff] %v10420_v63  ;;  %v8290_v18 = vpop.f32.mrf.mxu3  ;;  %v10440_v63 = vld [vmem:[#allocation22_spill] sm:$0xff] }
 0x816   : > { %4107 = vst [vmem:[#allocation1 + $0x7] ss:$9 sm:$0xff] %v10421_v11 }
 0x817   : > { %10430 = vst [vmem:[#allocation302_spill] sm:$0xff] %v8276_v52  ;;  %4955 = vmatmul.msk.bf16.gmra.mxu0 %vm10447_vm4, %v10446_v7  ;;  %v4004_v7 = vshrl.u32 %v8024_v61, 16  ;;  %v10493_v52 = vld [vmem:[#allocation259_spill] sm:$0xff] }
 0x818   : > { %10438 = vst [vmem:[#allocation304_spill] sm:$0xff] %v8290_v18  ;;  %v8294_v11 = vpop.f32.mrf.mxu1  ;;  %4985 = vmatmul.msk.bf16.gmra.mxu2 %vm10320_vm1, %v10443_v28 }
 0x81a   : > { %4939 = vmatmul.msk.bf16.gmra.mxu3 %vm10442_vm10, %v10441_v59 }
 0x81b   : > { %4965 = vmatmul.msk.bf16.gmra.mxu1 %vm10445_vm2, %v10444_v58 }
 0x81d   : > { %v8278_v47 = vld [vmem:[#allocation1] sm:$0xff] }
 0x81e   : > { %10431 = vst [vmem:[#allocation303_spill] sm:$0xff] %v8278_v47 }
 0x81f   : > { %4109 = vst [vmem:[#allocation1] ss:$9 sm:$0xff] %v10432_v60  ;;  %v8304_v60 = vpop.f32.mrf.mxu2 }
 0x820   : > { %4110 = vst [vmem:[#allocation1 + $0x1] ss:$9 sm:$0xff] %v10433_v20  ;;  %v8306_v20 = vpop.f32.mrf.mxu3 }
 0x821   : > { %4111 = vst [vmem:[#allocation1 + $0x2] ss:$9 sm:$0xff] %v10434_v31 }
 0x822   : > { %4112 = vst [vmem:[#allocation1 + $0x3] ss:$9 sm:$0xff] %v10435_v8  ;;  %v10450_v8 = vld [vmem:[#allocation18_spill] sm:$0xff] }
 0x823   : > { %4113 = vst [vmem:[#allocation1 + $0x4] ss:$9 sm:$0xff] %v10436_v51  ;;  %v10451_v51 = vld [vmem:[#allocation27_spill] sm:$0xff] }
 0x824   : > { %4114 = vst [vmem:[#allocation1 + $0x5] ss:$9 sm:$0xff] %v10437_v0  ;;  %v8312_v0 = vpop.f32.mrf.mxu1 }
 0x825   : > { %4115 = vst [vmem:[#allocation1 + $0x6] ss:$9 sm:$0xff] %v10439_v1  ;;  %v3959_v1 = vsel %vm684_vm3, %v7989_v25, %v7998_v16  ;;  %vm10455_vm3 = vmmov %vm10320_vm1 }
 0x826   : > { %4116 = vst [vmem:[#allocation1 + $0x7] ss:$9 sm:$0xff] %v10440_v63  ;;  %v10452_v63 = vld [vmem:[#allocation29_spill] sm:$0xff]  ;;  %v3961_v59 = vrot.slane %v3959_v1, 3 }
 0x827   : > { %10448 = vst [vmem:[#allocation305_spill] sm:$0xff] %v8306_v20  ;;  %v8322_v28 = vpop.f32.mrf.mxu2 }
 0x828   : > { %v8324_v58 = vpop.f32.mrf.mxu3  ;;  %v4009_v16 = vshll.u32 %v3961_v59, 16 }
 0x829   : > { %10453 = vst [vmem:[#allocation307_spill] sm:$0xff] %v8324_v58 }
 0x82d   : > { %v8308_v31 = vld [vmem:[#allocation1] sm:$0xff] }
 0x82e   : > { %10449 = vst [vmem:[#allocation306_spill] sm:$0xff] %v8308_v31  ;;  %v10470_v31 = vld [vmem:[#allocation240_spill] sm:$0xff] }
 0x82f   : > { %4118 = vst [vmem:[#allocation1] ss:$9 sm:$0xff] %v10450_v8  ;;  %v8328_v8 = vpop.f32.mrf.mxu1  ;;  %v8342_v61 = vpop.f32.mrf.mxu2 }
 0x830   : > { %4119 = vst [vmem:[#allocation1 + $0x1] ss:$9 sm:$0xff] %v10451_v51  ;;  %v10454_v51 = vld [vmem:[#allocation239_spill] sm:$0xff]  ;;  %v8344_v1 = vpop.f32.mrf.mxu3 }
 0x831   : > { %4120 = vst [vmem:[#allocation1 + $0x2] ss:$9 sm:$0xff] %v10452_v63  ;;  %4940 = vmatmul.msk.bf16.gmra.mxu3 %vm10455_vm3, %v10454_v51  ;;  %v10464_v63 = vld [vmem:[#allocation23_spill] sm:$0xff]  ;;  %v2056_v51 = vpop.f32.mrf.mxu0 }
 0x832   : > { %4122 = vst [vmem:[#allocation1 + $0x3] ss:$9 sm:$0xff] %v8029_v32  ;;  %v10456_v32 = vld [vmem:[#allocation278_spill] sm:$0xff] }
 0x833   : > { %4124 = vst [vmem:[#allocation1 + $0x4] ss:$9 sm:$0xff] %v8033_v5  ;;  %4986 = vmatmul.msk.bf16.gmra.mxu2 %vm10457_vm9, %v10456_v32  ;;  %v10458_v5 = vld [vmem:[#allocation257_spill] sm:$0xff] }
 0x834   : > { %4126 = vst [vmem:[#allocation1 + $0x5] ss:$9 sm:$0xff] %v8037_v29  ;;  %4966 = vmatmul.msk.bf16.gmra.mxu1 %vm10459_vm11, %v10458_v5  ;;  %v10460_v29 = vld [vmem:[#allocation247_spill] sm:$0xff] }
 0x835   : > { %4128 = vst [vmem:[#allocation1 + $0x6] ss:$9 sm:$0xff] %v8041_v48  ;;  %4956 = vmatmul.msk.bf16.gmra.mxu0 %vm10461_vm12, %v10460_v29  ;;  %v4011_v48 = vsel %vm5538_vm0, %v4004_v7, %v4009_v16  ;;  %vm10471_vm0 = vmmov %vm10320_vm1 }
 0x836   : > { %4130 = vst [vmem:[#allocation1 + $0x7] ss:$9 sm:$0xff] %v8046_v42  ;;  %vm10473_vm13 = vmmov %vm10471_vm0 }
 0x837   : > { %10463 = vst [vmem:[#allocation309_spill] sm:$0xff] %v8344_v1  ;;  %v8348_v59 = vpop.f32.mrf.mxu1  ;;  %v8350_v32 = vpop.f32.mrf.mxu2  ;;  %vm10475_vm14 = vmmov %vm10471_vm0 }
 0x838   : > { %10465 = vst [vmem:[#allocation310_spill] sm:$0xff] %v8350_v32  ;;  %v8352_v5 = vpop.f32.mrf.mxu3  ;;  %vm10477_vm15 = vmmov %vm10471_vm0 }
 0x839   : > { %10466 = vst [vmem:[#allocation311_spill] sm:$0xff] %v8352_v5  ;;  %v2058_v47 = vpop.f32.mrf.mxu0  ;;  %vm10488_vm5 = vmmov %vm10471_vm0 }
 0x83a   : > { %vm10490_vm6 = vmmov %vm10471_vm0 }
 0x83b   : > { %vm10494_vm7 = vmmov %vm10471_vm0 }
 0x83c   : > { %vm10496_vm8 = vmmov %vm10471_vm0 }
 0x83d   : > { %v8340_v42 = vld [vmem:[#allocation1] sm:$0xff]  ;;  %vm10507_vm10 = vmmov %vm10471_vm0 }
 0x83e   : > { %10462 = vst [vmem:[#allocation308_spill] sm:$0xff] %v8340_v42  ;;  %vm10509_vm1 = vmmov %vm10471_vm0 }
 0x83f   : > { %4133 = vst [vmem:[#allocation1] ss:$9 sm:$0xff] %v8050_v35  ;;  %v8364_v35 = vpop.f32.mrf.mxu1  ;;  %v8376_v44 = vpop.f32.mrf.mxu2  ;;  %vm10515_vm2 = vmmov %vm10471_vm0 }
 0x840   : > { %4135 = vst [vmem:[#allocation1 + $0x1] ss:$9 sm:$0xff] %v4011_v48  ;;  %v10468_v48 = vld [vmem:[#allocation15_spill] sm:$0xff]  ;;  %v8378_v39 = vpop.f32.mrf.mxu3  ;;  %vm10517_vm4 = vmmov %vm10471_vm0 }
 0x841   : > { %4269 = vst [vmem:[#allocation1 + $0x20] sm:$0xff] %v10464_v63  ;;  %v10469_v63 = vld [vmem:[#allocation41_spill] sm:$0xff]  ;;  %4941 = vmatmul.msk.bf16.gmra.mxu3 %vm10471_vm0, %v10470_v31  ;;  %vm10532_vm3 = vmmov %vm10471_vm0 }
 0x842   : > { %10478 = vst [vmem:[#allocation313_spill] sm:$0xff] %v8376_v44  ;;  %vm10534_vm9 = vmmov %vm10471_vm0 }
 0x843   : > { %4987 = vmatmul.msk.bf16.gmra.mxu2 %vm10473_vm13, %v10472_v55  ;;  %10479 = vst [vmem:[#allocation314_spill] sm:$0xff] %v8378_v39  ;;  %v2629_v39 = vpop.f32.mrf.mxu0  ;;  %vm10536_vm11 = vmmov %vm10471_vm0 }
 0x844   : > { %vm10537_vm12 = vmmov %vm10471_vm0 }
 0x845   : > { %4957 = vmatmul.msk.bf16.gmra.mxu0 %vm10477_vm15, %v10476_v4  ;;  %v10480_v4 = vld [vmem:[#allocation28_spill] sm:$0xff]  ;;  %vm10557_vm13 = vmmov %vm10471_vm0 }
 0x846   : > { %vm10560_vm15 = vmmov %vm10471_vm0 }
 0x847   : > { %v8354_v22 = vld [vmem:[#allocation1] sm:$0xff]  ;;  %v8398_v23 = vpop.f32.mrf.mxu2 }
 0x848   : > { %10467 = vst [vmem:[#allocation312_spill] sm:$0xff] %v8354_v22  ;;  %v8356_v7 = vld [vmem:[#allocation1 + $0x20] ss:$4 sm:$0xff]  ;;  %v8358_v16 = vld [vmem:[#allocation1 + $0x21] ss:$4 sm:$0xff]  ;;  %v2118_v1 = vpop.f32.mrf.mxu3 }
 0x849   : > { %v8360_v29 = vld [vmem:[#allocation1 + $0x22] ss:$4 sm:$0xff]  ;;  %v8362_v42 = vld [vmem:[#allocation1 + $0x23] ss:$4 sm:$0xff]  ;;  %4268 = vst [vmem:[#allocation1] sm:$0xff] %v10468_v48 }
 0x84a   : > { %4285 = vst [vmem:[#allocation1 + $0x20] sm:$0xff] %v10469_v63  ;;  %v10474_v22 = vld [vmem:[#allocation258_spill] sm:$0xff] }
 0x84b   : > { %4967 = vmatmul.msk.bf16.gmra.mxu1 %vm10475_vm14, %v10474_v22  ;;  %v8392_v22 = vpop.f32.mrf.mxu1  ;;  %10482 = vst [vmem:[#allocation315_spill] sm:$0xff] %v8398_v23  ;;  %v10491_v1 = vld [vmem:[#allocation46_spill] sm:$0xff]  ;;  %v2631_v23 = vpop.f32.mrf.mxu0  ;;  %vm10559_vm14 = vmmov %vm10471_vm0 }
 0x84f   : > { %v3213_v3 = vpop.f32.mrf.mxu2 }
 0x850   : > { %v8380_v48 = vld [vmem:[#allocation1 + $0x1] ss:$4 sm:$0xff]  ;;  %v8382_v63 = vld [vmem:[#allocation1 + $0x2] ss:$4 sm:$0xff]  ;;  %v8384_v50 = vld [vmem:[#allocation1 + $0x3] ss:$4 sm:$0xff]  ;;  %v2276_v36 = vpop.f32.mrf.mxu3 }
 0x851   : > { %v8386_v31 = vld [vmem:[#allocation1 + $0x20] ss:$4 sm:$0xff]  ;;  %v8388_v55 = vld [vmem:[#allocation1 + $0x21] ss:$4 sm:$0xff]  ;;  %v8390_v5 = vld [vmem:[#allocation1 + $0x22] ss:$4 sm:$0xff]  ;;  %v2277_v44 = vadd.f32 %v2276_v36, %v2056_v51 }
 0x852   : > { %v8394_v45 = vld [vmem:[#allocation1 + $0x23] ss:$4 sm:$0xff]  ;;  %4284 = vst [vmem:[#allocation1] sm:$0xff] %v10480_v4 }
 0x853   : > { %4294 = vst [vmem:[#allocation1 + $0x20] sm:$0xff] %v10481_v17  ;;  %v2908_v58 = vpop.f32.mrf.mxu1  ;;  %v10487_v17 = vld [vmem:[#allocation241_spill] sm:$0xff]  ;;  %4988 = vmatmul.msk.bf16.gmra.mxu2 %vm10490_vm6, %v10489_v2  ;;  %vm10580_vm6 = vmmov %vm10471_vm0 }
 0x854   : > { %4942 = vmatmul.msk.bf16.gmra.mxu3 %vm10488_vm5, %v10487_v17  ;;  %vm10578_vm5 = vmmov %vm10471_vm0 }
 0x855   : > { %4958 = vmatmul.msk.bf16.gmra.mxu0 %vm10496_vm8, %v10495_v10  ;;  %v2634_v10 = vpop.f32.mrf.mxu0  ;;  %vm10583_vm8 = vmmov %vm10471_vm0 }
 0x857   : > { %v3215_v51 = vpop.f32.mrf.mxu2 }
 0x859   : > { %v8400_v49 = vld [vmem:[#allocation1 + $0x1] ss:$4 sm:$0xff]  ;;  %v8402_v6 = vld [vmem:[#allocation1 + $0x2] ss:$4 sm:$0xff]  ;;  %v8404_v9 = vld [vmem:[#allocation1 + $0x3] ss:$4 sm:$0xff] }
 0x85a   : > { %v8406_v20 = vld [vmem:[#allocation1 + $0x20] ss:$4 sm:$0xff]  ;;  %v8408_v18 = vld [vmem:[#allocation1 + $0x21] ss:$4 sm:$0xff]  ;;  %v8410_v43 = vld [vmem:[#allocation1 + $0x22] ss:$4 sm:$0xff] }
 0x85b   : > { %10483 = vst [vmem:[#allocation316_spill] sm:$0xff] %v8406_v20  ;;  %v8412_v4 = vld [vmem:[#allocation1 + $0x23] ss:$4 sm:$0xff]  ;;  %4968 = vmatmul.msk.bf16.gmra.mxu1 %vm10494_vm7, %v10493_v52  ;;  %vm10582_vm7 = vmmov %vm10471_vm0 }
 0x85c   : > { %10484 = vst [vmem:[#allocation317_spill] sm:$0xff] %v8408_v18 }
 0x85d   : > { %10485 = vst [vmem:[#allocation318_spill] sm:$0xff] %v8410_v43  ;;  %v2910_v43 = vpop.f32.mrf.mxu1 }
 0x85e   : > { %10486 = vst [vmem:[#allocation319_spill] sm:$0xff] %v8412_v4  ;;  %v2693_v4 = vadd.f32 %v2629_v39, %v2277_v44  ;;  %v10504_v44 = vld [vmem:[#allocation86_spill] sm:$0xff]  ;;  %v2278_v39 = vpop.f32.mrf.mxu3 }
 0x85f   : > { %4293 = vst [vmem:[#allocation1] sm:$0xff] %v10491_v1  ;;  %v2279_v21 = vadd.f32 %v2278_v39, %v2058_v47 }
 0x860   : > { %4303 = vst [vmem:[#allocation1 + $0x20] sm:$0xff] %v10492_v46  ;;  %v2972_v20 = vadd.f32 %v2908_v58, %v2693_v4 }
 0x862   : > { %v8440_v36 = vadd.f32 %v3213_v3, %v2972_v20 }
 0x864   : > { %10505 = vst [vmem:[#allocation40_spill] sm:$0xff] %v8440_v36  ;;  %4943 = vmatmul.msk.bf16.gmra.mxu3 %vm10507_vm10, %v10506_v38  ;;  %v10516_v38 = vld [vmem:[#allocation250_spill] sm:$0xff]  ;;  %v3218_v36 = vpop.f32.mrf.mxu2  ;;  %vm10594_vm10 = vmmov %vm10471_vm0 }
 0x865   : > { %4959 = vmatmul.msk.bf16.gmra.mxu0 %vm10517_vm4, %v10516_v38  ;;  %vm10605_vm4 = vmmov %vm10471_vm0 }
 0x866   : > { %v8424_v17 = vld [vmem:[#allocation1 + $0x1] ss:$4 sm:$0xff]  ;;  %v8426_v18 = vld [vmem:[#allocation1 + $0x2] ss:$4 sm:$0xff]  ;;  %v8428_v2 = vld [vmem:[#allocation1 + $0x3] ss:$4 sm:$0xff]  ;;  %v2281_v39 = vpop.f32.mrf.mxu3 }
 0x867   : > { %10497 = vst [vmem:[#allocation25_spill] sm:$0xff] %v8426_v18  ;;  %v8430_v1 = vld [vmem:[#allocation1 + $0x20] ss:$4 sm:$0xff]  ;;  %v8432_v46 = vld [vmem:[#allocation1 + $0x21] ss:$4 sm:$0xff]  ;;  %v2913_v18 = vpop.f32.mrf.mxu1 }
 0x868   : > { %10498 = vst [vmem:[#allocation24_spill] sm:$0xff] %v8428_v2  ;;  %v8434_v52 = vld [vmem:[#allocation1 + $0x22] ss:$4 sm:$0xff]  ;;  %v8436_v32 = vld [vmem:[#allocation1 + $0x23] ss:$4 sm:$0xff]  ;;  %v2694_v2 = vadd.f32 %v2631_v23, %v2279_v21 }
 0x869   : > { %10499 = vst [vmem:[#allocation26_spill] sm:$0xff] %v8430_v1  ;;  %v10514_v23 = vld [vmem:[#allocation260_spill] sm:$0xff] }
 0x86a   : > { %10500 = vst [vmem:[#allocation36_spill] sm:$0xff] %v8432_v46  ;;  %v2973_v1 = vadd.f32 %v2910_v43, %v2694_v2  ;;  %v2636_v43 = vpop.f32.mrf.mxu0 }
 0x86b   : > { %10501 = vst [vmem:[#allocation38_spill] sm:$0xff] %v8434_v52  ;;  %v10508_v52 = vld [vmem:[#allocation13_spill] sm:$0xff]  ;;  %4969 = vmatmul.msk.bf16.gmra.mxu1 %vm10515_vm2, %v10514_v23  ;;  %vm10598_vm2 = vmmov %vm10471_vm0 }
 0x86c   : > { %10502 = vst [vmem:[#allocation39_spill] sm:$0xff] %v8436_v32  ;;  %4989 = vmatmul.msk.bf16.gmra.mxu2 %vm10509_vm1, %v10508_v52  ;;  %v8464_v2 = vadd.f32 %v3215_v51, %v2973_v1  ;;  %v10520_v52 = vld [vmem:[#allocation82_spill] sm:$0xff]  ;;  %vm10597_vm1 = vmmov %vm10471_vm0 }
 0x86d   : > { %4302 = vst [vmem:[#allocation1] sm:$0xff] %v10503_v56 }
 0x86e   : > { %4312 = vst [vmem:[#allocation1 + $0x20] sm:$0xff] %v10504_v44  ;;  %v10521_v44 = vld [vmem:[#allocation104_spill] sm:$0xff] }
 0x86f   : > { %10519 = vst [vmem:[#allocation58_spill] sm:$0xff] %v8464_v2 }
 0x872   : > { %v2639_v23 = vpop.f32.mrf.mxu0 }
 0x874   : > { %v8446_v58 = vld [vmem:[#allocation1 + $0x1] ss:$4 sm:$0xff]  ;;  %v8448_v4 = vld [vmem:[#allocation1 + $0x2] ss:$4 sm:$0xff]  ;;  %v8450_v56 = vld [vmem:[#allocation1 + $0x3] ss:$4 sm:$0xff] }
 0x875   : > { %10510 = vst [vmem:[#allocation43_spill] sm:$0xff] %v8450_v56  ;;  %v8452_v3 = vld [vmem:[#allocation1 + $0x20] ss:$4 sm:$0xff]  ;;  %v8454_v20 = vld [vmem:[#allocation1 + $0x21] ss:$4 sm:$0xff]  ;;  %5006 = vmatmul.msk.bf16.vlgmr.msra.gmra.mxu0 %vm10537_vm12, %v7893_v41  ;;  %vm10612_vm12 = vmmov %vm10471_vm0 }
 0x876   : > { %10511 = vst [vmem:[#allocation42_spill] sm:$0xff] %v8452_v3  ;;  %v8456_v47 = vld [vmem:[#allocation1 + $0x22] ss:$4 sm:$0xff]  ;;  %v8462_v21 = vld [vmem:[#allocation1 + $0x23] ss:$4 sm:$0xff]  ;;  %v2915_v3 = vpop.f32.mrf.mxu1 }
 0x877   : > { %10512 = vst [vmem:[#allocation44_spill] sm:$0xff] %v8454_v20  ;;  %v2282_v20 = vadd.f32 %v2281_v39, %v8264_v27  ;;  %v2283_v27 = vpop.f32.mrf.mxu3  ;;  %v10544_v41 = vld [vmem:[#allocation118_spill] sm:$0xff] }
 0x878   : > { %10513 = vst [vmem:[#allocation45_spill] sm:$0xff] %v8456_v47 }
 0x879   : > { %10518 = vst [vmem:[#allocation57_spill] sm:$0xff] %v8462_v21  ;;  %v2695_v47 = vadd.f32 %v2634_v10, %v2282_v20  ;;  %v8485_v10 = vpop.f32.mrf.mxu2  ;;  %v10529_v20 = vld [vmem:[#allocation122_spill] sm:$0xff] }
 0x87a   : > { %4311 = vst [vmem:[#allocation1] sm:$0xff] %v10520_v52 }
 0x87b   : > { %4321 = vst [vmem:[#allocation1 + $0x20] sm:$0xff] %v10521_v44  ;;  %v2974_v32 = vadd.f32 %v2913_v18, %v2695_v47  ;;  %v10528_v18 = vld [vmem:[#allocation100_spill] sm:$0xff]  ;;  %v2284_v47 = vadd.f32 %v2283_v27, %v8281_v24 }
 0x87c   : > { %10527 = vst [vmem:[#allocation65_spill] sm:$0xff] %v8485_v10  ;;  %v10545_v10 = vld [vmem:[#allocation140_spill] sm:$0xff] }
 0x87d   : > { %v8481_v44 = vadd.f32 %v3218_v36, %v2974_v32  ;;  %v2696_v39 = vadd.f32 %v2636_v43, %v2284_v47  ;;  %v10533_v32 = vld [vmem:[#allocation17_spill] sm:$0xff]  ;;  %v10535_v36 = vld [vmem:[#allocation262_spill] sm:$0xff] }
 0x87e   : > { %v2918_v21 = vpop.f32.mrf.mxu1  ;;  %4990 = vmatmul.msk.bf16.gmra.mxu2 %vm10534_vm9, %v10533_v32  ;;  %4970 = vmatmul.msk.bf16.gmra.mxu1 %vm10536_vm11, %v10535_v36  ;;  %vm10609_vm9 = vmmov %vm10471_vm0 }
 0x87f   : > { %10525 = vst [vmem:[#allocation62_spill] sm:$0xff] %v8481_v44  ;;  %v2286_v47 = vpop.f32.mrf.mxu3  ;;  %vm10611_vm11 = vmmov %vm10471_vm0 }
 0x880   : > { %v2287_v36 = vadd.f32 %v2286_v47, %v8294_v11 }
 0x881   : > { %v8469_v46 = vld [vmem:[#allocation1 + $0x1] ss:$4 sm:$0xff]  ;;  %v8471_v56 = vld [vmem:[#allocation1 + $0x2] ss:$4 sm:$0xff]  ;;  %v8473_v38 = vld [vmem:[#allocation1 + $0x3] ss:$4 sm:$0xff] }
 0x882   : > { %v8475_v1 = vld [vmem:[#allocation1 + $0x20] ss:$4 sm:$0xff]  ;;  %v8477_v51 = vld [vmem:[#allocation1 + $0x21] ss:$4 sm:$0xff]  ;;  %v8479_v52 = vld [vmem:[#allocation1 + $0x22] ss:$4 sm:$0xff] }
 0x883   : > { %10522 = vst [vmem:[#allocation59_spill] sm:$0xff] %v8475_v1  ;;  %v8483_v2 = vld [vmem:[#allocation1 + $0x23] ss:$4 sm:$0xff]  ;;  %v8490_v1 = vadd.f32 %v2915_v3, %v2696_v39  ;;  %v3223_v39 = vpop.f32.mrf.mxu2 }
 0x884   : > { %10523 = vst [vmem:[#allocation61_spill] sm:$0xff] %v8477_v51  ;;  %v10531_v51 = vld [vmem:[#allocation243_spill] sm:$0xff] }
 0x885   : > { %10524 = vst [vmem:[#allocation60_spill] sm:$0xff] %v8479_v52  ;;  %4944 = vmatmul.msk.bf16.gmra.mxu3 %vm10532_vm3, %v10531_v51  ;;  %vm10608_vm3 = vmmov %vm10471_vm0 }
 0x886   : > { %10526 = vst [vmem:[#allocation63_spill] sm:$0xff] %v8483_v2  ;;  %v2920_v44 = vpop.f32.mrf.mxu1 }
 0x887   : > { %4320 = vst [vmem:[#allocation1] sm:$0xff] %v10528_v18  ;;  %v2641_v18 = vpop.f32.mrf.mxu0  ;;  %5007 = vmatmul.msk.bf16.gmra.mxu0 %vm10560_vm15, %v7903_v33  ;;  %v10566_v33 = vld [vmem:[#allocation145_spill] sm:$0xff]  ;;  %vm10618_vm15 = vmmov %vm10471_vm0 }
 0x888   : > { %4330 = vst [vmem:[#allocation1 + $0x20] sm:$0xff] %v10529_v20 }
 0x889   : > { %10530 = vst [vmem:[#allocation75_spill] sm:$0xff] %v8490_v1  ;;  %v2697_v1 = vadd.f32 %v2639_v23, %v2287_v36 }
 0x88b   : > { %v2976_v2 = vadd.f32 %v2918_v21, %v2697_v1  ;;  %v10552_v1 = vld [vmem:[#allocation127_spill] sm:$0xff] }
 0x88d   : > { %v8517_v52 = vadd.f32 %v3223_v39, %v2976_v2 }
 0x88e   : > { %v8500_v20 = vld [vmem:[#allocation1 + $0x1] ss:$4 sm:$0xff]  ;;  %v8502_v24 = vld [vmem:[#allocation1 + $0x2] ss:$4 sm:$0xff]  ;;  %v8504_v43 = vld [vmem:[#allocation1 + $0x3] ss:$4 sm:$0xff]  ;;  %v2923_v36 = vpop.f32.mrf.mxu1 }
 0x88f   : > { %10538 = vst [vmem:[#allocation77_spill] sm:$0xff] %v8502_v24  ;;  %v8506_v3 = vld [vmem:[#allocation1 + $0x20] ss:$4 sm:$0xff]  ;;  %v8508_v27 = vld [vmem:[#allocation1 + $0x21] ss:$4 sm:$0xff]  ;;  %v2644_v2 = vpop.f32.mrf.mxu0 }
 0x890   : > { %10539 = vst [vmem:[#allocation78_spill] sm:$0xff] %v8504_v43  ;;  %v8510_v51 = vld [vmem:[#allocation1 + $0x22] ss:$4 sm:$0xff]  ;;  %v8512_v32 = vld [vmem:[#allocation1 + $0x23] ss:$4 sm:$0xff]  ;;  %v8519_v43 = vpop.f32.mrf.mxu2 }
 0x891   : > { %10540 = vst [vmem:[#allocation79_spill] sm:$0xff] %v8506_v3  ;;  %v2288_v3 = vpop.f32.mrf.mxu3 }
 0x892   : > { %10541 = vst [vmem:[#allocation80_spill] sm:$0xff] %v8508_v27  ;;  %v2289_v23 = vadd.f32 %v2288_v3, %v8312_v0 }
 0x893   : > { %10542 = vst [vmem:[#allocation81_spill] sm:$0xff] %v8510_v51 }
 0x894   : > { %10543 = vst [vmem:[#allocation83_spill] sm:$0xff] %v8512_v32  ;;  %v2698_v39 = vadd.f32 %v2641_v18, %v2289_v23 }
 0x895   : > { %4329 = vst [vmem:[#allocation1] sm:$0xff] %v10544_v41 }
 0x896   : > { %4339 = vst [vmem:[#allocation1 + $0x20] sm:$0xff] %v10545_v10  ;;  %v10553_v10 = vld [vmem:[#allocation158_spill] sm:$0xff]  ;;  %v8538_v41 = vadd.f32 %v2920_v44, %v2698_v39 }
 0x897   : > { %10546 = vst [vmem:[#allocation84_spill] sm:$0xff] %v8517_v52  ;;  %v10556_v52 = vld [vmem:[#allocation30_spill] sm:$0xff] }
 0x898   : > { %10547 = vst [vmem:[#allocation94_spill] sm:$0xff] %v8519_v43  ;;  %v10555_v43 = vld [vmem:[#allocation244_spill] sm:$0xff]  ;;  %4991 = vmatmul.msk.bf16.gmra.mxu2 %vm10557_vm13, %v10556_v52  ;;  %vm10613_vm13 = vmmov %vm10471_vm0 }
 0x899   : > { %10554 = vst [vmem:[#allocation101_spill] sm:$0xff] %v8538_v41  ;;  %4945 = vmatmul.msk.bf16.gmra.mxu3 %vm10471_vm0, %v10555_v43  ;;  %v2291_v0 = vpop.f32.mrf.mxu3  ;;  %v10567_v41 = vld [vmem:[#allocation176_spill] sm:$0xff] }
 0x89a   : > { %v2292_v3 = vadd.f32 %v2291_v0, %v8328_v8  ;;  %v2646_v8 = vpop.f32.mrf.mxu0  ;;  %5008 = vmatmul.msk.bf16.gmra.mxu0 %vm10583_vm8, %v7913_v34  ;;  %vm10633_vm8 = vmmov %vm10471_vm0 }
 0x89c   : > { %v8521_v27 = vld [vmem:[#allocation1 + $0x1] ss:$4 sm:$0xff]  ;;  %v8523_v51 = vld [vmem:[#allocation1 + $0x2] ss:$4 sm:$0xff]  ;;  %v8525_v24 = vld [vmem:[#allocation1 + $0x3] ss:$4 sm:$0xff]  ;;  %v2699_v39 = vadd.f32 %v2644_v2, %v2292_v3 }
 0x89d   : > { %v8527_v32 = vld [vmem:[#allocation1 + $0x20] ss:$4 sm:$0xff]  ;;  %v8529_v11 = vld [vmem:[#allocation1 + $0x21] ss:$4 sm:$0xff]  ;;  %v8531_v47 = vld [vmem:[#allocation1 + $0x22] ss:$4 sm:$0xff] }
 0x89e   : > { %10548 = vst [vmem:[#allocation97_spill] sm:$0xff] %v8527_v32  ;;  %v8534_v21 = vld [vmem:[#allocation1 + $0x23] ss:$4 sm:$0xff]  ;;  %v2978_v0 = vadd.f32 %v2923_v36, %v2699_v39 }
 0x89f   : > { %10549 = vst [vmem:[#allocation96_spill] sm:$0xff] %v8529_v11  ;;  %v10574_v39 = vld [vmem:[#allocation163_spill] sm:$0xff] }
 0x8a0   : > { %10550 = vst [vmem:[#allocation98_spill] sm:$0xff] %v8531_v47  ;;  %v10558_v47 = vld [vmem:[#allocation269_spill] sm:$0xff] }
 0x8a1   : > { %10551 = vst [vmem:[#allocation99_spill] sm:$0xff] %v8534_v21  ;;  %4971 = vmatmul.msk.bf16.gmra.mxu1 %vm10559_vm14, %v10558_v47  ;;  %v2925_v21 = vpop.f32.mrf.mxu1  ;;  %v2293_v32 = vpop.f32.mrf.mxu3  ;;  %vm10615_vm14 = vmmov %vm10471_vm0 }
 0x8a2   : > { %4338 = vst [vmem:[#allocation1] sm:$0xff] %v10552_v1 }
 0x8a3   : > { %4348 = vst [vmem:[#allocation1 + $0x20] sm:$0xff] %v10553_v10  ;;  %v3228_v10 = vpop.f32.mrf.mxu2 }
 0x8a4   : > { %v8565_v11 = vadd.f32 %v3228_v10, %v2978_v0  ;;  %v10579_v0 = vld [vmem:[#allocation32_spill] sm:$0xff] }
 0x8a6   : > { %10568 = vst [vmem:[#allocation117_spill] sm:$0xff] %v8565_v11  ;;  %v2649_v11 = vpop.f32.mrf.mxu0 }
 0x8a8   : > { %4992 = vmatmul.msk.bf16.gmra.mxu2 %vm10580_vm6, %v10579_v0  ;;  %vm10623_vm6 = vmmov %vm10471_vm0 }
 0x8a9   : > { %v8549_v1 = vld [vmem:[#allocation1 + $0x1] ss:$4 sm:$0xff]  ;;  %v8551_v18 = vld [vmem:[#allocation1 + $0x2] ss:$4 sm:$0xff]  ;;  %v8553_v44 = vld [vmem:[#allocation1 + $0x3] ss:$4 sm:$0xff] }
 0x8aa   : > { %10561 = vst [vmem:[#allocation102_spill] sm:$0xff] %v8553_v44  ;;  %v8555_v23 = vld [vmem:[#allocation1 + $0x20] ss:$4 sm:$0xff]  ;;  %v8557_v43 = vld [vmem:[#allocation1 + $0x21] ss:$4 sm:$0xff] }
 0x8ab   : > { %10562 = vst [vmem:[#allocation103_spill] sm:$0xff] %v8555_v23  ;;  %v8559_v52 = vld [vmem:[#allocation1 + $0x22] ss:$4 sm:$0xff]  ;;  %v8561_v47 = vld [vmem:[#allocation1 + $0x23] ss:$4 sm:$0xff]  ;;  %v2294_v23 = vadd.f32 %v2293_v32, %v8348_v59  ;;  %v8582_v10 = vpop.f32.mrf.mxu2 }
 0x8ac   : > { %10563 = vst [vmem:[#allocation115_spill] sm:$0xff] %v8557_v43  ;;  %v10575_v59 = vld [vmem:[#allocation190_spill] sm:$0xff] }
 0x8ad   : > { %10564 = vst [vmem:[#allocation114_spill] sm:$0xff] %v8559_v52 }
 0x8ae   : > { %10565 = vst [vmem:[#allocation116_spill] sm:$0xff] %v8561_v47 }
 0x8af   : > { %4347 = vst [vmem:[#allocation1] sm:$0xff] %v10566_v33  ;;  %v10577_v33 = vld [vmem:[#allocation9_spill] sm:$0xff] }
 0x8b0   : > { %4357 = vst [vmem:[#allocation1 + $0x20] sm:$0xff] %v10567_v41  ;;  %v2700_v41 = vadd.f32 %v2646_v8, %v2294_v23  ;;  %4946 = vmatmul.msk.bf16.gmra.mxu3 %vm10578_vm5, %v10577_v33  ;;  %v2928_v23 = vpop.f32.mrf.mxu1  ;;  %v2296_v8 = vpop.f32.mrf.mxu3  ;;  %vm10620_vm5 = vmmov %vm10471_vm0 }
 0x8b1   : > { %10573 = vst [vmem:[#allocation132_spill] sm:$0xff] %v8582_v10 }
 0x8b2   : > { %v8586_v32 = vadd.f32 %v2925_v21, %v2700_v41 }
 0x8b4   : > { %10576 = vst [vmem:[#allocation135_spill] sm:$0xff] %v8586_v32 }
 0x8b6   : > { %v8568_v44 = vld [vmem:[#allocation1 + $0x1] ss:$4 sm:$0xff]  ;;  %v8570_v43 = vld [vmem:[#allocation1 + $0x2] ss:$4 sm:$0xff]  ;;  %v8572_v52 = vld [vmem:[#allocation1 + $0x3] ss:$4 sm:$0xff] }
 0x8b7   : > { %v8574_v47 = vld [vmem:[#allocation1 + $0x20] ss:$4 sm:$0xff]  ;;  %v8576_v2 = vld [vmem:[#allocation1 + $0x21] ss:$4 sm:$0xff]  ;;  %v8578_v3 = vld [vmem:[#allocation1 + $0x22] ss:$4 sm:$0xff] }
 0x8b8   : > { %10569 = vst [vmem:[#allocation119_spill] sm:$0xff] %v8574_v47  ;;  %v8580_v36 = vld [vmem:[#allocation1 + $0x23] ss:$4 sm:$0xff] }
 0x8b9   : > { %10570 = vst [vmem:[#allocation120_spill] sm:$0xff] %v8576_v2  ;;  %v10581_v2 = vld [vmem:[#allocation270_spill] sm:$0xff] }
 0x8ba   : > { %10571 = vst [vmem:[#allocation121_spill] sm:$0xff] %v8578_v3  ;;  %4972 = vmatmul.msk.bf16.gmra.mxu1 %vm10582_vm7, %v10581_v2  ;;  %v10590_v3 = vld [vmem:[#allocation203_spill] sm:$0xff]  ;;  %vm10631_vm7 = vmmov %vm10471_vm0 }
 0x8bb   : > { %10572 = vst [vmem:[#allocation134_spill] sm:$0xff] %v8580_v36  ;;  %v10589_v36 = vld [vmem:[#allocation181_spill] sm:$0xff] }
 0x8bc   : > { %4356 = vst [vmem:[#allocation1] sm:$0xff] %v10574_v39  ;;  %v2297_v39 = vadd.f32 %v2296_v8, %v8364_v35  ;;  %v3233_v35 = vpop.f32.mrf.mxu2  ;;  %v2651_v8 = vpop.f32.mrf.mxu0  ;;  %5009 = vmatmul.msk.bf16.gmra.mxu0 %vm10598_vm2, %v7923_v12  ;;  %v10604_v12 = vld [vmem:[#allocation261_spill] sm:$0xff]  ;;  %vm10645_vm2 = vmmov %vm10471_vm0 }
 0x8bd   : > { %4366 = vst [vmem:[#allocation1 + $0x20] sm:$0xff] %v10575_v59 }
 0x8be   : > { %v2701_v59 = vadd.f32 %v2649_v11, %v2297_v39  ;;  %v2298_v39 = vpop.f32.mrf.mxu3 }
 0x8bf   : > { %v2299_v47 = vadd.f32 %v2298_v39, %v8392_v22 }
 0x8c0   : > { %v2980_v34 = vadd.f32 %v2928_v23, %v2701_v59  ;;  %4993 = vmatmul.msk.bf16.vlgmr.msra.gmra.mxu3 %vm10594_vm10, %v7766_v30  ;;  %vm10635_vm10 = vmmov %vm10471_vm0 }
 0x8c2   : > { %v8613_v11 = vadd.f32 %v3233_v35, %v2980_v34 }
 0x8c3   : > { %v8597_v21 = vld [vmem:[#allocation1 + $0x1] ss:$4 sm:$0xff]  ;;  %v8599_v41 = vld [vmem:[#allocation1 + $0x2] ss:$4 sm:$0xff]  ;;  %v8601_v33 = vld [vmem:[#allocation1 + $0x3] ss:$4 sm:$0xff] }
 0x8c4   : > { %10584 = vst [vmem:[#allocation136_spill] sm:$0xff] %v8599_v41  ;;  %v8603_v10 = vld [vmem:[#allocation1 + $0x20] ss:$4 sm:$0xff]  ;;  %v8605_v0 = vld [vmem:[#allocation1 + $0x21] ss:$4 sm:$0xff]  ;;  %v8640_v34 = vpop.f32.mrf.mxu2  ;;  %v2654_v35 = vpop.f32.mrf.mxu0 }
 0x8c5   : > { %10585 = vst [vmem:[#allocation137_spill] sm:$0xff] %v8601_v33  ;;  %v8607_v32 = vld [vmem:[#allocation1 + $0x22] ss:$4 sm:$0xff]  ;;  %v8609_v2 = vld [vmem:[#allocation1 + $0x23] ss:$4 sm:$0xff]  ;;  %v2930_v33 = vpop.f32.mrf.mxu1 }
 0x8c6   : > { %10586 = vst [vmem:[#allocation138_spill] sm:$0xff] %v8603_v10  ;;  %v2702_v10 = vadd.f32 %v2651_v8, %v2299_v47  ;;  %v10596_v47 = vld [vmem:[#allocation199_spill] sm:$0xff] }
 0x8c7   : > { %10587 = vst [vmem:[#allocation139_spill] sm:$0xff] %v8605_v0 }
 0x8c8   : > { %10588 = vst [vmem:[#allocation142_spill] sm:$0xff] %v8607_v32  ;;  %v8628_v59 = vadd.f32 %v2930_v33, %v2702_v10 }
 0x8c9   : > { %4365 = vst [vmem:[#allocation1] sm:$0xff] %v10589_v36 }
 0x8ca   : > { %4375 = vst [vmem:[#allocation1 + $0x20] sm:$0xff] %v10590_v3  ;;  %5026 = vmatmul.msk.bf16.vlgmr.msra.gmra.mxu1 %vm10597_vm1, %v8105_v15  ;;  %vm10639_vm1 = vmmov %vm10471_vm0 }
 0x8cb   : > { %10591 = vst [vmem:[#allocation141_spill] sm:$0xff] %v8613_v11 }
 0x8cc   : > { %10593 = vst [vmem:[#allocation154_spill] sm:$0xff] %v8628_v59 }
 0x8cd   : > { %10599 = vst [vmem:[#allocation156_spill] sm:$0xff] %v8640_v34  ;;  %v2933_v10 = vpop.f32.mrf.mxu1  ;;  %v3238_v34 = vpop.f32.mrf.mxu2 }
 0x8d0   : > { %v8616_v41 = vld [vmem:[#allocation1 + $0x1] ss:$4 sm:$0xff]  ;;  %v8618_v0 = vld [vmem:[#allocation1 + $0x2] ss:$4 sm:$0xff]  ;;  %v8620_v32 = vld [vmem:[#allocation1 + $0x3] ss:$4 sm:$0xff]  ;;  %4994 = vmatmul.msk.bf16.gmra.mxu3 %vm10605_vm4, %v7776_v57 }
 0x8d1   : > { %v8622_v23 = vld [vmem:[#allocation1 + $0x20] ss:$4 sm:$0xff]  ;;  %v8624_v36 = vld [vmem:[#allocation1 + $0x21] ss:$4 sm:$0xff]  ;;  %v8626_v3 = vld [vmem:[#allocation1 + $0x22] ss:$4 sm:$0xff] }
 0x8d2   : > { %10592 = vst [vmem:[#allocation152_spill] sm:$0xff] %v8626_v3  ;;  %v8632_v22 = vld [vmem:[#allocation1 + $0x23] ss:$4 sm:$0xff]  ;;  %vm10647_vm4 = vmmov %vm10471_vm0 }
 0x8d3   : > { %10595 = vst [vmem:[#allocation155_spill] sm:$0xff] %v8632_v22  ;;  %v2656_v22 = vpop.f32.mrf.mxu0  ;;  %5010 = vmatmul.msk.bf16.gmra.mxu0 %vm10609_vm9, %v7934_v54  ;;  %vm10654_vm9 = vmmov %vm10471_vm0 }
 0x8d4   : > { %4374 = vst [vmem:[#allocation1] sm:$0xff] %v10596_v47 }
 0x8d5   : > { %4384 = vst [vmem:[#allocation1 + $0x20] sm:$0xff] %v7289_v40  ;;  %v2301_v40 = vpop.f32.mrf.mxu3  ;;  %v8674_v57 = vpop.f32.mrf.mxu2 }
 0x8d6   : > { %v2302_v11 = vadd.f32 %v2301_v40, %v8274_v13  ;;  %10610 = vst [vmem:[#allocation174_spill] sm:$0xff] %v8674_v57 }
 0x8d8   : > { %v2703_v3 = vadd.f32 %v2654_v35, %v2302_v11 }
 0x8da   : > { %5027 = vmatmul.msk.bf16.gmra.mxu1 %vm10608_vm3, %v8128_v19  ;;  %vm10649_vm3 = vmmov %vm10471_vm0 }
 0x8db   : > { %v8642_v33 = vld [vmem:[#allocation1 + $0x1] ss:$4 sm:$0xff]  ;;  %v8644_v8 = vld [vmem:[#allocation1 + $0x2] ss:$4 sm:$0xff]  ;;  %v8646_v30 = vld [vmem:[#allocation1 + $0x3] ss:$4 sm:$0xff]  ;;  %v2659_v40 = vpop.f32.mrf.mxu0 }
 0x8dc   : > { %v8648_v39 = vld [vmem:[#allocation1 + $0x20] ss:$4 sm:$0xff]  ;;  %v8650_v47 = vld [vmem:[#allocation1 + $0x21] ss:$4 sm:$0xff]  ;;  %v8652_v15 = vld [vmem:[#allocation1 + $0x22] ss:$4 sm:$0xff] }
 0x8dd   : > { %10600 = vst [vmem:[#allocation157_spill] sm:$0xff] %v8648_v39  ;;  %v8654_v59 = vld [vmem:[#allocation1 + $0x23] ss:$4 sm:$0xff]  ;;  %v2303_v11 = vpop.f32.mrf.mxu3 }
 0x8de   : > { %10601 = vst [vmem:[#allocation160_spill] sm:$0xff] %v8650_v47  ;;  %v2304_v35 = vadd.f32 %v2303_v11, %v8288_v62  ;;  %v3243_v11 = vpop.f32.mrf.mxu2 }
 0x8df   : > { %10602 = vst [vmem:[#allocation159_spill] sm:$0xff] %v8652_v15 }
 0x8e0   : > { %10603 = vst [vmem:[#allocation161_spill] sm:$0xff] %v8654_v59  ;;  %v2935_v59 = vpop.f32.mrf.mxu1  ;;  %v2704_v54 = vadd.f32 %v2656_v22, %v2304_v35  ;;  %4995 = vmatmul.msk.bf16.gmra.mxu3 %vm10611_vm11, %v7786_v26  ;;  %vm10661_vm11 = vmmov %vm10471_vm0 }
 0x8e1   : > { %4383 = vst [vmem:[#allocation1] sm:$0xff] %v10604_v12 }
 0x8e2   : > { %4393 = vst [vmem:[#allocation1 + $0x20] sm:$0xff] %v7989_v25  ;;  %v2982_v25 = vadd.f32 %v2933_v10, %v2703_v3 }
 0x8e3   : > { %v2661_v35 = vpop.f32.mrf.mxu0  ;;  %5011 = vmatmul.msk.bf16.gmra.mxu0 %vm10471_vm0, %v7944_v14 }
 0x8e4   : > { %v8672_v13 = vadd.f32 %v3238_v34, %v2982_v25  ;;  %v8691_v25 = vadd.f32 %v2935_v59, %v2704_v54  ;;  %v10617_v54 = vld [vmem:[#allocation296_spill] sm:$0xff] }
 0x8e5   : > { %v2306_v62 = vpop.f32.mrf.mxu3 }
 0x8e6   : > { %v2307_v22 = vadd.f32 %v2306_v62, %v8304_v60 }
 0x8e8   : > { %v8661_v39 = vld [vmem:[#allocation1 + $0x1] ss:$4 sm:$0xff]  ;;  %v8663_v47 = vld [vmem:[#allocation1 + $0x2] ss:$4 sm:$0xff]  ;;  %v8665_v15 = vld [vmem:[#allocation1 + $0x3] ss:$4 sm:$0xff]  ;;  %v2938_v3 = vpop.f32.mrf.mxu1  ;;  %v2705_v57 = vadd.f32 %v2659_v40, %v2307_v22 }
 0x8e9   : > { %10606 = vst [vmem:[#allocation171_spill] sm:$0xff] %v8663_v47  ;;  %v8677_v12 = vld [vmem:[#allocation1 + $0x20] ss:$4 sm:$0xff]  ;;  %v8681_v47 = vld [vmem:[#allocation1 + $0x22] ss:$4 sm:$0xff] }
 0x8ea   : > { %10607 = vst [vmem:[#allocation173_spill] sm:$0xff] %v8665_v15  ;;  %v8679_v15 = vld [vmem:[#allocation1 + $0x21] ss:$4 sm:$0xff]  ;;  %v8683_v19 = vld [vmem:[#allocation1 + $0x23] ss:$4 sm:$0xff]  ;;  %5028 = vmatmul.msk.bf16.gmra.mxu1 %vm10612_vm12, %v8146_v37  ;;  %vm10663_vm12 = vmmov %vm10471_vm0 }
 0x8eb   : > { %4392 = vst [vmem:[#allocation1] sm:$0xff] %v7986_v53  ;;  %v2664_v26 = vpop.f32.mrf.mxu0  ;;  %v10614_v40 = vld [vmem:[#allocation320_spill] sm:$0xff] }
 0x8f0   : > { %4996 = vmatmul.msk.bf16.gmra.mxu3 %vm10615_vm14, %v10614_v40  ;;  %vm10674_vm14 = vmmov %vm10471_vm0 }
 0x8f2   : > { %v8685_v10 = vld [vmem:[#allocation1 + $0x1] ss:$4 sm:$0xff]  ;;  %v8687_v53 = vld [vmem:[#allocation1 + $0x2] ss:$4 sm:$0xff]  ;;  %v8689_v34 = vld [vmem:[#allocation1 + $0x3] ss:$4 sm:$0xff] }
 0x8f3   : > { %4401 = vst [vmem:[#allocation1] ss:$9 sm:$0xff] %v8380_v48  ;;  %v2940_v48 = vpop.f32.mrf.mxu1 }
 0x8f4   : > { %4403 = vst [vmem:[#allocation1 + $0x1] ss:$9 sm:$0xff] %v8382_v63 }
 0x8f5   : > { %4405 = vst [vmem:[#allocation1 + $0x2] ss:$9 sm:$0xff] %v8384_v50  ;;  %v2984_v50 = vadd.f32 %v2938_v3, %v2705_v57  ;;  %v2666_v57 = vpop.f32.mrf.mxu0 }
 0x8f6   : > { %4407 = vst [vmem:[#allocation1 + $0x3] ss:$9 sm:$0xff] %v8356_v7  ;;  %v2308_v7 = vpop.f32.mrf.mxu3 }
 0x8f7   : > { %4409 = vst [vmem:[#allocation1 + $0x4] ss:$9 sm:$0xff] %v8358_v16  ;;  %v8708_v60 = vadd.f32 %v3243_v11, %v2984_v50  ;;  %v8710_v16 = vpop.f32.mrf.mxu2 }
 0x8f8   : > { %4411 = vst [vmem:[#allocation1 + $0x5] ss:$9 sm:$0xff] %v8360_v29  ;;  %v2309_v29 = vadd.f32 %v2308_v7, %v8322_v28  ;;  %v10624_v7 = vld [vmem:[#allocation316_spill] sm:$0xff] }
 0x8f9   : > { %4413 = vst [vmem:[#allocation1 + $0x6] ss:$9 sm:$0xff] %v8362_v42 }
 0x8fa   : > { %4415 = vst [vmem:[#allocation1 + $0x7] ss:$9 sm:$0xff] %v8400_v49  ;;  %v2706_v63 = vadd.f32 %v2661_v35, %v2309_v29  ;;  %5029 = vmatmul.msk.bf16.gmra.mxu1 %vm10618_vm15, %v10617_v54  ;;  %v10632_v54 = vld [vmem:[#allocation297_spill] sm:$0xff]  ;;  %vm10676_vm15 = vmmov %vm10471_vm0 }
 0x8fb   : > { %v2943_v59 = vpop.f32.mrf.mxu1 }
 0x8fc   : > { %v8715_v37 = vadd.f32 %v2940_v48, %v2706_v63  ;;  %v10622_v48 = vld [vmem:[#allocation24_spill] sm:$0xff]  ;;  %v10626_v63 = vld [vmem:[#allocation318_spill] sm:$0xff] }
 0x8fd   : > { %v2669_v11 = vpop.f32.mrf.mxu0 }
 0x8fe   : > { %v2311_v14 = vpop.f32.mrf.mxu3 }
 0x8ff   : > { %v3248_v49 = vpop.f32.mrf.mxu2  ;;  %v2312_v28 = vadd.f32 %v2311_v14, %v8342_v61 }
 0x901   : > { %v4416_v42 = vld [vmem:[#allocation1] sm:$0xff] }
 0x902   : > { %5039 = vmatmul.msk.bf16.vlgmr.msra.gmra.mxu2 %vm10613_vm13, %v4416_v42  ;;  %4417 = vst [vmem:[#allocation1] ss:$9 sm:$0xff] %v8402_v6  ;;  %v2707_v6 = vadd.f32 %v2664_v26, %v2312_v28  ;;  %v10625_v26 = vld [vmem:[#allocation317_spill] sm:$0xff]  ;;  %v10627_v42 = vld [vmem:[#allocation319_spill] sm:$0xff]  ;;  %vm10668_vm13 = vmmov %vm10471_vm0 }
 0x903   : > { %4418 = vst [vmem:[#allocation1 + $0x1] ss:$9 sm:$0xff] %v8404_v9  ;;  %v10616_v9 = vld [vmem:[#allocation25_spill] sm:$0xff] }
 0x904   : > { %4419 = vst [vmem:[#allocation1 + $0x2] ss:$9 sm:$0xff] %v8386_v31  ;;  %v2945_v31 = vpop.f32.mrf.mxu1 }
 0x905   : > { %4420 = vst [vmem:[#allocation1 + $0x3] ss:$9 sm:$0xff] %v8388_v55  ;;  %v10619_v55 = vld [vmem:[#allocation289_spill] sm:$0xff] }
 0x906   : > { %4421 = vst [vmem:[#allocation1 + $0x4] ss:$9 sm:$0xff] %v8390_v5  ;;  %5012 = vmatmul.msk.bf16.gmra.mxu0 %vm10620_vm5, %v10619_v55  ;;  %v2986_v5 = vadd.f32 %v2943_v59, %v2707_v6  ;;  %v10629_v6 = vld [vmem:[#allocation43_spill] sm:$0xff]  ;;  %v10634_v55 = vld [vmem:[#allocation290_spill] sm:$0xff]  ;;  %vm10678_vm5 = vmmov %vm10471_vm0 }
 0x907   : > { %4422 = vst [vmem:[#allocation1 + $0x5] ss:$9 sm:$0xff] %v8394_v45  ;;  %v2313_v45 = vpop.f32.mrf.mxu3  ;;  %v8733_v3 = vpop.f32.mrf.mxu2 }
 0x908   : > { %4423 = vst [vmem:[#allocation1 + $0x6] ss:$9 sm:$0xff] %v8424_v17  ;;  %v8731_v61 = vadd.f32 %v3248_v49, %v2986_v5  ;;  %v10621_v17 = vld [vmem:[#allocation310_spill] sm:$0xff]  ;;  %v10628_v49 = vld [vmem:[#allocation313_spill] sm:$0xff] }
 0x909   : > { %4424 = vst [vmem:[#allocation1 + $0x7] ss:$9 sm:$0xff] %v10616_v9  ;;  %v2314_v62 = vadd.f32 %v2313_v45, %v10621_v17  ;;  %v10630_v9 = vld [vmem:[#allocation321_spill] sm:$0xff] }
 0x90a   : > { %4997 = vmatmul.msk.bf16.gmra.mxu3 %vm10631_vm7, %v10630_v9  ;;  %5030 = vmatmul.msk.bf16.gmra.mxu1 %vm10633_vm8, %v10632_v54  ;;  %v10644_v9 = vld [vmem:[#allocation322_spill] sm:$0xff]  ;;  %vm10689_vm7 = vmmov %vm10471_vm0 }
 0x90b   : > { %v2708_v35 = vadd.f32 %v2666_v57, %v2314_v62  ;;  %v2671_v57 = vpop.f32.mrf.mxu0  ;;  %v10646_v54 = vld [vmem:[#allocation298_spill] sm:$0xff]  ;;  %vm10691_vm8 = vmmov %vm10471_vm0 }
 0x90c   : > { %v2948_v50 = vpop.f32.mrf.mxu1 }
 0x90d   : > { %v8739_v29 = vadd.f32 %v2945_v31, %v2708_v35  ;;  %v10637_v35 = vld [vmem:[#allocation26_spill] sm:$0xff] }
 0x90f   : > { %v2316_v59 = vpop.f32.mrf.mxu3  ;;  %v3253_v14 = vpop.f32.mrf.mxu2 }
 0x910   : > { %v4425_v22 = vld [vmem:[#allocation1] sm:$0xff]  ;;  %v2317_v28 = vadd.f32 %v2316_v59, %v10628_v49  ;;  %v10642_v49 = vld [vmem:[#allocation302_spill] sm:$0xff] }
 0x911   : > { %4426 = vst [vmem:[#allocation1] ss:$9 sm:$0xff] %v10622_v48 }
 0x912   : > { %5040 = vmatmul.msk.bf16.gmra.mxu2 %vm10623_vm6, %v4425_v22  ;;  %4427 = vst [vmem:[#allocation1 + $0x1] ss:$9 sm:$0xff] %v10624_v7  ;;  %v2709_v40 = vadd.f32 %v2669_v11, %v2317_v28  ;;  %v10638_v7 = vld [vmem:[#allocation36_spill] sm:$0xff]  ;;  %vm10683_vm6 = vmmov %vm10471_vm0 }
 0x913   : > { %4428 = vst [vmem:[#allocation1 + $0x2] ss:$9 sm:$0xff] %v10625_v26  ;;  %v2674_v11 = vpop.f32.mrf.mxu0 }
 0x914   : > { %4429 = vst [vmem:[#allocation1 + $0x3] ss:$9 sm:$0xff] %v10626_v63  ;;  %v2950_v31 = vpop.f32.mrf.mxu1  ;;  %v2988_v5 = vadd.f32 %v2948_v50, %v2709_v40  ;;  %v10640_v63 = vld [vmem:[#allocation38_spill] sm:$0xff] }
 0x915   : > { %4430 = vst [vmem:[#allocation1 + $0x4] ss:$9 sm:$0xff] %v10627_v42  ;;  %v10641_v42 = vld [vmem:[#allocation39_spill] sm:$0xff] }
 0x916   : > { %4431 = vst [vmem:[#allocation1 + $0x5] ss:$9 sm:$0xff] %v8446_v58  ;;  %5013 = vmatmul.msk.bf16.gmra.mxu0 %vm10635_vm10, %v10634_v55  ;;  %v8754_v58 = vadd.f32 %v3253_v14, %v2988_v5  ;;  %vm10693_vm10 = vmmov %vm10471_vm0 }
 0x917   : > { %4432 = vst [vmem:[#allocation1 + $0x6] ss:$9 sm:$0xff] %v8448_v4  ;;  %v2318_v45 = vpop.f32.mrf.mxu3  ;;  %v8756_v17 = vpop.f32.mrf.mxu2  ;;  %v10636_v4 = vld [vmem:[#allocation315_spill] sm:$0xff] }
 0x918   : > { %4433 = vst [vmem:[#allocation1 + $0x7] ss:$9 sm:$0xff] %v10629_v6  ;;  %v2319_v62 = vadd.f32 %v2318_v45, %v10636_v4  ;;  %v10650_v4 = vld [vmem:[#allocation304_spill] sm:$0xff] }
 0x91a   : > { %v2710_v48 = vadd.f32 %v2671_v57, %v2319_v62  ;;  %v10643_v57 = vld [vmem:[#allocation42_spill] sm:$0xff]  ;;  %4998 = vmatmul.msk.bf16.gmra.mxu3 %vm10645_vm2, %v10644_v9  ;;  %5031 = vmatmul.msk.bf16.gmra.mxu1 %vm10647_vm4, %v10646_v54  ;;  %vm10700_vm2 = vmmov %vm10471_vm0 }
 0x91b   : > { %v2676_v6 = vpop.f32.mrf.mxu0  ;;  %vm10702_vm4 = vmmov %vm10471_vm0 }
 0x91c   : > { %v2953_v26 = vpop.f32.mrf.mxu1  ;;  %v8763_v50 = vadd.f32 %v2950_v31, %v2710_v48 }
 0x91f   : > { %v4434_v22 = vld [vmem:[#allocation1] sm:$0xff]  ;;  %v2321_v59 = vpop.f32.mrf.mxu3  ;;  %v3258_v14 = vpop.f32.mrf.mxu2 }
 0x920   : > { %4435 = vst [vmem:[#allocation1] ss:$9 sm:$0xff] %v10637_v35  ;;  %v2322_v28 = vadd.f32 %v2321_v59, %v10642_v49  ;;  %v10652_v35 = vld [vmem:[#allocation45_spill] sm:$0xff]  ;;  %v10656_v59 = vld [vmem:[#allocation78_spill] sm:$0xff] }
 0x921   : > { %4436 = vst [vmem:[#allocation1 + $0x1] ss:$9 sm:$0xff] %v10638_v7  ;;  %v10653_v7 = vld [vmem:[#allocation57_spill] sm:$0xff] }
 0x922   : > { %5041 = vmatmul.msk.bf16.gmra.mxu2 %vm10639_vm1, %v4434_v22  ;;  %4437 = vst [vmem:[#allocation1 + $0x2] ss:$9 sm:$0xff] %v10640_v63  ;;  %v2711_v40 = vadd.f32 %v2674_v11, %v2322_v28  ;;  %v10651_v22 = vld [vmem:[#allocation44_spill] sm:$0xff]  ;;  %vm10697_vm1 = vmmov %vm10471_vm0 }
 0x923   : > { %4438 = vst [vmem:[#allocation1 + $0x3] ss:$9 sm:$0xff] %v10641_v42  ;;  %v2679_v11 = vpop.f32.mrf.mxu0  ;;  %v10655_v42 = vld [vmem:[#allocation77_spill] sm:$0xff] }
 0x924   : > { %4439 = vst [vmem:[#allocation1 + $0x4] ss:$9 sm:$0xff] %v8469_v46  ;;  %v2955_v31 = vpop.f32.mrf.mxu1  ;;  %v10648_v46 = vld [vmem:[#allocation291_spill] sm:$0xff] }
 0x925   : > { %4440 = vst [vmem:[#allocation1 + $0x5] ss:$9 sm:$0xff] %v8471_v56  ;;  %v2990_v56 = vadd.f32 %v2953_v26, %v2711_v40 }
 0x926   : > { %4441 = vst [vmem:[#allocation1 + $0x6] ss:$9 sm:$0xff] %v8473_v38  ;;  %5014 = vmatmul.msk.bf16.gmra.mxu0 %vm10649_vm3, %v10648_v46  ;;  %v10660_v46 = vld [vmem:[#allocation33_spill] sm:$0xff]  ;;  %vm10704_vm3 = vmmov %vm10471_vm0 }
 0x927   : > { %4442 = vst [vmem:[#allocation1 + $0x7] ss:$9 sm:$0xff] %v10643_v57  ;;  %v8777_v55 = vadd.f32 %v3258_v14, %v2990_v56  ;;  %v2323_v38 = vpop.f32.mrf.mxu3  ;;  %v8779_v5 = vpop.f32.mrf.mxu2  ;;  %v10657_v14 = vld [vmem:[#allocation59_spill] sm:$0xff]  ;;  %v10658_v57 = vld [vmem:[#allocation61_spill] sm:$0xff]  ;;  %v10664_v56 = vld [vmem:[#allocation292_spill] sm:$0xff] }
 0x928   : > { %v2324_v62 = vadd.f32 %v2323_v38, %v10650_v4 }
 0x92a   : > { %v2712_v48 = vadd.f32 %v2676_v6, %v2324_v62  ;;  %v10659_v6 = vld [vmem:[#allocation305_spill] sm:$0xff]  ;;  %4999 = vmatmul.msk.bf16.gmra.mxu3 %vm10661_vm11, %v10660_v46  ;;  %vm10713_vm11 = vmmov %vm10471_vm0 }
 0x92b   : > { %v2681_v9 = vpop.f32.mrf.mxu0 }
 0x92c   : > { %v2958_v63 = vpop.f32.mrf.mxu1  ;;  %v8787_v26 = vadd.f32 %v2955_v31, %v2712_v48  ;;  %v10662_v31 = vld [vmem:[#allocation299_spill] sm:$0xff] }
 0x92d   : > { %5032 = vmatmul.msk.bf16.gmra.mxu1 %vm10663_vm12, %v10662_v31  ;;  %vm10715_vm12 = vmmov %vm10471_vm0 }
 0x92e   : > { %v4443_v45 = vld [vmem:[#allocation1] sm:$0xff] }
 0x92f   : > { %4444 = vst [vmem:[#allocation1] ss:$9 sm:$0xff] %v10651_v22  ;;  %v2326_v49 = vpop.f32.mrf.mxu3  ;;  %v3263_v28 = vpop.f32.mrf.mxu2 }
 0x930   : > { %4445 = vst [vmem:[#allocation1 + $0x1] ss:$9 sm:$0xff] %v10652_v35  ;;  %v2327_v40 = vadd.f32 %v2326_v49, %v10659_v6  ;;  %v10665_v35 = vld [vmem:[#allocation60_spill] sm:$0xff]  ;;  %v10669_v49 = vld [vmem:[#allocation79_spill] sm:$0xff] }
 0x931   : > { %4446 = vst [vmem:[#allocation1 + $0x2] ss:$9 sm:$0xff] %v10653_v7  ;;  %v10667_v7 = vld [vmem:[#allocation63_spill] sm:$0xff] }
 0x932   : > { %5042 = vmatmul.msk.bf16.gmra.mxu2 %vm10654_vm9, %v4443_v45  ;;  %4447 = vst [vmem:[#allocation1 + $0x3] ss:$9 sm:$0xff] %v8500_v20  ;;  %v2713_v54 = vadd.f32 %v2679_v11, %v2327_v40  ;;  %v10666_v11 = vld [vmem:[#allocation307_spill] sm:$0xff]  ;;  %vm10711_vm9 = vmmov %vm10471_vm0 }
 0x933   : > { %4448 = vst [vmem:[#allocation1 + $0x4] ss:$9 sm:$0xff] %v10655_v42  ;;  %v2684_v42 = vpop.f32.mrf.mxu0 }
 0x934   : > { %4449 = vst [vmem:[#allocation1 + $0x5] ss:$9 sm:$0xff] %v10656_v59  ;;  %v2960_v20 = vpop.f32.mrf.mxu1  ;;  %v2992_v38 = vadd.f32 %v2958_v63, %v2713_v54  ;;  %v10672_v54 = vld [vmem:[#allocation309_spill] sm:$0xff] }
 0x935   : > { %4450 = vst [vmem:[#allocation1 + $0x6] ss:$9 sm:$0xff] %v10657_v14 }
 0x936   : > { %4451 = vst [vmem:[#allocation1 + $0x7] ss:$9 sm:$0xff] %v10658_v57  ;;  %5015 = vmatmul.msk.bf16.gmra.mxu0 %vm10471_vm0, %v10664_v56  ;;  %v8800_v45 = vadd.f32 %v3263_v28, %v2992_v38  ;;  %v10670_v28 = vld [vmem:[#allocation80_spill] sm:$0xff]  ;;  %v10671_v57 = vld [vmem:[#allocation81_spill] sm:$0xff] }
 0x937   : > { %v2328_v62 = vpop.f32.mrf.mxu3  ;;  %v8802_v22 = vpop.f32.mrf.mxu2  ;;  %v10675_v56 = vld [vmem:[#allocation300_spill] sm:$0xff] }
 0x938   : > { %v2329_v48 = vadd.f32 %v2328_v62, %v10666_v11  ;;  %v10679_v62 = vld [vmem:[#allocation83_spill] sm:$0xff] }
 0x93a   : > { %v2714_v59 = vadd.f32 %v2681_v9, %v2329_v48  ;;  %v10680_v48 = vld [vmem:[#allocation311_spill] sm:$0xff] }
 0x93b   : > { %v2686_v9 = vpop.f32.mrf.mxu0 }
 0x93c   : > { %v2963_v14 = vpop.f32.mrf.mxu1  ;;  %v8811_v63 = vadd.f32 %v2960_v20, %v2714_v59  ;;  %v10681_v59 = vld [vmem:[#allocation102_spill] sm:$0xff] }
 0x93d   : > { %v4452_v4 = vld [vmem:[#allocation1] sm:$0xff]  ;;  %5033 = vmatmul.msk.bf16.gmra.mxu1 %vm10676_vm15, %v10675_v56  ;;  %vm10733_vm15 = vmmov %vm10471_vm0 }
 0x93e   : > { %4453 = vst [vmem:[#allocation1] ss:$9 sm:$0xff] %v10665_v35 }
 0x93f   : > { %4454 = vst [vmem:[#allocation1 + $0x1] ss:$9 sm:$0xff] %v10667_v7  ;;  %v2331_v6 = vpop.f32.mrf.mxu3  ;;  %v3268_v40 = vpop.f32.mrf.mxu2 }
 0x940   : > { %4455 = vst [vmem:[#allocation1 + $0x2] ss:$9 sm:$0xff] %v8521_v27  ;;  %v2332_v27 = vadd.f32 %v2331_v6, %v10672_v54 }
 0x941   : > { %4456 = vst [vmem:[#allocation1 + $0x3] ss:$9 sm:$0xff] %v8523_v51  ;;  %v10673_v51 = vld [vmem:[#allocation34_spill] sm:$0xff] }
 0x942   : > { %5043 = vmatmul.msk.bf16.gmra.mxu2 %vm10668_vm13, %v4452_v4  ;;  %4457 = vst [vmem:[#allocation1 + $0x4] ss:$9 sm:$0xff] %v8525_v24  ;;  %v2715_v46 = vadd.f32 %v2684_v42, %v2332_v27  ;;  %5000 = vmatmul.msk.bf16.gmra.mxu3 %vm10674_vm14, %v10673_v51  ;;  %v10677_v24 = vld [vmem:[#allocation293_spill] sm:$0xff]  ;;  %vm10722_vm13 = vmmov %vm10471_vm0 }
 0x943   : > { %4458 = vst [vmem:[#allocation1 + $0x5] ss:$9 sm:$0xff] %v10669_v49  ;;  %v2689_v42 = vpop.f32.mrf.mxu0  ;;  %vm10724_vm14 = vmmov %vm10471_vm0 }
 0x944   : > { %4459 = vst [vmem:[#allocation1 + $0x6] ss:$9 sm:$0xff] %v10670_v28  ;;  %v2965_v31 = vpop.f32.mrf.mxu1  ;;  %v2994_v20 = vadd.f32 %v2963_v14, %v2715_v46  ;;  %v10682_v28 = vld [vmem:[#allocation97_spill] sm:$0xff] }
 0x945   : > { %4460 = vst [vmem:[#allocation1 + $0x7] ss:$9 sm:$0xff] %v10671_v57  ;;  %v10684_v57 = vld [vmem:[#allocation96_spill] sm:$0xff] }
 0x946   : > { %5016 = vmatmul.msk.bf16.gmra.mxu0 %vm10678_vm5, %v10677_v24  ;;  %v8823_v4 = vadd.f32 %v3268_v40, %v2994_v20  ;;  %v10685_v40 = vld [vmem:[#allocation98_spill] sm:$0xff]  ;;  %v10690_v20 = vld [vmem:[#allocation301_spill] sm:$0xff]  ;;  %vm10736_vm5 = vmmov %vm10471_vm0 }
 0x947   : > { %v2333_v35 = vpop.f32.mrf.mxu3  ;;  %v8826_v11 = vpop.f32.mrf.mxu2 }
 0x948   : > { %v2334_v7 = vadd.f32 %v2333_v35, %v10680_v48 }
 0x94a   : > { %v2716_v49 = vadd.f32 %v2686_v9, %v2334_v7  ;;  %v10688_v9 = vld [vmem:[#allocation12_spill] sm:$0xff] }
 0x94b   : > { %v2691_v51 = vpop.f32.mrf.mxu0 }
 0x94c   : > { %v4461_v38 = vld [vmem:[#allocation1] sm:$0xff]  ;;  %v2968_v14 = vpop.f32.mrf.mxu1  ;;  %v8835_v6 = vadd.f32 %v2965_v31, %v2716_v49 }
 0x94d   : > { %4462 = vst [vmem:[#allocation1] ss:$9 sm:$0xff] %v10679_v62  ;;  %5034 = vmatmul.msk.bf16.gmra.mxu1 %vm10691_vm8, %v10690_v20  ;;  %v10695_v49 = vld [vmem:[#allocation115_spill] sm:$0xff]  ;;  %v10710_v20 = vld [vmem:[#allocation134_spill] sm:$0xff]  ;;  %vm10748_vm8 = vmmov %vm10471_vm0 }
 0x94e   : > { %4463 = vst [vmem:[#allocation1 + $0x1] ss:$9 sm:$0xff] %v8549_v1  ;;  %v10686_v1 = vld [vmem:[#allocation99_spill] sm:$0xff] }
 0x94f   : > { %4464 = vst [vmem:[#allocation1 + $0x2] ss:$9 sm:$0xff] %v8551_v18  ;;  %v2336_v54 = vpop.f32.mrf.mxu3  ;;  %v3273_v27 = vpop.f32.mrf.mxu2  ;;  %v10687_v18 = vld [vmem:[#allocation314_spill] sm:$0xff]  ;;  %v10707_v51 = vld [vmem:[#allocation119_spill] sm:$0xff] }
 0x950   : > { %4465 = vst [vmem:[#allocation1 + $0x3] ss:$9 sm:$0xff] %v10681_v59  ;;  %v2337_v46 = vadd.f32 %v2336_v54, %v10687_v18  ;;  %v10703_v54 = vld [vmem:[#allocation295_spill] sm:$0xff]  ;;  %v10705_v18 = vld [vmem:[#allocation136_spill] sm:$0xff] }
 0x951   : > { %4466 = vst [vmem:[#allocation1 + $0x4] ss:$9 sm:$0xff] %v10682_v28  ;;  %v10696_v28 = vld [vmem:[#allocation114_spill] sm:$0xff] }
 0x952   : > { %5044 = vmatmul.msk.bf16.gmra.mxu2 %vm10683_vm6, %v4461_v38  ;;  %4467 = vst [vmem:[#allocation1 + $0x5] ss:$9 sm:$0xff] %v10684_v57  ;;  %v2717_v56 = vadd.f32 %v2689_v42, %v2337_v46  ;;  %5001 = vmatmul.msk.bf16.gmra.mxu3 %vm10689_vm7, %v10688_v9  ;;  %v10692_v38 = vld [vmem:[#allocation294_spill] sm:$0xff]  ;;  %v10694_v42 = vld [vmem:[#allocation103_spill] sm:$0xff]  ;;  %v10706_v46 = vld [vmem:[#allocation137_spill] sm:$0xff] }
 0x953   : > { %4468 = vst [vmem:[#allocation1 + $0x6] ss:$9 sm:$0xff] %v10685_v40  ;;  %v3870_v59 = vpop.f32.mrf.mxu0  ;;  %v10699_v40 = vld [vmem:[#allocation11_spill] sm:$0xff]  ;;  %v10709_v9 = vld [vmem:[#allocation121_spill] sm:$0xff]  ;;  %vm10739_vm6 = vmmov %vm10471_vm0 }
 0x954   : > { %4469 = vst [vmem:[#allocation1 + $0x7] ss:$9 sm:$0xff] %v10686_v1  ;;  %v2970_v24 = vpop.f32.mrf.mxu1  ;;  %v2996_v31 = vadd.f32 %v2968_v14, %v2717_v56  ;;  %v10698_v14 = vld [vmem:[#allocation116_spill] sm:$0xff]  ;;  %v10701_v1 = vld [vmem:[#allocation303_spill] sm:$0xff]  ;;  %vm10744_vm7 = vmmov %vm10471_vm0 }
 0x955   : > { %v10708_v56 = vld [vmem:[#allocation120_spill] sm:$0xff] }
 0x956   : > { %5017 = vmatmul.msk.bf16.gmra.mxu0 %vm10693_vm10, %v10692_v38  ;;  %v8847_v35 = vadd.f32 %v3273_v27, %v2996_v31  ;;  %vm10752_vm10 = vmmov %vm10471_vm0 }
 0x957   : > { %v2338_v48 = vpop.f32.mrf.mxu3  ;;  %v3275_v7 = vpop.f32.mrf.mxu2 }
 0x958   : > { %v10712_v48 = vld [vmem:[#allocation286_spill] sm:$0xff] }
 0x95b   : > { %v4470_v62 = vld [vmem:[#allocation1] sm:$0xff] }
 0x95c   : > { %4471 = vst [vmem:[#allocation1] ss:$9 sm:$0xff] %v8568_v44  ;;  %v4179_v57 = vpop.f32.mrf.mxu1 }
 0x95d   : > { %4472 = vst [vmem:[#allocation1 + $0x1] ss:$9 sm:$0xff] %v8570_v43  ;;  %v3872_v43 = vpop.f32.mrf.mxu0  ;;  %5035 = vmatmul.msk.bf16.gmra.mxu1 %vm10702_vm4, %v10701_v1  ;;  %v10719_v1 = vld [vmem:[#allocation142_spill] sm:$0xff] }
 0x95e   : > { %4473 = vst [vmem:[#allocation1 + $0x2] ss:$9 sm:$0xff] %v8572_v52 }
 0x95f   : > { %4474 = vst [vmem:[#allocation1 + $0x3] ss:$9 sm:$0xff] %v10694_v42  ;;  %v3595_v44 = vpop.f32.mrf.mxu3 }
 0x960   : > { %4475 = vst [vmem:[#allocation1 + $0x4] ss:$9 sm:$0xff] %v10695_v49  ;;  %v10714_v49 = vld [vmem:[#allocation306_spill] sm:$0xff] }
 0x961   : > { %4476 = vst [vmem:[#allocation1 + $0x5] ss:$9 sm:$0xff] %v10696_v28  ;;  %v10716_v28 = vld [vmem:[#allocation40_spill] sm:$0xff] }
 0x962   : > { %5045 = vmatmul.msk.bf16.gmra.mxu2 %vm10697_vm1, %v4470_v62  ;;  %4477 = vst [vmem:[#allocation1 + $0x6] ss:$9 sm:$0xff] %v10698_v14  ;;  %5002 = vmatmul.msk.bf16.gmra.mxu3 %vm10700_vm2, %v10699_v40  ;;  %v3659_v14 = vadd.f32 %v3595_v44, %v10716_v28  ;;  %v10718_v40 = vld [vmem:[#allocation139_spill] sm:$0xff]  ;;  %vm4711_vm1 = vcmask 556032  }
 0x963   : > { %4478 = vst [vmem:[#allocation1 + $0x7] ss:$9 sm:$0xff] %v8597_v21 }
 0x964   : > { %v4181_v52 = vpop.f32.mrf.mxu1 }
 0x965   : > { %v3875_v24 = vpop.f32.mrf.mxu0 }
 0x966   : > { %5018 = vmatmul.msk.bf16.gmra.mxu0 %vm10704_vm3, %v10703_v54  ;;  %v3934_v54 = vadd.f32 %v3870_v59, %v3659_v14 }
 0x967   : > { %v3597_v21 = vpop.f32.mrf.mxu3 }
 0x968   : > { %v4243_v44 = vadd.f32 %v4179_v57, %v3934_v54  ;;  %v10731_v54 = vld [vmem:[#allocation65_spill] sm:$0xff] }
 0x96a   : > { %v4479_v27 = vld [vmem:[#allocation1] sm:$0xff] }
 0x96b   : > { %4480 = vst [vmem:[#allocation1] ss:$9 sm:$0xff] %v10705_v18  ;;  %v10720_v18 = vld [vmem:[#allocation58_spill] sm:$0xff] }
 0x96c   : > { %4481 = vst [vmem:[#allocation1 + $0x1] ss:$9 sm:$0xff] %v10706_v46  ;;  %v4184_v38 = vpop.f32.mrf.mxu1  ;;  %v3660_v46 = vadd.f32 %v3597_v21, %v10720_v18  ;;  %v10725_v21 = vld [vmem:[#allocation62_spill] sm:$0xff] }
 0x96d   : > { %4482 = vst [vmem:[#allocation1 + $0x2] ss:$9 sm:$0xff] %v10707_v51  ;;  %v3877_v62 = vpop.f32.mrf.mxu0  ;;  %5036 = vmatmul.msk.bf16.gmra.mxu1 %vm10715_vm12, %v10714_v49 }
 0x96e   : > { %4483 = vst [vmem:[#allocation1 + $0x3] ss:$9 sm:$0xff] %v10708_v56 }
 0x96f   : > { %4484 = vst [vmem:[#allocation1 + $0x4] ss:$9 sm:$0xff] %v10709_v9  ;;  %v3600_v31 = vpop.f32.mrf.mxu3 }
 0x970   : > { %4485 = vst [vmem:[#allocation1 + $0x5] ss:$9 sm:$0xff] %v10710_v20  ;;  %v3935_v20 = vadd.f32 %v3872_v43, %v3660_v46  ;;  %v10727_v43 = vld [vmem:[#allocation155_spill] sm:$0xff] }
 0x971   : > { %4486 = vst [vmem:[#allocation1 + $0x6] ss:$9 sm:$0xff] %v8616_v41  ;;  %v10717_v41 = vld [vmem:[#allocation138_spill] sm:$0xff] }
 0x972   : > { %5046 = vmatmul.msk.bf16.gmra.mxu2 %vm10711_vm9, %v4479_v27  ;;  %4487 = vst [vmem:[#allocation1 + $0x7] ss:$9 sm:$0xff] %v8618_v0  ;;  %5003 = vmatmul.msk.bf16.gmra.mxu3 %vm10713_vm11, %v10712_v48  ;;  %v4244_v57 = vadd.f32 %v4181_v52, %v3935_v20  ;;  %v3661_v48 = vadd.f32 %v3600_v31, %v10725_v21  ;;  %v10730_v52 = vld [vmem:[#allocation75_spill] sm:$0xff] }
 0x973   : > { %v10737_v21 = vld [vmem:[#allocation159_spill] sm:$0xff] }
 0x974   : > { %v4186_v42 = vpop.f32.mrf.mxu1 }
 0x975   : > { %v3880_v27 = vpop.f32.mrf.mxu0 }
 0x977   : > { %v3602_v0 = vpop.f32.mrf.mxu3 }
 0x979   : > { %v4488_v7 = vld [vmem:[#allocation1] sm:$0xff] }
 0x97a   : > { %4489 = vst [vmem:[#allocation1] ss:$9 sm:$0xff] %v8620_v32 }
 0x97b   : > { %4490 = vst [vmem:[#allocation1 + $0x1] ss:$9 sm:$0xff] %v10717_v41  ;;  %v3936_v41 = vadd.f32 %v3875_v24, %v3661_v48 }
 0x97c   : > { %4491 = vst [vmem:[#allocation1 + $0x2] ss:$9 sm:$0xff] %v10718_v40  ;;  %v8885_v32 = vpop.f32.mrf.mxu1  ;;  %v10729_v40 = vld [vmem:[#allocation173_spill] sm:$0xff] }
 0x97d   : > { %4492 = vst [vmem:[#allocation1 + $0x3] ss:$9 sm:$0xff] %v10719_v1  ;;  %v4245_v18 = vadd.f32 %v4184_v38, %v3936_v41 }
 0x97e   : > { %4493 = vst [vmem:[#allocation1 + $0x4] ss:$9 sm:$0xff] %v8609_v2  ;;  %v3882_v2 = vpop.f32.mrf.mxu0 }
 0x97f   : > { %4494 = vst [vmem:[#allocation1 + $0x5] ss:$9 sm:$0xff] %v8642_v33  ;;  %v3605_v56 = vpop.f32.mrf.mxu3  ;;  %v10721_v33 = vld [vmem:[#allocation287_spill] sm:$0xff] }
 0x980   : > { %4495 = vst [vmem:[#allocation1 + $0x6] ss:$9 sm:$0xff] %v8644_v8 }
 0x981   : > { %4496 = vst [vmem:[#allocation1 + $0x7] ss:$9 sm:$0xff] %v8646_v30  ;;  %v10723_v30 = vld [vmem:[#allocation308_spill] sm:$0xff] }
 0x982   : > { %5047 = vmatmul.msk.bf16.gmra.mxu2 %vm10471_vm0, %v4488_v7  ;;  %5004 = vmatmul.msk.bf16.gmra.mxu3 %vm10722_vm13, %v10721_v33  ;;  %v10726_v7 = vld [vmem:[#allocation152_spill] sm:$0xff] }
 0x983   : > { %5037 = vmatmul.msk.bf16.gmra.mxu1 %vm10724_vm14, %v10723_v30  ;;  %v10734_v30 = vld [vmem:[#allocation160_spill] sm:$0xff] }
 0x984   : > { %v8892_v8 = vpop.f32.mrf.mxu1 }
 0x985   : > { %v4557_v51 = vpop.f32.mrf.mxu2 }
 0x986   : > { %v4621_v9 = vadd.f32 %v4557_v51, %v4243_v44  ;;  %v3885_v1 = vpop.f32.mrf.mxu0  ;;  %v10732_v44 = vld [vmem:[#allocation157_spill] sm:$0xff] }
 0x987   : > { %v3607_v28 = vpop.f32.mrf.mxu3 }
 0x988   : > { %4646 = vxpose.xlu0.b32.start [1/16] (narrow) %v4621_v9, 8  ;;  %v4497_v59 = vld [vmem:[#allocation1] sm:$0xff] }
 0x989   : > { %4498 = vst [vmem:[#allocation1] ss:$9 sm:$0xff] %v8622_v23  ;;  %v10728_v23 = vld [vmem:[#allocation171_spill] sm:$0xff] }
 0x98a   : > { %4499 = vst [vmem:[#allocation1 + $0x1] ss:$9 sm:$0xff] %v8624_v36  ;;  %v3280_v36 = vadd.f32 %v10731_v54, %v10730_v52 }
 0x98b   : > { %4500 = vst [vmem:[#allocation1 + $0x2] ss:$9 sm:$0xff] %v10726_v7  ;;  %v10738_v7 = vld [vmem:[#allocation312_spill] sm:$0xff] }
 0x98c   : > { %4501 = vst [vmem:[#allocation1 + $0x3] ss:$9 sm:$0xff] %v10727_v43  ;;  %v4194_v31 = vpop.f32.mrf.mxu1  ;;  %v3662_v46 = vadd.f32 %v3602_v0, %v3280_v36  ;;  %v10740_v0 = vld [vmem:[#allocation161_spill] sm:$0xff] }
 0x98d   : > { %v4559_v49 = vpop.f32.mrf.mxu2  ;;  %4502 = vst [vmem:[#allocation1 + $0x4] ss:$9 sm:$0xff] %v8661_v39 }
 0x98e   : > { %v4622_v14 = vadd.f32 %v4559_v49, %v4244_v57  ;;  %4503 = vst [vmem:[#allocation1 + $0x5] ss:$9 sm:$0xff] %v10728_v23  ;;  %v3937_v20 = vadd.f32 %v3877_v62, %v3662_v46  ;;  %v3887_v24 = vpop.f32.mrf.mxu0  ;;  %v10735_v57 = vld [vmem:[#allocation288_spill] sm:$0xff]  ;;  %v10745_v46 = vld [vmem:[#allocation117_spill] sm:$0xff] }
 0x98f   : > { %4504 = vst [vmem:[#allocation1 + $0x6] ss:$9 sm:$0xff] %v10729_v40  ;;  %v3610_v51 = vpop.f32.mrf.mxu3  ;;  %v10743_v40 = vld [vmem:[#allocation94_spill] sm:$0xff] }
 0x990   : > { %4505 = vst [vmem:[#allocation1 + $0x7] ss:$9 sm:$0xff] %v10732_v44  ;;  %4647 = vxpose.xlu0.b32.cont [2/16] (narrow) %v4622_v14, 8  ;;  %v4246_v38 = vadd.f32 %v4186_v42, %v3937_v20  ;;  %v10742_v42 = vld [vmem:[#allocation101_spill] sm:$0xff] }
 0x991   : > { %v3282_v52 = vadd.f32 %v10743_v40, %v10742_v42 }
 0x992   : > { %5048 = vmatmul.msk.bf16.gmra.mxu2 %vm10733_vm15, %v4497_v59  ;;  %5005 = vmatmul.msk.bf16.gmra.mxu3 %vm10736_vm5, %v10735_v57  ;;  %v10741_v59 = vld [vmem:[#allocation84_spill] sm:$0xff] }
 0x993   : > { %5038 = vmatmul.msk.bf16.gmra.mxu1 %vm10739_vm6, %v10738_v7  ;;  %v3663_v43 = vadd.f32 %v3605_v56, %v10741_v59  ;;  %v10747_v57 = vld [vmem:[#allocation132_spill] sm:$0xff] }
 0x994   : > { %v4196_v48 = vpop.f32.mrf.mxu1 }
 0x995   : > { %v4562_v39 = vpop.f32.mrf.mxu2  ;;  %v3938_v23 = vadd.f32 %v3880_v27, %v3663_v43 }
 0x996   : > { %v4623_v9 = vadd.f32 %v4562_v39, %v4245_v18  ;;  %v3890_v41 = vpop.f32.mrf.mxu0  ;;  %v3665_v39 = vadd.f32 %v3610_v51, %v10745_v46 }
 0x997   : > { %v4506_v33 = vld [vmem:[#allocation1] sm:$0xff]  ;;  %v3612_v49 = vpop.f32.mrf.mxu3 }
 0x998   : > { %4648 = vxpose.xlu0.b32.cont [3/16] (narrow) %v4623_v9, 8  ;;  %4507 = vst [vmem:[#allocation1] ss:$9 sm:$0xff] %v10734_v30  ;;  %v10746_v30 = vld [vmem:[#allocation135_spill] sm:$0xff] }
 0x999   : > { %4508 = vst [vmem:[#allocation1 + $0x1] ss:$9 sm:$0xff] %v10737_v21 }
 0x99a   : > { %4509 = vst [vmem:[#allocation1 + $0x2] ss:$9 sm:$0xff] %v10740_v0 }
 0x99b   : > { %4510 = vst [vmem:[#allocation1 + $0x3] ss:$9 sm:$0xff] %v8685_v10  ;;  %v4247_v10 = vadd.f32 %v8885_v32, %v3938_v23 }
 0x99c   : > { %4511 = vst [vmem:[#allocation1 + $0x4] ss:$9 sm:$0xff] %v8687_v53  ;;  %v4199_v56 = vpop.f32.mrf.mxu1  ;;  %v3664_v53 = vadd.f32 %v3607_v28, %v3282_v52  ;;  %v3940_v28 = vadd.f32 %v3885_v1, %v3665_v39 }
 0x99d   : > { %v4564_v62 = vpop.f32.mrf.mxu2  ;;  %4512 = vst [vmem:[#allocation1 + $0x5] ss:$9 sm:$0xff] %v8689_v34 }
 0x99e   : > { %v4624_v14 = vadd.f32 %v4564_v62, %v4246_v38  ;;  %4513 = vst [vmem:[#allocation1 + $0x6] ss:$9 sm:$0xff] %v8677_v12  ;;  %v3939_v44 = vadd.f32 %v3882_v2, %v3664_v53  ;;  %v3892_v12 = vpop.f32.mrf.mxu0  ;;  %v3284_v2 = vadd.f32 %v10747_v57, %v10746_v30  ;;  %v10749_v62 = vld [vmem:[#allocation141_spill] sm:$0xff]  ;;  %v10750_v53 = vld [vmem:[#allocation154_spill] sm:$0xff] }
 0x99f   : > { %4514 = vst [vmem:[#allocation1 + $0x7] ss:$9 sm:$0xff] %v8679_v15  ;;  %v3615_v34 = vpop.f32.mrf.mxu3 }
 0x9a0   : > { %4649 = vxpose.xlu0.b32.cont [4/16] (narrow) %v4624_v14, 8  ;;  %v4248_v27 = vadd.f32 %v8892_v8, %v3939_v44  ;;  %v3666_v7 = vadd.f32 %v3612_v49, %v3284_v2  ;;  %v3667_v1 = vadd.f32 %v3615_v34, %v10749_v62  ;;  %v10753_v2 = vld [vmem:[#allocation174_spill] sm:$0xff] }
 0x9a2   : > { %5049 = vmatmul.msk.bf16.gmra.mxu2 %vm10744_vm7, %v4506_v33  ;;  %v3941_v8 = vadd.f32 %v3887_v24, %v3666_v7  ;;  %v3942_v40 = vadd.f32 %v3890_v41, %v3667_v1 }
 0x9a4   : > { %v4201_v15 = vpop.f32.mrf.mxu1  ;;  %v4250_v43 = vadd.f32 %v4196_v48, %v3941_v8  ;;  %v4251_v24 = vadd.f32 %v4199_v56, %v3942_v40 }
 0x9a5   : > { %v4567_v54 = vpop.f32.mrf.mxu2 }
 0x9a6   : > { %v4625_v36 = vadd.f32 %v4567_v54, %v4247_v10  ;;  %v4515_v18 = vld [vmem:[#allocation1] sm:$0xff]  ;;  %v3895_v33 = vpop.f32.mrf.mxu0  ;;  %v10751_v54 = vld [vmem:[#allocation156_spill] sm:$0xff] }
 0x9a7   : > { %4516 = vst [vmem:[#allocation1] ss:$9 sm:$0xff] %v8681_v47  ;;  %v3617_v20 = vpop.f32.mrf.mxu3  ;;  %v4249_v47 = vadd.f32 %v4194_v31, %v3940_v28  ;;  %v3286_v31 = vadd.f32 %v10751_v54, %v10750_v53 }
 0x9a8   : > { %4650 = vxpose.xlu0.b32.cont [5/16] (narrow) %v4625_v36, 8  ;;  %4517 = vst [vmem:[#allocation1 + $0x1] ss:$9 sm:$0xff] %v8683_v19 }
 0x9a9   : > { %v3668_v36 = vadd.f32 %v3617_v20, %v3286_v31 }
 0x9ac   : > { %v4204_v21 = vpop.f32.mrf.mxu1 }
 0x9ad   : > { %v4569_v9 = vpop.f32.mrf.mxu2 }
 0x9ae   : > { %v4626_v32 = vadd.f32 %v4569_v9, %v4248_v27  ;;  %v3897_v59 = vpop.f32.mrf.mxu0  ;;  %v3943_v27 = vadd.f32 %v3892_v12, %v3668_v36 }
 0x9af   : > { %v3620_v38 = vpop.f32.mrf.mxu3  ;;  %v4518_v52 = vld [vmem:[#allocation1] sm:$0xff] }
 0x9b0   : > { %4651 = vxpose.xlu0.b32.cont [6/16] (narrow) %v4626_v32, 8  ;;  %v4252_v39 = vadd.f32 %v4201_v15, %v3943_v27  ;;  %v3669_v41 = vadd.f32 %v3620_v38, %v8672_v13 }
 0x9b2   : > { %5050 = vmatmul.msk.bf16.gmra.mxu2 %vm10748_vm8, %v4515_v18  ;;  %v3944_v30 = vadd.f32 %v3895_v33, %v3669_v41 }
 0x9b4   : > { %v4206_v51 = vpop.f32.mrf.mxu1  ;;  %v4253_v20 = vadd.f32 %v4204_v21, %v3944_v30 }
 0x9b5   : > { %v4572_v19 = vpop.f32.mrf.mxu2 }
 0x9b6   : > { %v4627_v0 = vadd.f32 %v4572_v19, %v4249_v47  ;;  %v3900_v10 = vpop.f32.mrf.mxu0  ;;  %v3288_v47 = vadd.f32 %v10753_v2, %v8691_v25  ;;  %v3290_v25 = vadd.f32 %v8710_v16, %v8715_v37  ;;  %v3292_v16 = vadd.f32 %v8733_v3, %v8739_v29 }
 0x9b7   : > { %v3622_v23 = vpop.f32.mrf.mxu3  ;;  %v3294_v3 = vadd.f32 %v8756_v17, %v8763_v50  ;;  %v3296_v17 = vadd.f32 %v8779_v5, %v8787_v26 }
 0x9b8   : > { %4652 = vxpose.xlu0.b32.cont [7/16] (narrow) %v4627_v0, 8  ;;  %v3670_v7 = vadd.f32 %v3622_v23, %v3288_v47 }
 0x9ba   : > { %v3945_v8 = vadd.f32 %v3897_v59, %v3670_v7 }
 0x9bc   : > { %v4209_v49 = vpop.f32.mrf.mxu1  ;;  %v4254_v13 = vadd.f32 %v4206_v51, %v3945_v8 }
 0x9bd   : > { %v4574_v14 = vpop.f32.mrf.mxu2 }
 0x9be   : > { %v4628_v42 = vadd.f32 %v4574_v14, %v4250_v43  ;;  %v3902_v34 = vpop.f32.mrf.mxu0 }
 0x9bf   : > { %v3625_v18 = vpop.f32.mrf.mxu3 }
 0x9c0   : > { %4653 = vxpose.xlu0.b32.cont [8/16] (narrow) %v4628_v42, 8  ;;  %v3671_v38 = vadd.f32 %v3625_v18, %v8708_v60 }
 0x9c2   : > { %5051 = vmatmul.msk.bf16.gmra.mxu2 %vm10752_vm10, %v4518_v52  ;;  %v3946_v14 = vadd.f32 %v3900_v10, %v3671_v38 }
 0x9c4   : > { %v4211_v46 = vpop.f32.mrf.mxu1  ;;  %v4255_v23 = vadd.f32 %v4209_v49, %v3946_v14 }
 0x9c5   : > { %v4577_v44 = vpop.f32.mrf.mxu2 }
 0x9c6   : > { %v4629_v48 = vadd.f32 %v4577_v44, %v4251_v24  ;;  %v3905_v57 = vpop.f32.mrf.mxu0 }
 0x9c7   : > { %v3627_v32 = vpop.f32.mrf.mxu3 }
 0x9c8   : > { %4654 = vxpose.xlu0.b32.cont [9/16] (narrow) %v4629_v48, 8  ;;  %v3672_v40 = vadd.f32 %v3627_v32, %v3290_v25 }
 0x9ca   : > { %v3947_v54 = vadd.f32 %v3902_v34, %v3672_v40 }
 0x9cc   : > { %v4214_v56 = vpop.f32.mrf.mxu1  ;;  %v4256_v60 = vadd.f32 %v4211_v46, %v3947_v54 }
 0x9cd   : > { %v4579_v9 = vpop.f32.mrf.mxu2 }
 0x9ce   : > { %v4630_v28 = vadd.f32 %v4579_v9, %v4252_v39  ;;  %v3907_v43 = vpop.f32.mrf.mxu0 }
 0x9cf   : > { %v3630_v12 = vpop.f32.mrf.mxu3 }
 0x9d0   : > { %4655 = vxpose.xlu0.b32.cont [10/16] (narrow) %v4630_v28, 8  ;;  %v3673_v24 = vadd.f32 %v3630_v12, %v8731_v61 }
 0x9d2   : > { %v3948_v18 = vadd.f32 %v3905_v57, %v3673_v24  ;;  %v3298_v24 = vadd.f32 %v8802_v22, %v8811_v63 }
 0x9d4   : > { %v4216_v15 = vpop.f32.mrf.mxu1  ;;  %v4257_v49 = vadd.f32 %v4214_v56, %v3948_v18 }
 0x9d5   : > { %v4582_v19 = vpop.f32.mrf.mxu2 }
 0x9d6   : > { %v4631_v0 = vadd.f32 %v4582_v19, %v4253_v20  ;;  %v3910_v42 = vpop.f32.mrf.mxu0 }
 0x9d7   : > { %v3632_v33 = vpop.f32.mrf.mxu3 }
 0x9d8   : > { %4656 = vxpose.xlu0.b32.cont [11/16] (narrow) %v4631_v0, 8  ;;  %v3674_v27 = vadd.f32 %v3632_v33, %v3292_v16 }
 0x9da   : > { %v3949_v9 = vadd.f32 %v3907_v43, %v3674_v27 }
 0x9dc   : > { %v4219_v21 = vpop.f32.mrf.mxu1  ;;  %v4258_v61 = vadd.f32 %v4216_v15, %v3949_v9 }
 0x9dd   : > { %v4584_v62 = vpop.f32.mrf.mxu2 }
 0x9de   : > { %v4632_v1 = vadd.f32 %v4584_v62, %v4254_v13  ;;  %v3912_v31 = vpop.f32.mrf.mxu0 }
 0x9df   : > { %v3635_v59 = vpop.f32.mrf.mxu3 }
 0x9e0   : > { %4657 = vxpose.xlu0.b32.cont [12/16] (narrow) %v4632_v1, 8  ;;  %v3675_v28 = vadd.f32 %v3635_v59, %v8754_v58 }
 0x9e2   : > { %v3950_v47 = vadd.f32 %v3910_v42, %v3675_v28 }
 0x9e4   : > { %v4221_v51 = vpop.f32.mrf.mxu1  ;;  %v4259_v56 = vadd.f32 %v4219_v21, %v3950_v47 }
 0x9e5   : > { %v4587_v52 = vpop.f32.mrf.mxu2 }
 0x9e6   : > { %v4633_v53 = vadd.f32 %v4587_v52, %v4255_v23  ;;  %v3915_v48 = vpop.f32.mrf.mxu0 }
 0x9e7   : > { %v3637_v10 = vpop.f32.mrf.mxu3 }
 0x9e8   : > { %4658 = vxpose.xlu0.b32.cont [13/16] (narrow) %v4633_v53, 8  ;;  %v3676_v7 = vadd.f32 %v3637_v10, %v3294_v3 }
 0x9ea   : > { %v3951_v8 = vadd.f32 %v3912_v31, %v3676_v7 }
 0x9ec   : > { %v4224_v37 = vpop.f32.mrf.mxu1  ;;  %v4260_v58 = vadd.f32 %v4221_v51, %v3951_v8 }
 0x9ed   : > { %v4589_v36 = vpop.f32.mrf.mxu2 }
 0x9ee   : > { %v4634_v44 = vadd.f32 %v4589_v36, %v4256_v60  ;;  %v3917_v32 = vpop.f32.mrf.mxu0 }
 0x9ef   : > { %v3640_v34 = vpop.f32.mrf.mxu3 }
 0x9f0   : > { %4659 = vxpose.xlu0.b32.cont [14/16] (narrow) %v4634_v44, 8  ;;  %v3677_v13 = vadd.f32 %v3640_v34, %v8777_v55 }
 0x9f2   : > { %v3952_v1 = vadd.f32 %v3915_v48, %v3677_v13 }
 0x9f4   : > { %v4226_v46 = vpop.f32.mrf.mxu1  ;;  %v4261_v42 = vadd.f32 %v4224_v37, %v3952_v1 }
 0x9f5   : > { %v4592_v39 = vpop.f32.mrf.mxu2 }
 0x9f6   : > { %v4635_v41 = vadd.f32 %v4592_v39, %v4257_v49  ;;  %v3920_v20 = vpop.f32.mrf.mxu0 }
 0x9f7   : > { %v3642_v57 = vpop.f32.mrf.mxu3 }
 0x9f8   : > { %4660 = vxpose.xlu0.b32.cont [15/16] (narrow) %v4635_v41, 8  ;;  %v3678_v25 = vadd.f32 %v3642_v57, %v3296_v17 }
 0x9fa   : > { %v3953_v52 = vadd.f32 %v3917_v32, %v3678_v25  ;;  %v3300_v32 = vadd.f32 %v8826_v11, %v8835_v6 }
 0x9fc   : > { %v4229_v29 = vpop.f32.mrf.mxu1  ;;  %v4262_v55 = vadd.f32 %v4226_v46, %v3953_v52 }
 0x9fd   : > { %v4594_v30 = vpop.f32.mrf.mxu2 }
 0x9fe   : > { %v4636_v2 = vadd.f32 %v4594_v30, %v4258_v61  ;;  %v3922_v43 = vpop.f32.mrf.mxu0 }
 0x9ff   : > { %v3645_v12 = vpop.f32.mrf.mxu3 }
 0xa00   : > { %4661 = vxpose.xlu0.b32.end [16/16] (narrow) %v4636_v2, 8  ;;  %v3679_v54 = vadd.f32 %v3645_v12, %v8800_v45 }
 0xa02   : > { %v3954_v5 = vadd.f32 %v3920_v20, %v3679_v54 }
 0xa04   : > { %v4231_v15 = vpop.f32.mrf.mxu1  ;;  %v4263_v10 = vadd.f32 %v4229_v29, %v3954_v5 }
 0xa05   : > { %v4597_v19 = vpop.f32.mrf.mxu2 }
 0xa06   : > { %v4637_v0 = vadd.f32 %v4597_v19, %v4259_v56  ;;  %v3925_v14 = vpop.f32.mrf.mxu0 }
 0xa07   : > { %v3647_v62 = vpop.f32.mrf.mxu3 }
 0xa08   : > { %4678 = vxpose.xlu1.b32.start [1/9] (short) (narrow) %v4637_v0, 8  ;;  %v3680_v44 = vadd.f32 %v3647_v62, %v3298_v24 }
 0xa0a   : > { %v3955_v37 = vadd.f32 %v3922_v43, %v3680_v44 }
 0xa0c   : > { %v4234_v50 = vpop.f32.mrf.mxu1  ;;  %v4264_v27 = vadd.f32 %v4231_v15, %v3955_v37 }
 0xa0d   : > { %v4599_v38 = vpop.f32.mrf.mxu2 }
 0xa0e   : > { %v4638_v33 = vadd.f32 %v4599_v38, %v4260_v58  ;;  %v3927_v59 = vpop.f32.mrf.mxu0 }
 0xa0f   : > { %v3650_v23 = vpop.f32.mrf.mxu3 }
 0xa10   : > { %4679 = vxpose.xlu1.b32.cont [2/9] (short) (narrow) %v4638_v33, 8  ;;  %v3681_v39 = vadd.f32 %v3650_v23, %v8823_v4 }
 0xa12   : > { %v3956_v63 = vadd.f32 %v3925_v14, %v3681_v39 }
 0xa14   : > { %v4236_v53 = vpop.f32.mrf.mxu1  ;;  %v4265_v46 = vadd.f32 %v4234_v50, %v3956_v63 }
 0xa15   : > { %v4602_v21 = vpop.f32.mrf.mxu2 }
 0xa16   : > { %v4639_v40 = vadd.f32 %v4602_v21, %v4261_v42  ;;  %v3930_v26 = vpop.f32.mrf.mxu0 }
 0xa17   : > { %v3652_v51 = vpop.f32.mrf.mxu3 }
 0xa18   : > { %4680 = vxpose.xlu1.b32.cont [3/9] (short) (narrow) %v4639_v40, 8  ;;  %v3682_v61 = vadd.f32 %v3652_v51, %v3300_v32 }
 0xa1a   : > { %v3957_v57 = vadd.f32 %v3927_v59, %v3682_v61 }
 0xa1c   : > { %v4239_v36 = vpop.f32.mrf.mxu1  ;;  %v4266_v2 = vadd.f32 %v4236_v53, %v3957_v57 }
 0xa1d   : > { %v4604_v31 = vpop.f32.mrf.mxu2 }
 0xa1e   : > { %v4640_v60 = vadd.f32 %v4604_v31, %v4262_v55  ;;  %v3932_v49 = vpop.f32.mrf.mxu0 }
 0xa1f   : > { %v3655_v48 = vpop.f32.mrf.mxu3 }
 0xa20   : > { %4681 = vxpose.xlu1.b32.cont [4/9] (short) (narrow) %v4640_v60, 8  ;;  %v3683_v4 = vadd.f32 %v3655_v48, %v8847_v35 }
 0xa22   : > { %v3958_v3 = vadd.f32 %v3930_v26, %v3683_v4 }
 0xa24   : > { %v4241_v45 = vpop.f32.mrf.mxu1  ;;  %v4267_v29 = vadd.f32 %v4239_v36, %v3958_v3 }
 0xa25   : > { %v4607_v18 = vpop.f32.mrf.mxu2 }
 0xa26   : > { %v4641_v16 = vadd.f32 %v4607_v18, %v4263_v10 }
 0xa27   : > { %v3657_v41 = vpop.f32.mrf.mxu3 }
 0xa28   : > { %4682 = vxpose.xlu1.b32.cont [5/9] (short) (narrow) %v4641_v16, 8 }
 0xa2c   : > { %v4662_v9 = vpop.trf.xlu0 }
 0xa2d   : > { %v4609_v34 = vpop.f32.mrf.mxu2  ;;  %4710 = vst [vmem:[%s231_s9] sm:$0xff] %v4662_v9 }
 0xa2e   : > { %v4642_v22 = vadd.f32 %v4609_v34, %v4264_v27 }
 0xa30   : > { %4683 = vxpose.xlu1.b32.cont [6/9] (short) (narrow) %v4642_v22, 8 }
 0xa35   : > { %v4612_v28 = vpop.f32.mrf.mxu2 }
 0xa36   : > { %v4643_v30 = vadd.f32 %v4612_v28, %v4265_v46 }
 0xa38   : > { %4684 = vxpose.xlu1.b32.cont [7/9] (short) (narrow) %v4643_v30, 8 }
 0xa3d   : > { %v4614_v47 = vpop.f32.mrf.mxu2 }
 0xa3e   : > { %v4644_v20 = vadd.f32 %v4614_v47, %v4266_v2 }
 0xa40   : > { %4685 = vxpose.xlu1.b32.cont [8/9] (short) (narrow) %v4644_v20, 8 }
 0xa45   : > { %v4617_v56 = vpop.f32.mrf.mxu2 }
 0xa46   : > { %v4645_v7 = vadd.f32 %v4617_v56, %v4267_v29 }
 0xa48   : > { %4686 = vxpose.xlu1.b32.end [9/9] (short) (narrow) %v4645_v7, 8 }
 0xa4d   : > { %v4619_v11 = vpop.f32.mrf.mxu2 }
 0xaac   : > { %v4694_v6 = vpop.trf.xlu1 }
 0xaad   : > { %4712 = vst.msk [vmem:[%s231_s9 + $0x8] sm:$0xff] %vm4711_vm1, %v4694_v6 }
 0xaae   : > { %5201 = shalt.err (!%p5198_p8)
}
 0xaaf   : > { %5084 = dma.vmem_to_hbm [thread:$0]  (%p5314_p5), %s4728_s14, 256, %s4730_s15, %s4714_s16  }
 0xab0 PF: > { %p5096_p9 = scmp.ge.s32.totalorder %s5240_s21, 2  ;;  %s4741_s7 = sand.u32 1, %s5228_s18  }
 0xab1   : > { %s4742_s8 = scalar_lea.sflag [#allocation3], %s4741_s7 }
 0xab2   : > { %p5091_p10 = pnand %p5096_p9, %p5318_p6 }
 0xab4   : > { %p5092_p11 = pneg %p5091_p10 }
 0xab6   : > { %5223 = dma.done.wait (%p5092_p11), %s4742_s8, 256  }
 0xab7   : > { %5225 = vsyncadd (%p5092_p11), %s4742_s8, 4294967040  ;;  %p16_p12 = scmp.ge.s32.totalorder %s5301_s24, 4   ;;  %s10754_s18 = smov %s5232_s19 }
 0xab8   : > { %s10755_s19 = smov %s5236_s20  ;;  %s10756_s20 = smov %s5312_s27 }
 0xab9   : > { %s10757_s21 = smov %s5301_s24  ;;  %18 = sbr.rel (!%p16_p12) target bundleno = 4 (0x4), region = 165 }
 0xabe   :  { %4748 = vsyncpa [#allocation3], 1 }
 0xabf   :  { %4750 = vsyncpa [#allocation3 + $0x1], 1 }
 0xac0   :  { %4751 = vsyncpa [#allocation4], 1 }
 0xac1   :  { %4753 = vsyncpa [#allocation4 + $0x1], 1 }

</bundles_post_ra>
